<compile_context>
chip_gen: v5e
topology: v5e:2x2
jax: 0.10.0
libtpu: 0.0.40
codegen_flags: <defaults>
</compile_context>

<pallas_src>
import functools
import math

import jax
import jax.numpy as jnp
import numpy as np
from jax.experimental import pallas as pl
from jax.experimental.pallas import tpu as pltpu

C_IN = 430                      # conv / gate channel count
C_PAD = 512                     # channel count padded to a lane-dense multiple of 128
CONV_K = 5                      # conv kernel size == stride
N_WIN = 5                       # conv output length for L_in = 25
CK_PAD = 2176                   # conv contraction dim 430*5=2150 padded to 17*128
OUT_PAD = 128                   # folded-tail output (2) padded to one lane group
BATCH_TILE_MAX = 128            # rows of the batch processed per grid step
VMEM_LIMIT = 32 * 1024 * 1024   # safe scoped-VMEM limit on v5e / v6e / v7x

_PARAM_ORDER = ("conv_w", "conv_b", "fc1_w", "fc1_b", "fc2_w", "fc2_b",
                "tail_w", "tail_b")


def _round_up(x, m):
    return ((x + m - 1) // m) * m


# ----------------------- shared math (kernel + reference) --------------------
# Operands are indexed with [...] / static slices so the SAME function can be
# traced with Pallas Refs (inside the kernel) or plain jnp arrays (reference).

def _forward_math(xw2, cw, cb, w1, b1, w2, b2, wt, bt, *, num_windows,
                  conv_scratch=None):
    """xw2: (L*BT, CK_PAD) bf16 windowed input (window-major). Returns (BT, OUT_PAD) f32."""
    f32, bf16 = jnp.float32, jnp.bfloat16
    L = num_windows
    Cp = cw.shape[-1]
    BT = xw2.shape[0] // L

    # Conv1d(430,430,k=5,s=5): all L windows in ONE MXU pass (conv_w streamed once).
    conv = jnp.dot(xw2, cw[...], preferred_element_type=f32) + cb[...]      # (L*BT, Cp)
    if conv_scratch is not None:
        conv_scratch[...] = conv          # keep all windows live in VMEM scratch
        conv = conv_scratch

    # Channel gate: g = sigmoid(fc2(relu(fc1(mean over conv length)))).
    mX = conv[0:BT, :]
    for l in range(1, L):
        mX = mX + conv[l * BT:(l + 1) * BT, :]
    mX = mX * (1.0 / L)                                                      # (BT, Cp)
    h = jnp.maximum(jnp.dot(mX.astype(bf16), w1[...],
                            preferred_element_type=f32) + b1[...], 0.0)
    g = jax.nn.sigmoid(jnp.dot(h.astype(bf16), w2[...],
                               preferred_element_type=f32) + b2[...])        # (BT, Cp)

    # Folded linear tail: fc3+BN3, fc4+BN4, fc5+BN5, fc6, fc7, fc8 pre-composed
    # into wt/bt at pack time (eval mode: Dropout = identity, BN = scale).
    # TODO(synk): training-mode Dropout masks / BatchNorm batch statistics are not
    # modeled; only the eval-mode (folded) forward is implemented.
    x = bt[...]                                                              # (1, OUT_PAD)
    for l in range(L):
        gated = (conv[l * BT:(l + 1) * BT, :] * g).astype(bf16)             # (BT, Cp)
        x = x + jnp.dot(gated, wt[l * Cp:(l + 1) * Cp, :],
                        preferred_element_type=f32)
    return x                                                                 # (BT, OUT_PAD)


def _fused_kernel(xw_ref, cw_ref, cb_ref, w1_ref, b1_ref, w2_ref, b2_ref,
                  wt_ref, bt_ref, out_ref, conv_sc, *, num_windows):
    out_ref[...] = _forward_math(
        xw_ref[0], cw_ref, cb_ref, w1_ref, b1_ref, w2_ref, b2_ref,
        wt_ref, bt_ref, num_windows=num_windows,
        conv_scratch=conv_sc).astype(out_ref.dtype)


# ------------------------------- forward -------------------------------------

def _window_input(X, bt_rows):
    """(B, 430, 25) f32 -> (num_tiles, L*BT, CK_PAD) bf16, window-major per tile."""
    B, C, Lin = X.shape
    K = CONV_K
    L = Lin // K
    CK = C * K
    B_pad = _round_up(B, bt_rows)
    nt = B_pad // bt_rows
    # For window l, conv consumes X[:, c, l*K + k] in (c, k) order.
    xw = X.reshape(B, C, L, K).transpose(2, 0, 1, 3).reshape(L, B, CK)
    xw = jnp.pad(xw, ((0, 0), (0, B_pad - B), (0, CK_PAD - CK)))
    xw = xw.reshape(L, nt, bt_rows, CK_PAD).transpose(1, 0, 2, 3)
    xw = xw.reshape(nt, L * bt_rows, CK_PAD)
    return xw.astype(jnp.bfloat16), L, nt


def win_bin_vec_forward(packed, X):
    """X: (B, 430, 25) NCL float32  ->  (B, 2) float32 (eval-mode forward)."""
    B, C, Lin = X.shape
    assert C == C_IN and Lin == CONV_K * N_WIN, "fc3 requires 430 channels x 25 length"

    BT = min(_round_up(B, 8), BATCH_TILE_MAX)
    xw, L, nt = _window_input(X, BT)

    weights = tuple(packed[k] for k in _PARAM_ORDER)
    xw_spec = pl.BlockSpec((1, L * BT, CK_PAD), lambda i: (i, 0, 0))
    # Constant index_map: every weight is DMA'd HBM->VMEM once and stays resident
    # across all batch tiles.
    w_specs = [pl.BlockSpec(w.shape, lambda i: (0, 0)) for w in weights]

    out = pl.pallas_call(
        functools.partial(_fused_kernel, num_windows=L),
        out_shape=jax.ShapeDtypeStruct((nt * BT, OUT_PAD), jnp.float32),
        grid_spec=pltpu.PrefetchScalarGridSpec(
            num_scalar_prefetch=0,
            grid=(nt,),
            in_specs=[xw_spec] + w_specs,
            out_specs=pl.BlockSpec((BT, OUT_PAD), lambda i: (i, 0)),
            scratch_shapes=[pltpu.VMEM((L * BT, C_PAD), jnp.float32)]),
        compiler_params=pltpu.CompilerParams(
            dimension_semantics=("parallel",),
            vmem_limit_bytes=VMEM_LIMIT),
    )(xw, *weights)
    return out[:B, :2]


# ------------------------------ parameters ------------------------------------

def init_raw_params(key):
    """Deterministic PyTorch-default-style init (U(-1/sqrt(fan_in), ...))."""
    def linear(k, out_f, in_f):
        k1, k2 = jax.random.split(k)
        bound = 1.0 / math.sqrt(in_f)
        w = jax.random.uniform(k1, (out_f, in_f), jnp.float32, -bound, bound)
        b = jax.random.uniform(k2, (out_f,), jnp.float32, -bound, bound)
        return w, b

    keys = jax.random.split(key, 9)
    p = {}
    p["fc1_w"], p["fc1_b"] = linear(keys[0], 256, 430)
    p["fc2_w"], p["fc2_b"] = linear(keys[1], 430, 256)
    kc1, kc2 = jax.random.split(keys[2])
    bound = 1.0 / math.sqrt(430 * 5)
    p["conv_w"] = jax.random.uniform(kc1, (430, 430, 5), jnp.float32, -bound, bound)
    p["conv_b"] = jax.random.uniform(kc2, (430,), jnp.float32, -bound, bound)
    p["fc3_w"], p["fc3_b"] = linear(keys[3], 1024, 2150)
    p["fc4_w"], p["fc4_b"] = linear(keys[4], 512, 1024)
    p["fc5_w"], p["fc5_b"] = linear(keys[5], 256, 512)
    p["fc6_w"], p["fc6_b"] = linear(keys[6], 64, 256)
    p["fc7_w"], p["fc7_b"] = linear(keys[7], 32, 64)
    p["fc8_w"], p["fc8_b"] = linear(keys[8], 2, 32)
    return p


def pack_params(raw):
    """One-time transpose / BN-fold / tail-fold / zero-pad / bf16-cast of all weights."""
    C, Cp, K, L = C_IN, C_PAD, CONV_K, N_WIN
    CK = C * K
    eps = 1e-5
    s = 1.0 / jnp.sqrt(jnp.float32(1.0 + eps))      # eval-mode BN (mean=0, var=1)
    hi = jax.lax.Precision.HIGHEST

    p = {}
    # Conv1d weight (c_out, c_in, k) -> rows (c_in*K + k) padded 2150->2176,
    # cols c_out padded 430->512, bf16.
    cw = jnp.transpose(raw["conv_w"], (1, 2, 0)).reshape(CK, C)
    cw = jnp.pad(cw, ((0, CK_PAD - CK), (0, Cp - C)))
    p["conv_w"] = cw.astype(jnp.bfloat16)
    p["conv_b"] = jnp.pad(raw["conv_b"], (0, Cp - C)).reshape(1, Cp)

    # Gate fc1/fc2 in bf16 (f32 accumulation in-kernel), channel dim padded to 512.
    # Padded gate channels see g = sigmoid(0) = 0.5, which is benign only because
    # the padded conv columns (and conv bias) are exactly zero.
    p["fc1_w"] = jnp.pad(raw["fc1_w"].T, ((0, Cp - C), (0, 0))).astype(jnp.bfloat16)
    p["fc1_b"] = raw["fc1_b"].reshape(1, 256)
    p["fc2_w"] = jnp.pad(raw["fc2_w"].T, ((0, 0), (0, Cp - C))).astype(jnp.bfloat16)
    p["fc2_b"] = jnp.pad(raw["fc2_b"], (0, Cp - C)).reshape(1, Cp)

    # Fold the purely linear eval-mode tail fc3+BN3 -> fc4+BN4 -> fc5+BN5 -> fc6
    # -> fc7 -> fc8 into one (2150, 2) matrix + (2,) bias, in f32 / HIGHEST.
    A = (raw["fc3_w"] * s).T                         # (2150, 1024)
    c = raw["fc3_b"] * s
    for name, scale in (("fc4", s), ("fc5", s), ("fc6", 1.0), ("fc7", 1.0), ("fc8", 1.0)):
        W = (raw[name + "_w"] * scale).T
        b = raw[name + "_b"] * scale
        A = jnp.dot(A, W, precision=hi)
        c = jnp.dot(c, W, precision=hi) + b
    # Reorder rows from PyTorch's channel-major flatten (c*L + l, 430 channels) to
    # the kernel's window-major padded layout (l*Cp + c, 512 channels); pad; bf16.
    A = A.reshape(C, L, 2).transpose(1, 0, 2)        # (L, 430, 2)
    A = jnp.pad(A, ((0, 0), (0, Cp - C), (0, 0)))    # (L, 512, 2)
    p["tail_w"] = jnp.pad(A.reshape(L * Cp, 2),
                          ((0, 0), (0, OUT_PAD - 2))).astype(jnp.bfloat16)
    p["tail_b"] = jnp.pad(c, (0, OUT_PAD - 2)).reshape(1, OUT_PAD)
    return p


# ------------------------ pure-JAX references ---------------------------------

def matched_reference(packed, X):
    """Same packed/bf16/folded weights, same math graph — validates the kernel itself."""
    B = X.shape[0]
    BT = min(_round_up(B, 8), BATCH_TILE_MAX)
    xw, L, nt = _window_input(X, BT)
    vals = [packed[k] for k in _PARAM_ORDER]
    outs = [_forward_math(xw[t], *vals, num_windows=L) for t in range(nt)]
    out = jnp.concatenate(outs, axis=0)
    return out[:B, :2]


def reference_forward(raw, X):
    """Full-f32 PyTorch-semantics reference (eval mode)."""
    B = X.shape[0]
    hi = jax.lax.Precision.HIGHEST
    xw = X.reshape(B, 430, 5, 5)                               # [b, c_in, l, k]
    conv = jnp.einsum("bclk,ock->bol", xw, raw["conv_w"], precision=hi)
    conv = conv + raw["conv_b"][None, :, None]                 # (B, 430, 5)
    mX = jnp.mean(conv, axis=2)
    mX = jax.nn.relu(jnp.dot(mX, raw["fc1_w"].T, precision=hi) + raw["fc1_b"])
    mX = jax.nn.sigmoid(jnp.dot(mX, raw["fc2_w"].T, precision=hi) + raw["fc2_b"])
    x = conv * mX[:, :, None]
    x = x.reshape(B, -1)
    eps = 1e-5
    bn = lambda v: v / jnp.sqrt(1.0 + eps)
    x = bn(jnp.dot(x, raw["fc3_w"].T, precision=hi) + raw["fc3_b"])
    x = bn(jnp.dot(x, raw["fc4_w"].T, precision=hi) + raw["fc4_b"])
    x = bn(jnp.dot(x, raw["fc5_w"].T, precision=hi) + raw["fc5_b"])
    x = jnp.dot(x, raw["fc6_w"].T, precision=hi) + raw["fc6_b"]
    x = jnp.dot(x, raw["fc7_w"].T, precision=hi) + raw["fc7_b"]
    x = jnp.dot(x, raw["fc8_w"].T, precision=hi) + raw["fc8_b"]
    return x


# --------------------------------- main ----------------------------------------

if __name__ == "__main__":
    key = jax.random.PRNGKey(0)
    pkey, xkey = jax.random.split(key)
    raw = init_raw_params(pkey)
    packed = pack_params(raw)

    # Conv1d output length must be 5 (fc3 in_features = 430*5 = 2150) -> L_in = 25.
    X = jax.random.normal(xkey, (2, 430, 25), jnp.float32)

    fwd = jax.jit(win_bin_vec_forward)
    out = jax.block_until_ready(fwd(packed, X))

    # 1) Kernel vs identical-numerics pure-JAX graph (same bf16/folded weights).
    ref_same = matched_reference(packed, X)
    np.testing.assert_allclose(np.asarray(out), np.asarray(ref_same),
                               rtol=5e-3, atol=5e-4)

    # 2) Kernel vs full-f32 PyTorch-semantics reference (bf16-weight tolerance).
    ref_f32 = reference_forward(raw, X)
    np.testing.assert_allclose(np.asarray(out), np.asarray(ref_f32),
                               rtol=2e-2, atol=3e-3)

    print("KERNEL_OK")
</pallas_src>

<mosaic_0001>
module attributes {stable_mosaic.version = 11 : i64} {
  func.func @_fused_kernel(%arg0: i32, %arg1: memref<1x40x2176xbf16, #tpu.memory_space<vmem>>, %arg2: memref<2176x512xbf16, #tpu.memory_space<vmem>>, %arg3: memref<1x512xf32, #tpu.memory_space<vmem>>, %arg4: memref<512x256xbf16, #tpu.memory_space<vmem>>, %arg5: memref<1x256xf32, #tpu.memory_space<vmem>>, %arg6: memref<256x512xbf16, #tpu.memory_space<vmem>>, %arg7: memref<1x512xf32, #tpu.memory_space<vmem>>, %arg8: memref<2560x128xbf16, #tpu.memory_space<vmem>>, %arg9: memref<1x128xf32, #tpu.memory_space<vmem>>, %arg10: memref<8x128xf32, #tpu.memory_space<vmem>>, %arg11: memref<40x512xf32, #tpu.memory_space<vmem>>) attributes {dimension_semantics = [#tpu.dimension_semantics<parallel>], iteration_bounds = array<i64: 1>, scalar_prefetch = 0 : i64, scratch_operands = 1 : i64, tpu.core_type = #tpu.core_type<tc>, window_params = [{transform_indices = @transform_0, window_bounds = array<i64: 1, 40, 2176>}, {pipeline_mode = #tpu.pipeline_mode<synchronous>, transform_indices = @transform_1, window_bounds = array<i64: 2176, 512>}, {pipeline_mode = #tpu.pipeline_mode<synchronous>, transform_indices = @transform_2, window_bounds = array<i64: 1, 512>}, {pipeline_mode = #tpu.pipeline_mode<synchronous>, transform_indices = @transform_3, window_bounds = array<i64: 512, 256>}, {pipeline_mode = #tpu.pipeline_mode<synchronous>, transform_indices = @transform_4, window_bounds = array<i64: 1, 256>}, {pipeline_mode = #tpu.pipeline_mode<synchronous>, transform_indices = @transform_5, window_bounds = array<i64: 256, 512>}, {pipeline_mode = #tpu.pipeline_mode<synchronous>, transform_indices = @transform_6, window_bounds = array<i64: 1, 512>}, {pipeline_mode = #tpu.pipeline_mode<synchronous>, transform_indices = @transform_7, window_bounds = array<i64: 2560, 128>}, {pipeline_mode = #tpu.pipeline_mode<synchronous>, transform_indices = @transform_8, window_bounds = array<i64: 1, 128>}, {transform_indices = @transform_9, window_bounds = array<i64: 8, 128>}]} {
    %c0 = arith.constant 0 : index
    %c0_0 = arith.constant 0 : index
    %c0_1 = arith.constant 0 : index
    %0 = vector.load %arg1[%c0, %c0_0, %c0_1] : memref<1x40x2176xbf16, #tpu.memory_space<vmem>>, vector<1x40x2176xbf16>
    %1 = vector.shape_cast %0 : vector<1x40x2176xbf16> to vector<40x2176xbf16>
    %c0_2 = arith.constant 0 : index
    %c0_3 = arith.constant 0 : index
    %2 = vector.load %arg2[%c0_2, %c0_3] : memref<2176x512xbf16, #tpu.memory_space<vmem>>, vector<2176x512xbf16>
    %cst = arith.constant dense<0.000000e+00> : vector<40x512xf32>
    %3 = tpu.matmul %1, %2, %cst {dimension_numbers = #tpu.dot_dimension_numbers<[1], [0], [0], [1], [0, 0, 1, 1], [], []>} : vector<40x2176xbf16>, vector<2176x512xbf16>, vector<40x512xf32> -> vector<40x512xf32>
    %c0_4 = arith.constant 0 : index
    %c0_5 = arith.constant 0 : index
    %4 = vector.load %arg3[%c0_4, %c0_5] : memref<1x512xf32, #tpu.memory_space<vmem>>, vector<1x512xf32>
    %5 = vector.broadcast %4 : vector<1x512xf32> to vector<40x512xf32>
    %6 = arith.addf %3, %5 : vector<40x512xf32>
    %c0_6 = arith.constant 0 : index
    %c0_7 = arith.constant 0 : index
    %7 = vector.load %arg11[%c0_6, %c0_7] : memref<40x512xf32, #tpu.memory_space<vmem>>, vector<40x512xf32>
    tpu.vector_store %arg11[%c0_6, %c0_7], %6 {strides = array<i32>} : memref<40x512xf32, #tpu.memory_space<vmem>>, vector<40x512xf32>,
    %c0_8 = arith.constant 0 : index
    %c0_9 = arith.constant 0 : index
    %8 = vector.load %arg11[%c0_8, %c0_9] : memref<40x512xf32, #tpu.memory_space<vmem>>, vector<8x512xf32>
    %c8 = arith.constant 8 : index
    %c0_10 = arith.constant 0 : index
    %9 = vector.load %arg11[%c8, %c0_10] : memref<40x512xf32, #tpu.memory_space<vmem>>, vector<8x512xf32>
    %10 = arith.addf %8, %9 : vector<8x512xf32>
    %c16 = arith.constant 16 : index
    %c0_11 = arith.constant 0 : index
    %11 = vector.load %arg11[%c16, %c0_11] : memref<40x512xf32, #tpu.memory_space<vmem>>, vector<8x512xf32>
    %12 = arith.addf %10, %11 : vector<8x512xf32>
    %c24 = arith.constant 24 : index
    %c0_12 = arith.constant 0 : index
    %13 = vector.load %arg11[%c24, %c0_12] : memref<40x512xf32, #tpu.memory_space<vmem>>, vector<8x512xf32>
    %14 = arith.addf %12, %13 : vector<8x512xf32>
    %c32 = arith.constant 32 : index
    %c0_13 = arith.constant 0 : index
    %15 = vector.load %arg11[%c32, %c0_13] : memref<40x512xf32, #tpu.memory_space<vmem>>, vector<8x512xf32>
    %16 = arith.addf %14, %15 : vector<8x512xf32>
    %cst_14 = arith.constant 2.000000e-01 : f32
    %17 = vector.broadcast %cst_14 : f32 to vector<8x512xf32>
    %18 = arith.mulf %16, %17 : vector<8x512xf32>
    %19 = arith.truncf %18 : vector<8x512xf32> to vector<8x512xbf16>
    %c0_15 = arith.constant 0 : index
    %c0_16 = arith.constant 0 : index
    %20 = vector.load %arg4[%c0_15, %c0_16] : memref<512x256xbf16, #tpu.memory_space<vmem>>, vector<512x256xbf16>
    %cst_17 = arith.constant dense<0.000000e+00> : vector<8x256xf32>
    %21 = tpu.matmul %19, %20, %cst_17 {dimension_numbers = #tpu.dot_dimension_numbers<[1], [0], [0], [1], [0, 0, 1, 1], [], []>} : vector<8x512xbf16>, vector<512x256xbf16>, vector<8x256xf32> -> vector<8x256xf32>
    %c0_18 = arith.constant 0 : index
    %c0_19 = arith.constant 0 : index
    %22 = vector.load %arg5[%c0_18, %c0_19] : memref<1x256xf32, #tpu.memory_space<vmem>>, vector<1x256xf32>
    %23 = vector.broadcast %22 : vector<1x256xf32> to vector<8x256xf32>
    %24 = arith.addf %21, %23 : vector<8x256xf32>
    %cst_20 = arith.constant 0.000000e+00 : f32
    %25 = vector.broadcast %cst_20 : f32 to vector<8x256xf32>
    %26 = arith.maximumf %24, %25 : vector<8x256xf32>
    %27 = arith.truncf %26 : vector<8x256xf32> to vector<8x256xbf16>
    %c0_21 = arith.constant 0 : index
    %c0_22 = arith.constant 0 : index
    %28 = vector.load %arg6[%c0_21, %c0_22] : memref<256x512xbf16, #tpu.memory_space<vmem>>, vector<256x512xbf16>
    %cst_23 = arith.constant dense<0.000000e+00> : vector<8x512xf32>
    %29 = tpu.matmul %27, %28, %cst_23 {dimension_numbers = #tpu.dot_dimension_numbers<[1], [0], [0], [1], [0, 0, 1, 1], [], []>} : vector<8x256xbf16>, vector<256x512xbf16>, vector<8x512xf32> -> vector<8x512xf32>
    %c0_24 = arith.constant 0 : index
    %c0_25 = arith.constant 0 : index
    %30 = vector.load %arg7[%c0_24, %c0_25] : memref<1x512xf32, #tpu.memory_space<vmem>>, vector<1x512xf32>
    %31 = vector.broadcast %30 : vector<1x512xf32> to vector<8x512xf32>
    %32 = arith.addf %29, %31 : vector<8x512xf32>
    %33 = arith.negf %32 : vector<8x512xf32>
    %34 = math.exp %33 : vector<8x512xf32>
    %cst_26 = arith.constant 1.000000e+00 : f32
    %35 = vector.broadcast %cst_26 : f32 to vector<8x512xf32>
    %36 = arith.addf %35, %34 : vector<8x512xf32>
    %37 = arith.divf %35, %36 : vector<8x512xf32>
    %c0_27 = arith.constant 0 : index
    %c0_28 = arith.constant 0 : index
    %38 = vector.load %arg9[%c0_27, %c0_28] : memref<1x128xf32, #tpu.memory_space<vmem>>, vector<1x128xf32>
    %c0_29 = arith.constant 0 : index
    %c0_30 = arith.constant 0 : index
    %39 = vector.load %arg11[%c0_29, %c0_30] : memref<40x512xf32, #tpu.memory_space<vmem>>, vector<8x512xf32>
    %40 = arith.mulf %39, %37 : vector<8x512xf32>
    %41 = arith.truncf %40 : vector<8x512xf32> to vector<8x512xbf16>
    %c0_31 = arith.constant 0 : index
    %c0_32 = arith.constant 0 : index
    %42 = vector.load %arg8[%c0_31, %c0_32] : memref<2560x128xbf16, #tpu.memory_space<vmem>>, vector<512x128xbf16>
    %cst_33 = arith.constant dense<0.000000e+00> : vector<8x128xf32>
    %43 = tpu.matmul %41, %42, %cst_33 {dimension_numbers = #tpu.dot_dimension_numbers<[1], [0], [0], [1], [0, 0, 1, 1], [], []>} : vector<8x512xbf16>, vector<512x128xbf16>, vector<8x128xf32> -> vector<8x128xf32>
    %44 = vector.broadcast %38 : vector<1x128xf32> to vector<8x128xf32>
    %45 = arith.addf %44, %43 : vector<8x128xf32>
    %c8_34 = arith.constant 8 : index
    %c0_35 = arith.constant 0 : index
    %46 = vector.load %arg11[%c8_34, %c0_35] : memref<40x512xf32, #tpu.memory_space<vmem>>, vector<8x512xf32>
    %47 = arith.mulf %46, %37 : vector<8x512xf32>
    %48 = arith.truncf %47 : vector<8x512xf32> to vector<8x512xbf16>
    %c512 = arith.constant 512 : index
    %c0_36 = arith.constant 0 : index
    %49 = vector.load %arg8[%c512, %c0_36] : memref<2560x128xbf16, #tpu.memory_space<vmem>>, vector<512x128xbf16>
    %cst_37 = arith.constant dense<0.000000e+00> : vector<8x128xf32>
    %50 = tpu.matmul %48, %49, %cst_37 {dimension_numbers = #tpu.dot_dimension_numbers<[1], [0], [0], [1], [0, 0, 1, 1], [], []>} : vector<8x512xbf16>, vector<512x128xbf16>, vector<8x128xf32> -> vector<8x128xf32>
    %51 = arith.addf %45, %50 : vector<8x128xf32>
    %c16_38 = arith.constant 16 : index
    %c0_39 = arith.constant 0 : index
    %52 = vector.load %arg11[%c16_38, %c0_39] : memref<40x512xf32, #tpu.memory_space<vmem>>, vector<8x512xf32>
    %53 = arith.mulf %52, %37 : vector<8x512xf32>
    %54 = arith.truncf %53 : vector<8x512xf32> to vector<8x512xbf16>
    %c1024 = arith.constant 1024 : index
    %c0_40 = arith.constant 0 : index
    %55 = vector.load %arg8[%c1024, %c0_40] : memref<2560x128xbf16, #tpu.memory_space<vmem>>, vector<512x128xbf16>
    %cst_41 = arith.constant dense<0.000000e+00> : vector<8x128xf32>
    %56 = tpu.matmul %54, %55, %cst_41 {dimension_numbers = #tpu.dot_dimension_numbers<[1], [0], [0], [1], [0, 0, 1, 1], [], []>} : vector<8x512xbf16>, vector<512x128xbf16>, vector<8x128xf32> -> vector<8x128xf32>
    %57 = arith.addf %51, %56 : vector<8x128xf32>
    %c24_42 = arith.constant 24 : index
    %c0_43 = arith.constant 0 : index
    %58 = vector.load %arg11[%c24_42, %c0_43] : memref<40x512xf32, #tpu.memory_space<vmem>>, vector<8x512xf32>
    %59 = arith.mulf %58, %37 : vector<8x512xf32>
    %60 = arith.truncf %59 : vector<8x512xf32> to vector<8x512xbf16>
    %c1536 = arith.constant 1536 : index
    %c0_44 = arith.constant 0 : index
    %61 = vector.load %arg8[%c1536, %c0_44] : memref<2560x128xbf16, #tpu.memory_space<vmem>>, vector<512x128xbf16>
    %cst_45 = arith.constant dense<0.000000e+00> : vector<8x128xf32>
    %62 = tpu.matmul %60, %61, %cst_45 {dimension_numbers = #tpu.dot_dimension_numbers<[1], [0], [0], [1], [0, 0, 1, 1], [], []>} : vector<8x512xbf16>, vector<512x128xbf16>, vector<8x128xf32> -> vector<8x128xf32>
    %63 = arith.addf %57, %62 : vector<8x128xf32>
    %c32_46 = arith.constant 32 : index
    %c0_47 = arith.constant 0 : index
    %64 = vector.load %arg11[%c32_46, %c0_47] : memref<40x512xf32, #tpu.memory_space<vmem>>, vector<8x512xf32>
    %65 = arith.mulf %64, %37 : vector<8x512xf32>
    %66 = arith.truncf %65 : vector<8x512xf32> to vector<8x512xbf16>
    %c2048 = arith.constant 2048 : index
    %c0_48 = arith.constant 0 : index
    %67 = vector.load %arg8[%c2048, %c0_48] : memref<2560x128xbf16, #tpu.memory_space<vmem>>, vector<512x128xbf16>
    %cst_49 = arith.constant dense<0.000000e+00> : vector<8x128xf32>
    %68 = tpu.matmul %66, %67, %cst_49 {dimension_numbers = #tpu.dot_dimension_numbers<[1], [0], [0], [1], [0, 0, 1, 1], [], []>} : vector<8x512xbf16>, vector<512x128xbf16>, vector<8x128xf32> -> vector<8x128xf32>
    %69 = arith.addf %63, %68 : vector<8x128xf32>
    %c0_50 = arith.constant 0 : index
    %c0_51 = arith.constant 0 : index
    %70 = vector.load %arg10[%c0_50, %c0_51] : memref<8x128xf32, #tpu.memory_space<vmem>>, vector<8x128xf32>
    tpu.vector_store %arg10[%c0_50, %c0_51], %69 {strides = array<i32>} : memref<8x128xf32, #tpu.memory_space<vmem>>, vector<8x128xf32>,
    return
  }
  func.func @transform_0(%arg0: i32) -> (i32, i32, i32) {
    %c0_i32 = arith.constant 0 : i32
    %c0_i32_0 = arith.constant 0 : i32
    %c0_i32_1 = arith.constant 0 : i32
    return %arg0, %c0_i32, %c0_i32_0 : i32, i32, i32
  }
  func.func @transform_1(%arg0: i32) -> (i32, i32) {
    %c0_i32 = arith.constant 0 : i32
    %c0_i32_0 = arith.constant 0 : i32
    %c0_i32_1 = arith.constant 0 : i32
    return %c0_i32, %c0_i32_0 : i32, i32
  }
  func.func @transform_2(%arg0: i32) -> (i32, i32) {
    %c0_i32 = arith.constant 0 : i32
    %c0_i32_0 = arith.constant 0 : i32
    %c0_i32_1 = arith.constant 0 : i32
    return %c0_i32, %c0_i32_0 : i32, i32
  }
  func.func @transform_3(%arg0: i32) -> (i32, i32) {
    %c0_i32 = arith.constant 0 : i32
    %c0_i32_0 = arith.constant 0 : i32
    %c0_i32_1 = arith.constant 0 : i32
    return %c0_i32, %c0_i32_0 : i32, i32
  }
  func.func @transform_4(%arg0: i32) -> (i32, i32) {
    %c0_i32 = arith.constant 0 : i32
    %c0_i32_0 = arith.constant 0 : i32
    %c0_i32_1 = arith.constant 0 : i32
    return %c0_i32, %c0_i32_0 : i32, i32
  }
  func.func @transform_5(%arg0: i32) -> (i32, i32) {
    %c0_i32 = arith.constant 0 : i32
    %c0_i32_0 = arith.constant 0 : i32
    %c0_i32_1 = arith.constant 0 : i32
    return %c0_i32, %c0_i32_0 : i32, i32
  }
  func.func @transform_6(%arg0: i32) -> (i32, i32) {
    %c0_i32 = arith.constant 0 : i32
    %c0_i32_0 = arith.constant 0 : i32
    %c0_i32_1 = arith.constant 0 : i32
    return %c0_i32, %c0_i32_0 : i32, i32
  }
  func.func @transform_7(%arg0: i32) -> (i32, i32) {
    %c0_i32 = arith.constant 0 : i32
    %c0_i32_0 = arith.constant 0 : i32
    %c0_i32_1 = arith.constant 0 : i32
    return %c0_i32, %c0_i32_0 : i32, i32
  }
  func.func @transform_8(%arg0: i32) -> (i32, i32) {
    %c0_i32 = arith.constant 0 : i32
    %c0_i32_0 = arith.constant 0 : i32
    %c0_i32_1 = arith.constant 0 : i32
    return %c0_i32, %c0_i32_0 : i32, i32
  }
  func.func @transform_9(%arg0: i32) -> (i32, i32) {
    %c0_i32 = arith.constant 0 : i32
    %c0_i32_0 = arith.constant 0 : i32
    return %arg0, %c0_i32 : i32, i32
  }
}

</mosaic_0001>

<bundles_post_ra>
// kernel: win_bin_vec_forward.1
= control target key start
LH: loop header
LB: loop body
LE: loop exit
PB: predicated region body
PF: predicated region fallthrough
CT: control target
= control target key end

     0   :  { %14 = vsyncpa [#allocation4], 0  ;;  %s17059_s0 = inlined_call_operand.vmem [shape: bf16[1,40,2176], index: 0, kind: input, shape index: {}]   ;;  %s17060_s1 = inlined_call_operand.vmem [shape: bf16[2176,512], index: 1, kind: input, shape index: {}]   ;;  %s17061_s2 = inlined_call_operand.vmem [shape: f32[1,512], index: 2, kind: input, shape index: {}]   ;;  %s17062_s3 = inlined_call_operand.vmem [shape: bf16[512,256], index: 3, kind: input, shape index: {}]   ;;  %s17063_s4 = inlined_call_operand.vmem [shape: f32[1,256], index: 4, kind: input, shape index: {}]   ;;  %s17064_s5 = inlined_call_operand.hbm [shape: bf16[256,512], index: 5, kind: input, shape index: {}]   ;;  %s17065_s6 = inlined_call_operand.vmem [shape: f32[1,512], index: 6, kind: input, shape index: {}]   ;;  %s17066_s7 = inlined_call_operand.hbm [shape: bf16[2560,128], index: 7, kind: input, shape index: {}]   ;;  %s17067_s8 = inlined_call_operand.vmem [shape: f32[1,128], index: 8, kind: input, shape index: {}]   ;;  %s17068_s9 = inlined_call_operand.vmem [shape: f32[8,128], index: 9, kind: output, shape index: {}]  }
   0x1   :  { %s30_s11 = sshll.u32 %s17064_s5, 4  ;;  %s31_s11 = int_to_ptr.hbm [resolvable:$true] %s30_s11 }
   0x2   :  { %15 = vsyncpa [#allocation6], 0  ;;  %s12323_s12 = smov [#allocation3]   ;;  %s45_s16 = sshll.u32 %s17066_s7, 4  ;;  %s46_s16 = int_to_ptr.hbm [resolvable:$true] %s45_s16 }
   0x3   :  { %s32_s13 = sshll.u32 %s12323_s12, 4  ;;  %s12324_s17 = smov 256   ;;  %s33_s13 = int_to_ptr.vmem [resolvable:$true] %s32_s13 }
   0x4   :  { %s12325_s18 = smov 16   ;;  %s12326_s19 = smov [#allocation5]  }
   0x5   :  { %38 = dma.hbm_to_vmem [thread:$0]  %s31_s11, 8192, %s33_s13, [#allocation4], %s12324_s17, %s12324_s17, %s12325_s18  }
   0x6   :  { %s47_s20 = sshll.u32 %s12326_s19, 4  ;;  %s12327_s21 = smov 64   ;;  %s48_s20 = int_to_ptr.vmem [resolvable:$true] %s47_s20 }
   0x7   :  { %s12328_s22 = smov 4  }
   0x8   :  { %53 = dma.hbm_to_vmem [thread:$0]  %s46_s16, 20480, %s48_s20, [#allocation6], %s12327_s21, %s12327_s21, %s12328_s22  }
   0x9   :  { %12319 = dma.done.wait [#allocation4], 8192  }
   0xa   :  { %12320 = vsyncadd [#allocation4], 4294959104 }
   0xb   :  { %12321 = dma.done.wait [#allocation6], 20480  }
   0xc   :  { %12322 = vsyncadd [#allocation6], 4294946816  ;;  %v8161_v0 = vld [vmem:[%s17060_s1 + $0xe0] sm:$0xf]  ;;  %v11443_v1 = vld [vmem:[%s17060_s1 + $0xec] sm:$0xf0] }
   0xd   :  { %v8289_v2 = vld [vmem:[%s17060_s1 + $0x1e0] sm:$0xf]  ;;  %v8162_v3 = vor.u32 %v11443_v1, %v8161_v0  ;;  %v11475_v4 = vld [vmem:[%s17060_s1 + $0x1ec] sm:$0xf0] }
   0xe   :  { %v8417_v5 = vld [vmem:[%s17060_s1 + $0x2e0] sm:$0xf]  ;;  %v11507_v6 = vld [vmem:[%s17060_s1 + $0x2ec] sm:$0xf0]  ;;  %v8290_v7 = vor.u32 %v11475_v4, %v8289_v2 }
   0xf   :  { %v8418_v8 = vor.u32 %v11507_v6, %v8417_v5  ;;  %v8545_v9 = vld [vmem:[%s17060_s1 + $0x3e0] sm:$0xf]  ;;  %v11539_v10 = vld [vmem:[%s17060_s1 + $0x3ec] sm:$0xf0]  ;;  %3615 = vmatpush.bf16.msra.mxu0 %v8162_v3 }
  0x10   :  { %v8145_v11 = vld [vmem:[%s17060_s1 + $0xc0] sm:$0xf]  ;;  %v8546_v12 = vor.u32 %v11539_v10, %v8545_v9  ;;  %v11439_v13 = vld [vmem:[%s17060_s1 + $0xcc] sm:$0xf0]  ;;  %3638 = vmatpush.bf16.msra.mxu1 %v8290_v7 }
  0x11   :  { %v8273_v14 = vld [vmem:[%s17060_s1 + $0x1c0] sm:$0xf]  ;;  %v11471_v15 = vld [vmem:[%s17060_s1 + $0x1cc] sm:$0xf0]  ;;  %3661 = vmatpush.bf16.msra.mxu2 %v8418_v8  ;;  %v8146_v16 = vor.u32 %v11439_v13, %v8145_v11 }
  0x12   :  { %v8274_v17 = vor.u32 %v11471_v15, %v8273_v14  ;;  %v8401_v18 = vld [vmem:[%s17060_s1 + $0x2c0] sm:$0xf]  ;;  %v11503_v19 = vld [vmem:[%s17060_s1 + $0x2cc] sm:$0xf0]  ;;  %3684 = vmatpush.bf16.msra.mxu3 %v8546_v12 }
  0x13   :  { %v8529_v20 = vld [vmem:[%s17060_s1 + $0x3c0] sm:$0xf]  ;;  %v8402_v21 = vor.u32 %v11503_v19, %v8401_v18  ;;  %v11535_v22 = vld [vmem:[%s17060_s1 + $0x3cc] sm:$0xf0]  ;;  %3616 = vmatpush.bf16.msra.mxu0 %v8146_v16 }
  0x14   :  { %v8129_v23 = vld [vmem:[%s17060_s1 + $0xa0] sm:$0xf]  ;;  %v11435_v24 = vld [vmem:[%s17060_s1 + $0xac] sm:$0xf0]  ;;  %v8530_v25 = vor.u32 %v11535_v22, %v8529_v20  ;;  %3639 = vmatpush.bf16.msra.mxu1 %v8274_v17 }
  0x15   :  { %v8257_v26 = vld [vmem:[%s17060_s1 + $0x1a0] sm:$0xf]  ;;  %v11467_v27 = vld [vmem:[%s17060_s1 + $0x1ac] sm:$0xf0]  ;;  %v8130_v29 = vor.u32 %v11435_v24, %v8129_v23  ;;  %3662 = vmatpush.bf16.msra.mxu2 %v8402_v21 }
  0x16   :  { %v8385_v28 = vld [vmem:[%s17060_s1 + $0x2a0] sm:$0xf]  ;;  %v11499_v30 = vld [vmem:[%s17060_s1 + $0x2ac] sm:$0xf0]  ;;  %v8258_v33 = vor.u32 %v11467_v27, %v8257_v26  ;;  %3685 = vmatpush.bf16.msra.mxu3 %v8530_v25 }
  0x17   :  { %v8513_v31 = vld [vmem:[%s17060_s1 + $0x3a0] sm:$0xf]  ;;  %v11531_v32 = vld [vmem:[%s17060_s1 + $0x3ac] sm:$0xf0]  ;;  %v8386_v34 = vor.u32 %v11499_v30, %v8385_v28  ;;  %3617 = vmatpush.bf16.msra.mxu0 %v8130_v29  ;;  %v11387_v29 = vld [vmem:[%s17059_s0 + $0x40] sm:$0xf0] }
  0x18   :  { %v8113_v35 = vld [vmem:[%s17060_s1 + $0x80] sm:$0xf]  ;;  %v11431_v36 = vld [vmem:[%s17060_s1 + $0x8c] sm:$0xf0]  ;;  %v8514_v38 = vor.u32 %v11531_v32, %v8513_v31  ;;  %3640 = vmatpush.bf16.msra.mxu1 %v8258_v33  ;;  %v11379_v30 = vld [vmem:[%s17059_s0 + $0x4] sm:$0xf] }
  0x19   :  { %v8241_v37 = vld [vmem:[%s17060_s1 + $0x180] sm:$0xf]  ;;  %v11463_v39 = vld [vmem:[%s17060_s1 + $0x18c] sm:$0xf0]  ;;  %v8114_v44 = vor.u32 %v11431_v36, %v8113_v35  ;;  %3663 = vmatpush.bf16.msra.mxu2 %v8386_v34  ;;  %v7915_v31 = vld [vmem:[%s17059_s0 + $0x44] sm:$0xf0] }
  0x1a   :  { %v8369_v40 = vld [vmem:[%s17060_s1 + $0x280] sm:$0xf]  ;;  %v11495_v41 = vld [vmem:[%s17060_s1 + $0x28c] sm:$0xf0]  ;;  %v8242_v45 = vor.u32 %v11463_v39, %v8241_v37  ;;  %3686 = vmatpush.bf16.msra.mxu3 %v8514_v38  ;;  %v7921_v32 = vld [vmem:[%s17059_s0 + $0x8] sm:$0xf] }
  0x1b   :  { %v8497_v42 = vld [vmem:[%s17060_s1 + $0x380] sm:$0xf]  ;;  %v11527_v43 = vld [vmem:[%s17060_s1 + $0x38c] sm:$0xf0]  ;;  %v8370_v46 = vor.u32 %v11495_v41, %v8369_v40  ;;  %3618 = vmatpush.bf16.msra.mxu0 %v8114_v44  ;;  %v11388_v40 = vld [vmem:[%s17059_s0 + $0x48] sm:$0xf0] }
  0x1c   :  { %v8097_v47 = vld [vmem:[%s17060_s1 + $0x60] sm:$0xf]  ;;  %v11427_v48 = vld [vmem:[%s17060_s1 + $0x6c] sm:$0xf0]  ;;  %v8498_v50 = vor.u32 %v11527_v43, %v8497_v42  ;;  %3641 = vmatpush.bf16.msra.mxu1 %v8242_v45  ;;  %v11380_v41 = vld [vmem:[%s17059_s0 + $0xc] sm:$0xf] }
  0x1d   :  { %v8225_v49 = vld [vmem:[%s17060_s1 + $0x160] sm:$0xf]  ;;  %v11459_v51 = vld [vmem:[%s17060_s1 + $0x16c] sm:$0xf0]  ;;  %v8098_v56 = vor.u32 %v11427_v48, %v8097_v47  ;;  %3664 = vmatpush.bf16.msra.mxu2 %v8370_v46 }
  0x1e   :  { %v8353_v52 = vld [vmem:[%s17060_s1 + $0x260] sm:$0xf]  ;;  %v11491_v53 = vld [vmem:[%s17060_s1 + $0x26c] sm:$0xf0]  ;;  %v8226_v57 = vor.u32 %v11459_v51, %v8225_v49  ;;  %3687 = vmatpush.bf16.msra.mxu3 %v8498_v50 }
  0x1f   :  { %v8481_v54 = vld [vmem:[%s17060_s1 + $0x360] sm:$0xf]  ;;  %v11523_v55 = vld [vmem:[%s17060_s1 + $0x36c] sm:$0xf0]  ;;  %v8354_v58 = vor.u32 %v11491_v53, %v8353_v52  ;;  %3619 = vmatpush.bf16.msra.mxu0 %v8098_v56  ;;  %v12633_v53 = vor.u32 %v11379_v30, %v7915_v31 }
  0x20   :  { %v8081_v59 = vld [vmem:[%s17060_s1 + $0x40] sm:$0xf]  ;;  %v11423_v60 = vld [vmem:[%s17060_s1 + $0x4c] sm:$0xf0]  ;;  %v8482_v62 = vor.u32 %v11523_v55, %v8481_v54  ;;  %3642 = vmatpush.bf16.msra.mxu1 %v8226_v57  ;;  %v12635_v54 = vor.u32 %v11388_v40, %v7921_v32 }
  0x21   :  { %v8209_v61 = vld [vmem:[%s17060_s1 + $0x140] sm:$0xf]  ;;  %v11455_v63 = vld [vmem:[%s17060_s1 + $0x14c] sm:$0xf0]  ;;  %v8082_v4 = vor.u32 %v11423_v60, %v8081_v59  ;;  %3665 = vmatpush.bf16.msra.mxu2 %v8354_v58  ;;  %17112 = vst [vmem:[#allocation9_spill] sm:$0xff] %v12633_v53 }
  0x22   :  { %v8337_v0 = vld [vmem:[%s17060_s1 + $0x240] sm:$0xf]  ;;  %v11487_v1 = vld [vmem:[%s17060_s1 + $0x24c] sm:$0xf0]  ;;  %v8210_v5 = vor.u32 %v11455_v63, %v8209_v61  ;;  %3688 = vmatpush.bf16.msra.mxu3 %v8482_v62  ;;  %17113 = vst [vmem:[#allocation10_spill] sm:$0xff] %v12635_v54 }
  0x23   :  { %v8465_v2 = vld [vmem:[%s17060_s1 + $0x340] sm:$0xf]  ;;  %v11519_v3 = vld [vmem:[%s17060_s1 + $0x34c] sm:$0xf0]  ;;  %v8338_v6 = vor.u32 %v11487_v1, %v8337_v0  ;;  %3620 = vmatpush.bf16.msra.mxu0 %v8082_v4 }
  0x24   :  { %v8065_v7 = vld [vmem:[%s17060_s1 + $0x20] sm:$0xf]  ;;  %v11419_v8 = vld [vmem:[%s17060_s1 + $0x2c] sm:$0xf0]  ;;  %v8466_v10 = vor.u32 %v11519_v3, %v8465_v2  ;;  %3643 = vmatpush.bf16.msra.mxu1 %v8210_v5 }
  0x25   :  { %v8193_v9 = vld [vmem:[%s17060_s1 + $0x120] sm:$0xf]  ;;  %v11451_v11 = vld [vmem:[%s17060_s1 + $0x12c] sm:$0xf0]  ;;  %v8066_v17 = vor.u32 %v11419_v8, %v8065_v7  ;;  %3666 = vmatpush.bf16.msra.mxu2 %v8338_v6 }
  0x26   :  { %v8321_v12 = vld [vmem:[%s17060_s1 + $0x220] sm:$0xf]  ;;  %v11483_v13 = vld [vmem:[%s17060_s1 + $0x22c] sm:$0xf0]  ;;  %v8194_v21 = vor.u32 %v11451_v11, %v8193_v9  ;;  %3689 = vmatpush.bf16.msra.mxu3 %v8466_v10 }
  0x27   :  { %v8449_v14 = vld [vmem:[%s17060_s1 + $0x320] sm:$0xf]  ;;  %v11515_v15 = vld [vmem:[%s17060_s1 + $0x32c] sm:$0xf0]  ;;  %v8322_v22 = vor.u32 %v11483_v13, %v8321_v12  ;;  %3621 = vmatpush.bf16.msra.mxu0 %v8066_v17 }
  0x28   :  { %v8049_v16 = vld [vmem:[%s17060_s1] sm:$0xf]  ;;  %v11415_v18 = vld [vmem:[%s17060_s1 + $0xc] sm:$0xf0]  ;;  %v8450_v26 = vor.u32 %v11515_v15, %v8449_v14  ;;  %3644 = vmatpush.bf16.msra.mxu1 %v8194_v21 }
  0x29   :  { %v8177_v19 = vld [vmem:[%s17060_s1 + $0x100] sm:$0xf]  ;;  %v11447_v20 = vld [vmem:[%s17060_s1 + $0x10c] sm:$0xf0]  ;;  %v8050_v34 = vor.u32 %v11415_v18, %v8049_v16  ;;  %3667 = vmatpush.bf16.msra.mxu2 %v8322_v22 }
  0x2a   :  { %v8305_v23 = vld [vmem:[%s17060_s1 + $0x200] sm:$0xf]  ;;  %v11479_v24 = vld [vmem:[%s17060_s1 + $0x20c] sm:$0xf0]  ;;  %v8178_v38 = vor.u32 %v11447_v20, %v8177_v19  ;;  %3690 = vmatpush.bf16.msra.mxu3 %v8450_v26  ;;  %v7981_v19 = vld [vmem:[%s17059_s0 + $0x88] sm:$0xf] }
  0x2b   :  { %v8433_v25 = vld [vmem:[%s17060_s1 + $0x300] sm:$0xf]  ;;  %v11511_v27 = vld [vmem:[%s17060_s1 + $0x30c] sm:$0xf0]  ;;  %v8306_v39 = vor.u32 %v11479_v24, %v8305_v23  ;;  %3622 = vmatpush.bf16.msra.mxu0 %v8050_v34  ;;  %v11404_v20 = vld [vmem:[%s17059_s0 + $0xc8] sm:$0xf0] }
  0x2c   :  { %v7913_v28 = vld [vmem:[%s17059_s0] sm:$0xf]  ;;  %v11571_v35 = vld [vmem:[%s17060_s1 + $0x4ec] sm:$0xf0]  ;;  %v8434_v43 = vor.u32 %v11511_v27, %v8433_v25  ;;  %3645 = vmatpush.bf16.msra.mxu1 %v8178_v38  ;;  %v11396_v26 = vld [vmem:[%s17059_s0 + $0x8c] sm:$0xf] }
  0x2d   :  { %v8673_v33 = vld [vmem:[%s17060_s1 + $0x4e0] sm:$0xf]  ;;  %v11603_v37 = vld [vmem:[%s17060_s1 + $0x5ec] sm:$0xf0]  ;;  %v12622_v48 = vor.u32 %v11387_v29, %v7913_v28  ;;  %3668 = vmatpush.bf16.msra.mxu2 %v8306_v39 }
  0x2e   :  { %v8801_v36 = vld [vmem:[%s17060_s1 + $0x5e0] sm:$0xf]  ;;  %v7923_v42 = vld [vmem:[%s17059_s0 + $0x4c] sm:$0xf0]  ;;  %v8674_v44 = vor.u32 %v11571_v35, %v8673_v33  ;;  %3691 = vmatpush.bf16.msra.mxu3 %v8434_v43  ;;  %v11405_v35 = vld [vmem:[%s17059_s0 + $0xd0] sm:$0xf0] }
  0x2f   :  { %v8929_v45 = vld [vmem:[%s17060_s1 + $0x6e0] sm:$0xf]  ;;  %v11635_v46 = vld [vmem:[%s17060_s1 + $0x6ec] sm:$0xf0]  ;;  %v8802_v49 = vor.u32 %v11603_v37, %v8801_v36  ;;  %v12643_v57 = vor.u32 %v11380_v41, %v7923_v42  ;;  %3623 = vmatmul.bf16.vlgmr.msra.gmra.mxu0 %v12622_v48  ;;  %3646 = vmatmul.bf16.vlgmr.msra.gmra.mxu1 %v12633_v53  ;;  %v11397_v36 = vld [vmem:[%s17059_s0 + $0x94] sm:$0xf] }
  0x30   :  { %v9057_v47 = vld [vmem:[%s17060_s1 + $0x7e0] sm:$0xf]  ;;  %v11667_v50 = vld [vmem:[%s17060_s1 + $0x7ec] sm:$0xf0]  ;;  %v8930_v58 = vor.u32 %v11635_v46, %v8929_v45  ;;  %3707 = vmatpush.bf16.msrb.mxu0 %v8674_v44  ;;  %3669 = vmatmul.bf16.vlgmr.msra.gmra.mxu2 %v12635_v54  ;;  %v7991_v37 = vld [vmem:[%s17059_s0 + $0xd4] sm:$0xf0]  ;;  %v12754_v44 = vor.u32 %v11404_v20, %v7981_v19 }
  0x31   :  { %v8657_v51 = vld [vmem:[%s17060_s1 + $0x4c0] sm:$0xf]  ;;  %v11567_v52 = vld [vmem:[%s17060_s1 + $0x4cc] sm:$0xf0]  ;;  %v9058_v59 = vor.u32 %v11667_v50, %v9057_v47  ;;  %3730 = vmatpush.bf16.msrb.mxu1 %v8802_v49  ;;  %3692 = vmatmul.bf16.vlgmr.msra.gmra.mxu3 %v12643_v57  ;;  %v101_v19 = vld [vmem:[%s17059_s0 + $0x118] sm:$0xff] }
  0x32   :  { %v8785_v55 = vld [vmem:[%s17060_s1 + $0x5c0] sm:$0xf]  ;;  %v11599_v56 = vld [vmem:[%s17060_s1 + $0x5cc] sm:$0xf0]  ;;  %v8658_v60 = vor.u32 %v11567_v52, %v8657_v51  ;;  %3753 = vmatpush.bf16.msrb.mxu2 %v8930_v58 }
  0x33   :  { %v8913_v61 = vld [vmem:[%s17060_s1 + $0x6c0] sm:$0xf]  ;;  %v11631_v62 = vld [vmem:[%s17060_s1 + $0x6cc] sm:$0xf0]  ;;  %v8786_v0 = vor.u32 %v11599_v56, %v8785_v55  ;;  %3776 = vmatpush.bf16.msrb.mxu3 %v9058_v59  ;;  %v12775_v56 = vor.u32 %v11397_v36, %v7991_v37 }
  0x34   :  { %v9041_v63 = vld [vmem:[%s17060_s1 + $0x7c0] sm:$0xf]  ;;  %v11663_v1 = vld [vmem:[%s17060_s1 + $0x7cc] sm:$0xf0]  ;;  %v8914_v6 = vor.u32 %v11631_v62, %v8913_v61  ;;  %3708 = vmatpush.bf16.msrb.mxu0 %v8658_v60 }
  0x35   :  { %v8641_v2 = vld [vmem:[%s17060_s1 + $0x4a0] sm:$0xf]  ;;  %v11563_v3 = vld [vmem:[%s17060_s1 + $0x4ac] sm:$0xf0]  ;;  %v9042_v7 = vor.u32 %v11663_v1, %v9041_v63  ;;  %3731 = vmatpush.bf16.msrb.mxu1 %v8786_v0 }
  0x36   :  { %v8769_v4 = vld [vmem:[%s17060_s1 + $0x5a0] sm:$0xf]  ;;  %v11595_v5 = vld [vmem:[%s17060_s1 + $0x5ac] sm:$0xf0]  ;;  %v8642_v8 = vor.u32 %v11563_v3, %v8641_v2  ;;  %3754 = vmatpush.bf16.msrb.mxu2 %v8914_v6 }
  0x37   :  { %v8897_v9 = vld [vmem:[%s17060_s1 + $0x6a0] sm:$0xf]  ;;  %v11627_v10 = vld [vmem:[%s17060_s1 + $0x6ac] sm:$0xf0]  ;;  %v8770_v12 = vor.u32 %v11595_v5, %v8769_v4  ;;  %3777 = vmatpush.bf16.msrb.mxu3 %v9042_v7 }
  0x38   :  { %v9025_v11 = vld [vmem:[%s17060_s1 + $0x7a0] sm:$0xf]  ;;  %v11659_v13 = vld [vmem:[%s17060_s1 + $0x7ac] sm:$0xf0]  ;;  %v8898_v18 = vor.u32 %v11627_v10, %v8897_v9  ;;  %3709 = vmatpush.bf16.msrb.mxu0 %v8642_v8 }
  0x39   :  { %v8625_v14 = vld [vmem:[%s17060_s1 + $0x480] sm:$0xf]  ;;  %v11559_v15 = vld [vmem:[%s17060_s1 + $0x48c] sm:$0xf0]  ;;  %v9026_v21 = vor.u32 %v11659_v13, %v9025_v11  ;;  %3732 = vmatpush.bf16.msrb.mxu1 %v8770_v12 }
  0x3a   :  { %v8753_v16 = vld [vmem:[%s17060_s1 + $0x580] sm:$0xf]  ;;  %v11591_v17 = vld [vmem:[%s17060_s1 + $0x58c] sm:$0xf0]  ;;  %v8626_v22 = vor.u32 %v11559_v15, %v8625_v14  ;;  %3755 = vmatpush.bf16.msrb.mxu2 %v8898_v18 }
  0x3b   :  { %v8881_v23 = vld [vmem:[%s17060_s1 + $0x680] sm:$0xf]  ;;  %v11623_v24 = vld [vmem:[%s17060_s1 + $0x68c] sm:$0xf0]  ;;  %v8754_v28 = vor.u32 %v11591_v17, %v8753_v16  ;;  %3778 = vmatpush.bf16.msrb.mxu3 %v9026_v21 }
  0x3c   :  { %v9009_v25 = vld [vmem:[%s17060_s1 + $0x780] sm:$0xf]  ;;  %v7983_v27 = vld [vmem:[%s17059_s0 + $0xcc] sm:$0xf0]  ;;  %v8882_v38 = vor.u32 %v11623_v24, %v8881_v23  ;;  %3710 = vmatpush.bf16.msrb.mxu0 %v8626_v22 }
  0x3d   :  { %v11655_v29 = vld [vmem:[%s17060_s1 + $0x78c] sm:$0xf0]  ;;  %v8609_v30 = vld [vmem:[%s17060_s1 + $0x460] sm:$0xf]  ;;  %3733 = vmatpush.bf16.msrb.mxu1 %v8754_v28  ;;  %v12765_v50 = vor.u32 %v11396_v26, %v7983_v27 }
  0x3e   :  { %v11555_v31 = vld [vmem:[%s17060_s1 + $0x46c] sm:$0xf0]  ;;  %v8737_v33 = vld [vmem:[%s17060_s1 + $0x560] sm:$0xf]  ;;  %v9010_v39 = vor.u32 %v11655_v29, %v9009_v25  ;;  %3756 = vmatpush.bf16.msrb.mxu2 %v8882_v38 }
  0x3f   :  { %v7989_v32 = vld [vmem:[%s17059_s0 + $0x90] sm:$0xf]  ;;  %v8610_v40 = vor.u32 %v11555_v31, %v8609_v30  ;;  %v8865_v41 = vld [vmem:[%s17060_s1 + $0x660] sm:$0xf]  ;;  %3628 = vmatmul.bf16.gmra.mxu0 %v12754_v44  ;;  %3651 = vmatmul.bf16.gmra.mxu1 %v12765_v50  ;;  %v778_v30 = vunpack.c.l.b16 %v101_v19  ;;  %v779_v31 = vunpack.c.h.b16 %v101_v19  ;;  %v7937_v19 = vld [vmem:[%s17059_s0 + $0x18] sm:$0xf] }
  0x40   :  { %v11587_v34 = vld [vmem:[%s17060_s1 + $0x56c] sm:$0xf0]  ;;  %v8993_v43 = vld [vmem:[%s17060_s1 + $0x760] sm:$0xf]  ;;  %v12767_v51 = vor.u32 %v11405_v35, %v7989_v32  ;;  %3779 = vmatpush.bf16.msrb.mxu3 %v9010_v39 }
  0x41   :  { %v11619_v42 = vld [vmem:[%s17060_s1 + $0x66c] sm:$0xf0]  ;;  %v8738_v45 = vor.u32 %v11587_v34, %v8737_v33  ;;  %v8593_v47 = vld [vmem:[%s17060_s1 + $0x440] sm:$0xf]  ;;  %3711 = vmatpush.bf16.msrb.mxu0 %v8610_v40  ;;  %3697 = vmatmul.bf16.gmra.mxu3 %v12775_v56  ;;  %v12851_v36 = vpack.c.b16 %v778_v30, %v778_v30  ;;  %v12853_v37 = vpack.c.b16 %v779_v31, %v779_v31 }
  0x42   :  { %v11651_v46 = vld [vmem:[%s17060_s1 + $0x76c] sm:$0xf0]  ;;  %v8721_v52 = vld [vmem:[%s17060_s1 + $0x540] sm:$0xf]  ;;  %v8866_v58 = vor.u32 %v11619_v42, %v8865_v41  ;;  %3674 = vmatmul.bf16.gmra.mxu2 %v12767_v51 }
  0x43   :  { %v11551_v49 = vld [vmem:[%s17060_s1 + $0x44c] sm:$0xf0]  ;;  %v8994_v59 = vor.u32 %v11651_v46, %v8993_v43  ;;  %v8849_v61 = vld [vmem:[%s17060_s1 + $0x640] sm:$0xf]  ;;  %3734 = vmatpush.bf16.msrb.mxu1 %v8738_v45 }
  0x44   :  { %v11583_v55 = vld [vmem:[%s17060_s1 + $0x54c] sm:$0xf0]  ;;  %v8594_v60 = vor.u32 %v11551_v49, %v8593_v47  ;;  %v8977_v63 = vld [vmem:[%s17060_s1 + $0x740] sm:$0xf]  ;;  %3757 = vmatpush.bf16.msrb.mxu2 %v8866_v58 }
  0x45   :  { %v11615_v62 = vld [vmem:[%s17060_s1 + $0x64c] sm:$0xf0]  ;;  %v8722_v0 = vor.u32 %v11583_v55, %v8721_v52  ;;  %v8577_v2 = vld [vmem:[%s17060_s1 + $0x420] sm:$0xf]  ;;  %3780 = vmatpush.bf16.msrb.mxu3 %v8994_v59 }
  0x46   :  { %v11647_v1 = vld [vmem:[%s17060_s1 + $0x74c] sm:$0xf0]  ;;  %v8705_v4 = vld [vmem:[%s17060_s1 + $0x520] sm:$0xf]  ;;  %v8850_v6 = vor.u32 %v11615_v62, %v8849_v61  ;;  %3712 = vmatpush.bf16.msrb.mxu0 %v8594_v60 }
  0x47   :  { %v11547_v3 = vld [vmem:[%s17060_s1 + $0x42c] sm:$0xf0]  ;;  %v8978_v7 = vor.u32 %v11647_v1, %v8977_v63  ;;  %v8833_v9 = vld [vmem:[%s17060_s1 + $0x620] sm:$0xf]  ;;  %3735 = vmatpush.bf16.msrb.mxu1 %v8722_v0 }
  0x48   :  { %v11579_v5 = vld [vmem:[%s17060_s1 + $0x52c] sm:$0xf0]  ;;  %v8578_v8 = vor.u32 %v11547_v3, %v8577_v2  ;;  %v8961_v11 = vld [vmem:[%s17060_s1 + $0x720] sm:$0xf]  ;;  %3758 = vmatpush.bf16.msrb.mxu2 %v8850_v6 }
  0x49   :  { %v11611_v10 = vld [vmem:[%s17060_s1 + $0x62c] sm:$0xf0]  ;;  %v8706_v12 = vor.u32 %v11579_v5, %v8705_v4  ;;  %v8561_v14 = vld [vmem:[%s17060_s1 + $0x400] sm:$0xf]  ;;  %3781 = vmatpush.bf16.msrb.mxu3 %v8978_v7 }
  0x4a   :  { %v11643_v13 = vld [vmem:[%s17060_s1 + $0x72c] sm:$0xf0]  ;;  %v8689_v17 = vld [vmem:[%s17060_s1 + $0x500] sm:$0xf]  ;;  %v8834_v20 = vor.u32 %v11611_v10, %v8833_v9  ;;  %3713 = vmatpush.bf16.msrb.mxu0 %v8578_v8  ;;  %v11389_v8 = vld [vmem:[%s17059_s0 + $0x50] sm:$0xf0] }
  0x4b   :  { %v11543_v15 = vld [vmem:[%s17060_s1 + $0x40c] sm:$0xf0]  ;;  %v8962_v21 = vor.u32 %v11643_v13, %v8961_v11  ;;  %v8817_v23 = vld [vmem:[%s17060_s1 + $0x600] sm:$0xf]  ;;  %3736 = vmatpush.bf16.msrb.mxu1 %v8706_v12 }
  0x4c   :  { %v100_v16 = vld [vmem:[%s17059_s0 + $0x110] sm:$0xff]  ;;  %v8562_v22 = vor.u32 %v11543_v15, %v8561_v14  ;;  %v8945_v27 = vld [vmem:[%s17060_s1 + $0x700] sm:$0xf]  ;;  %3759 = vmatpush.bf16.msrb.mxu2 %v8834_v20 }
  0x4d   :  { %v11575_v18 = vld [vmem:[%s17060_s1 + $0x50c] sm:$0xf0]  ;;  %v776_v25 = vunpack.c.l.b16 %v100_v16  ;;  %v777_v29 = vunpack.c.h.b16 %v100_v16  ;;  %3782 = vmatpush.bf16.msrb.mxu3 %v8962_v21  ;;  %v9185_v38 = vld [vmem:[%s17060_s1 + $0x8e0] sm:$0xf] }
  0x4e   :  { %v11607_v24 = vld [vmem:[%s17060_s1 + $0x60c] sm:$0xf0]  ;;  %v8690_v26 = vor.u32 %v11575_v18, %v8689_v17  ;;  %3714 = vmatpush.bf16.msrb.mxu0 %v8562_v22  ;;  %v9313_v40 = vld [vmem:[%s17060_s1 + $0x9e0] sm:$0xf]  ;;  %v11381_v17 = vld [vmem:[%s17059_s0 + $0x14] sm:$0xf] }
  0x4f   :  { %v11639_v28 = vld [vmem:[%s17060_s1 + $0x70c] sm:$0xf0]  ;;  %v8818_v32 = vor.u32 %v11607_v24, %v8817_v23  ;;  %v12847_v34 = vpack.c.b16 %v776_v25, %v776_v25  ;;  %v12849_v35 = vpack.c.b16 %v777_v29, %v777_v29  ;;  %v9441_v43 = vld [vmem:[%s17060_s1 + $0xae0] sm:$0xf]  ;;  %v7931_v18 = vld [vmem:[%s17059_s0 + $0x54] sm:$0xf0] }
  0x50   :  { %v8946_v33 = vor.u32 %v11639_v28, %v8945_v27  ;;  %3737 = vmatpush.bf16.msrb.mxu1 %v8690_v26  ;;  %v11699_v39 = vld [vmem:[%s17060_s1 + $0x8ec] sm:$0xf0]  ;;  %v9569_v49 = vld [vmem:[%s17060_s1 + $0xbe0] sm:$0xf]  ;;  %v11390_v22 = vld [vmem:[%s17059_s0 + $0x58] sm:$0xf0] }
  0x51   :  { %17114 = vst [vmem:[#allocation11_spill] sm:$0xff] %v12849_v35  ;;  %3760 = vmatpush.bf16.msrb.mxu2 %v8818_v32  ;;  %3633 = vmatmul.bf16.gmra.mxu0 %v12847_v34  ;;  %v9186_v41 = vor.u32 %v11699_v39, %v9185_v38  ;;  %v11731_v42 = vld [vmem:[%s17060_s1 + $0x9ec] sm:$0xf0]  ;;  %v9169_v55 = vld [vmem:[%s17060_s1 + $0x8c0] sm:$0xf]  ;;  %v12977_v38 = vor.u32 %v11390_v22, %v7937_v19 }
  0x52   :  { %3783 = vmatpush.bf16.msrb.mxu3 %v8946_v33  ;;  %3656 = vmatmul.bf16.gmra.mxu1 %v12849_v35  ;;  %v11763_v45 = vld [vmem:[%s17060_s1 + $0xaec] sm:$0xf0]  ;;  %v9314_v46 = vor.u32 %v11731_v42, %v9313_v40  ;;  %v9297_v60 = vld [vmem:[%s17060_s1 + $0x9c0] sm:$0xf]  ;;  %v11382_v23 = vld [vmem:[%s17059_s0 + $0x1c] sm:$0xf]  ;;  %v12975_v33 = vor.u32 %v11381_v17, %v7931_v18 }
  0x53   :  { %3679 = vmatmul.bf16.gmra.mxu2 %v12851_v36  ;;  %3702 = vmatmul.bf16.gmra.mxu3 %v12853_v37  ;;  %v9442_v47 = vor.u32 %v11763_v45, %v9441_v43  ;;  %v11795_v52 = vld [vmem:[%s17060_s1 + $0xbec] sm:$0xf0]  ;;  %v9425_v0 = vld [vmem:[%s17060_s1 + $0xac0] sm:$0xf]  ;;  %17116 = vst [vmem:[#allocation13_spill] sm:$0xff] %v12977_v38 }
  0x54   :  { %3799 = vmatpush.bf16.msra.mxu0 %v9186_v41  ;;  %v9570_v58 = vor.u32 %v11795_v52, %v9569_v49  ;;  %v11695_v59 = vld [vmem:[%s17060_s1 + $0x8cc] sm:$0xf0]  ;;  %3822 = vmatpush.bf16.msra.mxu1 %v9314_v46  ;;  %v9553_v2 = vld [vmem:[%s17060_s1 + $0xbc0] sm:$0xf]  ;;  %17115 = vst [vmem:[#allocation12_spill] sm:$0xff] %v12975_v33 }
  0x55   :  { %v11727_v61 = vld [vmem:[%s17060_s1 + $0x9cc] sm:$0xf0]  ;;  %3845 = vmatpush.bf16.msra.mxu2 %v9442_v47  ;;  %v9170_v62 = vor.u32 %v11695_v59, %v9169_v55  ;;  %v9153_v5 = vld [vmem:[%s17060_s1 + $0x8a0] sm:$0xf]  ;;  %v11398_v18 = vld [vmem:[%s17059_s0 + $0x9c] sm:$0xf] }
  0x56   :  { %v9298_v63 = vor.u32 %v11727_v61, %v9297_v60  ;;  %v11759_v1 = vld [vmem:[%s17060_s1 + $0xacc] sm:$0xf0]  ;;  %3868 = vmatpush.bf16.msra.mxu3 %v9570_v58  ;;  %v9281_v10 = vld [vmem:[%s17060_s1 + $0x9a0] sm:$0xf] }
  0x57   :  { %v9426_v3 = vor.u32 %v11759_v1, %v9425_v0  ;;  %v11791_v4 = vld [vmem:[%s17060_s1 + $0xbcc] sm:$0xf0]  ;;  %v9409_v12 = vld [vmem:[%s17060_s1 + $0xaa0] sm:$0xf] }
  0x58   :  { %v11691_v6 = vld [vmem:[%s17060_s1 + $0x8ac] sm:$0xf0]  ;;  %v9554_v9 = vor.u32 %v11791_v4, %v9553_v2  ;;  %3800 = vmatpush.bf16.msra.mxu0 %v9170_v62  ;;  %v9537_v15 = vld [vmem:[%s17060_s1 + $0xba0] sm:$0xf]  ;;  %3823 = vmatpush.bf16.msra.mxu1 %v9298_v63 }
  0x59   :  { %v7929_v7 = vld [vmem:[%s17059_s0 + $0x10] sm:$0xf]  ;;  %v9154_v13 = vor.u32 %v11691_v6, %v9153_v5  ;;  %3846 = vmatpush.bf16.msra.mxu2 %v9426_v3  ;;  %v7939_v24 = vld [vmem:[%s17059_s0 + $0x5c] sm:$0xf0] }
  0x5a   :  { %v11723_v11 = vld [vmem:[%s17060_s1 + $0x9ac] sm:$0xf0]  ;;  %3869 = vmatpush.bf16.msra.mxu3 %v9554_v9  ;;  %v9137_v26 = vld [vmem:[%s17060_s1 + $0x880] sm:$0xf]  ;;  %v12964_v29 = vor.u32 %v11389_v8, %v7929_v7  ;;  %v12985_v41 = vor.u32 %v11382_v23, %v7939_v24 }
  0x5b   :  { %v11755_v14 = vld [vmem:[%s17060_s1 + $0xaac] sm:$0xf0]  ;;  %v9282_v20 = vor.u32 %v11723_v11, %v9281_v10  ;;  %v9265_v28 = vld [vmem:[%s17060_s1 + $0x980] sm:$0xf]  ;;  %v7997_v11 = vld [vmem:[%s17059_s0 + $0x98] sm:$0xf] }
  0x5c   :  { %v11787_v16 = vld [vmem:[%s17060_s1 + $0xbac] sm:$0xf0]  ;;  %v9410_v21 = vor.u32 %v11755_v14, %v9409_v12  ;;  %3801 = vmatpush.bf16.msra.mxu0 %v9154_v13  ;;  %v9393_v31 = vld [vmem:[%s17060_s1 + $0xa80] sm:$0xf]  ;;  %v11406_v12 = vld [vmem:[%s17059_s0 + $0xd8] sm:$0xf0] }
  0x5d   :  { %v9538_v25 = vor.u32 %v11787_v16, %v9537_v15  ;;  %v11687_v27 = vld [vmem:[%s17060_s1 + $0x88c] sm:$0xf0]  ;;  %3824 = vmatpush.bf16.msra.mxu1 %v9282_v20  ;;  %v9521_v39 = vld [vmem:[%s17060_s1 + $0xb80] sm:$0xf] }
  0x5e   :  { %v11719_v30 = vld [vmem:[%s17060_s1 + $0x98c] sm:$0xf0]  ;;  %3847 = vmatpush.bf16.msra.mxu2 %v9410_v21  ;;  %v9138_v42 = vor.u32 %v11687_v27, %v9137_v26  ;;  %v9121_v47 = vld [vmem:[%s17060_s1 + $0x860] sm:$0xf]  ;;  %v11407_v27 = vld [vmem:[%s17059_s0 + $0xe0] sm:$0xf0] }
  0x5f   :  { %v11751_v32 = vld [vmem:[%s17060_s1 + $0xa8c] sm:$0xf0]  ;;  %3870 = vmatpush.bf16.msra.mxu3 %v9538_v25  ;;  %v9266_v43 = vor.u32 %v11719_v30, %v9265_v28  ;;  %v9249_v52 = vld [vmem:[%s17060_s1 + $0x960] sm:$0xf]  ;;  %v11399_v28 = vld [vmem:[%s17059_s0 + $0xa4] sm:$0xf] }
  0x60   :  { %v11783_v40 = vld [vmem:[%s17060_s1 + $0xb8c] sm:$0xf0]  ;;  %v9394_v45 = vor.u32 %v11751_v32, %v9393_v31  ;;  %v9377_v58 = vld [vmem:[%s17060_s1 + $0xa60] sm:$0xf]  ;;  %3802 = vmatpush.bf16.msra.mxu0 %v9138_v42  ;;  %v8007_v30 = vld [vmem:[%s17059_s0 + $0xe4] sm:$0xf0] }
  0x61   :  { %3715 = vmatmul.bf16.vlgmr.msrb.gmra.mxu0 %v12964_v29  ;;  %v9522_v46 = vor.u32 %v11783_v40, %v9521_v39  ;;  %v11683_v49 = vld [vmem:[%s17060_s1 + $0x86c] sm:$0xf0]  ;;  %v9505_v61 = vld [vmem:[%s17060_s1 + $0xb60] sm:$0xf]  ;;  %3825 = vmatpush.bf16.msra.mxu1 %v9266_v43 }
  0x62   :  { %3738 = vmatmul.bf16.vlgmr.msrb.gmra.mxu1 %v12975_v33  ;;  %v11715_v55 = vld [vmem:[%s17060_s1 + $0x96c] sm:$0xf0]  ;;  %v9122_v60 = vor.u32 %v11683_v49, %v9121_v47  ;;  %3848 = vmatpush.bf16.msra.mxu2 %v9394_v45  ;;  %v9105_v1 = vld [vmem:[%s17060_s1 + $0x840] sm:$0xf]  ;;  %v13096_v45 = vor.u32 %v11406_v12, %v7997_v11 }
  0x63   :  { %3761 = vmatmul.bf16.vlgmr.msrb.gmra.mxu2 %v12977_v38  ;;  %v11747_v59 = vld [vmem:[%s17060_s1 + $0xa6c] sm:$0xf0]  ;;  %3784 = vmatmul.bf16.vlgmr.msrb.gmra.mxu3 %v12985_v41  ;;  %v9250_v63 = vor.u32 %v11715_v55, %v9249_v52  ;;  %v9233_v3 = vld [vmem:[%s17060_s1 + $0x940] sm:$0xf] }
  0x64   :  { %v11779_v62 = vld [vmem:[%s17060_s1 + $0xb6c] sm:$0xf0]  ;;  %v9378_v0 = vor.u32 %v11747_v59, %v9377_v58  ;;  %3871 = vmatpush.bf16.msra.mxu3 %v9522_v46  ;;  %v9361_v6 = vld [vmem:[%s17060_s1 + $0xa40] sm:$0xf]  ;;  %3803 = vmatpush.bf16.msra.mxu0 %v9122_v60 }
  0x65   :  { %v11679_v2 = vld [vmem:[%s17060_s1 + $0x84c] sm:$0xf0]  ;;  %v9506_v4 = vor.u32 %v11779_v62, %v9505_v61  ;;  %v9489_v8 = vld [vmem:[%s17060_s1 + $0xb40] sm:$0xf]  ;;  %3826 = vmatpush.bf16.msra.mxu1 %v9250_v63  ;;  %v13117_v61 = vor.u32 %v11399_v28, %v8007_v30 }
  0x66   :  { %v11711_v5 = vld [vmem:[%s17060_s1 + $0x94c] sm:$0xf0]  ;;  %v9106_v10 = vor.u32 %v11679_v2, %v9105_v1  ;;  %3849 = vmatpush.bf16.msra.mxu2 %v9378_v0  ;;  %v9089_v15 = vld [vmem:[%s17060_s1 + $0x820] sm:$0xf] }
  0x67   :  { %v11743_v7 = vld [vmem:[%s17060_s1 + $0xa4c] sm:$0xf0]  ;;  %v9234_v13 = vor.u32 %v11711_v5, %v9233_v3  ;;  %v9217_v17 = vld [vmem:[%s17060_s1 + $0x920] sm:$0xf]  ;;  %v103_v3 = vld [vmem:[%s17059_s0 + $0x128] sm:$0xff] }
  0x68   :  { %v11775_v9 = vld [vmem:[%s17060_s1 + $0xb4c] sm:$0xf0]  ;;  %v9362_v14 = vor.u32 %v11743_v7, %v9361_v6  ;;  %v7999_v19 = vld [vmem:[%s17059_s0 + $0xdc] sm:$0xf0]  ;;  %3872 = vmatpush.bf16.msra.mxu3 %v9506_v4  ;;  %3804 = vmatpush.bf16.msra.mxu0 %v9106_v10  ;;  %v782_v6 = vunpack.c.l.b16 %v103_v3  ;;  %v783_v7 = vunpack.c.h.b16 %v103_v3  ;;  %v11383_v3 = vld [vmem:[%s17059_s0 + $0x24] sm:$0xf] }
  0x69   :  { %v11675_v16 = vld [vmem:[%s17060_s1 + $0x82c] sm:$0xf0]  ;;  %v9490_v20 = vor.u32 %v11775_v9, %v9489_v8  ;;  %v9345_v22 = vld [vmem:[%s17060_s1 + $0xa20] sm:$0xf]  ;;  %3827 = vmatpush.bf16.msra.mxu1 %v9234_v13  ;;  %v13107_v55 = vor.u32 %v11398_v18, %v7999_v19 }
  0x6a   :  { %v11707_v21 = vld [vmem:[%s17060_s1 + $0x92c] sm:$0xf0]  ;;  %v8005_v24 = vld [vmem:[%s17059_s0 + $0xa0] sm:$0xf]  ;;  %v9090_v31 = vor.u32 %v11675_v16, %v9089_v15  ;;  %3850 = vmatpush.bf16.msra.mxu2 %v9362_v14  ;;  %v13133_v10 = vpack.c.b16 %v782_v6, %v782_v6  ;;  %v13135_v11 = vpack.c.b16 %v783_v7, %v783_v7  ;;  %v7947_v6 = vld [vmem:[%s17059_s0 + $0x64] sm:$0xf0] }
  0x6b   :  { %v11739_v23 = vld [vmem:[%s17060_s1 + $0xa2c] sm:$0xf0]  ;;  %v9473_v25 = vld [vmem:[%s17060_s1 + $0xb20] sm:$0xf]  ;;  %v9218_v32 = vor.u32 %v11707_v21, %v9217_v17  ;;  %v13109_v58 = vor.u32 %v11407_v27, %v8005_v24  ;;  %v7953_v7 = vld [vmem:[%s17059_s0 + $0x28] sm:$0xf] }
  0x6c   :  { %v11771_v26 = vld [vmem:[%s17060_s1 + $0xb2c] sm:$0xf0]  ;;  %v9346_v39 = vor.u32 %v11739_v23, %v9345_v22  ;;  %v9073_v40 = vld [vmem:[%s17060_s1 + $0x800] sm:$0xf]  ;;  %3873 = vmatpush.bf16.msra.mxu3 %v9490_v20  ;;  %3805 = vmatpush.bf16.msra.mxu0 %v9090_v31 }
  0x6d   :  { %v11671_v42 = vld [vmem:[%s17060_s1 + $0x80c] sm:$0xf0]  ;;  %v9201_v43 = vld [vmem:[%s17060_s1 + $0x900] sm:$0xf]  ;;  %v9474_v46 = vor.u32 %v11771_v26, %v9473_v25  ;;  %3828 = vmatpush.bf16.msra.mxu1 %v9218_v32 }
  0x6e   :  { %v11703_v47 = vld [vmem:[%s17060_s1 + $0x90c] sm:$0xf0]  ;;  %v9329_v49 = vld [vmem:[%s17060_s1 + $0xa00] sm:$0xf]  ;;  %v9074_v62 = vor.u32 %v11671_v42, %v9073_v40  ;;  %3851 = vmatpush.bf16.msra.mxu2 %v9346_v39 }
  0x6f   :  { %v11735_v52 = vld [vmem:[%s17060_s1 + $0xa0c] sm:$0xf0]  ;;  %v9457_v59 = vld [vmem:[%s17060_s1 + $0xb00] sm:$0xf]  ;;  %v9202_v63 = vor.u32 %v11703_v47, %v9201_v43 }
  0x70   :  { %v11767_v60 = vld [vmem:[%s17060_s1 + $0xb0c] sm:$0xf0]  ;;  %v9330_v0 = vor.u32 %v11735_v52, %v9329_v49  ;;  %3874 = vmatpush.bf16.msra.mxu3 %v9474_v46  ;;  %3806 = vmatpush.bf16.msra.mxu0 %v9074_v62  ;;  %v102_v2 = vld [vmem:[%s17059_s0 + $0x120] sm:$0xff] }
  0x71   :  { %3720 = vmatmul.bf16.gmra.mxu0 %v13096_v45  ;;  %v9458_v1 = vor.u32 %v11767_v60, %v9457_v59  ;;  %3829 = vmatpush.bf16.msra.mxu1 %v9202_v63  ;;  %v780_v4 = vunpack.c.l.b16 %v102_v2  ;;  %v781_v5 = vunpack.c.h.b16 %v102_v2  ;;  %v9697_v12 = vld [vmem:[%s17060_s1 + $0xce0] sm:$0xf]  ;;  %v11827_v13 = vld [vmem:[%s17060_s1 + $0xcec] sm:$0xf0]  ;;  %v11391_v2 = vld [vmem:[%s17059_s0 + $0x60] sm:$0xf0] }
  0x72   :  { %3743 = vmatmul.bf16.gmra.mxu1 %v13107_v55  ;;  %3852 = vmatpush.bf16.msra.mxu2 %v9330_v0  ;;  %v9825_v14 = vld [vmem:[%s17060_s1 + $0xde0] sm:$0xf]  ;;  %v9698_v15 = vor.u32 %v11827_v13, %v9697_v12  ;;  %v11859_v16 = vld [vmem:[%s17060_s1 + $0xdec] sm:$0xf0]  ;;  %v11392_v12 = vld [vmem:[%s17059_s0 + $0x68] sm:$0xf0] }
  0x73   :  { %3766 = vmatmul.bf16.gmra.mxu2 %v13109_v58  ;;  %3789 = vmatmul.bf16.gmra.mxu3 %v13117_v61  ;;  %v13129_v8 = vpack.c.b16 %v780_v4, %v780_v4  ;;  %v13131_v9 = vpack.c.b16 %v781_v5, %v781_v5  ;;  %v9953_v17 = vld [vmem:[%s17060_s1 + $0xee0] sm:$0xf]  ;;  %v11891_v18 = vld [vmem:[%s17060_s1 + $0xeec] sm:$0xf0]  ;;  %v9826_v19 = vor.u32 %v11859_v16, %v9825_v14  ;;  %v11384_v14 = vld [vmem:[%s17059_s0 + $0x2c] sm:$0xf] }
  0x74   :  { %3875 = vmatpush.bf16.msra.mxu3 %v9458_v1  ;;  %v9954_v20 = vor.u32 %v11891_v18, %v9953_v17  ;;  %v10081_v21 = vld [vmem:[%s17060_s1 + $0xfe0] sm:$0xf]  ;;  %v11923_v22 = vld [vmem:[%s17060_s1 + $0xfec] sm:$0xf0]  ;;  %3891 = vmatpush.bf16.msrb.mxu0 %v9698_v15 }
  0x75   :  { %v9681_v23 = vld [vmem:[%s17060_s1 + $0xcc0] sm:$0xf]  ;;  %v10082_v24 = vor.u32 %v11923_v22, %v10081_v21  ;;  %v11823_v25 = vld [vmem:[%s17060_s1 + $0xccc] sm:$0xf0]  ;;  %3914 = vmatpush.bf16.msrb.mxu1 %v9826_v19  ;;  %v13250_v21 = vor.u32 %v11392_v12, %v7953_v7 }
  0x76   :  { %v9809_v26 = vld [vmem:[%s17060_s1 + $0xdc0] sm:$0xf]  ;;  %v11855_v27 = vld [vmem:[%s17060_s1 + $0xdcc] sm:$0xf0]  ;;  %3937 = vmatpush.bf16.msrb.mxu2 %v9954_v20  ;;  %v9682_v28 = vor.u32 %v11823_v25, %v9681_v23  ;;  %v13248_v20 = vor.u32 %v11383_v3, %v7947_v6 }
  0x77   :  { %v9810_v30 = vor.u32 %v11855_v27, %v9809_v26  ;;  %v9937_v31 = vld [vmem:[%s17060_s1 + $0xec0] sm:$0xf]  ;;  %v11887_v32 = vld [vmem:[%s17060_s1 + $0xecc] sm:$0xf0] }
  0x78   :  { %v10065_v39 = vld [vmem:[%s17060_s1 + $0xfc0] sm:$0xf]  ;;  %3960 = vmatpush.bf16.msrb.mxu3 %v10082_v24  ;;  %v9938_v40 = vor.u32 %v11887_v32, %v9937_v31  ;;  %v11919_v42 = vld [vmem:[%s17060_s1 + $0xfcc] sm:$0xf0]  ;;  %3892 = vmatpush.bf16.msrb.mxu0 %v9682_v28  ;;  %17117 = vst [vmem:[#allocation14_spill] sm:$0xff] %v13248_v20 }
  0x79   :  { %v9665_v43 = vld [vmem:[%s17060_s1 + $0xca0] sm:$0xf]  ;;  %v11819_v46 = vld [vmem:[%s17060_s1 + $0xcac] sm:$0xf0]  ;;  %v10066_v47 = vor.u32 %v11919_v42, %v10065_v39  ;;  %3915 = vmatpush.bf16.msrb.mxu1 %v9810_v30 }
  0x7a   :  { %v9793_v49 = vld [vmem:[%s17060_s1 + $0xda0] sm:$0xf]  ;;  %v11851_v52 = vld [vmem:[%s17060_s1 + $0xdac] sm:$0xf0]  ;;  %v9666_v60 = vor.u32 %v11819_v46, %v9665_v43  ;;  %3938 = vmatpush.bf16.msrb.mxu2 %v9938_v40 }
  0x7b   :  { %v9921_v59 = vld [vmem:[%s17060_s1 + $0xea0] sm:$0xf]  ;;  %v11883_v62 = vld [vmem:[%s17060_s1 + $0xeac] sm:$0xf0]  ;;  %v9794_v4 = vor.u32 %v11851_v52, %v9793_v49 }
  0x7c   :  { %v10049_v63 = vld [vmem:[%s17060_s1 + $0xfa0] sm:$0xf]  ;;  %v11915_v0 = vld [vmem:[%s17060_s1 + $0xfac] sm:$0xf0]  ;;  %v9922_v5 = vor.u32 %v11883_v62, %v9921_v59  ;;  %3961 = vmatpush.bf16.msrb.mxu3 %v10066_v47  ;;  %3893 = vmatpush.bf16.msrb.mxu0 %v9666_v60 }
  0x7d   :  { %v7945_v1 = vld [vmem:[%s17059_s0 + $0x20] sm:$0xf]  ;;  %v10050_v13 = vor.u32 %v11915_v0, %v10049_v63  ;;  %v7955_v15 = vld [vmem:[%s17059_s0 + $0x6c] sm:$0xf0]  ;;  %3916 = vmatpush.bf16.msrb.mxu1 %v9794_v4 }
  0x7e   :  { %v13237_v16 = vor.u32 %v11391_v2, %v7945_v1  ;;  %v9649_v17 = vld [vmem:[%s17060_s1 + $0xc80] sm:$0xf]  ;;  %v11815_v18 = vld [vmem:[%s17060_s1 + $0xc8c] sm:$0xf0]  ;;  %3939 = vmatpush.bf16.msrb.mxu2 %v9922_v5  ;;  %v13261_v25 = vor.u32 %v11384_v14, %v7955_v15  ;;  %v11408_v14 = vld [vmem:[%s17059_s0 + $0xe8] sm:$0xf0] }
  0x7f   :  { %v9777_v19 = vld [vmem:[%s17060_s1 + $0xd80] sm:$0xf]  ;;  %v11847_v22 = vld [vmem:[%s17060_s1 + $0xd8c] sm:$0xf0]  ;;  %v9650_v26 = vor.u32 %v11815_v18, %v9649_v17  ;;  %v11400_v18 = vld [vmem:[%s17059_s0 + $0xac] sm:$0xf] }
  0x80   :  { %v9905_v23 = vld [vmem:[%s17060_s1 + $0xe80] sm:$0xf]  ;;  %v11879_v24 = vld [vmem:[%s17060_s1 + $0xe8c] sm:$0xf0]  ;;  %17118 = vst [vmem:[#allocation15_spill] sm:$0xff] %v13261_v25  ;;  %3962 = vmatpush.bf16.msrb.mxu3 %v10050_v13  ;;  %v9778_v30 = vor.u32 %v11847_v22, %v9777_v19 }
  0x81   :  { %3725 = vmatmul.bf16.gmra.mxu0 %v13129_v8  ;;  %v10033_v27 = vld [vmem:[%s17060_s1 + $0xf80] sm:$0xf]  ;;  %v11911_v28 = vld [vmem:[%s17060_s1 + $0xf8c] sm:$0xf0]  ;;  %v9906_v31 = vor.u32 %v11879_v24, %v9905_v23  ;;  %v8013_v13 = vld [vmem:[%s17059_s0 + $0xa8] sm:$0xf] }
  0x82   :  { %3748 = vmatmul.bf16.gmra.mxu1 %v13131_v9  ;;  %v10034_v32 = vor.u32 %v11911_v28, %v10033_v27  ;;  %v9633_v39 = vld [vmem:[%s17060_s1 + $0xc60] sm:$0xf]  ;;  %v11811_v40 = vld [vmem:[%s17060_s1 + $0xc6c] sm:$0xf0]  ;;  %3894 = vmatpush.bf16.msrb.mxu0 %v9650_v26 }
  0x83   :  { %3771 = vmatmul.bf16.gmra.mxu2 %v13133_v10  ;;  %3794 = vmatmul.bf16.gmra.mxu3 %v13135_v11  ;;  %v9761_v42 = vld [vmem:[%s17060_s1 + $0xd60] sm:$0xf]  ;;  %v11843_v43 = vld [vmem:[%s17060_s1 + $0xd6c] sm:$0xf0]  ;;  %v9634_v49 = vor.u32 %v11811_v40, %v9633_v39 }
  0x84   :  { %v9889_v46 = vld [vmem:[%s17060_s1 + $0xe60] sm:$0xf]  ;;  %v11875_v47 = vld [vmem:[%s17060_s1 + $0xe6c] sm:$0xf0]  ;;  %3917 = vmatpush.bf16.msrb.mxu1 %v9778_v30  ;;  %3940 = vmatpush.bf16.msrb.mxu2 %v9906_v31  ;;  %v9762_v60 = vor.u32 %v11843_v43, %v9761_v42  ;;  %v11401_v43 = vld [vmem:[%s17059_s0 + $0xb4] sm:$0xf] }
  0x85   :  { %v10017_v52 = vld [vmem:[%s17060_s1 + $0xf60] sm:$0xf]  ;;  %v11907_v59 = vld [vmem:[%s17060_s1 + $0xf6c] sm:$0xf0]  ;;  %v9890_v62 = vor.u32 %v11875_v47, %v9889_v46  ;;  %3963 = vmatpush.bf16.msrb.mxu3 %v10034_v32  ;;  %v11409_v32 = vld [vmem:[%s17059_s0 + $0xf0] sm:$0xf0] }
  0x86   :  { %v10018_v63 = vor.u32 %v11907_v59, %v10017_v52  ;;  %v9617_v0 = vld [vmem:[%s17060_s1 + $0xc40] sm:$0xf]  ;;  %v11807_v1 = vld [vmem:[%s17060_s1 + $0xc4c] sm:$0xf0]  ;;  %3895 = vmatpush.bf16.msrb.mxu0 %v9634_v49  ;;  %v8023_v46 = vld [vmem:[%s17059_s0 + $0xf4] sm:$0xf0]  ;;  %v13369_v52 = vor.u32 %v11408_v14, %v8013_v13 }
  0x87   :  { %v9745_v2 = vld [vmem:[%s17060_s1 + $0xd40] sm:$0xf]  ;;  %v11839_v3 = vld [vmem:[%s17060_s1 + $0xd4c] sm:$0xf0]  ;;  %v9618_v6 = vor.u32 %v11807_v1, %v9617_v0 }
  0x88   :  { %v9873_v4 = vld [vmem:[%s17060_s1 + $0xe40] sm:$0xf]  ;;  %v11871_v5 = vld [vmem:[%s17060_s1 + $0xe4c] sm:$0xf0]  ;;  %3918 = vmatpush.bf16.msrb.mxu1 %v9762_v60  ;;  %3941 = vmatpush.bf16.msrb.mxu2 %v9890_v62  ;;  %v9746_v15 = vor.u32 %v11839_v3, %v9745_v2 }
  0x89   :  { %v10001_v7 = vld [vmem:[%s17060_s1 + $0xf40] sm:$0xf]  ;;  %v11903_v12 = vld [vmem:[%s17060_s1 + $0xf4c] sm:$0xf0]  ;;  %v9874_v17 = vor.u32 %v11871_v5, %v9873_v4  ;;  %3964 = vmatpush.bf16.msrb.mxu3 %v10018_v63  ;;  %v13393_v5 = vor.u32 %v11401_v43, %v8023_v46 }
  0x8a   :  { %v8015_v19 = vld [vmem:[%s17059_s0 + $0xec] sm:$0xf0]  ;;  %v10002_v23 = vor.u32 %v11903_v12, %v10001_v7  ;;  %v9601_v24 = vld [vmem:[%s17060_s1 + $0xc20] sm:$0xf]  ;;  %3896 = vmatpush.bf16.msrb.mxu0 %v9618_v6 }
  0x8b   :  { %v8021_v22 = vld [vmem:[%s17059_s0 + $0xb0] sm:$0xf]  ;;  %v9729_v27 = vld [vmem:[%s17060_s1 + $0xd20] sm:$0xf]  ;;  %v13380_v0 = vor.u32 %v11400_v18, %v8015_v19  ;;  %17121 = vst [vmem:[#allocation18_spill] sm:$0xff] %v13393_v5  ;;  %v105_v18 = vld [vmem:[%s17059_s0 + $0x138] sm:$0xff] }
  0x8c   :  { %v11803_v26 = vld [vmem:[%s17060_s1 + $0xc2c] sm:$0xf0]  ;;  %v9857_v30 = vld [vmem:[%s17060_s1 + $0xe20] sm:$0xf]  ;;  %3919 = vmatpush.bf16.msrb.mxu1 %v9746_v15  ;;  %3942 = vmatpush.bf16.msrb.mxu2 %v9874_v17  ;;  %v13382_v1 = vor.u32 %v11409_v32, %v8021_v22 }
  0x8d   :  { %v11835_v28 = vld [vmem:[%s17060_s1 + $0xd2c] sm:$0xf0]  ;;  %v9602_v39 = vor.u32 %v11803_v26, %v9601_v24  ;;  %v9985_v40 = vld [vmem:[%s17060_s1 + $0xf20] sm:$0xf]  ;;  %3965 = vmatpush.bf16.msrb.mxu3 %v10002_v23  ;;  %17119 = vst [vmem:[#allocation16_spill] sm:$0xff] %v13380_v0  ;;  %v786_v24 = vunpack.c.l.b16 %v105_v18 }
  0x8e   :  { %v11867_v31 = vld [vmem:[%s17060_s1 + $0xe2c] sm:$0xf0]  ;;  %v9730_v47 = vor.u32 %v11835_v28, %v9729_v27  ;;  %v9585_v60 = vld [vmem:[%s17060_s1 + $0xc00] sm:$0xf]  ;;  %17120 = vst [vmem:[#allocation17_spill] sm:$0xff] %v13382_v1  ;;  %v787_v27 = vunpack.c.h.b16 %v105_v18 }
  0x8f   :  { %v11899_v42 = vld [vmem:[%s17060_s1 + $0xf2c] sm:$0xf0]  ;;  %v9858_v49 = vor.u32 %v11867_v31, %v9857_v30  ;;  %v9713_v63 = vld [vmem:[%s17060_s1 + $0xd00] sm:$0xf]  ;;  %3897 = vmatpush.bf16.msrb.mxu0 %v9602_v39  ;;  %v13420_v32 = vpack.c.b16 %v786_v24, %v786_v24  ;;  %v11469_v24 = vld [vmem:[%s17060_s1 + $0x1c4] sm:$0xf] }
  0x90   :  { %v9986_v59 = vor.u32 %v11899_v42, %v9985_v40  ;;  %v11799_v62 = vld [vmem:[%s17060_s1 + $0xc0c] sm:$0xf0]  ;;  %v9841_v3 = vld [vmem:[%s17060_s1 + $0xe00] sm:$0xf]  ;;  %3920 = vmatpush.bf16.msrb.mxu1 %v9730_v47  ;;  %v13423_v42 = vpack.c.b16 %v787_v27, %v787_v27 }
  0x91   :  { %3807 = vmatmul.bf16.vlgmr.msra.gmra.mxu0 %v13237_v16  ;;  %v11831_v2 = vld [vmem:[%s17060_s1 + $0xd0c] sm:$0xf0]  ;;  %v9586_v6 = vor.u32 %v11799_v62, %v9585_v60  ;;  %v9969_v7 = vld [vmem:[%s17060_s1 + $0xf00] sm:$0xf]  ;;  %3943 = vmatpush.bf16.msrb.mxu2 %v9858_v49  ;;  %17123 = vst [vmem:[#allocation20_spill] sm:$0xff] %v13420_v32 }
  0x92   :  { %3830 = vmatmul.bf16.vlgmr.msra.gmra.mxu1 %v13248_v20  ;;  %v11863_v4 = vld [vmem:[%s17060_s1 + $0xe0c] sm:$0xf0]  ;;  %v9714_v13 = vor.u32 %v11831_v2, %v9713_v63  ;;  %3966 = vmatpush.bf16.msrb.mxu3 %v9986_v59  ;;  %v653_v19 = vld [vmem:[%s17061_s2] sm:$0xf]  ;;  %17124 = vst [vmem:[#allocation21_spill] sm:$0xff] %v13423_v42 }
  0x93   :  { %3853 = vmatmul.bf16.vlgmr.msra.gmra.mxu2 %v13250_v21  ;;  %3876 = vmatmul.bf16.vlgmr.msra.gmra.mxu3 %v13261_v25  ;;  %v11895_v12 = vld [vmem:[%s17060_s1 + $0xf0c] sm:$0xf0]  ;;  %v9842_v14 = vor.u32 %v11863_v4, %v9841_v3  ;;  %v13414_v26 = vperm.slane %v653_v19, 0  ;;  %v10209_v46 = vld [vmem:[%s17060_s1 + $0x10e0] sm:$0xf] }
  0x94   :  { %v9970_v15 = vor.u32 %v11895_v12, %v9969_v7  ;;  %3898 = vmatpush.bf16.msrb.mxu0 %v9586_v6  ;;  %3921 = vmatpush.bf16.msrb.mxu1 %v9714_v13  ;;  %v104_v17 = vld [vmem:[%s17059_s0 + $0x130] sm:$0xff]  ;;  %v11441_v49 = vld [vmem:[%s17060_s1 + $0xe4] sm:$0xf]  ;;  %v10193_v12 = vld [vmem:[%s17060_s1 + $0x10c0] sm:$0xf] }
  0x95   :  { %3944 = vmatpush.bf16.msrb.mxu2 %v9842_v14  ;;  %v784_v22 = vunpack.c.l.b16 %v104_v17  ;;  %v785_v23 = vunpack.c.h.b16 %v104_v17  ;;  %v11955_v47 = vld [vmem:[%s17060_s1 + $0x10ec] sm:$0xf0]  ;;  %v8163_v59 = vld [vmem:[%s17060_s1 + $0xf0] sm:$0xf0]  ;;  %v11473_v63 = vld [vmem:[%s17060_s1 + $0x1e4] sm:$0xf] }
  0x96   :  { %3967 = vmatpush.bf16.msrb.mxu3 %v9970_v15  ;;  %v10210_v60 = vor.u32 %v11955_v47, %v10209_v46  ;;  %v8166_v62 = vor.u32 %v11441_v49, %v8163_v59  ;;  %v8291_v2 = vld [vmem:[%s17060_s1 + $0x1f0] sm:$0xf0]  ;;  %v11505_v3 = vld [vmem:[%s17060_s1 + $0x2e4] sm:$0xf]  ;;  %v11951_v13 = vld [vmem:[%s17060_s1 + $0x10cc] sm:$0xf0] }
  0x97   :  { %v13416_v28 = vpack.c.b16 %v784_v22, %v784_v22  ;;  %v13418_v31 = vpack.c.b16 %v785_v23, %v785_v23  ;;  %v8294_v6 = vor.u32 %v11473_v63, %v8291_v2  ;;  %v8419_v7 = vld [vmem:[%s17060_s1 + $0x2f0] sm:$0xf0]  ;;  %v10194_v19 = vor.u32 %v11951_v13, %v10193_v12  ;;  %v11437_v22 = vld [vmem:[%s17060_s1 + $0xc4] sm:$0xf]  ;;  %v7961_v49 = vld [vmem:[%s17059_s0 + $0x30] sm:$0xf] }
  0x98   :  { %3983 = vmatpush.bf16.msra.mxu0 %v10210_v60  ;;  %4006 = vmatpush.bf16.msra.mxu1 %v8166_v62  ;;  %v8422_v18 = vor.u32 %v11505_v3, %v8419_v7  ;;  %v8147_v23 = vld [vmem:[%s17060_s1 + $0xd0] sm:$0xf0]  ;;  %v10177_v63 = vld [vmem:[%s17060_s1 + $0x10a0] sm:$0xf]  ;;  %v11947_v2 = vld [vmem:[%s17060_s1 + $0x10ac] sm:$0xf0] }
  0x99   :  { %17122 = vst [vmem:[#allocation19_spill] sm:$0xff] %v13418_v31  ;;  %4029 = vmatpush.bf16.msra.mxu2 %v8294_v6  ;;  %v8403_v46 = vld [vmem:[%s17060_s1 + $0x2d0] sm:$0xf0]  ;;  %v11433_v3 = vld [vmem:[%s17060_s1 + $0xa4] sm:$0xf] }
  0x9a   :  { %v11393_v59 = vld [vmem:[%s17059_s0 + $0x70] sm:$0xf0]  ;;  %4052 = vmatpush.bf16.msra.mxu3 %v8422_v18  ;;  %v11465_v7 = vld [vmem:[%s17060_s1 + $0x1a4] sm:$0xf] }
  0x9b   :  { %v8131_v6 = vld [vmem:[%s17060_s1 + $0xb0] sm:$0xf0] }
  0x9c   :  { %v8259_v12 = vld [vmem:[%s17060_s1 + $0x1b0] sm:$0xf0]  ;;  %3984 = vmatpush.bf16.msra.mxu0 %v10194_v19  ;;  %v11394_v19 = vld [vmem:[%s17059_s0 + $0x78] sm:$0xf0] }
  0x9d   :  { %v11385_v13 = vld [vmem:[%s17059_s0 + $0x34] sm:$0xf] }
  0x9e   :  { %v8387_v18 = vld [vmem:[%s17060_s1 + $0x2b0] sm:$0xf0] }
  0xa1   :  { %3812 = vmatmul.bf16.gmra.mxu0 %v13369_v52 }
  0xa2   :  { %3835 = vmatmul.bf16.gmra.mxu1 %v13380_v0 }
  0xa3   :  { %3858 = vmatmul.bf16.gmra.mxu2 %v13382_v1  ;;  %3881 = vmatmul.bf16.gmra.mxu3 %v13393_v5 }
  0xac   :  { %v3624_v30 = vpop.f32.mrf.mxu0  ;;  %v3647_v40 = vpop.f32.mrf.mxu1 }
  0xad   :  { %v3625_v39 = vadd.f32 %v3624_v30, %v13414_v26 }
  0xaf   :  { %v3648_v43 = vadd.f32 %v3647_v40, %v3625_v39  ;;  %v8150_v39 = vor.u32 %v11437_v22, %v8147_v23  ;;  %v8275_v40 = vld [vmem:[%s17060_s1 + $0x1d0] sm:$0xf0]  ;;  %v7963_v22 = vld [vmem:[%s17059_s0 + $0x74] sm:$0xf0] }
  0xb0   :  { %v8278_v60 = vor.u32 %v11469_v24, %v8275_v40  ;;  %v7969_v23 = vld [vmem:[%s17059_s0 + $0x38] sm:$0xf]  ;;  %v8262_v24 = vor.u32 %v11465_v7, %v8259_v12 }
  0xb1   :  { %3817 = vmatmul.bf16.gmra.mxu0 %v13416_v28  ;;  %4007 = vmatpush.bf16.msra.mxu1 %v8150_v39  ;;  %v13541_v7 = vor.u32 %v11394_v19, %v7969_v23 }
  0xb2   :  { %3840 = vmatmul.bf16.gmra.mxu1 %v13418_v31  ;;  %4030 = vmatpush.bf16.msra.mxu2 %v8278_v60  ;;  %v11943_v60 = vld [vmem:[%s17060_s1 + $0x108c] sm:$0xf0] }
  0xb3   :  { %3863 = vmatmul.bf16.gmra.mxu2 %v13420_v32  ;;  %3886 = vmatmul.bf16.gmra.mxu3 %v13423_v42  ;;  %v3670_v4 = vpop.f32.mrf.mxu2  ;;  %17127 = vst [vmem:[#allocation24_spill] sm:$0xff] %v13541_v7  ;;  %v8039_v42 = vld [vmem:[%s17059_s0 + $0x104] sm:$0xf0] }
  0xb4   :  { %v3671_v14 = vadd.f32 %v3670_v4, %v3648_v43  ;;  %v3693_v15 = vpop.f32.mrf.mxu3  ;;  %v3626_v17 = vpop.f32.mrf.mxu0  ;;  %v11501_v43 = vld [vmem:[%s17060_s1 + $0x2c4] sm:$0xf] }
  0xb5   :  { %v3627_v27 = vadd.f32 %v3626_v17, %v13414_v26  ;;  %v3649_v30 = vpop.f32.mrf.mxu1  ;;  %v8406_v62 = vor.u32 %v11501_v43, %v8403_v46  ;;  %v11497_v17 = vld [vmem:[%s17060_s1 + $0x2a4] sm:$0xf]  ;;  %v13528_v43 = vor.u32 %v11393_v59, %v7961_v49  ;;  %v10161_v46 = vld [vmem:[%s17060_s1 + $0x1080] sm:$0xf]  ;;  %v8115_v49 = vld [vmem:[%s17060_s1 + $0x90] sm:$0xf0] }
  0xb6   :  { %v13478_v47 = vadd.f32 %v3693_v15, %v3671_v14  ;;  %v10178_v14 = vor.u32 %v11947_v2, %v10177_v63  ;;  %v8134_v15 = vor.u32 %v11433_v3, %v8131_v6  ;;  %v8390_v39 = vor.u32 %v11497_v17, %v8387_v18  ;;  %v11429_v63 = vld [vmem:[%s17060_s1 + $0x84] sm:$0xf]  ;;  %4031 = vmatpush.bf16.msra.mxu2 %v8262_v24  ;;  %v8371_v18 = vld [vmem:[%s17060_s1 + $0x290] sm:$0xf0]  ;;  %v10145_v24 = vld [vmem:[%s17060_s1 + $0x1060] sm:$0xf] }
  0xb7   :  { %v3650_v4 = vadd.f32 %v3649_v30, %v3627_v27  ;;  %v11386_v27 = vld [vmem:[%s17059_s0 + $0x3c] sm:$0xf]  ;;  %v7971_v30 = vld [vmem:[%s17059_s0 + $0x7c] sm:$0xf0]  ;;  %4053 = vmatpush.bf16.msra.mxu3 %v8406_v62  ;;  %17125 = vst [vmem:[#allocation22_spill] sm:$0xff] %v13528_v43  ;;  %v13539_v62 = vor.u32 %v11385_v13, %v7963_v22  ;;  %v8118_v23 = vor.u32 %v11429_v63, %v8115_v49 }
  0xb8   :  { %3985 = vmatpush.bf16.msra.mxu0 %v10178_v14  ;;  %4008 = vmatpush.bf16.msra.mxu1 %v8134_v15  ;;  %v11461_v59 = vld [vmem:[%s17060_s1 + $0x184] sm:$0xf]  ;;  %v13553_v17 = vor.u32 %v11386_v27, %v7971_v30  ;;  %v10162_v14 = vor.u32 %v11943_v60, %v10161_v46  ;;  %v11939_v30 = vld [vmem:[%s17060_s1 + $0x106c] sm:$0xf0]  ;;  %v8227_v63 = vld [vmem:[%s17060_s1 + $0x170] sm:$0xf0] }
  0xb9   :  { %17126 = vst [vmem:[#allocation23_spill] sm:$0xff] %v13539_v62  ;;  %v11493_v15 = vld [vmem:[%s17060_s1 + $0x284] sm:$0xf] }
  0xba   :  { %17128 = vst [vmem:[#allocation25_spill] sm:$0xff] %v13553_v17  ;;  %v8374_v27 = vor.u32 %v11493_v15, %v8371_v18  ;;  %v11425_v46 = vld [vmem:[%s17060_s1 + $0x64] sm:$0xf] }
  0xbb   :  { %v3672_v40 = vpop.f32.mrf.mxu2  ;;  %4054 = vmatpush.bf16.msra.mxu3 %v8390_v39  ;;  %v8099_v39 = vld [vmem:[%s17060_s1 + $0x70] sm:$0xf0]  ;;  %v11457_v60 = vld [vmem:[%s17060_s1 + $0x164] sm:$0xf] }
  0xbc   :  { %v3673_v2 = vadd.f32 %v3672_v40, %v3650_v4  ;;  %v3695_v3 = vpop.f32.mrf.mxu3  ;;  %v3629_v6 = vpop.f32.mrf.mxu0  ;;  %v8243_v4 = vld [vmem:[%s17060_s1 + $0x190] sm:$0xf0]  ;;  %3986 = vmatpush.bf16.msra.mxu0 %v10162_v14  ;;  %4009 = vmatpush.bf16.msra.mxu1 %v8118_v23  ;;  %v8102_v49 = vor.u32 %v11425_v46, %v8099_v39  ;;  %v11935_v14 = vld [vmem:[%s17060_s1 + $0x104c] sm:$0xf0]  ;;  %v11421_v15 = vld [vmem:[%s17060_s1 + $0x44] sm:$0xf] }
  0xbd   :  { %v3630_v12 = vadd.f32 %v3629_v6, %v13414_v26  ;;  %v3652_v13 = vpop.f32.mrf.mxu1  ;;  %v8246_v19 = vor.u32 %v11461_v59, %v8243_v4  ;;  %v8355_v6 = vld [vmem:[%s17060_s1 + $0x270] sm:$0xf0]  ;;  %v8230_v59 = vor.u32 %v11457_v60, %v8227_v63 }
  0xbe   :  { %v13561_v22 = vadd.f32 %v3695_v3, %v3673_v2  ;;  %v10146_v2 = vor.u32 %v11939_v30, %v10145_v24  ;;  %v11489_v3 = vld [vmem:[%s17060_s1 + $0x264] sm:$0xf]  ;;  %v8211_v30 = vld [vmem:[%s17060_s1 + $0x150] sm:$0xf0] }
  0xbf   :  { %v3653_v40 = vadd.f32 %v3652_v13, %v3630_v12  ;;  %4032 = vmatpush.bf16.msra.mxu2 %v8246_v19  ;;  %4055 = vmatpush.bf16.msra.mxu3 %v8374_v27  ;;  %v8358_v12 = vor.u32 %v11489_v3, %v8355_v6  ;;  %v10129_v13 = vld [vmem:[%s17060_s1 + $0x1040] sm:$0xf]  ;;  %v8083_v27 = vld [vmem:[%s17060_s1 + $0x50] sm:$0xf0]  ;;  %v11453_v24 = vld [vmem:[%s17060_s1 + $0x144] sm:$0xf] }
  0xc0   :  { %3987 = vmatpush.bf16.msra.mxu0 %v10146_v2  ;;  %v10130_v60 = vor.u32 %v11935_v14, %v10129_v13  ;;  %v8339_v63 = vld [vmem:[%s17060_s1 + $0x250] sm:$0xf0]  ;;  %v8029_v6 = vld [vmem:[%s17059_s0 + $0xb8] sm:$0xf]  ;;  %4010 = vmatpush.bf16.msra.mxu1 %v8102_v49  ;;  %v8086_v2 = vor.u32 %v11421_v15, %v8083_v27  ;;  %v8214_v13 = vor.u32 %v11453_v24, %v8211_v30  ;;  %v10113_v49 = vld [vmem:[%s17060_s1 + $0x1020] sm:$0xf] }
  0xc1   :  { %3899 = vmatmul.bf16.vlgmr.msrb.gmra.mxu0 %v13528_v43  ;;  %v11417_v15 = vld [vmem:[%s17060_s1 + $0x24] sm:$0xf]  ;;  %v8067_v27 = vld [vmem:[%s17060_s1 + $0x30] sm:$0xf0]  ;;  %v11927_v43 = vld [vmem:[%s17060_s1 + $0x100c] sm:$0xf0] }
  0xc2   :  { %3922 = vmatmul.bf16.vlgmr.msrb.gmra.mxu1 %v13539_v62  ;;  %v8195_v24 = vld [vmem:[%s17060_s1 + $0x130] sm:$0xf0]  ;;  %v11411_v30 = vld [vmem:[%s17059_s0 + $0x100] sm:$0xf0]  ;;  %v10097_v62 = vld [vmem:[%s17060_s1 + $0x1000] sm:$0xf] }
  0xc3   :  { %3945 = vmatmul.bf16.vlgmr.msrb.gmra.mxu2 %v13541_v7  ;;  %3968 = vmatmul.bf16.vlgmr.msrb.gmra.mxu3 %v13553_v17 }
  0xc4   :  { %v3698_v23 = vpop.f32.mrf.mxu3  ;;  %v3631_v19 = vpop.f32.mrf.mxu0  ;;  %4033 = vmatpush.bf16.msra.mxu2 %v8230_v59  ;;  %4056 = vmatpush.bf16.msra.mxu3 %v8358_v12  ;;  %v11931_v59 = vld [vmem:[%s17060_s1 + $0x102c] sm:$0xf0]  ;;  %v11449_v12 = vld [vmem:[%s17060_s1 + $0x124] sm:$0xf] }
  0xc5   :  { %v3675_v4 = vpop.f32.mrf.mxu2  ;;  %v3632_v46 = vadd.f32 %v3631_v19, %v13414_v26  ;;  %v3654_v39 = vpop.f32.mrf.mxu1  ;;  %v11402_v19 = vld [vmem:[%s17059_s0 + $0xbc] sm:$0xf]  ;;  %3988 = vmatpush.bf16.msra.mxu0 %v10130_v60  ;;  %4011 = vmatpush.bf16.msra.mxu1 %v8086_v2  ;;  %v8070_v60 = vor.u32 %v11417_v15, %v8067_v27  ;;  %v11413_v2 = vld [vmem:[%s17060_s1 + $0x4] sm:$0xf] }
  0xc6   :  { %v3676_v18 = vadd.f32 %v3675_v4, %v3653_v40  ;;  %v11485_v40 = vld [vmem:[%s17060_s1 + $0x244] sm:$0xf]  ;;  %v11410_v4 = vld [vmem:[%s17059_s0 + $0xf8] sm:$0xf0] }
  0xc7   :  { %v3655_v14 = vadd.f32 %v3654_v39, %v3632_v46  ;;  %v8342_v17 = vor.u32 %v11485_v40, %v8339_v63  ;;  %v10114_v46 = vor.u32 %v11931_v59, %v10113_v49  ;;  %v11481_v39 = vld [vmem:[%s17060_s1 + $0x224] sm:$0xf]  ;;  %v8323_v40 = vld [vmem:[%s17060_s1 + $0x230] sm:$0xf0]  ;;  %v8198_v49 = vor.u32 %v11449_v12, %v8195_v24 }
  0xc8   :  { %v13616_v3 = vadd.f32 %v3698_v23, %v3676_v18  ;;  %v8031_v18 = vld [vmem:[%s17059_s0 + $0xfc] sm:$0xf0]  ;;  %v11403_v63 = vld [vmem:[%s17059_s0 + $0xc4] sm:$0xf]  ;;  %4034 = vmatpush.bf16.msra.mxu2 %v8214_v13  ;;  %v13666_v5 = vor.u32 %v11410_v4, %v8029_v6  ;;  %v8326_v7 = vor.u32 %v11481_v39, %v8323_v40  ;;  %v8179_v24 = vld [vmem:[%s17060_s1 + $0x110] sm:$0xf0] }
  0xc9   :  { %v8037_v23 = vld [vmem:[%s17059_s0 + $0xc0] sm:$0xf]  ;;  %4057 = vmatpush.bf16.msra.mxu3 %v8342_v17  ;;  %v13677_v12 = vor.u32 %v11402_v19, %v8031_v18  ;;  %v8051_v17 = vld [vmem:[%s17060_s1 + $0x10] sm:$0xf0]  ;;  %v11445_v4 = vld [vmem:[%s17060_s1 + $0x104] sm:$0xf]  ;;  %v13691_v40 = vor.u32 %v11403_v63, %v8039_v42  ;;  %3989 = vmatpush.bf16.msra.mxu0 %v10114_v46  ;;  %v10098_v19 = vor.u32 %v11927_v43, %v10097_v62 }
  0xca   :  { %v13679_v6 = vor.u32 %v11411_v30, %v8037_v23  ;;  %v11477_v18 = vld [vmem:[%s17060_s1 + $0x204] sm:$0xf]  ;;  %v8307_v23 = vld [vmem:[%s17060_s1 + $0x210] sm:$0xf0]  ;;  %4012 = vmatpush.bf16.msra.mxu1 %v8070_v60  ;;  %v8182_v25 = vor.u32 %v11445_v4, %v8179_v24 }
  0xcb   :  { %v8310_v42 = vor.u32 %v11477_v18, %v8307_v23  ;;  %v106_v60 = vld [vmem:[%s17059_s0 + $0x140] sm:$0xff] }
  0xcc   :  { %v3700_v15 = vpop.f32.mrf.mxu3  ;;  %4035 = vmatpush.bf16.msra.mxu2 %v8198_v49  ;;  %v107_v49 = vld [vmem:[%s17059_s0 + $0x148] sm:$0xff] }
  0xcd   :  { %v3677_v59 = vpop.f32.mrf.mxu2  ;;  %4058 = vmatpush.bf16.msra.mxu3 %v8326_v7  ;;  %3990 = vmatpush.bf16.msra.mxu0 %v10098_v19 }
  0xce   :  { %v3678_v13 = vadd.f32 %v3677_v59, %v3655_v14  ;;  %v3634_v27 = vpop.f32.mrf.mxu0  ;;  %v8054_v59 = vor.u32 %v11413_v2, %v8051_v17 }
  0xcf   :  { %v3635_v14 = vadd.f32 %v3634_v27, %v13414_v26  ;;  %v3657_v39 = vpop.f32.mrf.mxu1  ;;  %v790_v27 = vunpack.c.l.b16 %v107_v49 }
  0xd0   :  { %v13699_v30 = vadd.f32 %v3700_v15, %v3678_v13  ;;  %4013 = vmatpush.bf16.msra.mxu1 %v8054_v59  ;;  %4036 = vmatpush.bf16.msra.mxu2 %v8182_v25  ;;  %v788_v13 = vunpack.c.l.b16 %v106_v60  ;;  %v789_v15 = vunpack.c.h.b16 %v106_v60  ;;  %v791_v25 = vunpack.c.h.b16 %v107_v49  ;;  %v8803_v60 = vld [vmem:[%s17060_s1 + $0x5f0] sm:$0xf0] }
  0xd1   :  { %v3658_v26 = vadd.f32 %v3657_v39, %v3635_v14  ;;  %3904 = vmatmul.bf16.gmra.mxu0 %v13666_v5  ;;  %4059 = vmatpush.bf16.msra.mxu3 %v8310_v42  ;;  %v13717_v19 = vpack.c.b16 %v790_v27, %v790_v27  ;;  %v11537_v42 = vld [vmem:[%s17060_s1 + $0x3e4] sm:$0xf] }
  0xd2   :  { %3927 = vmatmul.bf16.gmra.mxu1 %v13677_v12  ;;  %v13713_v4 = vpack.c.b16 %v788_v13, %v788_v13  ;;  %v13715_v39 = vpack.c.b16 %v789_v15, %v789_v15  ;;  %v13720_v59 = vpack.c.b16 %v791_v25, %v791_v25  ;;  %v11633_v13 = vld [vmem:[%s17060_s1 + $0x6e4] sm:$0xf]  ;;  %v8931_v15 = vld [vmem:[%s17060_s1 + $0x6f0] sm:$0xf0] }
  0xd3   :  { %3950 = vmatmul.bf16.gmra.mxu2 %v13679_v6  ;;  %3973 = vmatmul.bf16.gmra.mxu3 %v13691_v40  ;;  %17130 = vst [vmem:[#allocation27_spill] sm:$0xff] %v13717_v19  ;;  %v8934_v27 = vor.u32 %v11633_v13, %v8931_v15  ;;  %v8915_v13 = vld [vmem:[%s17060_s1 + $0x6d0] sm:$0xf0] }
  0xd4   :  { %17129 = vst [vmem:[#allocation26_spill] sm:$0xff] %v13715_v39 }
  0xd5   :  { %17131 = vst [vmem:[#allocation28_spill] sm:$0xff] %v13720_v59  ;;  %4144 = vmatpush.bf16.msrb.mxu3 %v8934_v27  ;;  %v7977_v27 = vld [vmem:[%s17059_s0 + $0x40] sm:$0xf] }
  0xd6   :  { %v3680_v43 = vpop.f32.mrf.mxu2  ;;  %v3703_v46 = vpop.f32.mrf.mxu3 }
  0xd7   :  { %v3681_v62 = vadd.f32 %v3680_v43, %v3658_v26  ;;  %v3636_v63 = vpop.f32.mrf.mxu0  ;;  %v3659_v7 = vpop.f32.mrf.mxu1  ;;  %v8547_v43 = vld [vmem:[%s17060_s1 + $0x3f0] sm:$0xf0] }
  0xd8   :  { %v11601_v63 = vld [vmem:[%s17060_s1 + $0x5e4] sm:$0xf] }
  0xd9   :  { %v13711_v2 = vadd.f32 %v3703_v46, %v3681_v62  ;;  %v11569_v62 = vld [vmem:[%s17060_s1 + $0x4e4] sm:$0xf]  ;;  %v8675_v46 = vld [vmem:[%s17060_s1 + $0x4f0] sm:$0xf0]  ;;  %v8806_v49 = vor.u32 %v11601_v63, %v8803_v60 }
  0xda   :  { %v8678_v7 = vor.u32 %v11569_v62, %v8675_v46  ;;  %v8659_v62 = vld [vmem:[%s17060_s1 + $0x4d0] sm:$0xf0] }
  0xdb   :  { %4121 = vmatpush.bf16.msrb.mxu2 %v8806_v49  ;;  %v8787_v46 = vld [vmem:[%s17060_s1 + $0x5d0] sm:$0xf0]  ;;  %v11629_v49 = vld [vmem:[%s17060_s1 + $0x6c4] sm:$0xf] }
  0xdc   :  { %4098 = vmatpush.bf16.msrb.mxu1 %v8678_v7 }
  0xde   :  { %v3682_v17 = vpop.f32.mrf.mxu2  ;;  %v3705_v24 = vpop.f32.mrf.mxu3 }
  0xdf   :  { %v3716_v14 = vpop.f32.mrf.mxu0  ;;  %v3739_v23 = vpop.f32.mrf.mxu1  ;;  %v11533_v17 = vld [vmem:[%s17060_s1 + $0x3c4] sm:$0xf]  ;;  %v8531_v24 = vld [vmem:[%s17060_s1 + $0x3d0] sm:$0xf0] }
  0xe0   :  { %v3717_v18 = vadd.f32 %v3716_v14, %v13478_v47  ;;  %v8550_v47 = vor.u32 %v11537_v42, %v8547_v43  ;;  %v11565_v14 = vld [vmem:[%s17060_s1 + $0x4c4] sm:$0xf]  ;;  %v8534_v43 = vor.u32 %v11533_v17, %v8531_v24  ;;  %v8515_v17 = vld [vmem:[%s17060_s1 + $0x3b0] sm:$0xf0] }
  0xe1   :  { %3909 = vmatmul.bf16.gmra.mxu0 %v13713_v4  ;;  %v11561_v24 = vld [vmem:[%s17060_s1 + $0x4a4] sm:$0xf] }
  0xe2   :  { %v3740_v26 = vadd.f32 %v3739_v23, %v3717_v18  ;;  %3932 = vmatmul.bf16.gmra.mxu1 %v13715_v39  ;;  %4075 = vmatpush.bf16.msrb.mxu0 %v8550_v47  ;;  %v11597_v47 = vld [vmem:[%s17060_s1 + $0x5c4] sm:$0xf] }
  0xe3   :  { %3955 = vmatmul.bf16.gmra.mxu2 %v13717_v19  ;;  %3978 = vmatmul.bf16.gmra.mxu3 %v13720_v59  ;;  %v8790_v7 = vor.u32 %v11597_v47, %v8787_v46 }
  0xe5   :  { %4122 = vmatpush.bf16.msrb.mxu2 %v8790_v7 }
  0xe6   :  { %v3762_v25 = vpop.f32.mrf.mxu2  ;;  %v3785_v23 = vpop.f32.mrf.mxu3  ;;  %4076 = vmatpush.bf16.msrb.mxu0 %v8534_v43  ;;  %v8771_v43 = vld [vmem:[%s17060_s1 + $0x5b0] sm:$0xf0] }
  0xe7   :  { %v3763_v18 = vadd.f32 %v3762_v25, %v3740_v26  ;;  %v3718_v42 = vpop.f32.mrf.mxu0  ;;  %v3741_v60 = vpop.f32.mrf.mxu1  ;;  %v8662_v26 = vor.u32 %v11565_v14, %v8659_v62  ;;  %v8918_v25 = vor.u32 %v11629_v49, %v8915_v13  ;;  %v11395_v62 = vld [vmem:[%s17059_s0 + $0x80] sm:$0xf0] }
  0xe8   :  { %v3719_v63 = vadd.f32 %v3718_v42, %v13561_v22  ;;  %v11529_v22 = vld [vmem:[%s17060_s1 + $0x3a4] sm:$0xf]  ;;  %v13807_v49 = vor.u32 %v11395_v62, %v7977_v27 }
  0xe9   :  { %v13775_v15 = vadd.f32 %v3785_v23, %v3763_v18  ;;  %4099 = vmatpush.bf16.msrb.mxu1 %v8662_v26  ;;  %v8518_v18 = vor.u32 %v11529_v22, %v8515_v17  ;;  %v8643_v23 = vld [vmem:[%s17060_s1 + $0x4b0] sm:$0xf0]  ;;  %v11593_v42 = vld [vmem:[%s17060_s1 + $0x5a4] sm:$0xf]  ;;  %4145 = vmatpush.bf16.msrb.mxu3 %v8918_v25 }
  0xea   :  { %v3742_v14 = vadd.f32 %v3741_v60, %v3719_v63  ;;  %v8646_v47 = vor.u32 %v11561_v24, %v8643_v23  ;;  %v8774_v46 = vor.u32 %v11593_v42, %v8771_v43  ;;  %v11625_v63 = vld [vmem:[%s17060_s1 + $0x6a4] sm:$0xf]  ;;  %v8899_v60 = vld [vmem:[%s17060_s1 + $0x6b0] sm:$0xf0] }
  0xeb   :  { %v8902_v26 = vor.u32 %v11625_v63, %v8899_v60  ;;  %4077 = vmatpush.bf16.msrb.mxu0 %v8518_v18  ;;  %v11525_v13 = vld [vmem:[%s17060_s1 + $0x384] sm:$0xf]  ;;  %v8499_v25 = vld [vmem:[%s17060_s1 + $0x390] sm:$0xf0] }
  0xec   :  { %4123 = vmatpush.bf16.msrb.mxu2 %v8774_v46  ;;  %v11557_v22 = vld [vmem:[%s17060_s1 + $0x484] sm:$0xf]  ;;  %v8502_v27 = vor.u32 %v11525_v13, %v8499_v25  ;;  %v8627_v23 = vld [vmem:[%s17060_s1 + $0x490] sm:$0xf0] }
  0xed   :  { %4100 = vmatpush.bf16.msrb.mxu1 %v8646_v47  ;;  %4146 = vmatpush.bf16.msrb.mxu3 %v8902_v26  ;;  %v11589_v42 = vld [vmem:[%s17060_s1 + $0x584] sm:$0xf]  ;;  %v8755_v43 = vld [vmem:[%s17060_s1 + $0x590] sm:$0xf0] }
  0xee   :  { %v3764_v7 = vpop.f32.mrf.mxu2  ;;  %v3787_v24 = vpop.f32.mrf.mxu3  ;;  %v8758_v46 = vor.u32 %v11589_v42, %v8755_v43  ;;  %v11621_v63 = vld [vmem:[%s17060_s1 + $0x684] sm:$0xf]  ;;  %v8883_v60 = vld [vmem:[%s17060_s1 + $0x690] sm:$0xf0] }
  0xef   :  { %v3765_v17 = vadd.f32 %v3764_v7, %v3742_v14  ;;  %v3721_v18 = vpop.f32.mrf.mxu0  ;;  %v3744_v47 = vpop.f32.mrf.mxu1  ;;  %v8630_v14 = vor.u32 %v11557_v22, %v8627_v23  ;;  %4078 = vmatpush.bf16.msrb.mxu0 %v8502_v27  ;;  %v8886_v7 = vor.u32 %v11621_v63, %v8883_v60  ;;  %v8483_v25 = vld [vmem:[%s17060_s1 + $0x370] sm:$0xf0]  ;;  %v11553_v22 = vld [vmem:[%s17060_s1 + $0x464] sm:$0xf] }
  0xf0   :  { %v3722_v62 = vadd.f32 %v3721_v18, %v13616_v3  ;;  %v11521_v3 = vld [vmem:[%s17060_s1 + $0x364] sm:$0xf]  ;;  %v8739_v27 = vld [vmem:[%s17060_s1 + $0x570] sm:$0xf0]  ;;  %4124 = vmatpush.bf16.msrb.mxu2 %v8758_v46 }
  0xf1   :  { %v13834_v26 = vadd.f32 %v3787_v24, %v3765_v17  ;;  %3991 = vmatmul.bf16.vlgmr.msra.gmra.mxu0 %v13807_v49  ;;  %4101 = vmatpush.bf16.msrb.mxu1 %v8630_v14  ;;  %v8486_v17 = vor.u32 %v11521_v3, %v8483_v25  ;;  %v8611_v24 = vld [vmem:[%s17060_s1 + $0x470] sm:$0xf0]  ;;  %v11585_v18 = vld [vmem:[%s17060_s1 + $0x564] sm:$0xf] }
  0xf2   :  { %v3745_v13 = vadd.f32 %v3744_v47, %v3722_v62  ;;  %4014 = vmatmul.bf16.vlgmr.msra.gmra.mxu1 %v12622_v48  ;;  %v8614_v23 = vor.u32 %v11553_v22, %v8611_v24  ;;  %v8742_v42 = vor.u32 %v11585_v18, %v8739_v27  ;;  %v11617_v43 = vld [vmem:[%s17060_s1 + $0x664] sm:$0xf]  ;;  %v8867_v62 = vld [vmem:[%s17060_s1 + $0x670] sm:$0xf0]  ;;  %4147 = vmatpush.bf16.msrb.mxu3 %v8886_v7 }
  0xf3   :  { %4037 = vmatmul.bf16.vlgmr.msra.gmra.mxu2 %v12633_v53  ;;  %4060 = vmatmul.bf16.vlgmr.msra.gmra.mxu3 %v12635_v54  ;;  %v8870_v47 = vor.u32 %v11617_v43, %v8867_v62  ;;  %v11517_v63 = vld [vmem:[%s17060_s1 + $0x344] sm:$0xf]  ;;  %v8467_v46 = vld [vmem:[%s17060_s1 + $0x350] sm:$0xf0] }
  0xf4   :  { %4079 = vmatpush.bf16.msrb.mxu0 %v8486_v17  ;;  %v11549_v60 = vld [vmem:[%s17060_s1 + $0x444] sm:$0xf]  ;;  %v8470_v7 = vor.u32 %v11517_v63, %v8467_v46  ;;  %v8595_v17 = vld [vmem:[%s17060_s1 + $0x450] sm:$0xf0]  ;;  %4125 = vmatpush.bf16.msrb.mxu2 %v8742_v42  ;;  %v8045_v46 = vld [vmem:[%s17059_s0 + $0xc8] sm:$0xf] }
  0xf5   :  { %4102 = vmatpush.bf16.msrb.mxu1 %v8614_v23  ;;  %v11581_v24 = vld [vmem:[%s17060_s1 + $0x544] sm:$0xf]  ;;  %v8723_v18 = vld [vmem:[%s17060_s1 + $0x550] sm:$0xf0] }
  0xf6   :  { %v3767_v14 = vpop.f32.mrf.mxu2  ;;  %v3790_v25 = vpop.f32.mrf.mxu3  ;;  %v8726_v43 = vor.u32 %v11581_v24, %v8723_v18  ;;  %v11613_v62 = vld [vmem:[%s17060_s1 + $0x644] sm:$0xf]  ;;  %4148 = vmatpush.bf16.msrb.mxu3 %v8870_v47  ;;  %v8579_v47 = vld [vmem:[%s17060_s1 + $0x430] sm:$0xf0] }
  0xf7   :  { %v3768_v3 = vadd.f32 %v3767_v14, %v3745_v13  ;;  %v3723_v22 = vpop.f32.mrf.mxu0  ;;  %v3746_v23 = vpop.f32.mrf.mxu1  ;;  %v8598_v13 = vor.u32 %v11549_v60, %v8595_v17  ;;  %v8851_v14 = vld [vmem:[%s17060_s1 + $0x650] sm:$0xf0] }
  0xf8   :  { %v3724_v27 = vadd.f32 %v3723_v22, %v13699_v30  ;;  %v11412_v30 = vld [vmem:[%s17059_s0 + $0x108] sm:$0xf0]  ;;  %4080 = vmatpush.bf16.msrb.mxu0 %v8470_v7  ;;  %v8854_v42 = vor.u32 %v11613_v62, %v8851_v14  ;;  %v11513_v22 = vld [vmem:[%s17060_s1 + $0x324] sm:$0xf]  ;;  %v8707_v24 = vld [vmem:[%s17060_s1 + $0x530] sm:$0xf0]  ;;  %4126 = vmatpush.bf16.msrb.mxu2 %v8726_v43 }
  0xf9   :  { %v13889_v63 = vadd.f32 %v3790_v25, %v3768_v3  ;;  %4103 = vmatpush.bf16.msrb.mxu1 %v8598_v13  ;;  %v8451_v3 = vld [vmem:[%s17060_s1 + $0x330] sm:$0xf0]  ;;  %v11545_v25 = vld [vmem:[%s17060_s1 + $0x424] sm:$0xf] }
  0xfa   :  { %v3747_v60 = vadd.f32 %v3746_v23, %v3724_v27  ;;  %v8454_v17 = vor.u32 %v11513_v22, %v8451_v3  ;;  %v11577_v7 = vld [vmem:[%s17060_s1 + $0x524] sm:$0xf]  ;;  %v8582_v18 = vor.u32 %v11545_v25, %v8579_v47  ;;  %v8835_v13 = vld [vmem:[%s17060_s1 + $0x630] sm:$0xf0]  ;;  %4149 = vmatpush.bf16.msrb.mxu3 %v8854_v42  ;;  %v13921_v22 = vor.u32 %v11412_v30, %v8045_v46 }
  0xfb   :  { %v8710_v27 = vor.u32 %v11577_v7, %v8707_v24  ;;  %v11609_v23 = vld [vmem:[%s17060_s1 + $0x624] sm:$0xf]  ;;  %v8435_v3 = vld [vmem:[%s17060_s1 + $0x310] sm:$0xf0] }
  0xfc   :  { %4081 = vmatpush.bf16.msrb.mxu0 %v8454_v17  ;;  %v8838_v62 = vor.u32 %v11609_v23, %v8835_v13  ;;  %v11509_v43 = vld [vmem:[%s17060_s1 + $0x304] sm:$0xf]  ;;  %v8563_v46 = vld [vmem:[%s17060_s1 + $0x410] sm:$0xf0] }
  0xfd   :  { %4104 = vmatpush.bf16.msrb.mxu1 %v8582_v18  ;;  %v11541_v25 = vld [vmem:[%s17060_s1 + $0x404] sm:$0xf]  ;;  %v8438_v7 = vor.u32 %v11509_v43, %v8435_v3  ;;  %v8691_v24 = vld [vmem:[%s17060_s1 + $0x510] sm:$0xf0]  ;;  %4127 = vmatpush.bf16.msrb.mxu2 %v8710_v27 }
  0xfe   :  { %v3769_v14 = vpop.f32.mrf.mxu2  ;;  %v3792_v42 = vpop.f32.mrf.mxu3  ;;  %v11573_v30 = vld [vmem:[%s17060_s1 + $0x504] sm:$0xf]  ;;  %v8819_v43 = vld [vmem:[%s17060_s1 + $0x610] sm:$0xf0]  ;;  %4150 = vmatpush.bf16.msrb.mxu3 %v8838_v62  ;;  %v108_v62 = vld [vmem:[%s17059_s0 + $0x150] sm:$0xf] }
  0xff   :  { %v3770_v47 = vadd.f32 %v3769_v14, %v3747_v60  ;;  %v3726_v17 = vpop.f32.mrf.mxu0  ;;  %v3749_v23 = vpop.f32.mrf.mxu1  ;;  %v8566_v60 = vor.u32 %v11541_v25, %v8563_v46  ;;  %v8694_v13 = vor.u32 %v11573_v30, %v8691_v24  ;;  %v11605_v14 = vld [vmem:[%s17060_s1 + $0x604] sm:$0xf] }
 0x100   :  { %v3727_v18 = vadd.f32 %v3726_v17, %v13711_v2  ;;  %4082 = vmatpush.bf16.msrb.mxu0 %v8438_v7  ;;  %v8822_v54 = vor.u32 %v11605_v14, %v8819_v43  ;;  %v792_v7 = vunpack.c.l.b16 %v108_v62  ;;  %v11697_v14 = vld [vmem:[%s17060_s1 + $0x8e4] sm:$0xf]  ;;  %v9187_v43 = vld [vmem:[%s17060_s1 + $0x8f0] sm:$0xf0] }
 0x101   :  { %v13948_v3 = vadd.f32 %v3792_v42, %v3770_v47  ;;  %3996 = vmatmul.bf16.gmra.mxu0 %v13921_v22  ;;  %4105 = vmatpush.bf16.msrb.mxu1 %v8566_v60  ;;  %v11761_v62 = vld [vmem:[%s17060_s1 + $0xae4] sm:$0xf] }
 0x102   :  { %v3750_v59 = vadd.f32 %v3749_v23, %v3727_v18  ;;  %4019 = vmatmul.bf16.gmra.mxu1 %v12754_v44  ;;  %4128 = vmatpush.bf16.msrb.mxu2 %v8694_v13  ;;  %v13959_v30 = vpack.c.b16 %v792_v7, %v792_v7  ;;  %v9059_v13 = vld [vmem:[%s17060_s1 + $0x7f0] sm:$0xf0] }
 0x103   :  { %4042 = vmatmul.bf16.gmra.mxu2 %v12765_v50  ;;  %4065 = vmatmul.bf16.gmra.mxu3 %v12767_v51 }
 0x104   :  { %4151 = vmatpush.bf16.msrb.mxu3 %v8822_v54 }
 0x106   :  { %v3772_v2 = vpop.f32.mrf.mxu2  ;;  %v3795_v25 = vpop.f32.mrf.mxu3 }
 0x107   :  { %v3773_v27 = vadd.f32 %v3772_v2, %v3750_v59  ;;  %v3728_v47 = vpop.f32.mrf.mxu0  ;;  %v3751_v42 = vpop.f32.mrf.mxu1  ;;  %v11665_v59 = vld [vmem:[%s17060_s1 + $0x7e4] sm:$0xf] }
 0x108   :  { %v11729_v2 = vld [vmem:[%s17060_s1 + $0x9e4] sm:$0xf]  ;;  %v9443_v42 = vld [vmem:[%s17060_s1 + $0xaf0] sm:$0xf0] }
 0x109   :  { %v13957_v17 = vadd.f32 %v3795_v25, %v3773_v27  ;;  %v9315_v27 = vld [vmem:[%s17060_s1 + $0x9f0] sm:$0xf0]  ;;  %v9190_v25 = vor.u32 %v11697_v14, %v9187_v43  ;;  %v9446_v7 = vor.u32 %v11761_v62, %v9443_v42  ;;  %v11725_v43 = vld [vmem:[%s17060_s1 + $0x9c4] sm:$0xf] }
 0x10a   :  { %v9318_v47 = vor.u32 %v11729_v2, %v9315_v27  ;;  %v9299_v2 = vld [vmem:[%s17060_s1 + $0x9d0] sm:$0xf0]  ;;  %v11757_v62 = vld [vmem:[%s17060_s1 + $0xac4] sm:$0xf] }
 0x10b   :  { %4190 = vmatpush.bf16.msra.mxu1 %v9190_v25  ;;  %4236 = vmatpush.bf16.msra.mxu3 %v9446_v7  ;;  %v9427_v42 = vld [vmem:[%s17060_s1 + $0xad0] sm:$0xf0] }
 0x10c   :  { %4213 = vmatpush.bf16.msra.mxu2 %v9318_v47  ;;  %v9302_v47 = vor.u32 %v11725_v43, %v9299_v2  ;;  %v11753_v2 = vld [vmem:[%s17060_s1 + $0xaa4] sm:$0xf] }
 0x10e   :  { %v3774_v46 = vpop.f32.mrf.mxu2  ;;  %v3797_v24 = vpop.f32.mrf.mxu3 }
 0x10f   :  { %v3808_v18 = vpop.f32.mrf.mxu0  ;;  %v3831_v54 = vpop.f32.mrf.mxu1  ;;  %v11661_v24 = vld [vmem:[%s17060_s1 + $0x7c4] sm:$0xf] }
 0x110   :  { %v3809_v23 = vadd.f32 %v3808_v18, %v13775_v15  ;;  %v9062_v15 = vor.u32 %v11665_v59, %v9059_v13  ;;  %v9043_v18 = vld [vmem:[%s17060_s1 + $0x7d0] sm:$0xf0]  ;;  %4214 = vmatpush.bf16.msra.mxu2 %v9302_v47  ;;  %v11653_v47 = vld [vmem:[%s17060_s1 + $0x784] sm:$0xf] }
 0x111   :  { %4001 = vmatmul.bf16.gmra.mxu0 %v13959_v30  ;;  %v9046_v14 = vor.u32 %v11661_v24, %v9043_v18  ;;  %v11657_v24 = vld [vmem:[%s17060_s1 + $0x7a4] sm:$0xf] }
 0x112   :  { %v3832_v60 = vadd.f32 %v3831_v54, %v3809_v23  ;;  %4024 = vmatmul.bf16.gmra.mxu1 %v12847_v34  ;;  %4167 = vmatpush.bf16.msra.mxu0 %v9062_v15  ;;  %v11693_v23 = vld [vmem:[%s17060_s1 + $0x8c4] sm:$0xf]  ;;  %v9171_v15 = vld [vmem:[%s17060_s1 + $0x8d0] sm:$0xf0] }
 0x113   :  { %4047 = vmatmul.bf16.gmra.mxu2 %v12849_v35  ;;  %4070 = vmatmul.bf16.gmra.mxu3 %v12851_v36  ;;  %v11689_v18 = vld [vmem:[%s17060_s1 + $0x8a4] sm:$0xf] }
 0x116   :  { %v3854_v46 = vpop.f32.mrf.mxu2  ;;  %v3877_v59 = vpop.f32.mrf.mxu3  ;;  %4168 = vmatpush.bf16.msra.mxu0 %v9046_v14  ;;  %v9283_v14 = vld [vmem:[%s17060_s1 + $0x9b0] sm:$0xf0] }
 0x117   :  { %v3855_v54 = vadd.f32 %v3854_v46, %v3832_v60  ;;  %v3810_v13 = vpop.f32.mrf.mxu0  ;;  %v3833_v25 = vpop.f32.mrf.mxu1  ;;  %v9174_v60 = vor.u32 %v11693_v23, %v9171_v15  ;;  %v9430_v46 = vor.u32 %v11757_v62, %v9427_v42  ;;  %v9011_v62 = vld [vmem:[%s17060_s1 + $0x790] sm:$0xf0]  ;;  %v11685_v42 = vld [vmem:[%s17060_s1 + $0x884] sm:$0xf] }
 0x118   :  { %v3811_v27 = vadd.f32 %v3810_v13, %v13834_v26  ;;  %v9027_v26 = vld [vmem:[%s17060_s1 + $0x7b0] sm:$0xf0] }
 0x119   :  { %v14015_v7 = vadd.f32 %v3877_v59, %v3855_v54  ;;  %4191 = vmatpush.bf16.msra.mxu1 %v9174_v60  ;;  %v9030_v13 = vor.u32 %v11657_v24, %v9027_v26  ;;  %v9155_v54 = vld [vmem:[%s17060_s1 + $0x8b0] sm:$0xf0]  ;;  %v11721_v59 = vld [vmem:[%s17060_s1 + $0x9a4] sm:$0xf]  ;;  %4237 = vmatpush.bf16.msra.mxu3 %v9430_v46 }
 0x11a   :  { %v3834_v23 = vadd.f32 %v3833_v25, %v3811_v27  ;;  %v9158_v15 = vor.u32 %v11689_v18, %v9155_v54  ;;  %v9286_v43 = vor.u32 %v11721_v59, %v9283_v14  ;;  %v9411_v27 = vld [vmem:[%s17060_s1 + $0xab0] sm:$0xf0]  ;;  %v9014_v18 = vor.u32 %v11653_v47, %v9011_v62  ;;  %v11717_v54 = vld [vmem:[%s17060_s1 + $0x984] sm:$0xf] }
 0x11b   :  { %v9414_v25 = vor.u32 %v11753_v2, %v9411_v27  ;;  %4169 = vmatpush.bf16.msra.mxu0 %v9030_v13  ;;  %v9139_v13 = vld [vmem:[%s17060_s1 + $0x890] sm:$0xf0]  ;;  %v11749_v2 = vld [vmem:[%s17060_s1 + $0xa84] sm:$0xf] }
 0x11c   :  { %4215 = vmatpush.bf16.msra.mxu2 %v9286_v43  ;;  %v9267_v59 = vld [vmem:[%s17060_s1 + $0x990] sm:$0xf0] }
 0x11d   :  { %4192 = vmatpush.bf16.msra.mxu1 %v9158_v15  ;;  %4238 = vmatpush.bf16.msra.mxu3 %v9414_v25  ;;  %v9270_v43 = vor.u32 %v11717_v54, %v9267_v59  ;;  %v9395_v27 = vld [vmem:[%s17060_s1 + $0xa90] sm:$0xf0]  ;;  %v11745_v59 = vld [vmem:[%s17060_s1 + $0xa64] sm:$0xf] }
 0x11e   :  { %v3856_v60 = vpop.f32.mrf.mxu2  ;;  %v3879_v24 = vpop.f32.mrf.mxu3  ;;  %v8995_v62 = vld [vmem:[%s17060_s1 + $0x770] sm:$0xf0] }
 0x11f   :  { %v3857_v46 = vadd.f32 %v3856_v60, %v3834_v23  ;;  %v3813_v26 = vpop.f32.mrf.mxu0  ;;  %v3836_v15 = vpop.f32.mrf.mxu1  ;;  %v9142_v23 = vor.u32 %v11685_v42, %v9139_v13  ;;  %4170 = vmatpush.bf16.msra.mxu0 %v9014_v18  ;;  %v9398_v60 = vor.u32 %v11749_v2, %v9395_v27  ;;  %v11681_v42 = vld [vmem:[%s17060_s1 + $0x864] sm:$0xf]  ;;  %v9251_v18 = vld [vmem:[%s17060_s1 + $0x970] sm:$0xf0] }
 0x120   :  { %v3814_v14 = vadd.f32 %v3813_v26, %v13889_v63  ;;  %v11649_v63 = vld [vmem:[%s17060_s1 + $0x764] sm:$0xf]  ;;  %4216 = vmatpush.bf16.msra.mxu2 %v9270_v43  ;;  %v8979_v43 = vld [vmem:[%s17060_s1 + $0x750] sm:$0xf0] }
 0x121   :  { %v14066_v25 = vadd.f32 %v3879_v24, %v3857_v46  ;;  %4083 = vmatmul.bf16.vlgmr.msrb.gmra.mxu0 %v12643_v57  ;;  %4193 = vmatpush.bf16.msra.mxu1 %v9142_v23  ;;  %v8998_v46 = vor.u32 %v11649_v63, %v8995_v62  ;;  %v9123_v24 = vld [vmem:[%s17060_s1 + $0x870] sm:$0xf0]  ;;  %v11713_v26 = vld [vmem:[%s17060_s1 + $0x964] sm:$0xf] }
 0x122   :  { %v3837_v47 = vadd.f32 %v3836_v15, %v3814_v14  ;;  %4106 = vmatmul.bf16.vlgmr.msrb.gmra.mxu1 %v12964_v29  ;;  %v9126_v13 = vor.u32 %v11681_v42, %v9123_v24  ;;  %v9254_v54 = vor.u32 %v11713_v26, %v9251_v18  ;;  %v9379_v14 = vld [vmem:[%s17060_s1 + $0xa70] sm:$0xf0]  ;;  %4239 = vmatpush.bf16.msra.mxu3 %v9398_v60  ;;  %v11645_v2 = vld [vmem:[%s17060_s1 + $0x744] sm:$0xf] }
 0x123   :  { %4129 = vmatmul.bf16.vlgmr.msrb.gmra.mxu2 %v12975_v33  ;;  %4152 = vmatmul.bf16.vlgmr.msrb.gmra.mxu3 %v12977_v38  ;;  %v9382_v15 = vor.u32 %v11745_v59, %v9379_v14  ;;  %v11677_v27 = vld [vmem:[%s17060_s1 + $0x844] sm:$0xf]  ;;  %v8982_v60 = vor.u32 %v11645_v2, %v8979_v43  ;;  %v9235_v26 = vld [vmem:[%s17060_s1 + $0x950] sm:$0xf0] }
 0x124   :  { %4171 = vmatpush.bf16.msra.mxu0 %v8998_v46  ;;  %v9107_v46 = vld [vmem:[%s17060_s1 + $0x850] sm:$0xf0]  ;;  %v11709_v24 = vld [vmem:[%s17060_s1 + $0x944] sm:$0xf]  ;;  %4217 = vmatpush.bf16.msra.mxu2 %v9254_v54 }
 0x125   :  { %4194 = vmatpush.bf16.msra.mxu1 %v9126_v13  ;;  %v9238_v59 = vor.u32 %v11709_v24, %v9235_v26  ;;  %v11741_v14 = vld [vmem:[%s17060_s1 + $0xa44] sm:$0xf]  ;;  %v8963_v54 = vld [vmem:[%s17060_s1 + $0x730] sm:$0xf0] }
 0x126   :  { %v3859_v23 = vpop.f32.mrf.mxu2  ;;  %v3882_v62 = vpop.f32.mrf.mxu3  ;;  %4240 = vmatpush.bf16.msra.mxu3 %v9382_v15  ;;  %v9091_v15 = vld [vmem:[%s17060_s1 + $0x830] sm:$0xf0]  ;;  %v11737_v24 = vld [vmem:[%s17060_s1 + $0xa24] sm:$0xf] }
 0x127   :  { %v3860_v63 = vadd.f32 %v3859_v23, %v3837_v47  ;;  %v3815_v42 = vpop.f32.mrf.mxu0  ;;  %v3838_v13 = vpop.f32.mrf.mxu1  ;;  %v9110_v47 = vor.u32 %v11677_v27, %v9107_v46  ;;  %v9363_v23 = vld [vmem:[%s17060_s1 + $0xa50] sm:$0xf0]  ;;  %v11673_v27 = vld [vmem:[%s17060_s1 + $0x824] sm:$0xf] }
 0x128   :  { %v3816_v18 = vadd.f32 %v3815_v42, %v13948_v3  ;;  %4172 = vmatpush.bf16.msra.mxu0 %v8982_v60  ;;  %v9366_v43 = vor.u32 %v11741_v14, %v9363_v23  ;;  %v11641_v3 = vld [vmem:[%s17060_s1 + $0x724] sm:$0xf]  ;;  %4218 = vmatpush.bf16.msra.mxu2 %v9238_v59  ;;  %v9094_v60 = vor.u32 %v11673_v27, %v9091_v15  ;;  %v9347_v26 = vld [vmem:[%s17060_s1 + $0xa30] sm:$0xf0] }
 0x129   :  { %v14121_v2 = vadd.f32 %v3882_v62, %v3860_v63  ;;  %4195 = vmatpush.bf16.msra.mxu1 %v9110_v47  ;;  %v8966_v42 = vor.u32 %v11641_v3, %v8963_v54  ;;  %v11705_v63 = vld [vmem:[%s17060_s1 + $0x924] sm:$0xf]  ;;  %v9219_v62 = vld [vmem:[%s17060_s1 + $0x930] sm:$0xf0] }
 0x12a   :  { %v3839_v38 = vadd.f32 %v3838_v13, %v3816_v18  ;;  %v9222_v46 = vor.u32 %v11705_v63, %v9219_v62  ;;  %4241 = vmatpush.bf16.msra.mxu3 %v9366_v43  ;;  %v9350_v18 = vor.u32 %v11737_v24, %v9347_v26  ;;  %v11637_v47 = vld [vmem:[%s17060_s1 + $0x704] sm:$0xf]  ;;  %v8947_v59 = vld [vmem:[%s17060_s1 + $0x710] sm:$0xf0] }
 0x12b   :  { %v11669_v14 = vld [vmem:[%s17060_s1 + $0x804] sm:$0xf]  ;;  %v8950_v43 = vor.u32 %v11637_v47, %v8947_v59  ;;  %v9075_v27 = vld [vmem:[%s17060_s1 + $0x810] sm:$0xf0] }
 0x12c   :  { %4173 = vmatpush.bf16.msra.mxu0 %v8966_v42  ;;  %v11701_v42 = vld [vmem:[%s17060_s1 + $0x904] sm:$0xf]  ;;  %v9203_v15 = vld [vmem:[%s17060_s1 + $0x910] sm:$0xf0]  ;;  %4219 = vmatpush.bf16.msra.mxu2 %v9222_v46 }
 0x12d   :  { %4196 = vmatpush.bf16.msra.mxu1 %v9094_v60  ;;  %v9206_v60 = vor.u32 %v11701_v42, %v9203_v15  ;;  %v11733_v24 = vld [vmem:[%s17060_s1 + $0xa04] sm:$0xf]  ;;  %v9331_v26 = vld [vmem:[%s17060_s1 + $0xa10] sm:$0xf0] }
 0x12e   :  { %v3861_v13 = vpop.f32.mrf.mxu2  ;;  %v3884_v3 = vpop.f32.mrf.mxu3  ;;  %4242 = vmatpush.bf16.msra.mxu3 %v9350_v18  ;;  %v9334_v47 = vor.u32 %v11733_v24, %v9331_v26  ;;  %v9699_v24 = vld [vmem:[%s17060_s1 + $0xcf0] sm:$0xf0]  ;;  %v11857_v26 = vld [vmem:[%s17060_s1 + $0xde4] sm:$0xf] }
 0x12f   :  { %v3862_v23 = vadd.f32 %v3861_v13, %v3839_v38  ;;  %v3818_v54 = vpop.f32.mrf.mxu0  ;;  %v3841_v62 = vpop.f32.mrf.mxu1  ;;  %v9078_v38 = vor.u32 %v11669_v14, %v9075_v27 }
 0x130   :  { %v3819_v63 = vadd.f32 %v3818_v54, %v13957_v17  ;;  %4174 = vmatpush.bf16.msra.mxu0 %v8950_v43  ;;  %4220 = vmatpush.bf16.msra.mxu2 %v9206_v60  ;;  %v11825_v60 = vld [vmem:[%s17060_s1 + $0xce4] sm:$0xf] }
 0x131   :  { %v14172_v13 = vadd.f32 %v3884_v3, %v3862_v23  ;;  %4088 = vmatmul.bf16.gmra.mxu0 %v12775_v56  ;;  %4197 = vmatpush.bf16.msra.mxu1 %v9078_v38  ;;  %v9571_v38 = vld [vmem:[%s17060_s1 + $0xbf0] sm:$0xf0] }
 0x132   :  { %v3842_v59 = vadd.f32 %v3841_v62, %v3819_v63  ;;  %4111 = vmatmul.bf16.gmra.mxu1 %v13096_v45  ;;  %4243 = vmatpush.bf16.msra.mxu3 %v9334_v47  ;;  %v11793_v62 = vld [vmem:[%s17060_s1 + $0xbe4] sm:$0xf]  ;;  %v9827_v47 = vld [vmem:[%s17060_s1 + $0xdf0] sm:$0xf0] }
 0x133   :  { %4134 = vmatmul.bf16.gmra.mxu2 %v13107_v55  ;;  %4157 = vmatmul.bf16.gmra.mxu3 %v13109_v58 }
 0x136   :  { %v3864_v17 = vpop.f32.mrf.mxu2  ;;  %v3887_v14 = vpop.f32.mrf.mxu3 }
 0x137   :  { %v3865_v46 = vadd.f32 %v3864_v17, %v3842_v59  ;;  %v3820_v23 = vpop.f32.mrf.mxu0  ;;  %v3843_v3 = vpop.f32.mrf.mxu1  ;;  %v9702_v59 = vor.u32 %v11825_v60, %v9699_v24  ;;  %v9830_v17 = vor.u32 %v11857_v26, %v9827_v47  ;;  %v9683_v60 = vld [vmem:[%s17060_s1 + $0xcd0] sm:$0xf0] }
 0x138   :  { %v9811_v24 = vld [vmem:[%s17060_s1 + $0xdd0] sm:$0xf0] }
 0x139   :  { %v14178_v18 = vadd.f32 %v3887_v14, %v3865_v46  ;;  %v11889_v46 = vld [vmem:[%s17060_s1 + $0xee4] sm:$0xf]  ;;  %v9955_v14 = vld [vmem:[%s17060_s1 + $0xef0] sm:$0xf0]  ;;  %4282 = vmatpush.bf16.msrb.mxu1 %v9702_v59  ;;  %4305 = vmatpush.bf16.msrb.mxu2 %v9830_v17 }
 0x13a   :  { %v9958_v23 = vor.u32 %v11889_v46, %v9955_v14  ;;  %v11885_v17 = vld [vmem:[%s17060_s1 + $0xec4] sm:$0xf]  ;;  %v9939_v46 = vld [vmem:[%s17060_s1 + $0xed0] sm:$0xf0] }
 0x13c   :  { %4328 = vmatpush.bf16.msrb.mxu3 %v9958_v23  ;;  %v9942_v23 = vor.u32 %v11885_v17, %v9939_v46  ;;  %v11813_v17 = vld [vmem:[%s17060_s1 + $0xc84] sm:$0xf] }
 0x13e   :  { %v3866_v54 = vpop.f32.mrf.mxu2  ;;  %v3889_v43 = vpop.f32.mrf.mxu3 }
 0x13f   :  { %v3900_v27 = vpop.f32.mrf.mxu0  ;;  %v3923_v15 = vpop.f32.mrf.mxu1  ;;  %v11789_v54 = vld [vmem:[%s17060_s1 + $0xbc4] sm:$0xf]  ;;  %v9555_v43 = vld [vmem:[%s17060_s1 + $0xbd0] sm:$0xf0] }
 0x140   :  { %v3901_v42 = vadd.f32 %v3900_v27, %v14015_v7  ;;  %v9574_v7 = vor.u32 %v11793_v62, %v9571_v38  ;;  %v11821_v27 = vld [vmem:[%s17060_s1 + $0xcc4] sm:$0xf]  ;;  %v9558_v38 = vor.u32 %v11789_v54, %v9555_v43  ;;  %4329 = vmatpush.bf16.msrb.mxu3 %v9942_v23 }
 0x141   :  { %4093 = vmatmul.bf16.gmra.mxu0 %v12853_v37  ;;  %v11817_v54 = vld [vmem:[%s17060_s1 + $0xca4] sm:$0xf] }
 0x142   :  { %v3924_v63 = vadd.f32 %v3923_v15, %v3901_v42  ;;  %4116 = vmatmul.bf16.gmra.mxu1 %v13129_v8  ;;  %4259 = vmatpush.bf16.msrb.mxu0 %v9574_v7  ;;  %v11853_v7 = vld [vmem:[%s17060_s1 + $0xdc4] sm:$0xf] }
 0x143   :  { %4139 = vmatmul.bf16.gmra.mxu2 %v13131_v9  ;;  %4162 = vmatmul.bf16.gmra.mxu3 %v13133_v10  ;;  %v9814_v59 = vor.u32 %v11853_v7, %v9811_v24  ;;  %v11881_v7 = vld [vmem:[%s17060_s1 + $0xea4] sm:$0xf]  ;;  %v9923_v24 = vld [vmem:[%s17060_s1 + $0xeb0] sm:$0xf0] }
 0x145   :  { %4306 = vmatpush.bf16.msrb.mxu2 %v9814_v59  ;;  %v9523_v59 = vld [vmem:[%s17060_s1 + $0xb90] sm:$0xf0] }
 0x146   :  { %v3946_v3 = vpop.f32.mrf.mxu2  ;;  %v3969_v15 = vpop.f32.mrf.mxu3  ;;  %4260 = vmatpush.bf16.msrb.mxu0 %v9558_v38 }
 0x147   :  { %v3947_v42 = vadd.f32 %v3946_v3, %v3924_v63  ;;  %v3902_v62 = vpop.f32.mrf.mxu0  ;;  %v3925_v47 = vpop.f32.mrf.mxu1  ;;  %v9686_v63 = vor.u32 %v11821_v27, %v9683_v60  ;;  %v11785_v3 = vld [vmem:[%s17060_s1 + $0xba4] sm:$0xf] }
 0x148   :  { %v3903_v26 = vadd.f32 %v3902_v62, %v14066_v25  ;;  %v9539_v25 = vld [vmem:[%s17060_s1 + $0xbb0] sm:$0xf0] }
 0x149   :  { %v14234_v14 = vadd.f32 %v3969_v15, %v3947_v42  ;;  %4283 = vmatpush.bf16.msrb.mxu1 %v9686_v63  ;;  %v9542_v27 = vor.u32 %v11785_v3, %v9539_v25  ;;  %v9667_v42 = vld [vmem:[%s17060_s1 + $0xcb0] sm:$0xf0]  ;;  %v11849_v15 = vld [vmem:[%s17060_s1 + $0xda4] sm:$0xf] }
 0x14a   :  { %v3926_v43 = vadd.f32 %v3925_v47, %v3903_v26  ;;  %v9795_v62 = vld [vmem:[%s17060_s1 + $0xdb0] sm:$0xf0]  ;;  %v9670_v38 = vor.u32 %v11817_v54, %v9667_v42  ;;  %v9926_v26 = vor.u32 %v11881_v7, %v9923_v24  ;;  %v11781_v63 = vld [vmem:[%s17060_s1 + $0xb84] sm:$0xf] }
 0x14b   :  { %v9798_v60 = vor.u32 %v11849_v15, %v9795_v62  ;;  %4261 = vmatpush.bf16.msrb.mxu0 %v9542_v27  ;;  %v9526_v25 = vor.u32 %v11781_v63, %v9523_v59  ;;  %v9651_v54 = vld [vmem:[%s17060_s1 + $0xc90] sm:$0xf0]  ;;  %v11845_v27 = vld [vmem:[%s17060_s1 + $0xd84] sm:$0xf] }
 0x14c   :  { %4330 = vmatpush.bf16.msrb.mxu3 %v9926_v26  ;;  %v9779_v42 = vld [vmem:[%s17060_s1 + $0xd90] sm:$0xf0]  ;;  %v11809_v59 = vld [vmem:[%s17060_s1 + $0xc64] sm:$0xf] }
 0x14d   :  { %4284 = vmatpush.bf16.msrb.mxu1 %v9670_v38  ;;  %4307 = vmatpush.bf16.msrb.mxu2 %v9798_v60  ;;  %v9782_v38 = vor.u32 %v11845_v27, %v9779_v42  ;;  %v11877_v60 = vld [vmem:[%s17060_s1 + $0xe84] sm:$0xf]  ;;  %v9907_v7 = vld [vmem:[%s17060_s1 + $0xe90] sm:$0xf0] }
 0x14e   :  { %v3948_v47 = vpop.f32.mrf.mxu2  ;;  %v3971_v23 = vpop.f32.mrf.mxu3  ;;  %v9910_v26 = vor.u32 %v11877_v60, %v9907_v7  ;;  %v9507_v63 = vld [vmem:[%s17060_s1 + $0xb70] sm:$0xf0]  ;;  %v11873_v27 = vld [vmem:[%s17060_s1 + $0xe64] sm:$0xf] }
 0x14f   :  { %v3949_v46 = vadd.f32 %v3948_v47, %v3926_v43  ;;  %v3905_v3 = vpop.f32.mrf.mxu0  ;;  %v3928_v62 = vpop.f32.mrf.mxu1  ;;  %v9654_v43 = vor.u32 %v11813_v17, %v9651_v54  ;;  %4262 = vmatpush.bf16.msrb.mxu0 %v9526_v25  ;;  %v9891_v42 = vld [vmem:[%s17060_s1 + $0xe70] sm:$0xf0]  ;;  %v11805_v60 = vld [vmem:[%s17060_s1 + $0xc44] sm:$0xf] }
 0x150   :  { %v3906_v15 = vadd.f32 %v3905_v3, %v14121_v2  ;;  %v11777_v2 = vld [vmem:[%s17060_s1 + $0xb64] sm:$0xf]  ;;  %v9763_v3 = vld [vmem:[%s17060_s1 + $0xd70] sm:$0xf0]  ;;  %4331 = vmatpush.bf16.msrb.mxu3 %v9910_v26 }
 0x151   :  { %v14285_v24 = vadd.f32 %v3971_v23, %v3949_v46  ;;  %4175 = vmatmul.bf16.vlgmr.msra.gmra.mxu0 %v12985_v41  ;;  %4285 = vmatpush.bf16.msrb.mxu1 %v9654_v43  ;;  %v9510_v17 = vor.u32 %v11777_v2, %v9507_v63  ;;  %v9635_v46 = vld [vmem:[%s17060_s1 + $0xc70] sm:$0xf0]  ;;  %v11841_v23 = vld [vmem:[%s17060_s1 + $0xd64] sm:$0xf] }
 0x152   :  { %v3929_v47 = vadd.f32 %v3928_v62, %v3906_v15  ;;  %4198 = vmatmul.bf16.vlgmr.msra.gmra.mxu1 %v13237_v16  ;;  %4308 = vmatpush.bf16.msrb.mxu2 %v9782_v38  ;;  %v9638_v25 = vor.u32 %v11809_v59, %v9635_v46  ;;  %v9766_v54 = vor.u32 %v11841_v23, %v9763_v3  ;;  %v11773_v43 = vld [vmem:[%s17060_s1 + $0xb44] sm:$0xf]  ;;  %v9491_v38 = vld [vmem:[%s17060_s1 + $0xb50] sm:$0xf0] }
 0x153   :  { %4221 = vmatmul.bf16.vlgmr.msra.gmra.mxu2 %v13248_v20  ;;  %4244 = vmatmul.bf16.vlgmr.msra.gmra.mxu3 %v13250_v21  ;;  %v9894_v15 = vor.u32 %v11873_v27, %v9891_v42  ;;  %v9494_v26 = vor.u32 %v11773_v43, %v9491_v38  ;;  %v9619_v59 = vld [vmem:[%s17060_s1 + $0xc50] sm:$0xf0]  ;;  %v11869_v27 = vld [vmem:[%s17060_s1 + $0xe44] sm:$0xf] }
 0x154   :  { %4263 = vmatpush.bf16.msrb.mxu0 %v9510_v17  ;;  %v11837_v17 = vld [vmem:[%s17060_s1 + $0xd44] sm:$0xf]  ;;  %v9747_v46 = vld [vmem:[%s17060_s1 + $0xd50] sm:$0xf0] }
 0x155   :  { %4286 = vmatpush.bf16.msrb.mxu1 %v9638_v25  ;;  %v9750_v25 = vor.u32 %v11837_v17, %v9747_v46  ;;  %v9875_v42 = vld [vmem:[%s17060_s1 + $0xe50] sm:$0xf0]  ;;  %4332 = vmatpush.bf16.msrb.mxu3 %v9894_v15  ;;  %v11865_v17 = vld [vmem:[%s17060_s1 + $0xe24] sm:$0xf] }
 0x156   :  { %v3951_v62 = vpop.f32.mrf.mxu2  ;;  %v3974_v2 = vpop.f32.mrf.mxu3  ;;  %4309 = vmatpush.bf16.msrb.mxu2 %v9766_v54  ;;  %v9878_v43 = vor.u32 %v11869_v27, %v9875_v42  ;;  %v9475_v54 = vld [vmem:[%s17060_s1 + $0xb30] sm:$0xf0]  ;;  %v11797_v27 = vld [vmem:[%s17060_s1 + $0xc04] sm:$0xf] }
 0x157   :  { %v3952_v7 = vadd.f32 %v3951_v62, %v3929_v47  ;;  %v3907_v63 = vpop.f32.mrf.mxu0  ;;  %v3930_v3 = vpop.f32.mrf.mxu1  ;;  %v9622_v47 = vor.u32 %v11805_v60, %v9619_v59  ;;  %v11801_v60 = vld [vmem:[%s17060_s1 + $0xc24] sm:$0xf]  ;;  %v9603_v15 = vld [vmem:[%s17060_s1 + $0xc30] sm:$0xf0] }
 0x158   :  { %v3908_v23 = vadd.f32 %v3907_v63, %v14172_v13  ;;  %4264 = vmatpush.bf16.msrb.mxu0 %v9494_v26  ;;  %v11769_v13 = vld [vmem:[%s17060_s1 + $0xb24] sm:$0xf]  ;;  %v9606_v26 = vor.u32 %v11801_v60, %v9603_v15  ;;  %v9859_v46 = vld [vmem:[%s17060_s1 + $0xe30] sm:$0xf0] }
 0x159   :  { %v14340_v62 = vadd.f32 %v3974_v2, %v3952_v7  ;;  %4287 = vmatpush.bf16.msrb.mxu1 %v9622_v47  ;;  %v9478_v63 = vor.u32 %v11769_v13, %v9475_v54  ;;  %v11833_v7 = vld [vmem:[%s17060_s1 + $0xd24] sm:$0xf]  ;;  %v9731_v2 = vld [vmem:[%s17060_s1 + $0xd30] sm:$0xf0]  ;;  %4333 = vmatpush.bf16.msrb.mxu3 %v9878_v43 }
 0x15a   :  { %v3931_v38 = vadd.f32 %v3930_v3, %v3908_v23  ;;  %4310 = vmatpush.bf16.msrb.mxu2 %v9750_v25  ;;  %v9734_v59 = vor.u32 %v11833_v7, %v9731_v2  ;;  %v9862_v23 = vor.u32 %v11865_v17, %v9859_v46  ;;  %v11765_v47 = vld [vmem:[%s17060_s1 + $0xb04] sm:$0xf]  ;;  %v9459_v25 = vld [vmem:[%s17060_s1 + $0xb10] sm:$0xf0] }
 0x15b   :  { %v9462_v43 = vor.u32 %v11765_v47, %v9459_v25  ;;  %v9587_v60 = vld [vmem:[%s17060_s1 + $0xc10] sm:$0xf0]  ;;  %v11861_v17 = vld [vmem:[%s17060_s1 + $0xe04] sm:$0xf] }
 0x15c   :  { %4265 = vmatpush.bf16.msrb.mxu0 %v9478_v63  ;;  %v11829_v63 = vld [vmem:[%s17060_s1 + $0xd04] sm:$0xf]  ;;  %v9715_v15 = vld [vmem:[%s17060_s1 + $0xd10] sm:$0xf0] }
 0x15d   :  { %4288 = vmatpush.bf16.msrb.mxu1 %v9606_v26  ;;  %v9718_v26 = vor.u32 %v11829_v63, %v9715_v15  ;;  %v9843_v46 = vld [vmem:[%s17060_s1 + $0xe10] sm:$0xf0]  ;;  %4334 = vmatpush.bf16.msrb.mxu3 %v9862_v23  ;;  %v12268_v63 = vld [vmem:[%s17061_s2] sm:$0xf] }
 0x15e   :  { %v3953_v3 = vpop.f32.mrf.mxu2  ;;  %v3976_v13 = vpop.f32.mrf.mxu3  ;;  %4311 = vmatpush.bf16.msrb.mxu2 %v9734_v59  ;;  %v9846_v47 = vor.u32 %v11861_v17, %v9843_v46  ;;  %v14402_v15 = vperm.slane %v12268_v63, 1  ;;  %v11953_v17 = vld [vmem:[%s17060_s1 + $0x10e4] sm:$0xf]  ;;  %v10067_v63 = vld [vmem:[%s17060_s1 + $0xfd0] sm:$0xf0] }
 0x15f   :  { %v3954_v42 = vadd.f32 %v3953_v3, %v3931_v38  ;;  %v3910_v54 = vpop.f32.mrf.mxu0  ;;  %v3933_v2 = vpop.f32.mrf.mxu1  ;;  %v9590_v38 = vor.u32 %v11797_v27, %v9587_v60 }
 0x160   :  { %v3911_v7 = vadd.f32 %v3910_v54, %v14178_v18  ;;  %4266 = vmatpush.bf16.msrb.mxu0 %v9462_v43 }
 0x161   :  { %v14391_v3 = vadd.f32 %v3976_v13, %v3954_v42  ;;  %4180 = vmatmul.bf16.gmra.mxu0 %v13117_v61  ;;  %4289 = vmatpush.bf16.msrb.mxu1 %v9590_v38  ;;  %v11921_v38 = vld [vmem:[%s17060_s1 + $0xfe4] sm:$0xf] }
 0x162   :  { %v3934_v25 = vadd.f32 %v3933_v2, %v3911_v7  ;;  %4203 = vmatmul.bf16.gmra.mxu1 %v13369_v52  ;;  %4312 = vmatpush.bf16.msrb.mxu2 %v9718_v26  ;;  %v10083_v26 = vld [vmem:[%s17060_s1 + $0xff0] sm:$0xf0] }
 0x163   :  { %4226 = vmatmul.bf16.gmra.mxu2 %v13380_v0  ;;  %4249 = vmatmul.bf16.gmra.mxu3 %v13382_v1 }
 0x164   :  { %4335 = vmatpush.bf16.msrb.mxu3 %v9846_v47  ;;  %v10211_v47 = vld [vmem:[%s17060_s1 + $0x10f0] sm:$0xf0] }
 0x166   :  { %v3956_v18 = vpop.f32.mrf.mxu2  ;;  %v3979_v27 = vpop.f32.mrf.mxu3 }
 0x167   :  { %v3957_v59 = vadd.f32 %v3956_v18, %v3934_v25  ;;  %v3912_v42 = vpop.f32.mrf.mxu0  ;;  %v3935_v13 = vpop.f32.mrf.mxu1  ;;  %v8169_v25 = vld [vmem:[%s17060_s1 + $0xe8] sm:$0xf]  ;;  %v11444_v18 = vld [vmem:[%s17060_s1 + $0xf4] sm:$0xf0] }
 0x168   :  { %v8297_v42 = vld [vmem:[%s17060_s1 + $0x1e8] sm:$0xf]  ;;  %v11476_v13 = vld [vmem:[%s17060_s1 + $0x1f4] sm:$0xf0] }
 0x169   :  { %v14397_v23 = vadd.f32 %v3979_v27, %v3957_v59  ;;  %v10214_v59 = vor.u32 %v11953_v17, %v10211_v47  ;;  %v8170_v27 = vor.u32 %v11444_v18, %v8169_v25  ;;  %v10195_v47 = vld [vmem:[%s17060_s1 + $0x10d0] sm:$0xf0]  ;;  %v8153_v25 = vld [vmem:[%s17060_s1 + $0xc8] sm:$0xf]  ;;  %v11440_v18 = vld [vmem:[%s17060_s1 + $0xd4] sm:$0xf0] }
 0x16b   :  { %4374 = vmatpush.bf16.msra.mxu1 %v10214_v59  ;;  %4397 = vmatpush.bf16.msra.mxu2 %v8170_v27 }
 0x16e   :  { %v3958_v54 = vpop.f32.mrf.mxu2  ;;  %v3981_v43 = vpop.f32.mrf.mxu3 }
 0x16f   :  { %v3992_v60 = vpop.f32.mrf.mxu0  ;;  %v4015_v2 = vpop.f32.mrf.mxu1  ;;  %v8298_v54 = vor.u32 %v11476_v13, %v8297_v42  ;;  %v8154_v42 = vor.u32 %v11440_v18, %v8153_v25  ;;  %v8281_v13 = vld [vmem:[%s17060_s1 + $0x1c8] sm:$0xf] }
 0x170   :  { %v14405_v7 = vadd.f32 %v3992_v60, %v14234_v14  ;;  %v4016_v46 = vadd.f32 %v4015_v2, %v14402_v15  ;;  %v10086_v14 = vor.u32 %v11921_v38, %v10083_v26  ;;  %v11917_v60 = vld [vmem:[%s17060_s1 + $0xfc4] sm:$0xf]  ;;  %v8265_v18 = vld [vmem:[%s17060_s1 + $0x1a8] sm:$0xf] }
 0x171   :  { %4185 = vmatmul.bf16.gmra.mxu0 %v13135_v11  ;;  %v11949_v2 = vld [vmem:[%s17060_s1 + $0x10c4] sm:$0xf]  ;;  %4420 = vmatpush.bf16.msra.mxu3 %v8298_v54  ;;  %v11472_v54 = vld [vmem:[%s17060_s1 + $0x1d4] sm:$0xf0] }
 0x172   :  { %17132 = vst [vmem:[#allocation29_spill] sm:$0xff] %v14405_v7  ;;  %4208 = vmatmul.bf16.gmra.mxu1 %v13416_v28  ;;  %4351 = vmatpush.bf16.msra.mxu0 %v10086_v14  ;;  %v10070_v14 = vor.u32 %v11917_v60, %v10067_v63  ;;  %v10198_v27 = vor.u32 %v11949_v2, %v10195_v47  ;;  %v10051_v63 = vld [vmem:[%s17060_s1 + $0xfb0] sm:$0xf0]  ;;  %v11945_v2 = vld [vmem:[%s17060_s1 + $0x10a4] sm:$0xf] }
 0x173   :  { %4231 = vmatmul.bf16.gmra.mxu2 %v13418_v31  ;;  %4254 = vmatmul.bf16.gmra.mxu3 %v13420_v32  ;;  %v8282_v60 = vor.u32 %v11472_v54, %v8281_v13 }
 0x174   :  { %4375 = vmatpush.bf16.msra.mxu1 %v10198_v27  ;;  %4398 = vmatpush.bf16.msra.mxu2 %v8154_v42  ;;  %v11468_v27 = vld [vmem:[%s17060_s1 + $0x1b4] sm:$0xf0] }
 0x175   :  { %4421 = vmatpush.bf16.msra.mxu3 %v8282_v60  ;;  %v8266_v42 = vor.u32 %v11468_v27, %v8265_v18  ;;  %v11909_v60 = vld [vmem:[%s17060_s1 + $0xf84] sm:$0xf] }
 0x176   :  { %v4038_v43 = vpop.f32.mrf.mxu2  ;;  %v4061_v26 = vpop.f32.mrf.mxu3  ;;  %4352 = vmatpush.bf16.msra.mxu0 %v10070_v14  ;;  %v11436_v14 = vld [vmem:[%s17060_s1 + $0xb4] sm:$0xf0] }
 0x177   :  { %v4039_v38 = vadd.f32 %v4038_v43, %v4016_v46  ;;  %v3994_v17 = vpop.f32.mrf.mxu0  ;;  %v4017_v46 = vpop.f32.mrf.mxu1 }
 0x178   :  { %v14455_v59 = vadd.f32 %v3994_v17, %v14285_v24  ;;  %v11913_v24 = vld [vmem:[%s17060_s1 + $0xfa4] sm:$0xf]  ;;  %v4018_v13 = vadd.f32 %v4017_v46, %v14402_v15 }
 0x179   :  { %v14463_v43 = vadd.f32 %v4061_v26, %v4039_v38  ;;  %v10054_v17 = vor.u32 %v11913_v24, %v10051_v63  ;;  %v10179_v38 = vld [vmem:[%s17060_s1 + $0x10b0] sm:$0xf0]  ;;  %v8137_v26 = vld [vmem:[%s17060_s1 + $0xa8] sm:$0xf]  ;;  %v11941_v63 = vld [vmem:[%s17060_s1 + $0x1084] sm:$0xf]  ;;  %4422 = vmatpush.bf16.msra.mxu3 %v8266_v42 }
 0x17a   :  { %17133 = vst [vmem:[#allocation30_spill] sm:$0xff] %v14455_v59  ;;  %v10182_v47 = vor.u32 %v11945_v2, %v10179_v38  ;;  %v8138_v25 = vor.u32 %v11436_v14, %v8137_v26  ;;  %v10035_v24 = vld [vmem:[%s17060_s1 + $0xf90] sm:$0xf0]  ;;  %v8121_v14 = vld [vmem:[%s17060_s1 + $0x88] sm:$0xf] }
 0x17b   :  { %4353 = vmatpush.bf16.msra.mxu0 %v10054_v17  ;;  %v10038_v46 = vor.u32 %v11909_v60, %v10035_v24  ;;  %v10163_v17 = vld [vmem:[%s17060_s1 + $0x1090] sm:$0xf0]  ;;  %v8249_v42 = vld [vmem:[%s17060_s1 + $0x188] sm:$0xf] }
 0x17c   :  { %4376 = vmatpush.bf16.msra.mxu1 %v10182_v47  ;;  %4399 = vmatpush.bf16.msra.mxu2 %v8138_v25  ;;  %v11432_v47 = vld [vmem:[%s17060_s1 + $0x94] sm:$0xf0]  ;;  %v10166_v27 = vor.u32 %v11941_v63, %v10163_v17  ;;  %v17135_v59 = vld [vmem:[#allocation15_spill] sm:$0xff] }
 0x17d   :  { %v10019_v63 = vld [vmem:[%s17060_s1 + $0xf70] sm:$0xf0] }
 0x17e   :  { %v4040_v54 = vpop.f32.mrf.mxu2  ;;  %v4063_v38 = vpop.f32.mrf.mxu3 }
 0x17f   :  { %v4041_v2 = vadd.f32 %v4040_v54, %v4018_v13  ;;  %v3997_v26 = vpop.f32.mrf.mxu0  ;;  %v4020_v18 = vpop.f32.mrf.mxu1  ;;  %v8122_v13 = vor.u32 %v11432_v47, %v8121_v14  ;;  %v11464_v54 = vld [vmem:[%s17060_s1 + $0x194] sm:$0xf0]  ;;  %4354 = vmatpush.bf16.msra.mxu0 %v10038_v46  ;;  %v17137_v46 = vld [vmem:[#allocation23_spill] sm:$0xff]  ;;  %v8105_v47 = vld [vmem:[%s17060_s1 + $0x68] sm:$0xf] }
 0x180   :  { %v14509_v25 = vadd.f32 %v3997_v26, %v14340_v62  ;;  %v8250_v24 = vor.u32 %v11464_v54, %v8249_v42  ;;  %4377 = vmatpush.bf16.msra.mxu1 %v10166_v27  ;;  %v11905_v62 = vld [vmem:[%s17060_s1 + $0xf64] sm:$0xf]  ;;  %v10147_v14 = vld [vmem:[%s17060_s1 + $0x1070] sm:$0xf0]  ;;  %v11428_v27 = vld [vmem:[%s17060_s1 + $0x74] sm:$0xf0] }
 0x181   :  { %v14517_v60 = vadd.f32 %v4063_v38, %v4041_v2  ;;  %4267 = vmatmul.bf16.vlgmr.msrb.gmra.mxu0 %v17135_v59  ;;  %v11937_v26 = vld [vmem:[%s17060_s1 + $0x1064] sm:$0xf]  ;;  %v4021_v2 = vadd.f32 %v4020_v18, %v14402_v15  ;;  %v17136_v38 = vld [vmem:[#allocation22_spill] sm:$0xff]  ;;  %v10022_v17 = vor.u32 %v11905_v62, %v10019_v63  ;;  %v17138_v42 = vld [vmem:[#allocation24_spill] sm:$0xff]  ;;  %4400 = vmatpush.bf16.msra.mxu2 %v8122_v13 }
 0x182   :  { %17134 = vst [vmem:[#allocation31_spill] sm:$0xff] %v14509_v25  ;;  %4290 = vmatmul.bf16.vlgmr.msrb.gmra.mxu1 %v17136_v38  ;;  %v10150_v18 = vor.u32 %v11937_v26, %v10147_v14  ;;  %v8106_v54 = vor.u32 %v11428_v27, %v8105_v47  ;;  %v8233_v62 = vld [vmem:[%s17060_s1 + $0x168] sm:$0xf]  ;;  %v11460_v63 = vld [vmem:[%s17060_s1 + $0x174] sm:$0xf0]  ;;  %4423 = vmatpush.bf16.msra.mxu3 %v8250_v24 }
 0x183   :  { %4313 = vmatmul.bf16.vlgmr.msrb.gmra.mxu2 %v17137_v46  ;;  %4336 = vmatmul.bf16.vlgmr.msrb.gmra.mxu3 %v17138_v42  ;;  %v8234_v25 = vor.u32 %v11460_v63, %v8233_v62  ;;  %v11901_v42 = vld [vmem:[%s17060_s1 + $0xf44] sm:$0xf]  ;;  %v10003_v13 = vld [vmem:[%s17060_s1 + $0xf50] sm:$0xf0]  ;;  %v11424_v62 = vld [vmem:[%s17060_s1 + $0x54] sm:$0xf0] }
 0x184   :  { %4355 = vmatpush.bf16.msra.mxu0 %v10022_v17  ;;  %4378 = vmatpush.bf16.msra.mxu1 %v10150_v18  ;;  %v11933_v26 = vld [vmem:[%s17060_s1 + $0x1044] sm:$0xf]  ;;  %v10006_v24 = vor.u32 %v11901_v42, %v10003_v13  ;;  %v10131_v17 = vld [vmem:[%s17060_s1 + $0x1050] sm:$0xf0]  ;;  %v8089_v18 = vld [vmem:[%s17060_s1 + $0x48] sm:$0xf] }
 0x185   :  { %4401 = vmatpush.bf16.msra.mxu2 %v8106_v54  ;;  %v8217_v42 = vld [vmem:[%s17060_s1 + $0x148] sm:$0xf]  ;;  %v11456_v13 = vld [vmem:[%s17060_s1 + $0x154] sm:$0xf0]  ;;  %v9987_v54 = vld [vmem:[%s17060_s1 + $0xf30] sm:$0xf0] }
 0x186   :  { %v4043_v7 = vpop.f32.mrf.mxu2  ;;  %v4066_v47 = vpop.f32.mrf.mxu3  ;;  %4424 = vmatpush.bf16.msra.mxu3 %v8234_v25  ;;  %v8218_v46 = vor.u32 %v11456_v13, %v8217_v42  ;;  %v10115_v25 = vld [vmem:[%s17060_s1 + $0x1030] sm:$0xf0]  ;;  %v17141_v38 = vld [vmem:[#allocation18_spill] sm:$0xff] }
 0x187   :  { %v4044_v14 = vadd.f32 %v4043_v7, %v4021_v2  ;;  %v3999_v27 = vpop.f32.mrf.mxu0  ;;  %v4022_v32 = vpop.f32.mrf.mxu1  ;;  %v10134_v7 = vor.u32 %v11933_v26, %v10131_v17  ;;  %v8090_v2 = vor.u32 %v11424_v62, %v8089_v18  ;;  %v11929_v26 = vld [vmem:[%s17060_s1 + $0x1024] sm:$0xf]  ;;  %v8201_v18 = vld [vmem:[%s17060_s1 + $0x128] sm:$0xf]  ;;  %v11452_v62 = vld [vmem:[%s17060_s1 + $0x134] sm:$0xf0] }
 0x188   :  { %v14567_v63 = vadd.f32 %v3999_v27, %v14391_v3  ;;  %4356 = vmatpush.bf16.msra.mxu0 %v10006_v24  ;;  %v11897_v3 = vld [vmem:[%s17060_s1 + $0xf24] sm:$0xf]  ;;  %v10118_v24 = vor.u32 %v11929_v26, %v10115_v25  ;;  %v8202_v42 = vor.u32 %v11452_v62, %v8201_v18 }
 0x189   :  { %v14575_v1 = vadd.f32 %v4066_v47, %v4044_v14  ;;  %4379 = vmatpush.bf16.msra.mxu1 %v10134_v7  ;;  %v9990_v27 = vor.u32 %v11897_v3, %v9987_v54  ;;  %v8073_v14 = vld [vmem:[%s17060_s1 + $0x28] sm:$0xf]  ;;  %v11420_v47 = vld [vmem:[%s17060_s1 + $0x34] sm:$0xf0]  ;;  %4402 = vmatpush.bf16.msra.mxu2 %v8090_v2  ;;  %v4023_v7 = vadd.f32 %v4022_v32, %v14402_v15  ;;  %v11893_v2 = vld [vmem:[%s17060_s1 + $0xf04] sm:$0xf] }
 0x18a   :  { %17139 = vst [vmem:[#allocation15_spill] sm:$0xff] %v14567_v63  ;;  %v8074_v17 = vor.u32 %v11420_v47, %v8073_v14  ;;  %4425 = vmatpush.bf16.msra.mxu3 %v8218_v46  ;;  %v9971_v3 = vld [vmem:[%s17060_s1 + $0xf10] sm:$0xf0]  ;;  %v11925_v54 = vld [vmem:[%s17060_s1 + $0x1004] sm:$0xf] }
 0x18b   :  { %v9974_v46 = vor.u32 %v11893_v2, %v9971_v3  ;;  %v8057_v14 = vld [vmem:[%s17060_s1 + $0x8] sm:$0xf]  ;;  %v11416_v47 = vld [vmem:[%s17060_s1 + $0x14] sm:$0xf0] }
 0x18c   :  { %4357 = vmatpush.bf16.msra.mxu0 %v9990_v27  ;;  %v10099_v27 = vld [vmem:[%s17060_s1 + $0x1010] sm:$0xf0]  ;;  %v11448_v2 = vld [vmem:[%s17060_s1 + $0x114] sm:$0xf0] }
 0x18d   :  { %4380 = vmatpush.bf16.msra.mxu1 %v10118_v24  ;;  %4403 = vmatpush.bf16.msra.mxu2 %v8074_v17  ;;  %v10102_v62 = vor.u32 %v11925_v54, %v10099_v27 }
 0x18e   :  { %v4045_v13 = vpop.f32.mrf.mxu2  ;;  %v4068_v25 = vpop.f32.mrf.mxu3  ;;  %4426 = vmatpush.bf16.msra.mxu3 %v8202_v42 }
 0x18f   :  { %v4046_v26 = vadd.f32 %v4045_v13, %v4023_v7  ;;  %v4002_v32 = vpop.f32.mrf.mxu0  ;;  %v4025_v18 = vpop.f32.mrf.mxu1  ;;  %v8058_v7 = vor.u32 %v11416_v47, %v8057_v14  ;;  %v8185_v13 = vld [vmem:[%s17060_s1 + $0x108] sm:$0xf] }
 0x190   :  { %v14621_v24 = vadd.f32 %v4002_v32, %v14397_v23  ;;  %4358 = vmatpush.bf16.msra.mxu0 %v9974_v46  ;;  %v8186_v63 = vor.u32 %v11448_v2, %v8185_v13  ;;  %v4026_v23 = vadd.f32 %v4025_v18, %v14402_v15  ;;  %v8553_v13 = vld [vmem:[%s17060_s1 + $0x3e8] sm:$0xf]  ;;  %v11540_v2 = vld [vmem:[%s17060_s1 + $0x3f4] sm:$0xf0] }
 0x191   :  { %v14629_v3 = vadd.f32 %v4068_v25, %v4046_v26  ;;  %4272 = vmatmul.bf16.gmra.mxu0 %v17141_v38  ;;  %4381 = vmatpush.bf16.msra.mxu1 %v10102_v62  ;;  %v17142_v62 = vld [vmem:[#allocation21_spill] sm:$0xff] }
 0x192   :  { %17140 = vst [vmem:[#allocation32_spill] sm:$0xff] %v14621_v24  ;;  %4295 = vmatmul.bf16.gmra.mxu1 %v13666_v5  ;;  %4404 = vmatpush.bf16.msra.mxu2 %v8058_v7  ;;  %v11508_v7 = vld [vmem:[%s17060_s1 + $0x2f4] sm:$0xf0]  ;;  %v17143_v24 = vld [vmem:[#allocation25_spill] sm:$0xff] }
 0x193   :  { %4318 = vmatmul.bf16.gmra.mxu2 %v13677_v12  ;;  %4341 = vmatmul.bf16.gmra.mxu3 %v13679_v6 }
 0x194   :  { %4427 = vmatpush.bf16.msra.mxu3 %v8186_v63  ;;  %v8425_v63 = vld [vmem:[%s17060_s1 + $0x2e8] sm:$0xf] }
 0x196   :  { %v4048_v17 = vpop.f32.mrf.mxu2  ;;  %v4071_v26 = vpop.f32.mrf.mxu3 }
 0x197   :  { %v4049_v54 = vadd.f32 %v4048_v17, %v4026_v23  ;;  %v4004_v25 = vpop.f32.mrf.mxu0  ;;  %v4027_v42 = vpop.f32.mrf.mxu1  ;;  %v8681_v23 = vld [vmem:[%s17060_s1 + $0x4e8] sm:$0xf]  ;;  %v11572_v17 = vld [vmem:[%s17060_s1 + $0x4f4] sm:$0xf0] }
 0x198   :  { %v8809_v25 = vld [vmem:[%s17060_s1 + $0x5e8] sm:$0xf]  ;;  %v11604_v42 = vld [vmem:[%s17060_s1 + $0x5f4] sm:$0xf0] }
 0x199   :  { %v14636_v32 = vadd.f32 %v4071_v26, %v4049_v54  ;;  %v8554_v54 = vor.u32 %v11540_v2, %v8553_v13  ;;  %v8682_v26 = vor.u32 %v11572_v17, %v8681_v23  ;;  %v11536_v2 = vld [vmem:[%s17060_s1 + $0x3d4] sm:$0xf0]  ;;  %v8665_v23 = vld [vmem:[%s17060_s1 + $0x4c8] sm:$0xf] }
 0x19a   :  { %v11568_v17 = vld [vmem:[%s17060_s1 + $0x4d4] sm:$0xf0] }
 0x19b   :  { %4466 = vmatpush.bf16.msrb.mxu1 %v8554_v54  ;;  %4489 = vmatpush.bf16.msrb.mxu2 %v8682_v26 }
 0x19e   :  { %v4050_v46 = vpop.f32.mrf.mxu2  ;;  %v4073_v27 = vpop.f32.mrf.mxu3 }
 0x19f   :  { %v4084_v14 = vpop.f32.mrf.mxu0  ;;  %v4107_v47 = vpop.f32.mrf.mxu1  ;;  %v8810_v46 = vor.u32 %v11604_v42, %v8809_v25  ;;  %v8666_v25 = vor.u32 %v11568_v17, %v8665_v23  ;;  %v8793_v42 = vld [vmem:[%s17060_s1 + $0x5c8] sm:$0xf] }
 0x1a0   :  { %v4085_v15 = vadd.f32 %v4084_v14, %v14463_v43  ;;  %v8426_v43 = vor.u32 %v11508_v7, %v8425_v63  ;;  %v8409_v14 = vld [vmem:[%s17060_s1 + $0x2c8] sm:$0xf] }
 0x1a1   :  { %4277 = vmatmul.bf16.gmra.mxu0 %v17142_v62  ;;  %4512 = vmatpush.bf16.msrb.mxu3 %v8810_v46  ;;  %v11600_v46 = vld [vmem:[%s17060_s1 + $0x5d4] sm:$0xf0] }
 0x1a2   :  { %v4108_v18 = vadd.f32 %v4107_v47, %v4085_v15  ;;  %4300 = vmatmul.bf16.gmra.mxu1 %v13713_v4  ;;  %4443 = vmatpush.bf16.msrb.mxu0 %v8426_v43  ;;  %v11504_v15 = vld [vmem:[%s17060_s1 + $0x2d4] sm:$0xf0]  ;;  %v8537_v47 = vld [vmem:[%s17060_s1 + $0x3c8] sm:$0xf] }
 0x1a3   :  { %4323 = vmatmul.bf16.gmra.mxu2 %v13715_v39  ;;  %4346 = vmatmul.bf16.gmra.mxu3 %v13717_v19  ;;  %v8410_v43 = vor.u32 %v11504_v15, %v8409_v14  ;;  %v8794_v14 = vor.u32 %v11600_v46, %v8793_v42  ;;  %v8393_v15 = vld [vmem:[%s17060_s1 + $0x2a8] sm:$0xf]  ;;  %v11496_v46 = vld [vmem:[%s17060_s1 + $0x294] sm:$0xf0] }
 0x1a4   :  { %4490 = vmatpush.bf16.msrb.mxu2 %v8666_v25  ;;  %v8377_v42 = vld [vmem:[%s17060_s1 + $0x288] sm:$0xf] }
 0x1a5   :  { %4513 = vmatpush.bf16.msrb.mxu3 %v8794_v14  ;;  %v8505_v14 = vld [vmem:[%s17060_s1 + $0x388] sm:$0xf] }
 0x1a6   :  { %v4130_v27 = vpop.f32.mrf.mxu2  ;;  %v4153_v7 = vpop.f32.mrf.mxu3  ;;  %4444 = vmatpush.bf16.msrb.mxu0 %v8410_v43  ;;  %v11564_v43 = vld [vmem:[%s17060_s1 + $0x4b4] sm:$0xf0] }
 0x1a7   :  { %v4131_v63 = vadd.f32 %v4130_v27, %v4108_v18  ;;  %v4086_v13 = vpop.f32.mrf.mxu0  ;;  %v4109_v26 = vpop.f32.mrf.mxu1  ;;  %v8538_v18 = vor.u32 %v11536_v2, %v8537_v47  ;;  %v8521_v47 = vld [vmem:[%s17060_s1 + $0x3a8] sm:$0xf] }
 0x1a8   :  { %v4087_v54 = vadd.f32 %v4086_v13, %v14517_v60  ;;  %v11500_v60 = vld [vmem:[%s17060_s1 + $0x2b4] sm:$0xf0] }
 0x1a9   :  { %v14692_v27 = vadd.f32 %v4153_v7, %v4131_v63  ;;  %4467 = vmatpush.bf16.msrb.mxu1 %v8538_v18  ;;  %v8394_v2 = vor.u32 %v11500_v60, %v8393_v15  ;;  %v11532_v63 = vld [vmem:[%s17060_s1 + $0x3b4] sm:$0xf0]  ;;  %v8649_v7 = vld [vmem:[%s17060_s1 + $0x4a8] sm:$0xf] }
 0x1aa   :  { %v4110_v13 = vadd.f32 %v4109_v26, %v4087_v54  ;;  %v8522_v23 = vor.u32 %v11532_v63, %v8521_v47  ;;  %v8650_v17 = vor.u32 %v11564_v43, %v8649_v7  ;;  %v8777_v54 = vld [vmem:[%s17060_s1 + $0x5a8] sm:$0xf]  ;;  %v11596_v26 = vld [vmem:[%s17060_s1 + $0x5b4] sm:$0xf0] }
 0x1ab   :  { %v8778_v18 = vor.u32 %v11596_v26, %v8777_v54  ;;  %4445 = vmatpush.bf16.msrb.mxu0 %v8394_v2  ;;  %v8378_v2 = vor.u32 %v11496_v46, %v8377_v42  ;;  %v11528_v63 = vld [vmem:[%s17060_s1 + $0x394] sm:$0xf0]  ;;  %v8633_v7 = vld [vmem:[%s17060_s1 + $0x488] sm:$0xf] }
 0x1ac   :  { %4491 = vmatpush.bf16.msrb.mxu2 %v8650_v17  ;;  %v11560_v43 = vld [vmem:[%s17060_s1 + $0x494] sm:$0xf0]  ;;  %v8761_v26 = vld [vmem:[%s17060_s1 + $0x588] sm:$0xf] }
 0x1ad   :  { %4468 = vmatpush.bf16.msrb.mxu1 %v8522_v23  ;;  %4514 = vmatpush.bf16.msrb.mxu3 %v8778_v18  ;;  %v8634_v54 = vor.u32 %v11560_v43, %v8633_v7  ;;  %v11592_v18 = vld [vmem:[%s17060_s1 + $0x594] sm:$0xf0] }
 0x1ae   :  { %v4132_v25 = vpop.f32.mrf.mxu2  ;;  %v4155_v60 = vpop.f32.mrf.mxu3  ;;  %v8762_v42 = vor.u32 %v11592_v18, %v8761_v26  ;;  %v8345_v18 = vld [vmem:[%s17060_s1 + $0x248] sm:$0xf] }
 0x1af   :  { %v4133_v15 = vadd.f32 %v4132_v25, %v4110_v13  ;;  %v4089_v47 = vpop.f32.mrf.mxu0  ;;  %v4112_v17 = vpop.f32.mrf.mxu1  ;;  %v8506_v13 = vor.u32 %v11528_v63, %v8505_v14  ;;  %4446 = vmatpush.bf16.msrb.mxu0 %v8378_v2  ;;  %v11492_v14 = vld [vmem:[%s17060_s1 + $0x274] sm:$0xf0]  ;;  %v8617_v2 = vld [vmem:[%s17060_s1 + $0x468] sm:$0xf] }
 0x1b0   :  { %v4090_v23 = vadd.f32 %v4089_v47, %v14575_v1  ;;  %v8361_v1 = vld [vmem:[%s17060_s1 + $0x268] sm:$0xf]  ;;  %v11556_v63 = vld [vmem:[%s17060_s1 + $0x474] sm:$0xf0]  ;;  %4492 = vmatpush.bf16.msrb.mxu2 %v8634_v54 }
 0x1b1   :  { %v14743_v25 = vadd.f32 %v4155_v60, %v4133_v15  ;;  %4359 = vmatmul.bf16.vlgmr.msra.gmra.mxu0 %v17143_v24  ;;  %4469 = vmatpush.bf16.msrb.mxu1 %v8506_v13  ;;  %v8489_v47 = vld [vmem:[%s17060_s1 + $0x368] sm:$0xf]  ;;  %v8362_v15 = vor.u32 %v11492_v14, %v8361_v1  ;;  %v11524_v60 = vld [vmem:[%s17060_s1 + $0x374] sm:$0xf0]  ;;  %v8618_v43 = vor.u32 %v11556_v63, %v8617_v2 }
 0x1b2   :  { %v4113_v46 = vadd.f32 %v4112_v17, %v4090_v23  ;;  %4382 = vmatmul.bf16.vlgmr.msra.gmra.mxu1 %v13807_v49  ;;  %v8490_v7 = vor.u32 %v11524_v60, %v8489_v47  ;;  %v8745_v23 = vld [vmem:[%s17060_s1 + $0x568] sm:$0xf]  ;;  %v11588_v17 = vld [vmem:[%s17060_s1 + $0x574] sm:$0xf0]  ;;  %4515 = vmatpush.bf16.msrb.mxu3 %v8762_v42 }
 0x1b3   :  { %4405 = vmatmul.bf16.vlgmr.msra.gmra.mxu2 %v12622_v48  ;;  %4428 = vmatmul.bf16.vlgmr.msra.gmra.mxu3 %v12633_v53  ;;  %v8746_v13 = vor.u32 %v11588_v17, %v8745_v23  ;;  %v11488_v54 = vld [vmem:[%s17060_s1 + $0x254] sm:$0xf0]  ;;  %v8473_v1 = vld [vmem:[%s17060_s1 + $0x348] sm:$0xf] }
 0x1b4   :  { %4447 = vmatpush.bf16.msrb.mxu0 %v8362_v15  ;;  %v8346_v42 = vor.u32 %v11488_v54, %v8345_v18  ;;  %v11520_v15 = vld [vmem:[%s17060_s1 + $0x354] sm:$0xf0]  ;;  %v8601_v2 = vld [vmem:[%s17060_s1 + $0x448] sm:$0xf]  ;;  %4493 = vmatpush.bf16.msrb.mxu2 %v8618_v43 }
 0x1b5   :  { %4470 = vmatpush.bf16.msrb.mxu1 %v8490_v7  ;;  %v11552_v63 = vld [vmem:[%s17060_s1 + $0x454] sm:$0xf0] }
 0x1b6   :  { %v4135_v26 = vpop.f32.mrf.mxu2  ;;  %v4158_v47 = vpop.f32.mrf.mxu3  ;;  %v8602_v17 = vor.u32 %v11552_v63, %v8601_v2  ;;  %v11584_v18 = vld [vmem:[%s17060_s1 + $0x554] sm:$0xf0]  ;;  %4516 = vmatpush.bf16.msrb.mxu3 %v8746_v13  ;;  %v8713_v2 = vld [vmem:[%s17060_s1 + $0x528] sm:$0xf] }
 0x1b7   :  { %v4136_v14 = vadd.f32 %v4135_v26, %v4113_v46  ;;  %v4091_v60 = vpop.f32.mrf.mxu0  ;;  %v4114_v23 = vpop.f32.mrf.mxu1  ;;  %v8474_v46 = vor.u32 %v11520_v15, %v8473_v1  ;;  %v8729_v26 = vld [vmem:[%s17060_s1 + $0x548] sm:$0xf]  ;;  %v11484_v43 = vld [vmem:[%s17060_s1 + $0x234] sm:$0xf0] }
 0x1b8   :  { %v4092_v7 = vadd.f32 %v4091_v60, %v14629_v3  ;;  %4448 = vmatpush.bf16.msrb.mxu0 %v8346_v42  ;;  %v8730_v53 = vor.u32 %v11584_v18, %v8729_v26  ;;  %v8329_v3 = vld [vmem:[%s17060_s1 + $0x228] sm:$0xf]  ;;  %v11516_v13 = vld [vmem:[%s17060_s1 + $0x334] sm:$0xf0]  ;;  %4494 = vmatpush.bf16.msrb.mxu2 %v8602_v17 }
 0x1b9   :  { %v14798_v54 = vadd.f32 %v4158_v47, %v4136_v14  ;;  %4471 = vmatpush.bf16.msrb.mxu1 %v8474_v46  ;;  %v8457_v1 = vld [vmem:[%s17060_s1 + $0x328] sm:$0xf]  ;;  %v8330_v60 = vor.u32 %v11484_v43, %v8329_v3  ;;  %v11548_v47 = vld [vmem:[%s17060_s1 + $0x434] sm:$0xf0] }
 0x1ba   :  { %v4115_v19 = vadd.f32 %v4114_v23, %v4092_v7  ;;  %v8585_v14 = vld [vmem:[%s17060_s1 + $0x428] sm:$0xf]  ;;  %v8458_v42 = vor.u32 %v11516_v13, %v8457_v1  ;;  %v11580_v63 = vld [vmem:[%s17060_s1 + $0x534] sm:$0xf0]  ;;  %4517 = vmatpush.bf16.msrb.mxu3 %v8730_v53 }
 0x1bb   :  { %v8586_v15 = vor.u32 %v11548_v47, %v8585_v14  ;;  %v8714_v7 = vor.u32 %v11580_v63, %v8713_v2  ;;  %v8313_v46 = vld [vmem:[%s17060_s1 + $0x208] sm:$0xf]  ;;  %v11480_v17 = vld [vmem:[%s17060_s1 + $0x214] sm:$0xf0] }
 0x1bc   :  { %4449 = vmatpush.bf16.msrb.mxu0 %v8330_v60  ;;  %v8441_v26 = vld [vmem:[%s17060_s1 + $0x308] sm:$0xf]  ;;  %v8314_v53 = vor.u32 %v11480_v17, %v8313_v46  ;;  %v11512_v1 = vld [vmem:[%s17060_s1 + $0x314] sm:$0xf0] }
 0x1bd   :  { %4472 = vmatpush.bf16.msrb.mxu1 %v8458_v42  ;;  %v8569_v60 = vld [vmem:[%s17060_s1 + $0x408] sm:$0xf]  ;;  %v11544_v13 = vld [vmem:[%s17060_s1 + $0x414] sm:$0xf0]  ;;  %4495 = vmatpush.bf16.msrb.mxu2 %v8586_v15 }
 0x1be   :  { %v4137_v23 = vpop.f32.mrf.mxu2  ;;  %v4160_v3 = vpop.f32.mrf.mxu3  ;;  %v8570_v42 = vor.u32 %v11544_v13, %v8569_v60  ;;  %v8697_v2 = vld [vmem:[%s17060_s1 + $0x508] sm:$0xf]  ;;  %v11576_v63 = vld [vmem:[%s17060_s1 + $0x514] sm:$0xf0]  ;;  %4518 = vmatpush.bf16.msrb.mxu3 %v8714_v7 }
 0x1bf   :  { %v4138_v18 = vadd.f32 %v4137_v23, %v4115_v19  ;;  %v4094_v43 = vpop.f32.mrf.mxu0  ;;  %v4117_v47 = vpop.f32.mrf.mxu1  ;;  %v8442_v19 = vor.u32 %v11512_v1, %v8441_v26  ;;  %v8698_v46 = vor.u32 %v11576_v63, %v8697_v2  ;;  %v9065_v2 = vld [vmem:[%s17060_s1 + $0x7e8] sm:$0xf]  ;;  %v11668_v63 = vld [vmem:[%s17060_s1 + $0x7f4] sm:$0xf0] }
 0x1c0   :  { %v4095_v14 = vadd.f32 %v4094_v43, %v14636_v32  ;;  %4450 = vmatpush.bf16.msrb.mxu0 %v8314_v53 }
 0x1c1   :  { %v14849_v23 = vadd.f32 %v4160_v3, %v4138_v18  ;;  %4364 = vmatmul.bf16.gmra.mxu0 %v13691_v40  ;;  %4473 = vmatpush.bf16.msrb.mxu1 %v8442_v19  ;;  %v8937_v19 = vld [vmem:[%s17060_s1 + $0x6e8] sm:$0xf] }
 0x1c2   :  { %v4118_v17 = vadd.f32 %v4117_v47, %v4095_v14  ;;  %4387 = vmatmul.bf16.gmra.mxu1 %v13921_v22  ;;  %4496 = vmatpush.bf16.msrb.mxu2 %v8570_v42  ;;  %v17144_v47 = vld [vmem:[#allocation28_spill] sm:$0xff] }
 0x1c3   :  { %4410 = vmatmul.bf16.gmra.mxu2 %v12754_v44  ;;  %4433 = vmatmul.bf16.gmra.mxu3 %v12765_v50  ;;  %v11636_v42 = vld [vmem:[%s17060_s1 + $0x6f4] sm:$0xf0] }
 0x1c4   :  { %4519 = vmatpush.bf16.msrb.mxu3 %v8698_v46  ;;  %v9193_v46 = vld [vmem:[%s17060_s1 + $0x8e8] sm:$0xf] }
 0x1c6   :  { %v4140_v32 = vpop.f32.mrf.mxu2  ;;  %v4163_v26 = vpop.f32.mrf.mxu3 }
 0x1c7   :  { %v4141_v15 = vadd.f32 %v4140_v32, %v4118_v17  ;;  %v4096_v18 = vpop.f32.mrf.mxu0  ;;  %v4119_v3 = vpop.f32.mrf.mxu1  ;;  %v11700_v17 = vld [vmem:[%s17060_s1 + $0x8f4] sm:$0xf0]  ;;  %v9066_v32 = vor.u32 %v11668_v63, %v9065_v2  ;;  %v9177_v63 = vld [vmem:[%s17060_s1 + $0x8c8] sm:$0xf] }
 0x1c8   :  { %v11732_v18 = vld [vmem:[%s17060_s1 + $0x9f4] sm:$0xf0] }
 0x1c9   :  { %v14855_v7 = vadd.f32 %v4163_v26, %v4141_v15  ;;  %v9194_v15 = vor.u32 %v11700_v17, %v9193_v46  ;;  %v9321_v26 = vld [vmem:[%s17060_s1 + $0x9e8] sm:$0xf]  ;;  %4558 = vmatpush.bf16.msra.mxu1 %v9066_v32  ;;  %v11696_v46 = vld [vmem:[%s17060_s1 + $0x8d4] sm:$0xf0] }
 0x1ca   :  { %v9322_v3 = vor.u32 %v11732_v18, %v9321_v26  ;;  %v9305_v26 = vld [vmem:[%s17060_s1 + $0x9c8] sm:$0xf]  ;;  %v11728_v18 = vld [vmem:[%s17060_s1 + $0x9d4] sm:$0xf0] }
 0x1cb   :  { %4581 = vmatpush.bf16.msra.mxu2 %v9194_v15  ;;  %v9178_v15 = vor.u32 %v11696_v46, %v9177_v63  ;;  %v9289_v46 = vld [vmem:[%s17060_s1 + $0x9a8] sm:$0xf] }
 0x1cc   :  { %4604 = vmatpush.bf16.msra.mxu3 %v9322_v3 }
 0x1ce   :  { %v4142_v43 = vpop.f32.mrf.mxu2  ;;  %v4165_v53 = vpop.f32.mrf.mxu3 }
 0x1cf   :  { %v4176_v1 = vpop.f32.mrf.mxu0  ;;  %v4199_v13 = vpop.f32.mrf.mxu1  ;;  %v8921_v53 = vld [vmem:[%s17060_s1 + $0x6c8] sm:$0xf]  ;;  %4582 = vmatpush.bf16.msra.mxu2 %v9178_v15 }
 0x1d0   :  { %v4177_v60 = vadd.f32 %v4176_v1, %v14692_v27  ;;  %v8938_v27 = vor.u32 %v11636_v42, %v8937_v19  ;;  %v11632_v1 = vld [vmem:[%s17060_s1 + $0x6d4] sm:$0xf0]  ;;  %v8889_v15 = vld [vmem:[%s17060_s1 + $0x688] sm:$0xf] }
 0x1d1   :  { %4369 = vmatmul.bf16.gmra.mxu0 %v17144_v47  ;;  %v8922_v2 = vor.u32 %v11632_v1, %v8921_v53  ;;  %v8905_v53 = vld [vmem:[%s17060_s1 + $0x6a8] sm:$0xf] }
 0x1d2   :  { %v4200_v14 = vadd.f32 %v4199_v13, %v4177_v60  ;;  %4392 = vmatmul.bf16.gmra.mxu1 %v13959_v30  ;;  %4535 = vmatpush.bf16.msra.mxu0 %v8938_v27  ;;  %v9049_v60 = vld [vmem:[%s17060_s1 + $0x7c8] sm:$0xf]  ;;  %v11664_v27 = vld [vmem:[%s17060_s1 + $0x7d4] sm:$0xf0] }
 0x1d3   :  { %4415 = vmatmul.bf16.gmra.mxu2 %v12847_v34  ;;  %4438 = vmatmul.bf16.gmra.mxu3 %v12849_v35  ;;  %v9033_v1 = vld [vmem:[%s17060_s1 + $0x7a8] sm:$0xf] }
 0x1d6   :  { %v4222_v43 = vpop.f32.mrf.mxu2  ;;  %v4245_v19 = vpop.f32.mrf.mxu3  ;;  %4536 = vmatpush.bf16.msra.mxu0 %v8922_v2  ;;  %v11692_v2 = vld [vmem:[%s17060_s1 + $0x8b4] sm:$0xf0] }
 0x1d7   :  { %v4223_v13 = vadd.f32 %v4222_v43, %v4200_v14  ;;  %v4178_v42 = vpop.f32.mrf.mxu0  ;;  %v4201_v32 = vpop.f32.mrf.mxu1  ;;  %v9050_v14 = vor.u32 %v11664_v27, %v9049_v60  ;;  %v9306_v43 = vor.u32 %v11728_v18, %v9305_v26  ;;  %v11624_v26 = vld [vmem:[%s17060_s1 + $0x694] sm:$0xf0]  ;;  %v9017_v18 = vld [vmem:[%s17060_s1 + $0x788] sm:$0xf] }
 0x1d8   :  { %v4179_v17 = vadd.f32 %v4178_v42, %v14743_v25  ;;  %v11628_v25 = vld [vmem:[%s17060_s1 + $0x6b4] sm:$0xf0] }
 0x1d9   :  { %v14911_v3 = vadd.f32 %v4245_v19, %v4223_v13  ;;  %4559 = vmatpush.bf16.msra.mxu1 %v9050_v14  ;;  %v8906_v42 = vor.u32 %v11628_v25, %v8905_v53  ;;  %v11660_v13 = vld [vmem:[%s17060_s1 + $0x7b4] sm:$0xf0]  ;;  %v9161_v19 = vld [vmem:[%s17060_s1 + $0x8a8] sm:$0xf]  ;;  %4605 = vmatpush.bf16.msra.mxu3 %v9306_v43 }
 0x1da   :  { %v4202_v60 = vadd.f32 %v4201_v32, %v4179_v17  ;;  %v9034_v27 = vor.u32 %v11660_v13, %v9033_v1  ;;  %v9162_v63 = vor.u32 %v11692_v2, %v9161_v19  ;;  %v11724_v17 = vld [vmem:[%s17060_s1 + $0x9b4] sm:$0xf0]  ;;  %v8890_v1 = vor.u32 %v11624_v26, %v8889_v15  ;;  %v9145_v13 = vld [vmem:[%s17060_s1 + $0x888] sm:$0xf] }
 0x1db   :  { %v9290_v32 = vor.u32 %v11724_v17, %v9289_v46  ;;  %4537 = vmatpush.bf16.msra.mxu0 %v8906_v42  ;;  %v11656_v42 = vld [vmem:[%s17060_s1 + $0x794] sm:$0xf0]  ;;  %v9273_v46 = vld [vmem:[%s17060_s1 + $0x988] sm:$0xf] }
 0x1dc   :  { %4583 = vmatpush.bf16.msra.mxu2 %v9162_v63  ;;  %v11688_v19 = vld [vmem:[%s17060_s1 + $0x894] sm:$0xf0]  ;;  %v17145_v26 = vld [vmem:[#allocation10_spill] sm:$0xff] }
 0x1dd   :  { %4560 = vmatpush.bf16.msra.mxu1 %v9034_v27  ;;  %4606 = vmatpush.bf16.msra.mxu3 %v9290_v32  ;;  %v9146_v63 = vor.u32 %v11688_v19, %v9145_v13  ;;  %v11720_v17 = vld [vmem:[%s17060_s1 + $0x994] sm:$0xf0] }
 0x1de   :  { %v4224_v14 = vpop.f32.mrf.mxu2  ;;  %v4247_v53 = vpop.f32.mrf.mxu3 }
 0x1df   :  { %v4225_v43 = vadd.f32 %v4224_v14, %v4202_v60  ;;  %v4181_v25 = vpop.f32.mrf.mxu0  ;;  %v4204_v27 = vpop.f32.mrf.mxu1  ;;  %v9018_v60 = vor.u32 %v11656_v42, %v9017_v18  ;;  %4538 = vmatpush.bf16.msra.mxu0 %v8890_v1  ;;  %v9274_v14 = vor.u32 %v11720_v17, %v9273_v46  ;;  %v11620_v18 = vld [vmem:[%s17060_s1 + $0x674] sm:$0xf0]  ;;  %v9129_v1 = vld [vmem:[%s17060_s1 + $0x868] sm:$0xf] }
 0x1e0   :  { %v4182_v2 = vadd.f32 %v4181_v25, %v14798_v54  ;;  %v8873_v54 = vld [vmem:[%s17060_s1 + $0x668] sm:$0xf]  ;;  %v11684_v42 = vld [vmem:[%s17060_s1 + $0x874] sm:$0xf0]  ;;  %4584 = vmatpush.bf16.msra.mxu2 %v9146_v63 }
 0x1e1   :  { %v14962_v32 = vadd.f32 %v4247_v53, %v4225_v43  ;;  %4451 = vmatmul.bf16.vlgmr.msrb.gmra.mxu0 %v17145_v26  ;;  %4561 = vmatpush.bf16.msra.mxu1 %v9018_v60  ;;  %v9001_v25 = vld [vmem:[%s17060_s1 + $0x768] sm:$0xf]  ;;  %v8874_v43 = vor.u32 %v11620_v18, %v8873_v54  ;;  %v11652_v53 = vld [vmem:[%s17060_s1 + $0x774] sm:$0xf0]  ;;  %v9130_v19 = vor.u32 %v11684_v42, %v9129_v1 }
 0x1e2   :  { %v4205_v15 = vadd.f32 %v4204_v27, %v4182_v2  ;;  %4474 = vmatmul.bf16.vlgmr.msrb.gmra.mxu1 %v12643_v57  ;;  %v9002_v13 = vor.u32 %v11652_v53, %v9001_v25  ;;  %v9257_v2 = vld [vmem:[%s17060_s1 + $0x968] sm:$0xf]  ;;  %v11716_v27 = vld [vmem:[%s17060_s1 + $0x974] sm:$0xf0]  ;;  %4607 = vmatpush.bf16.msra.mxu3 %v9274_v14 }
 0x1e3   :  { %4497 = vmatmul.bf16.vlgmr.msrb.gmra.mxu2 %v12964_v29  ;;  %4520 = vmatmul.bf16.vlgmr.msrb.gmra.mxu3 %v12975_v33  ;;  %v9258_v60 = vor.u32 %v11716_v27, %v9257_v2  ;;  %v8857_v17 = vld [vmem:[%s17060_s1 + $0x648] sm:$0xf]  ;;  %v11616_v63 = vld [vmem:[%s17060_s1 + $0x654] sm:$0xf0] }
 0x1e4   :  { %4539 = vmatpush.bf16.msra.mxu0 %v8874_v43  ;;  %v8985_v54 = vld [vmem:[%s17060_s1 + $0x748] sm:$0xf]  ;;  %v8858_v14 = vor.u32 %v11616_v63, %v8857_v17  ;;  %v11648_v43 = vld [vmem:[%s17060_s1 + $0x754] sm:$0xf0]  ;;  %4585 = vmatpush.bf16.msra.mxu2 %v9130_v19 }
 0x1e5   :  { %4562 = vmatpush.bf16.msra.mxu1 %v9002_v13  ;;  %v9113_v1 = vld [vmem:[%s17060_s1 + $0x848] sm:$0xf]  ;;  %v11680_v42 = vld [vmem:[%s17060_s1 + $0x854] sm:$0xf0] }
 0x1e6   :  { %v4227_v46 = vpop.f32.mrf.mxu2  ;;  %v4250_v25 = vpop.f32.mrf.mxu3  ;;  %v9114_v27 = vor.u32 %v11680_v42, %v9113_v1  ;;  %v11712_v17 = vld [vmem:[%s17060_s1 + $0x954] sm:$0xf0]  ;;  %4608 = vmatpush.bf16.msra.mxu3 %v9258_v60  ;;  %v9225_v1 = vld [vmem:[%s17060_s1 + $0x928] sm:$0xf] }
 0x1e7   :  { %v4228_v18 = vadd.f32 %v4227_v46, %v4205_v15  ;;  %v4183_v53 = vpop.f32.mrf.mxu0  ;;  %v4206_v2 = vpop.f32.mrf.mxu1  ;;  %v8986_v15 = vor.u32 %v11648_v43, %v8985_v54  ;;  %v9241_v46 = vld [vmem:[%s17060_s1 + $0x948] sm:$0xf]  ;;  %v11612_v19 = vld [vmem:[%s17060_s1 + $0x634] sm:$0xf0] }
 0x1e8   :  { %v4184_v13 = vadd.f32 %v4183_v53, %v14849_v23  ;;  %4540 = vmatpush.bf16.msra.mxu0 %v8858_v14  ;;  %v9242_v33 = vor.u32 %v11712_v17, %v9241_v46  ;;  %v8841_v23 = vld [vmem:[%s17060_s1 + $0x628] sm:$0xf]  ;;  %v11644_v60 = vld [vmem:[%s17060_s1 + $0x734] sm:$0xf0]  ;;  %4586 = vmatpush.bf16.msra.mxu2 %v9114_v27 }
 0x1e9   :  { %v15017_v63 = vadd.f32 %v4250_v25, %v4228_v18  ;;  %4563 = vmatpush.bf16.msra.mxu1 %v8986_v15  ;;  %v8969_v54 = vld [vmem:[%s17060_s1 + $0x728] sm:$0xf]  ;;  %v8842_v53 = vor.u32 %v11612_v19, %v8841_v23  ;;  %v11676_v25 = vld [vmem:[%s17060_s1 + $0x834] sm:$0xf0] }
 0x1ea   :  { %v4207_v35 = vadd.f32 %v4206_v2, %v4184_v13  ;;  %v9097_v18 = vld [vmem:[%s17060_s1 + $0x828] sm:$0xf]  ;;  %v8970_v14 = vor.u32 %v11644_v60, %v8969_v54  ;;  %v11708_v42 = vld [vmem:[%s17060_s1 + $0x934] sm:$0xf0]  ;;  %4609 = vmatpush.bf16.msra.mxu3 %v9242_v33 }
 0x1eb   :  { %v9098_v43 = vor.u32 %v11676_v25, %v9097_v18  ;;  %v9226_v13 = vor.u32 %v11708_v42, %v9225_v1  ;;  %v8825_v15 = vld [vmem:[%s17060_s1 + $0x608] sm:$0xf]  ;;  %v11608_v27 = vld [vmem:[%s17060_s1 + $0x614] sm:$0xf0] }
 0x1ec   :  { %4541 = vmatpush.bf16.msra.mxu0 %v8842_v53  ;;  %v8953_v46 = vld [vmem:[%s17060_s1 + $0x708] sm:$0xf]  ;;  %v8826_v33 = vor.u32 %v11608_v27, %v8825_v15  ;;  %v11640_v54 = vld [vmem:[%s17060_s1 + $0x714] sm:$0xf0] }
 0x1ed   :  { %4564 = vmatpush.bf16.msra.mxu1 %v8970_v14  ;;  %v9081_v53 = vld [vmem:[%s17060_s1 + $0x808] sm:$0xf]  ;;  %v11672_v60 = vld [vmem:[%s17060_s1 + $0x814] sm:$0xf0]  ;;  %4587 = vmatpush.bf16.msra.mxu2 %v9098_v43 }
 0x1ee   :  { %v4229_v2 = vpop.f32.mrf.mxu2  ;;  %v4252_v23 = vpop.f32.mrf.mxu3  ;;  %v9082_v14 = vor.u32 %v11672_v60, %v9081_v53  ;;  %v9209_v1 = vld [vmem:[%s17060_s1 + $0x908] sm:$0xf]  ;;  %v11704_v42 = vld [vmem:[%s17060_s1 + $0x914] sm:$0xf0]  ;;  %4610 = vmatpush.bf16.msra.mxu3 %v9226_v13 }
 0x1ef   :  { %v4230_v17 = vadd.f32 %v4229_v2, %v4207_v35  ;;  %v4186_v19 = vpop.f32.mrf.mxu0  ;;  %v4209_v25 = vpop.f32.mrf.mxu1  ;;  %v8954_v35 = vor.u32 %v11640_v54, %v8953_v46  ;;  %v9210_v15 = vor.u32 %v11704_v42, %v9209_v1  ;;  %v11796_v1 = vld [vmem:[%s17060_s1 + $0xbf4] sm:$0xf0]  ;;  %v9705_v42 = vld [vmem:[%s17060_s1 + $0xce8] sm:$0xf] }
 0x1f0   :  { %v4187_v18 = vadd.f32 %v4186_v19, %v14855_v7  ;;  %4542 = vmatpush.bf16.msra.mxu0 %v8826_v33 }
 0x1f1   :  { %v15068_v2 = vadd.f32 %v4252_v23, %v4230_v17  ;;  %4456 = vmatmul.bf16.gmra.mxu0 %v12767_v51  ;;  %4565 = vmatpush.bf16.msra.mxu1 %v8954_v35  ;;  %v11764_v35 = vld [vmem:[%s17060_s1 + $0xaf4] sm:$0xf0] }
 0x1f2   :  { %v4210_v27 = vadd.f32 %v4209_v25, %v4187_v18  ;;  %4479 = vmatmul.bf16.gmra.mxu1 %v12775_v56  ;;  %4588 = vmatpush.bf16.msra.mxu2 %v9082_v14  ;;  %v9449_v25 = vld [vmem:[%s17060_s1 + $0xae8] sm:$0xf] }
 0x1f3   :  { %4502 = vmatmul.bf16.gmra.mxu2 %v13096_v45  ;;  %4525 = vmatmul.bf16.gmra.mxu3 %v13107_v55  ;;  %v9577_v14 = vld [vmem:[%s17060_s1 + $0xbe8] sm:$0xf] }
 0x1f4   :  { %4611 = vmatpush.bf16.msra.mxu3 %v9210_v15  ;;  %v11828_v15 = vld [vmem:[%s17060_s1 + $0xcf4] sm:$0xf0] }
 0x1f6   :  { %v4232_v7 = vpop.f32.mrf.mxu2  ;;  %v4255_v46 = vpop.f32.mrf.mxu3 }
 0x1f7   :  { %v4233_v43 = vadd.f32 %v4232_v7, %v4210_v27  ;;  %v4188_v17 = vpop.f32.mrf.mxu0  ;;  %v4211_v23 = vpop.f32.mrf.mxu1  ;;  %v9578_v27 = vor.u32 %v11796_v1, %v9577_v14  ;;  %v9706_v7 = vor.u32 %v11828_v15, %v9705_v42  ;;  %v11792_v14 = vld [vmem:[%s17060_s1 + $0xbd4] sm:$0xf0] }
 0x1f8   :  { %v11824_v1 = vld [vmem:[%s17060_s1 + $0xcd4] sm:$0xf0] }
 0x1f9   :  { %v15074_v13 = vadd.f32 %v4255_v46, %v4233_v43  ;;  %v9833_v43 = vld [vmem:[%s17060_s1 + $0xde8] sm:$0xf]  ;;  %v11860_v46 = vld [vmem:[%s17060_s1 + $0xdf4] sm:$0xf0]  ;;  %4650 = vmatpush.bf16.msrb.mxu1 %v9578_v27  ;;  %4673 = vmatpush.bf16.msrb.mxu2 %v9706_v7 }
 0x1fa   :  { %v9834_v17 = vor.u32 %v11860_v46, %v9833_v43  ;;  %v9817_v7 = vld [vmem:[%s17060_s1 + $0xdc8] sm:$0xf]  ;;  %v11856_v43 = vld [vmem:[%s17060_s1 + $0xdd4] sm:$0xf0] }
 0x1fc   :  { %4696 = vmatpush.bf16.msrb.mxu3 %v9834_v17  ;;  %v9818_v17 = vor.u32 %v11856_v43, %v9817_v7  ;;  %v9529_v7 = vld [vmem:[%s17060_s1 + $0xb88] sm:$0xf] }
 0x1fe   :  { %v4234_v19 = vpop.f32.mrf.mxu2  ;;  %v4257_v33 = vpop.f32.mrf.mxu3 }
 0x1ff   :  { %v4268_v54 = vpop.f32.mrf.mxu0  ;;  %v4291_v60 = vpop.f32.mrf.mxu1  ;;  %v9433_v19 = vld [vmem:[%s17060_s1 + $0xac8] sm:$0xf]  ;;  %v11760_v33 = vld [vmem:[%s17060_s1 + $0xad4] sm:$0xf0] }
 0x200   :  { %v4269_v53 = vadd.f32 %v4268_v54, %v14911_v3  ;;  %v9450_v3 = vor.u32 %v11764_v35, %v9449_v25  ;;  %v9561_v54 = vld [vmem:[%s17060_s1 + $0xbc8] sm:$0xf]  ;;  %v9434_v35 = vor.u32 %v11760_v33, %v9433_v19  ;;  %4697 = vmatpush.bf16.msrb.mxu3 %v9818_v17 }
 0x201   :  { %4461 = vmatmul.bf16.gmra.mxu0 %v12851_v36  ;;  %v9545_v19 = vld [vmem:[%s17060_s1 + $0xba8] sm:$0xf] }
 0x202   :  { %v4292_v18 = vadd.f32 %v4291_v60, %v4269_v53  ;;  %4484 = vmatmul.bf16.gmra.mxu1 %v12853_v37  ;;  %4627 = vmatpush.bf16.msrb.mxu0 %v9450_v3  ;;  %v9689_v3 = vld [vmem:[%s17060_s1 + $0xcc8] sm:$0xf] }
 0x203   :  { %4507 = vmatmul.bf16.gmra.mxu2 %v13129_v8  ;;  %4530 = vmatmul.bf16.gmra.mxu3 %v13131_v9  ;;  %v9690_v27 = vor.u32 %v11824_v1, %v9689_v3  ;;  %v9801_v3 = vld [vmem:[%s17060_s1 + $0xda8] sm:$0xf]  ;;  %v11852_v1 = vld [vmem:[%s17060_s1 + $0xdb4] sm:$0xf0] }
 0x205   :  { %4674 = vmatpush.bf16.msrb.mxu2 %v9690_v27  ;;  %v11752_v27 = vld [vmem:[%s17060_s1 + $0xa94] sm:$0xf0] }
 0x206   :  { %v4314_v23 = vpop.f32.mrf.mxu2  ;;  %v4337_v60 = vpop.f32.mrf.mxu3  ;;  %4628 = vmatpush.bf16.msrb.mxu0 %v9434_v35 }
 0x207   :  { %v4315_v53 = vadd.f32 %v4314_v23, %v4292_v18  ;;  %v4270_v25 = vpop.f32.mrf.mxu0  ;;  %v4293_v15 = vpop.f32.mrf.mxu1  ;;  %v9562_v18 = vor.u32 %v11792_v14, %v9561_v54  ;;  %v9417_v23 = vld [vmem:[%s17060_s1 + $0xaa8] sm:$0xf] }
 0x208   :  { %v4271_v42 = vadd.f32 %v4270_v25, %v14962_v32  ;;  %v11756_v32 = vld [vmem:[%s17060_s1 + $0xab4] sm:$0xf0] }
 0x209   :  { %v15130_v46 = vadd.f32 %v4337_v60, %v4315_v53  ;;  %4651 = vmatpush.bf16.msrb.mxu1 %v9562_v18  ;;  %v9418_v54 = vor.u32 %v11756_v32, %v9417_v23  ;;  %v11788_v53 = vld [vmem:[%s17060_s1 + $0xbb4] sm:$0xf0]  ;;  %v9673_v60 = vld [vmem:[%s17060_s1 + $0xca8] sm:$0xf] }
 0x20a   :  { %v4294_v33 = vadd.f32 %v4293_v15, %v4271_v42  ;;  %v11820_v25 = vld [vmem:[%s17060_s1 + $0xcb4] sm:$0xf0]  ;;  %v9546_v35 = vor.u32 %v11788_v53, %v9545_v19  ;;  %v9802_v42 = vor.u32 %v11852_v1, %v9801_v3  ;;  %v9401_v18 = vld [vmem:[%s17060_s1 + $0xa88] sm:$0xf] }
 0x20b   :  { %v9674_v14 = vor.u32 %v11820_v25, %v9673_v60  ;;  %4629 = vmatpush.bf16.msrb.mxu0 %v9418_v54  ;;  %v9402_v32 = vor.u32 %v11752_v27, %v9401_v18  ;;  %v11784_v19 = vld [vmem:[%s17060_s1 + $0xb94] sm:$0xf0]  ;;  %v9657_v54 = vld [vmem:[%s17060_s1 + $0xc88] sm:$0xf]  ;;  %v17146_v18 = vld [vmem:[#allocation13_spill] sm:$0xff] }
 0x20c   :  { %4698 = vmatpush.bf16.msrb.mxu3 %v9802_v42  ;;  %v11816_v53 = vld [vmem:[%s17060_s1 + $0xc94] sm:$0xf0] }
 0x20d   :  { %4652 = vmatpush.bf16.msrb.mxu1 %v9546_v35  ;;  %4675 = vmatpush.bf16.msrb.mxu2 %v9674_v14  ;;  %v9658_v35 = vor.u32 %v11816_v53, %v9657_v54  ;;  %v9785_v14 = vld [vmem:[%s17060_s1 + $0xd88] sm:$0xf]  ;;  %v11848_v3 = vld [vmem:[%s17060_s1 + $0xd94] sm:$0xf0] }
 0x20e   :  { %v4316_v15 = vpop.f32.mrf.mxu2  ;;  %v4339_v17 = vpop.f32.mrf.mxu3  ;;  %v9786_v42 = vor.u32 %v11848_v3, %v9785_v14  ;;  %v11748_v27 = vld [vmem:[%s17060_s1 + $0xa74] sm:$0xf0]  ;;  %v9769_v53 = vld [vmem:[%s17060_s1 + $0xd68] sm:$0xf] }
 0x20f   :  { %v4317_v43 = vadd.f32 %v4316_v15, %v4294_v33  ;;  %v4273_v23 = vpop.f32.mrf.mxu0  ;;  %v4296_v25 = vpop.f32.mrf.mxu1  ;;  %v9530_v33 = vor.u32 %v11784_v19, %v9529_v7  ;;  %4630 = vmatpush.bf16.msrb.mxu0 %v9402_v32  ;;  %v9513_v7 = vld [vmem:[%s17060_s1 + $0xb68] sm:$0xf]  ;;  %v11812_v32 = vld [vmem:[%s17060_s1 + $0xc74] sm:$0xf0] }
 0x210   :  { %v4274_v60 = vadd.f32 %v4273_v23, %v15017_v63  ;;  %v9385_v63 = vld [vmem:[%s17060_s1 + $0xa68] sm:$0xf]  ;;  %4699 = vmatpush.bf16.msrb.mxu3 %v9786_v42 }
 0x211   :  { %v15181_v1 = vadd.f32 %v4339_v17, %v4317_v43  ;;  %4543 = vmatmul.bf16.vlgmr.msra.gmra.mxu0 %v17146_v18  ;;  %4653 = vmatpush.bf16.msrb.mxu1 %v9530_v33  ;;  %v9386_v43 = vor.u32 %v11748_v27, %v9385_v63  ;;  %v11780_v17 = vld [vmem:[%s17060_s1 + $0xb74] sm:$0xf0]  ;;  %v9641_v23 = vld [vmem:[%s17060_s1 + $0xc68] sm:$0xf] }
 0x212   :  { %v4297_v15 = vadd.f32 %v4296_v25, %v4274_v60  ;;  %4566 = vmatmul.bf16.vlgmr.msra.gmra.mxu1 %v12985_v41  ;;  %4676 = vmatpush.bf16.msrb.mxu2 %v9658_v35  ;;  %v9514_v19 = vor.u32 %v11780_v17, %v9513_v7  ;;  %v9642_v54 = vor.u32 %v11812_v32, %v9641_v23  ;;  %v11844_v60 = vld [vmem:[%s17060_s1 + $0xd74] sm:$0xf0]  ;;  %v9369_v14 = vld [vmem:[%s17060_s1 + $0xa48] sm:$0xf] }
 0x213   :  { %4589 = vmatmul.bf16.vlgmr.msra.gmra.mxu2 %v13237_v16  ;;  %4612 = vmatmul.bf16.vlgmr.msra.gmra.mxu3 %v13248_v20  ;;  %v9770_v25 = vor.u32 %v11844_v60, %v9769_v53  ;;  %v11744_v35 = vld [vmem:[%s17060_s1 + $0xa54] sm:$0xf0]  ;;  %v9497_v3 = vld [vmem:[%s17060_s1 + $0xb48] sm:$0xf] }
 0x214   :  { %4631 = vmatpush.bf16.msrb.mxu0 %v9386_v43  ;;  %v9370_v42 = vor.u32 %v11744_v35, %v9369_v14  ;;  %v11776_v43 = vld [vmem:[%s17060_s1 + $0xb54] sm:$0xf0]  ;;  %v9625_v17 = vld [vmem:[%s17060_s1 + $0xc48] sm:$0xf] }
 0x215   :  { %4654 = vmatpush.bf16.msrb.mxu1 %v9514_v19  ;;  %v11808_v23 = vld [vmem:[%s17060_s1 + $0xc54] sm:$0xf0]  ;;  %v9753_v60 = vld [vmem:[%s17060_s1 + $0xd48] sm:$0xf]  ;;  %4700 = vmatpush.bf16.msrb.mxu3 %v9770_v25 }
 0x216   :  { %v4319_v33 = vpop.f32.mrf.mxu2  ;;  %v4342_v27 = vpop.f32.mrf.mxu3  ;;  %4677 = vmatpush.bf16.msrb.mxu2 %v9642_v54  ;;  %v9626_v53 = vor.u32 %v11808_v23, %v9625_v17  ;;  %v11740_v54 = vld [vmem:[%s17060_s1 + $0xa34] sm:$0xf0]  ;;  %v9737_v17 = vld [vmem:[%s17060_s1 + $0xd28] sm:$0xf] }
 0x217   :  { %v4320_v63 = vadd.f32 %v4319_v33, %v4297_v15  ;;  %v4275_v7 = vpop.f32.mrf.mxu0  ;;  %v4298_v19 = vpop.f32.mrf.mxu1  ;;  %v9498_v15 = vor.u32 %v11776_v43, %v9497_v3  ;;  %v11840_v33 = vld [vmem:[%s17060_s1 + $0xd54] sm:$0xf0]  ;;  %v9481_v3 = vld [vmem:[%s17060_s1 + $0xb28] sm:$0xf] }
 0x218   :  { %v4276_v32 = vadd.f32 %v4275_v7, %v15068_v2  ;;  %4632 = vmatpush.bf16.msrb.mxu0 %v9370_v42  ;;  %v9754_v35 = vor.u32 %v11840_v33, %v9753_v60  ;;  %v9353_v2 = vld [vmem:[%s17060_s1 + $0xa28] sm:$0xf]  ;;  %v11772_v25 = vld [vmem:[%s17060_s1 + $0xb34] sm:$0xf0] }
 0x219   :  { %v15236_v14 = vadd.f32 %v4342_v27, %v4320_v63  ;;  %4655 = vmatpush.bf16.msrb.mxu1 %v9498_v15  ;;  %v9354_v7 = vor.u32 %v11740_v54, %v9353_v2  ;;  %v9609_v63 = vld [vmem:[%s17060_s1 + $0xc28] sm:$0xf]  ;;  %v11804_v27 = vld [vmem:[%s17060_s1 + $0xc34] sm:$0xf0]  ;;  %v9482_v42 = vor.u32 %v11772_v25, %v9481_v3 }
 0x21a   :  { %v4299_v20 = vadd.f32 %v4298_v19, %v4276_v32  ;;  %4678 = vmatpush.bf16.msrb.mxu2 %v9626_v53  ;;  %v9610_v43 = vor.u32 %v11804_v27, %v9609_v63  ;;  %v11836_v23 = vld [vmem:[%s17060_s1 + $0xd34] sm:$0xf0]  ;;  %4701 = vmatpush.bf16.msrb.mxu3 %v9754_v35  ;;  %v9337_v15 = vld [vmem:[%s17060_s1 + $0xa08] sm:$0xf] }
 0x21b   :  { %v9738_v32 = vor.u32 %v11836_v23, %v9737_v17  ;;  %v11736_v53 = vld [vmem:[%s17060_s1 + $0xa14] sm:$0xf0]  ;;  %v9465_v60 = vld [vmem:[%s17060_s1 + $0xb08] sm:$0xf] }
 0x21c   :  { %4633 = vmatpush.bf16.msrb.mxu0 %v9354_v7  ;;  %v9338_v35 = vor.u32 %v11736_v53, %v9337_v15  ;;  %v11768_v3 = vld [vmem:[%s17060_s1 + $0xb14] sm:$0xf0]  ;;  %v9593_v7 = vld [vmem:[%s17060_s1 + $0xc08] sm:$0xf] }
 0x21d   :  { %4656 = vmatpush.bf16.msrb.mxu1 %v9482_v42  ;;  %v11800_v25 = vld [vmem:[%s17060_s1 + $0xc14] sm:$0xf0]  ;;  %v9721_v17 = vld [vmem:[%s17060_s1 + $0xd08] sm:$0xf] }
 0x21e   :  { %v4321_v19 = vpop.f32.mrf.mxu2  ;;  %v4344_v2 = vpop.f32.mrf.mxu3  ;;  %4679 = vmatpush.bf16.msrb.mxu2 %v9610_v43  ;;  %v9594_v42 = vor.u32 %v11800_v25, %v9593_v7  ;;  %v11832_v23 = vld [vmem:[%s17060_s1 + $0xd14] sm:$0xf0]  ;;  %4702 = vmatpush.bf16.msrb.mxu3 %v9738_v32 }
 0x21f   :  { %v4322_v33 = vadd.f32 %v4321_v19, %v4299_v20  ;;  %v4278_v54 = vpop.f32.mrf.mxu0  ;;  %v4301_v27 = vpop.f32.mrf.mxu1  ;;  %v9466_v20 = vor.u32 %v11768_v3, %v9465_v60  ;;  %v9722_v15 = vor.u32 %v11832_v23, %v9721_v17  ;;  %v11892_v17 = vld [vmem:[%s17060_s1 + $0xef4] sm:$0xf0] }
 0x220   :  { %v4279_v63 = vadd.f32 %v4278_v54, %v15074_v13  ;;  %4634 = vmatpush.bf16.msrb.mxu0 %v9338_v35 }
 0x221   :  { %v15287_v19 = vadd.f32 %v4344_v2, %v4322_v33  ;;  %4548 = vmatmul.bf16.gmra.mxu0 %v13109_v58  ;;  %4657 = vmatpush.bf16.msrb.mxu1 %v9466_v20 }
 0x222   :  { %v4302_v53 = vadd.f32 %v4301_v27, %v4279_v63  ;;  %4571 = vmatmul.bf16.gmra.mxu1 %v13117_v61  ;;  %4680 = vmatpush.bf16.msrb.mxu2 %v9594_v42  ;;  %v12269_v63 = vld [vmem:[%s17061_s2] sm:$0xf]  ;;  %v9961_v42 = vld [vmem:[%s17060_s1 + $0xee8] sm:$0xf] }
 0x223   :  { %4594 = vmatmul.bf16.gmra.mxu2 %v13369_v52  ;;  %4617 = vmatmul.bf16.gmra.mxu3 %v13380_v0  ;;  %v15299_v27 = vperm.slane %v12269_v63, 2  ;;  %v9962_v23 = vor.u32 %v11892_v17, %v9961_v42 }
 0x224   :  { %4703 = vmatpush.bf16.msrb.mxu3 %v9722_v15  ;;  %v11924_v15 = vld [vmem:[%s17060_s1 + $0xff4] sm:$0xf0] }
 0x225   :  { %4719 = vmatpush.bf16.msra.mxu0 %v9962_v23  ;;  %v11920_v23 = vld [vmem:[%s17060_s1 + $0xfd4] sm:$0xf0] }
 0x226   :  { %v4324_v13 = vpop.f32.mrf.mxu2  ;;  %v4347_v60 = vpop.f32.mrf.mxu3 }
 0x227   :  { %v4325_v43 = vadd.f32 %v4324_v13, %v4302_v53  ;;  %v4280_v33 = vpop.f32.mrf.mxu0  ;;  %v4303_v2 = vpop.f32.mrf.mxu1  ;;  %v10217_v53 = vld [vmem:[%s17060_s1 + $0x10e8] sm:$0xf]  ;;  %v11956_v13 = vld [vmem:[%s17060_s1 + $0x10f4] sm:$0xf0] }
 0x228   :  { %v11442_v33 = vld [vmem:[%s17060_s1 + $0xec] sm:$0xf]  ;;  %v8171_v2 = vld [vmem:[%s17060_s1 + $0xf8] sm:$0xf0] }
 0x229   :  { %v15293_v32 = vadd.f32 %v4347_v60, %v4325_v43  ;;  %v10218_v60 = vor.u32 %v11956_v13, %v10217_v53  ;;  %v11952_v53 = vld [vmem:[%s17060_s1 + $0x10d4] sm:$0xf0] }
 0x22b   :  { %4765 = vmatpush.bf16.msra.mxu2 %v10218_v60 }
 0x22e   :  { %v4326_v54 = vpop.f32.mrf.mxu2  ;;  %v4349_v35 = vpop.f32.mrf.mxu3 }
 0x22f   :  { %v4360_v3 = vpop.f32.mrf.mxu0  ;;  %v4383_v25 = vpop.f32.mrf.mxu1  ;;  %v8174_v54 = vor.u32 %v11442_v33, %v8171_v2  ;;  %v11438_v2 = vld [vmem:[%s17060_s1 + $0xcc] sm:$0xf] }
 0x230   :  { %v4361_v7 = vadd.f32 %v4360_v3, %v15130_v46  ;;  %v10089_v46 = vld [vmem:[%s17060_s1 + $0xfe8] sm:$0xf] }
 0x231   :  { %4553 = vmatmul.bf16.gmra.mxu0 %v13133_v10  ;;  %v10090_v43 = vor.u32 %v11924_v15, %v10089_v46  ;;  %v9945_v3 = vld [vmem:[%s17060_s1 + $0xec8] sm:$0xf]  ;;  %4788 = vmatpush.bf16.msra.mxu3 %v8174_v54  ;;  %v8155_v54 = vld [vmem:[%s17060_s1 + $0xd8] sm:$0xf0] }
 0x232   :  { %v15301_v20 = vadd.f32 %v4383_v25, %v4361_v7  ;;  %4576 = vmatmul.bf16.gmra.mxu1 %v13135_v11  ;;  %v11888_v7 = vld [vmem:[%s17060_s1 + $0xed4] sm:$0xf0]  ;;  %v10073_v25 = vld [vmem:[%s17060_s1 + $0xfc8] sm:$0xf] }
 0x233   :  { %4599 = vmatmul.bf16.gmra.mxu2 %v13416_v28  ;;  %4622 = vmatmul.bf16.gmra.mxu3 %v13418_v31  ;;  %v9946_v46 = vor.u32 %v11888_v7, %v9945_v3  ;;  %v10201_v15 = vld [vmem:[%s17060_s1 + $0x10c8] sm:$0xf]  ;;  %v10074_v60 = vor.u32 %v11920_v23, %v10073_v25  ;;  %v8158_v3 = vor.u32 %v11438_v2, %v8155_v54  ;;  %v11948_v23 = vld [vmem:[%s17060_s1 + $0x10b4] sm:$0xf0] }
 0x234   :  { %17147 = vst [vmem:[#allocation18_spill] sm:$0xff] %v15301_v20  ;;  %4742 = vmatpush.bf16.msra.mxu1 %v10090_v43  ;;  %v10202_v33 = vor.u32 %v11952_v53, %v10201_v15  ;;  %v9929_v7 = vld [vmem:[%s17060_s1 + $0xea8] sm:$0xf]  ;;  %v11880_v54 = vld [vmem:[%s17060_s1 + $0xe94] sm:$0xf0] }
 0x235   :  { %4720 = vmatpush.bf16.msra.mxu0 %v9946_v46  ;;  %v10057_v25 = vld [vmem:[%s17060_s1 + $0xfa8] sm:$0xf]  ;;  %4789 = vmatpush.bf16.msra.mxu3 %v8158_v3 }
 0x236   :  { %v4406_v35 = vpop.f32.mrf.mxu2  ;;  %v4429_v42 = vpop.f32.mrf.mxu3  ;;  %4766 = vmatpush.bf16.msra.mxu2 %v10202_v33  ;;  %v10185_v46 = vld [vmem:[%s17060_s1 + $0x10a8] sm:$0xf] }
 0x237   :  { %v4407_v63 = vadd.f32 %v4406_v35, %v15299_v27  ;;  %v4362_v17 = vpop.f32.mrf.mxu0  ;;  %v4385_v43 = vpop.f32.mrf.mxu1  ;;  %v10186_v53 = vor.u32 %v11948_v23, %v10185_v46  ;;  %v9913_v2 = vld [vmem:[%s17060_s1 + $0xe88] sm:$0xf]  ;;  %v11944_v23 = vld [vmem:[%s17060_s1 + $0x1094] sm:$0xf0] }
 0x238   :  { %v4363_v13 = vadd.f32 %v4362_v17, %v15181_v1  ;;  %v11884_v1 = vld [vmem:[%s17060_s1 + $0xeb4] sm:$0xf0]  ;;  %4743 = vmatpush.bf16.msra.mxu1 %v10074_v60  ;;  %v10041_v3 = vld [vmem:[%s17060_s1 + $0xf88] sm:$0xf] }
 0x239   :  { %v15357_v35 = vadd.f32 %v4429_v42, %v4407_v63  ;;  %v9930_v63 = vor.u32 %v11884_v1, %v9929_v7  ;;  %v11916_v42 = vld [vmem:[%s17060_s1 + $0xfb4] sm:$0xf0]  ;;  %v10169_v46 = vld [vmem:[%s17060_s1 + $0x1088] sm:$0xf] }
 0x23a   :  { %v15368_v17 = vadd.f32 %v4385_v43, %v4363_v13  ;;  %v10058_v15 = vor.u32 %v11916_v42, %v10057_v25  ;;  %v11434_v13 = vld [vmem:[%s17060_s1 + $0xac] sm:$0xf]  ;;  %v8139_v43 = vld [vmem:[%s17060_s1 + $0xb8] sm:$0xf0]  ;;  %4767 = vmatpush.bf16.msra.mxu2 %v10186_v53  ;;  %v11912_v42 = vld [vmem:[%s17060_s1 + $0xf94] sm:$0xf0] }
 0x23b   :  { %v8142_v60 = vor.u32 %v11434_v13, %v8139_v43  ;;  %4721 = vmatpush.bf16.msra.mxu0 %v9930_v63  ;;  %v9914_v63 = vor.u32 %v11880_v54, %v9913_v2  ;;  %v10042_v13 = vor.u32 %v11912_v42, %v10041_v3  ;;  %v10170_v43 = vor.u32 %v11944_v23, %v10169_v46  ;;  %v11876_v3 = vld [vmem:[%s17060_s1 + $0xe74] sm:$0xf0]  ;;  %v10153_v42 = vld [vmem:[%s17060_s1 + $0x1068] sm:$0xf]  ;;  %v17151_v23 = vld [vmem:[#allocation23_spill] sm:$0xff] }
 0x23c   :  { %17148 = vst [vmem:[#allocation21_spill] sm:$0xff] %v15368_v17  ;;  %4744 = vmatpush.bf16.msra.mxu1 %v10058_v15  ;;  %v11940_v46 = vld [vmem:[%s17060_s1 + $0x1074] sm:$0xf0] }
 0x23d   :  { %4790 = vmatpush.bf16.msra.mxu3 %v8142_v60  ;;  %v11430_v60 = vld [vmem:[%s17060_s1 + $0x8c] sm:$0xf] }
 0x23e   :  { %v4408_v33 = vpop.f32.mrf.mxu2  ;;  %v4431_v1 = vpop.f32.mrf.mxu3  ;;  %4768 = vmatpush.bf16.msra.mxu2 %v10170_v43  ;;  %v11872_v43 = vld [vmem:[%s17060_s1 + $0xe54] sm:$0xf0] }
 0x23f   :  { %v4409_v7 = vadd.f32 %v4408_v33, %v15299_v27  ;;  %v4365_v25 = vpop.f32.mrf.mxu0  ;;  %v4388_v53 = vpop.f32.mrf.mxu1  ;;  %v8123_v33 = vld [vmem:[%s17060_s1 + $0x98] sm:$0xf0]  ;;  %4722 = vmatpush.bf16.msra.mxu0 %v9914_v63  ;;  %v11908_v63 = vld [vmem:[%s17060_s1 + $0xf74] sm:$0xf0] }
 0x240   :  { %v4366_v15 = vadd.f32 %v4365_v25, %v15236_v14  ;;  %v8126_v54 = vor.u32 %v11430_v60, %v8123_v33  ;;  %4745 = vmatpush.bf16.msra.mxu1 %v10042_v13  ;;  %v9897_v14 = vld [vmem:[%s17060_s1 + $0xe68] sm:$0xf]  ;;  %v11426_v13 = vld [vmem:[%s17060_s1 + $0x6c] sm:$0xf]  ;;  %v8107_v60 = vld [vmem:[%s17060_s1 + $0x78] sm:$0xf0] }
 0x241   :  { %v15411_v2 = vadd.f32 %v4431_v1, %v4409_v7  ;;  %4635 = vmatmul.bf16.vlgmr.msrb.gmra.mxu0 %v13250_v21  ;;  %v10025_v7 = vld [vmem:[%s17060_s1 + $0xf68] sm:$0xf]  ;;  %v9898_v25 = vor.u32 %v11876_v3, %v9897_v14  ;;  %v8110_v33 = vor.u32 %v11426_v13, %v8107_v60  ;;  %v11936_v13 = vld [vmem:[%s17060_s1 + $0x1054] sm:$0xf0] }
 0x242   :  { %v15413_v17 = vadd.f32 %v4388_v53, %v4366_v15  ;;  %4658 = vmatmul.bf16.vlgmr.msrb.gmra.mxu1 %v17135_v59  ;;  %v17150_v1 = vld [vmem:[#allocation22_spill] sm:$0xff]  ;;  %v10026_v15 = vor.u32 %v11908_v63, %v10025_v7  ;;  %v10154_v53 = vor.u32 %v11940_v46, %v10153_v42  ;;  %4791 = vmatpush.bf16.msra.mxu3 %v8126_v54  ;;  %v11904_v46 = vld [vmem:[%s17060_s1 + $0xf54] sm:$0xf0] }
 0x243   :  { %4681 = vmatmul.bf16.vlgmr.msrb.gmra.mxu2 %v17150_v1  ;;  %4704 = vmatmul.bf16.vlgmr.msrb.gmra.mxu3 %v17151_v23  ;;  %v9881_v3 = vld [vmem:[%s17060_s1 + $0xe48] sm:$0xf] }
 0x244   :  { %17149 = vst [vmem:[#allocation25_spill] sm:$0xff] %v15413_v17  ;;  %4723 = vmatpush.bf16.msra.mxu0 %v9898_v25  ;;  %4746 = vmatpush.bf16.msra.mxu1 %v10026_v15  ;;  %v10009_v7 = vld [vmem:[%s17060_s1 + $0xf48] sm:$0xf]  ;;  %v9882_v25 = vor.u32 %v11872_v43, %v9881_v3  ;;  %v11422_v3 = vld [vmem:[%s17060_s1 + $0x4c] sm:$0xf] }
 0x245   :  { %v10137_v15 = vld [vmem:[%s17060_s1 + $0x1048] sm:$0xf]  ;;  %4769 = vmatpush.bf16.msra.mxu2 %v10154_v53  ;;  %v8091_v43 = vld [vmem:[%s17060_s1 + $0x58] sm:$0xf0]  ;;  %v11868_v53 = vld [vmem:[%s17060_s1 + $0xe34] sm:$0xf0] }
 0x246   :  { %v4411_v14 = vpop.f32.mrf.mxu2  ;;  %v4434_v42 = vpop.f32.mrf.mxu3  ;;  %v10138_v20 = vor.u32 %v11936_v13, %v10137_v15  ;;  %4792 = vmatpush.bf16.msra.mxu3 %v8110_v33  ;;  %v8094_v31 = vor.u32 %v11422_v3, %v8091_v43  ;;  %v11900_v33 = vld [vmem:[%s17060_s1 + $0xf34] sm:$0xf0]  ;;  %v8075_v15 = vld [vmem:[%s17060_s1 + $0x38] sm:$0xf0]  ;;  %v9977_v3 = vld [vmem:[%s17060_s1 + $0xf08] sm:$0xf] }
 0x247   :  { %v4412_v63 = vadd.f32 %v4411_v14, %v15299_v27  ;;  %v4367_v54 = vpop.f32.mrf.mxu0  ;;  %v4390_v17 = vpop.f32.mrf.mxu1  ;;  %v10010_v14 = vor.u32 %v11904_v46, %v10009_v7  ;;  %v9993_v7 = vld [vmem:[%s17060_s1 + $0xf28] sm:$0xf]  ;;  %v11418_v46 = vld [vmem:[%s17060_s1 + $0x2c] sm:$0xf] }
 0x248   :  { %v4368_v60 = vadd.f32 %v4367_v54, %v15287_v19  ;;  %4724 = vmatpush.bf16.msra.mxu0 %v9882_v25  ;;  %v9865_v19 = vld [vmem:[%s17060_s1 + $0xe28] sm:$0xf]  ;;  %v9994_v54 = vor.u32 %v11900_v33, %v9993_v7  ;;  %v8078_v13 = vor.u32 %v11418_v46, %v8075_v15  ;;  %v11896_v7 = vld [vmem:[%s17060_s1 + $0xf14] sm:$0xf0]  ;;  %v11414_v15 = vld [vmem:[%s17060_s1 + $0xc] sm:$0xf] }
 0x249   :  { %v15469_v23 = vadd.f32 %v4434_v42, %v4412_v63  ;;  %4747 = vmatpush.bf16.msra.mxu1 %v10010_v14  ;;  %v9866_v63 = vor.u32 %v11868_v53, %v9865_v19  ;;  %v11932_v42 = vld [vmem:[%s17060_s1 + $0x1034] sm:$0xf0]  ;;  %4770 = vmatpush.bf16.msra.mxu2 %v10138_v20  ;;  %v9849_v14 = vld [vmem:[%s17060_s1 + $0xe08] sm:$0xf] }
 0x24a   :  { %v15471_v0 = vadd.f32 %v4390_v17, %v4368_v60  ;;  %v10121_v17 = vld [vmem:[%s17060_s1 + $0x1028] sm:$0xf]  ;;  %4793 = vmatpush.bf16.msra.mxu3 %v8094_v31  ;;  %v11864_v20 = vld [vmem:[%s17060_s1 + $0xe14] sm:$0xf0] }
 0x24b   :  { %v10122_v25 = vor.u32 %v11932_v42, %v10121_v17  ;;  %v9850_v53 = vor.u32 %v11864_v20, %v9849_v14  ;;  %v11928_v33 = vld [vmem:[%s17060_s1 + $0x1014] sm:$0xf0] }
 0x24c   :  { %17152 = vst [vmem:[#allocation28_spill] sm:$0xff] %v15471_v0  ;;  %4725 = vmatpush.bf16.msra.mxu0 %v9866_v63  ;;  %v10105_v63 = vld [vmem:[%s17060_s1 + $0x1008] sm:$0xf] }
 0x24d   :  { %4748 = vmatpush.bf16.msra.mxu1 %v9994_v54  ;;  %4771 = vmatpush.bf16.msra.mxu2 %v10122_v25  ;;  %v9978_v54 = vor.u32 %v11896_v7, %v9977_v3  ;;  %v10106_v46 = vor.u32 %v11928_v33, %v10105_v63 }
 0x24e   :  { %v4413_v60 = vpop.f32.mrf.mxu2  ;;  %v4436_v19 = vpop.f32.mrf.mxu3  ;;  %4794 = vmatpush.bf16.msra.mxu3 %v8078_v13 }
 0x24f   :  { %v4414_v43 = vadd.f32 %v4413_v60, %v15299_v27  ;;  %v4370_v31 = vpop.f32.mrf.mxu0  ;;  %v4393_v42 = vpop.f32.mrf.mxu1  ;;  %v8059_v60 = vld [vmem:[%s17060_s1 + $0x18] sm:$0xf0] }
 0x250   :  { %v4371_v17 = vadd.f32 %v4370_v31, %v15293_v32  ;;  %4726 = vmatpush.bf16.msra.mxu0 %v9850_v53  ;;  %v8062_v20 = vor.u32 %v11414_v15, %v8059_v60  ;;  %v17154_v32 = vld [vmem:[#allocation17_spill] sm:$0xff]  ;;  %v11506_v15 = vld [vmem:[%s17060_s1 + $0x2ec] sm:$0xf]  ;;  %v8427_v60 = vld [vmem:[%s17060_s1 + $0x2f8] sm:$0xf0] }
 0x251   :  { %v15523_v14 = vadd.f32 %v4436_v19, %v4414_v43  ;;  %4640 = vmatmul.bf16.gmra.mxu0 %v17154_v32  ;;  %4749 = vmatpush.bf16.msra.mxu1 %v9978_v54  ;;  %v17155_v54 = vld [vmem:[#allocation20_spill] sm:$0xff] }
 0x252   :  { %v15525_v0 = vadd.f32 %v4393_v42, %v4371_v17  ;;  %4663 = vmatmul.bf16.gmra.mxu1 %v17141_v38  ;;  %4772 = vmatpush.bf16.msra.mxu2 %v10106_v46  ;;  %v11474_v46 = vld [vmem:[%s17060_s1 + $0x1ec] sm:$0xf] }
 0x253   :  { %4686 = vmatmul.bf16.gmra.mxu2 %v13666_v5  ;;  %4709 = vmatmul.bf16.gmra.mxu3 %v13677_v12 }
 0x254   :  { %17153 = vst [vmem:[#allocation10_spill] sm:$0xff] %v15525_v0  ;;  %4795 = vmatpush.bf16.msra.mxu3 %v8062_v20  ;;  %v11538_v20 = vld [vmem:[%s17060_s1 + $0x3ec] sm:$0xf]  ;;  %v17156_v0 = vld [vmem:[#allocation24_spill] sm:$0xff] }
 0x256   :  { %v4416_v25 = vpop.f32.mrf.mxu2  ;;  %v4439_v43 = vpop.f32.mrf.mxu3 }
 0x257   :  { %v4417_v3 = vadd.f32 %v4416_v25, %v15299_v27  ;;  %v4372_v13 = vpop.f32.mrf.mxu0  ;;  %v4395_v19 = vpop.f32.mrf.mxu1  ;;  %v8299_v27 = vld [vmem:[%s17060_s1 + $0x1f8] sm:$0xf0] }
 0x258   :  { %v8555_v25 = vld [vmem:[%s17060_s1 + $0x3f8] sm:$0xf0]  ;;  %v11570_v13 = vld [vmem:[%s17060_s1 + $0x4ec] sm:$0xf] }
 0x259   :  { %v15532_v31 = vadd.f32 %v4439_v43, %v4417_v3  ;;  %v8430_v3 = vor.u32 %v11506_v15, %v8427_v60  ;;  %v8558_v43 = vor.u32 %v11538_v20, %v8555_v25  ;;  %v8683_v19 = vld [vmem:[%s17060_s1 + $0x4f8] sm:$0xf0]  ;;  %v11534_v20 = vld [vmem:[%s17060_s1 + $0x3cc] sm:$0xf] }
 0x25a   :  { %v8411_v60 = vld [vmem:[%s17060_s1 + $0x2d8] sm:$0xf0] }
 0x25b   :  { %4834 = vmatpush.bf16.msrb.mxu1 %v8430_v3  ;;  %4857 = vmatpush.bf16.msrb.mxu2 %v8558_v43  ;;  %v8539_v25 = vld [vmem:[%s17060_s1 + $0x3d8] sm:$0xf0] }
 0x25e   :  { %v4418_v53 = vpop.f32.mrf.mxu2  ;;  %v4441_v7 = vpop.f32.mrf.mxu3 }
 0x25f   :  { %v4452_v63 = vpop.f32.mrf.mxu0  ;;  %v4475_v17 = vpop.f32.mrf.mxu1  ;;  %v8686_v53 = vor.u32 %v11570_v13, %v8683_v19  ;;  %v8542_v13 = vor.u32 %v11534_v20, %v8539_v25  ;;  %v11566_v19 = vld [vmem:[%s17060_s1 + $0x4cc] sm:$0xf] }
 0x260   :  { %v4453_v33 = vadd.f32 %v4452_v63, %v15357_v35  ;;  %v8302_v35 = vor.u32 %v11474_v46, %v8299_v27  ;;  %v11470_v63 = vld [vmem:[%s17060_s1 + $0x1cc] sm:$0xf] }
 0x261   :  { %4645 = vmatmul.bf16.gmra.mxu0 %v17155_v54  ;;  %4880 = vmatpush.bf16.msrb.mxu3 %v8686_v53  ;;  %v8667_v53 = vld [vmem:[%s17060_s1 + $0x4d8] sm:$0xf0] }
 0x262   :  { %v4476_v42 = vadd.f32 %v4475_v17, %v4453_v33  ;;  %4668 = vmatmul.bf16.gmra.mxu1 %v17142_v62  ;;  %4811 = vmatpush.bf16.msrb.mxu0 %v8302_v35  ;;  %v8283_v33 = vld [vmem:[%s17060_s1 + $0x1d8] sm:$0xf0]  ;;  %v11502_v17 = vld [vmem:[%s17060_s1 + $0x2cc] sm:$0xf] }
 0x263   :  { %4691 = vmatmul.bf16.gmra.mxu2 %v13713_v4  ;;  %4714 = vmatmul.bf16.gmra.mxu3 %v13715_v39  ;;  %v8286_v35 = vor.u32 %v11470_v63, %v8283_v33  ;;  %v8670_v63 = vor.u32 %v11566_v19, %v8667_v53  ;;  %v11466_v33 = vld [vmem:[%s17060_s1 + $0x1ac] sm:$0xf]  ;;  %v8251_v53 = vld [vmem:[%s17060_s1 + $0x198] sm:$0xf0] }
 0x264   :  { %4858 = vmatpush.bf16.msrb.mxu2 %v8542_v13  ;;  %v11462_v19 = vld [vmem:[%s17060_s1 + $0x18c] sm:$0xf] }
 0x265   :  { %4881 = vmatpush.bf16.msrb.mxu3 %v8670_v63  ;;  %v11494_v63 = vld [vmem:[%s17060_s1 + $0x28c] sm:$0xf] }
 0x266   :  { %v4498_v7 = vpop.f32.mrf.mxu2  ;;  %v4521_v27 = vpop.f32.mrf.mxu3  ;;  %4812 = vmatpush.bf16.msrb.mxu0 %v8286_v35  ;;  %v8523_v35 = vld [vmem:[%s17060_s1 + $0x3b8] sm:$0xf0] }
 0x267   :  { %v4499_v46 = vadd.f32 %v4498_v7, %v4476_v42  ;;  %v4454_v15 = vpop.f32.mrf.mxu0  ;;  %v4477_v43 = vpop.f32.mrf.mxu1  ;;  %v8414_v42 = vor.u32 %v11502_v17, %v8411_v60  ;;  %v11498_v17 = vld [vmem:[%s17060_s1 + $0x2ac] sm:$0xf] }
 0x268   :  { %v4455_v3 = vadd.f32 %v4454_v15, %v15411_v2  ;;  %v8267_v2 = vld [vmem:[%s17060_s1 + $0x1b8] sm:$0xf0] }
 0x269   :  { %v15588_v7 = vadd.f32 %v4521_v27, %v4499_v46  ;;  %4835 = vmatpush.bf16.msrb.mxu1 %v8414_v42  ;;  %v8270_v60 = vor.u32 %v11466_v33, %v8267_v2  ;;  %v8395_v46 = vld [vmem:[%s17060_s1 + $0x2b8] sm:$0xf0]  ;;  %v11530_v27 = vld [vmem:[%s17060_s1 + $0x3ac] sm:$0xf] }
 0x26a   :  { %v4478_v15 = vadd.f32 %v4477_v43, %v4455_v3  ;;  %v8398_v20 = vor.u32 %v11498_v17, %v8395_v46  ;;  %v8526_v25 = vor.u32 %v11530_v27, %v8523_v35  ;;  %v11562_v3 = vld [vmem:[%s17060_s1 + $0x4ac] sm:$0xf]  ;;  %v8651_v43 = vld [vmem:[%s17060_s1 + $0x4b8] sm:$0xf0] }
 0x26b   :  { %v8654_v42 = vor.u32 %v11562_v3, %v8651_v43  ;;  %4813 = vmatpush.bf16.msrb.mxu0 %v8270_v60  ;;  %v8254_v60 = vor.u32 %v11462_v19, %v8251_v53  ;;  %v8379_v46 = vld [vmem:[%s17060_s1 + $0x298] sm:$0xf0]  ;;  %v11526_v27 = vld [vmem:[%s17060_s1 + $0x38c] sm:$0xf] }
 0x26c   :  { %4859 = vmatpush.bf16.msrb.mxu2 %v8526_v25  ;;  %v8507_v35 = vld [vmem:[%s17060_s1 + $0x398] sm:$0xf0]  ;;  %v11558_v43 = vld [vmem:[%s17060_s1 + $0x48c] sm:$0xf] }
 0x26d   :  { %4836 = vmatpush.bf16.msrb.mxu1 %v8398_v20  ;;  %4882 = vmatpush.bf16.msrb.mxu3 %v8654_v42  ;;  %v8510_v3 = vor.u32 %v11526_v27, %v8507_v35  ;;  %v8635_v42 = vld [vmem:[%s17060_s1 + $0x498] sm:$0xf0] }
 0x26e   :  { %v4500_v13 = vpop.f32.mrf.mxu2  ;;  %v4523_v2 = vpop.f32.mrf.mxu3  ;;  %v8638_v19 = vor.u32 %v11558_v43, %v8635_v42  ;;  %v11486_v42 = vld [vmem:[%s17060_s1 + $0x24c] sm:$0xf] }
 0x26f   :  { %v4501_v33 = vadd.f32 %v4500_v13, %v4478_v15  ;;  %v4457_v17 = vpop.f32.mrf.mxu0  ;;  %v4480_v25 = vpop.f32.mrf.mxu1  ;;  %v8382_v15 = vor.u32 %v11494_v63, %v8379_v46  ;;  %4814 = vmatpush.bf16.msrb.mxu0 %v8254_v60  ;;  %v8235_v63 = vld [vmem:[%s17060_s1 + $0x178] sm:$0xf0]  ;;  %v11522_v60 = vld [vmem:[%s17060_s1 + $0x36c] sm:$0xf] }
 0x270   :  { %v4458_v20 = vadd.f32 %v4457_v17, %v15469_v23  ;;  %v11458_v23 = vld [vmem:[%s17060_s1 + $0x16c] sm:$0xf]  ;;  %v8491_v46 = vld [vmem:[%s17060_s1 + $0x378] sm:$0xf0]  ;;  %4860 = vmatpush.bf16.msrb.mxu2 %v8510_v3 }
 0x271   :  { %v15639_v13 = vadd.f32 %v4523_v2, %v4501_v33  ;;  %4727 = vmatmul.bf16.vlgmr.msra.gmra.mxu0 %v17156_v0  ;;  %4837 = vmatpush.bf16.msrb.mxu1 %v8382_v15  ;;  %v11490_v17 = vld [vmem:[%s17060_s1 + $0x26c] sm:$0xf]  ;;  %v8238_v33 = vor.u32 %v11458_v23, %v8235_v63  ;;  %v8363_v2 = vld [vmem:[%s17060_s1 + $0x278] sm:$0xf0]  ;;  %v8494_v35 = vor.u32 %v11522_v60, %v8491_v46 }
 0x272   :  { %v4481_v53 = vadd.f32 %v4480_v25, %v4458_v20  ;;  %4750 = vmatmul.bf16.vlgmr.msra.gmra.mxu1 %v17143_v24  ;;  %v8366_v27 = vor.u32 %v11490_v17, %v8363_v2  ;;  %v11554_v20 = vld [vmem:[%s17060_s1 + $0x46c] sm:$0xf]  ;;  %v8619_v25 = vld [vmem:[%s17060_s1 + $0x478] sm:$0xf0]  ;;  %4883 = vmatpush.bf16.msrb.mxu3 %v8638_v19 }
 0x273   :  { %4773 = vmatmul.bf16.vlgmr.msra.gmra.mxu2 %v13807_v49  ;;  %4796 = vmatmul.bf16.vlgmr.msra.gmra.mxu3 %v12622_v48  ;;  %v8622_v15 = vor.u32 %v11554_v20, %v8619_v25  ;;  %v11454_v48 = vld [vmem:[%s17060_s1 + $0x14c] sm:$0xf]  ;;  %v8219_v3 = vld [vmem:[%s17060_s1 + $0x158] sm:$0xf0] }
 0x274   :  { %4815 = vmatpush.bf16.msrb.mxu0 %v8238_v33  ;;  %v8222_v19 = vor.u32 %v11454_v48, %v8219_v3  ;;  %v8347_v33 = vld [vmem:[%s17060_s1 + $0x258] sm:$0xf0]  ;;  %v11518_v2 = vld [vmem:[%s17060_s1 + $0x34c] sm:$0xf]  ;;  %4861 = vmatpush.bf16.msrb.mxu2 %v8494_v35 }
 0x275   :  { %4838 = vmatpush.bf16.msrb.mxu1 %v8366_v27  ;;  %v8475_v60 = vld [vmem:[%s17060_s1 + $0x358] sm:$0xf0]  ;;  %v11550_v25 = vld [vmem:[%s17060_s1 + $0x44c] sm:$0xf] }
 0x276   :  { %v4503_v43 = vpop.f32.mrf.mxu2  ;;  %v4526_v63 = vpop.f32.mrf.mxu3  ;;  %v8478_v20 = vor.u32 %v11518_v2, %v8475_v60  ;;  %4884 = vmatpush.bf16.msrb.mxu3 %v8622_v15  ;;  %v8203_v35 = vld [vmem:[%s17060_s1 + $0x138] sm:$0xf0]  ;;  %v11546_v2 = vld [vmem:[%s17060_s1 + $0x42c] sm:$0xf] }
 0x277   :  { %v4504_v23 = vadd.f32 %v4503_v43, %v4481_v53  ;;  %v4459_v17 = vpop.f32.mrf.mxu0  ;;  %v4482_v27 = vpop.f32.mrf.mxu1  ;;  %v8350_v53 = vor.u32 %v11486_v42, %v8347_v33  ;;  %v8603_v43 = vld [vmem:[%s17060_s1 + $0x458] sm:$0xf0]  ;;  %v11482_v42 = vld [vmem:[%s17060_s1 + $0x22c] sm:$0xf] }
 0x278   :  { %v4460_v46 = vadd.f32 %v4459_v17, %v15523_v14  ;;  %4816 = vmatpush.bf16.msrb.mxu0 %v8222_v19  ;;  %v8606_v3 = vor.u32 %v11550_v25, %v8603_v43  ;;  %v11450_v14 = vld [vmem:[%s17060_s1 + $0x12c] sm:$0xf]  ;;  %v8331_v15 = vld [vmem:[%s17060_s1 + $0x238] sm:$0xf0]  ;;  %4862 = vmatpush.bf16.msrb.mxu2 %v8478_v20 }
 0x279   :  { %v15694_v48 = vadd.f32 %v4526_v63, %v4504_v23  ;;  %4839 = vmatpush.bf16.msrb.mxu1 %v8350_v53  ;;  %v8206_v17 = vor.u32 %v11450_v14, %v8203_v35  ;;  %v11514_v23 = vld [vmem:[%s17060_s1 + $0x32c] sm:$0xf]  ;;  %v8459_v63 = vld [vmem:[%s17060_s1 + $0x338] sm:$0xf0]  ;;  %v8334_v19 = vor.u32 %v11482_v42, %v8331_v15 }
 0x27a   :  { %v4483_v39 = vadd.f32 %v4482_v27, %v4460_v46  ;;  %v8462_v33 = vor.u32 %v11514_v23, %v8459_v63  ;;  %v8587_v60 = vld [vmem:[%s17060_s1 + $0x438] sm:$0xf0]  ;;  %4885 = vmatpush.bf16.msrb.mxu3 %v8606_v3  ;;  %v11446_v53 = vld [vmem:[%s17060_s1 + $0x10c] sm:$0xf] }
 0x27b   :  { %v8590_v46 = vor.u32 %v11546_v2, %v8587_v60  ;;  %v8187_v20 = vld [vmem:[%s17060_s1 + $0x118] sm:$0xf0]  ;;  %v11478_v25 = vld [vmem:[%s17060_s1 + $0x20c] sm:$0xf] }
 0x27c   :  { %4817 = vmatpush.bf16.msrb.mxu0 %v8206_v17  ;;  %v8190_v3 = vor.u32 %v11446_v53, %v8187_v20  ;;  %v8315_v42 = vld [vmem:[%s17060_s1 + $0x218] sm:$0xf0]  ;;  %v11510_v17 = vld [vmem:[%s17060_s1 + $0x30c] sm:$0xf]  ;;  %4863 = vmatpush.bf16.msrb.mxu2 %v8462_v33 }
 0x27d   :  { %4840 = vmatpush.bf16.msrb.mxu1 %v8334_v19  ;;  %v8443_v15 = vld [vmem:[%s17060_s1 + $0x318] sm:$0xf0]  ;;  %v11542_v2 = vld [vmem:[%s17060_s1 + $0x40c] sm:$0xf] }
 0x27e   :  { %v4505_v27 = vpop.f32.mrf.mxu2  ;;  %v4528_v14 = vpop.f32.mrf.mxu3  ;;  %v8446_v19 = vor.u32 %v11510_v17, %v8443_v15  ;;  %v8571_v60 = vld [vmem:[%s17060_s1 + $0x418] sm:$0xf0]  ;;  %4886 = vmatpush.bf16.msrb.mxu3 %v8590_v46 }
 0x27f   :  { %v4506_v43 = vadd.f32 %v4505_v27, %v4483_v39  ;;  %v4462_v35 = vpop.f32.mrf.mxu0  ;;  %v4485_v63 = vpop.f32.mrf.mxu1  ;;  %v8318_v39 = vor.u32 %v11478_v25, %v8315_v42  ;;  %v8574_v53 = vor.u32 %v11542_v2, %v8571_v60  ;;  %v8939_v2 = vld [vmem:[%s17060_s1 + $0x6f8] sm:$0xf0]  ;;  %v11666_v60 = vld [vmem:[%s17060_s1 + $0x7ec] sm:$0xf] }
 0x280   :  { %v4463_v23 = vadd.f32 %v4462_v35, %v15532_v31  ;;  %4818 = vmatpush.bf16.msrb.mxu0 %v8190_v3  ;;  %4864 = vmatpush.bf16.msrb.mxu2 %v8446_v19  ;;  %v11634_v19 = vld [vmem:[%s17060_s1 + $0x6ec] sm:$0xf] }
 0x281   :  { %v15745_v27 = vadd.f32 %v4528_v14, %v4506_v43  ;;  %4732 = vmatmul.bf16.gmra.mxu0 %v13679_v6  ;;  %4841 = vmatpush.bf16.msrb.mxu1 %v8318_v39  ;;  %v8811_v39 = vld [vmem:[%s17060_s1 + $0x5f8] sm:$0xf0] }
 0x282   :  { %v4486_v20 = vadd.f32 %v4485_v63, %v4463_v23  ;;  %4755 = vmatmul.bf16.gmra.mxu1 %v13691_v40  ;;  %4887 = vmatpush.bf16.msrb.mxu3 %v8574_v53  ;;  %v17157_v63 = vld [vmem:[#allocation27_spill] sm:$0xff]  ;;  %v9067_v53 = vld [vmem:[%s17060_s1 + $0x7f8] sm:$0xf0] }
 0x283   :  { %4778 = vmatmul.bf16.gmra.mxu2 %v13921_v22  ;;  %4801 = vmatmul.bf16.gmra.mxu3 %v12754_v44  ;;  %v11602_v44 = vld [vmem:[%s17060_s1 + $0x5ec] sm:$0xf] }
 0x286   :  { %v4508_v31 = vpop.f32.mrf.mxu2  ;;  %v4531_v25 = vpop.f32.mrf.mxu3 }
 0x287   :  { %v4509_v33 = vadd.f32 %v4508_v31, %v4486_v20  ;;  %v4464_v43 = vpop.f32.mrf.mxu0  ;;  %v4487_v14 = vpop.f32.mrf.mxu1  ;;  %v8942_v20 = vor.u32 %v11634_v19, %v8939_v2  ;;  %v9070_v31 = vor.u32 %v11666_v60, %v9067_v53  ;;  %v11662_v19 = vld [vmem:[%s17060_s1 + $0x7cc] sm:$0xf] }
 0x289   :  { %v15751_v46 = vadd.f32 %v4531_v25, %v4509_v33  ;;  %v11698_v33 = vld [vmem:[%s17060_s1 + $0x8ec] sm:$0xf]  ;;  %v9195_v25 = vld [vmem:[%s17060_s1 + $0x8f8] sm:$0xf0]  ;;  %4926 = vmatpush.bf16.msra.mxu1 %v8942_v20  ;;  %4949 = vmatpush.bf16.msra.mxu2 %v9070_v31 }
 0x28a   :  { %v9198_v43 = vor.u32 %v11698_v33, %v9195_v25  ;;  %v11694_v20 = vld [vmem:[%s17060_s1 + $0x8cc] sm:$0xf]  ;;  %v9179_v31 = vld [vmem:[%s17060_s1 + $0x8d8] sm:$0xf0] }
 0x28b   :  { %v9182_v25 = vor.u32 %v11694_v20, %v9179_v31 }
 0x28c   :  { %4972 = vmatpush.bf16.msra.mxu3 %v9198_v43  ;;  %v11594_v43 = vld [vmem:[%s17060_s1 + $0x5ac] sm:$0xf] }
 0x28e   :  { %v4510_v35 = vpop.f32.mrf.mxu2  ;;  %v4533_v3 = vpop.f32.mrf.mxu3 }
 0x28f   :  { %v4544_v42 = vpop.f32.mrf.mxu0  ;;  %v4567_v15 = vpop.f32.mrf.mxu1  ;;  %v11598_v35 = vld [vmem:[%s17060_s1 + $0x5cc] sm:$0xf] }
 0x290   :  { %v4545_v17 = vadd.f32 %v4544_v42, %v15588_v7  ;;  %v8814_v7 = vor.u32 %v11602_v44, %v8811_v39  ;;  %v11630_v3 = vld [vmem:[%s17060_s1 + $0x6cc] sm:$0xf]  ;;  %v8923_v39 = vld [vmem:[%s17060_s1 + $0x6d8] sm:$0xf0]  ;;  %4973 = vmatpush.bf16.msra.mxu3 %v9182_v25 }
 0x291   :  { %4737 = vmatmul.bf16.gmra.mxu0 %v17157_v63 }
 0x292   :  { %v4568_v23 = vadd.f32 %v4567_v15, %v4545_v17  ;;  %4760 = vmatmul.bf16.gmra.mxu1 %v17144_v47  ;;  %4903 = vmatpush.bf16.msra.mxu0 %v8814_v7  ;;  %v9051_v7 = vld [vmem:[%s17060_s1 + $0x7d8] sm:$0xf0] }
 0x293   :  { %4783 = vmatmul.bf16.gmra.mxu2 %v13959_v30  ;;  %4806 = vmatmul.bf16.gmra.mxu3 %v12847_v34  ;;  %v8795_v34 = vld [vmem:[%s17060_s1 + $0x5d8] sm:$0xf0]  ;;  %v9054_v53 = vor.u32 %v11662_v19, %v9051_v7 }
 0x294   :  { %v8798_v44 = vor.u32 %v11598_v35, %v8795_v34  ;;  %v9163_v19 = vld [vmem:[%s17060_s1 + $0x8b8] sm:$0xf0] }
 0x295   :  { %4950 = vmatpush.bf16.msra.mxu2 %v9054_v53  ;;  %v11622_v53 = vld [vmem:[%s17060_s1 + $0x68c] sm:$0xf] }
 0x296   :  { %v4590_v14 = vpop.f32.mrf.mxu2  ;;  %v4613_v17 = vpop.f32.mrf.mxu3  ;;  %4904 = vmatpush.bf16.msra.mxu0 %v8798_v44 }
 0x297   :  { %v4591_v42 = vadd.f32 %v4590_v14, %v4568_v23  ;;  %v4546_v15 = vpop.f32.mrf.mxu0  ;;  %v4569_v60 = vpop.f32.mrf.mxu1  ;;  %v8926_v23 = vor.u32 %v11630_v3, %v8923_v39  ;;  %v11626_v14 = vld [vmem:[%s17060_s1 + $0x6ac] sm:$0xf]  ;;  %v8907_v3 = vld [vmem:[%s17060_s1 + $0x6b8] sm:$0xf0] }
 0x298   :  { %v4547_v2 = vadd.f32 %v4546_v15, %v15639_v13  ;;  %v8779_v13 = vld [vmem:[%s17060_s1 + $0x5b8] sm:$0xf0]  ;;  %v8910_v15 = vor.u32 %v11626_v14, %v8907_v3  ;;  %v11690_v39 = vld [vmem:[%s17060_s1 + $0x8ac] sm:$0xf] }
 0x299   :  { %v15807_v33 = vadd.f32 %v4613_v17, %v4591_v42  ;;  %4927 = vmatpush.bf16.msra.mxu1 %v8926_v23  ;;  %v8782_v34 = vor.u32 %v11594_v43, %v8779_v13  ;;  %v11658_v42 = vld [vmem:[%s17060_s1 + $0x7ac] sm:$0xf]  ;;  %v9035_v17 = vld [vmem:[%s17060_s1 + $0x7b8] sm:$0xf0]  ;;  %v9166_v7 = vor.u32 %v11690_v39, %v9163_v19 }
 0x29a   :  { %v4570_v35 = vadd.f32 %v4569_v60, %v4547_v2  ;;  %v9038_v44 = vor.u32 %v11658_v42, %v9035_v17  ;;  %v11590_v60 = vld [vmem:[%s17060_s1 + $0x58c] sm:$0xf]  ;;  %v8763_v23 = vld [vmem:[%s17060_s1 + $0x598] sm:$0xf0] }
 0x29b   :  { %4905 = vmatpush.bf16.msra.mxu0 %v8782_v34  ;;  %4974 = vmatpush.bf16.msra.mxu3 %v9166_v7  ;;  %v8766_v43 = vor.u32 %v11590_v60, %v8763_v23  ;;  %v8891_v13 = vld [vmem:[%s17060_s1 + $0x698] sm:$0xf0]  ;;  %v11654_v14 = vld [vmem:[%s17060_s1 + $0x78c] sm:$0xf] }
 0x29c   :  { %4951 = vmatpush.bf16.msra.mxu2 %v9038_v44  ;;  %v9019_v34 = vld [vmem:[%s17060_s1 + $0x798] sm:$0xf0]  ;;  %v11618_v23 = vld [vmem:[%s17060_s1 + $0x66c] sm:$0xf] }
 0x29d   :  { %4928 = vmatpush.bf16.msra.mxu1 %v8910_v15  ;;  %v9022_v17 = vor.u32 %v11654_v14, %v9019_v34  ;;  %v11686_v15 = vld [vmem:[%s17060_s1 + $0x88c] sm:$0xf]  ;;  %v9147_v44 = vld [vmem:[%s17060_s1 + $0x898] sm:$0xf0] }
 0x29e   :  { %v4592_v2 = vpop.f32.mrf.mxu2  ;;  %v4615_v31 = vpop.f32.mrf.mxu3  ;;  %v9150_v19 = vor.u32 %v11686_v15, %v9147_v44  ;;  %v8747_v60 = vld [vmem:[%s17060_s1 + $0x578] sm:$0xf0] }
 0x29f   :  { %v4593_v20 = vadd.f32 %v4592_v2, %v4570_v35  ;;  %v4549_v25 = vpop.f32.mrf.mxu0  ;;  %v4572_v42 = vpop.f32.mrf.mxu1  ;;  %v8894_v35 = vor.u32 %v11622_v53, %v8891_v13  ;;  %4906 = vmatpush.bf16.msra.mxu0 %v8766_v43  ;;  %v17158_v2 = vld [vmem:[#allocation9_spill] sm:$0xff]  ;;  %v9131_v13 = vld [vmem:[%s17060_s1 + $0x878] sm:$0xf0] }
 0x2a0   :  { %v4550_v3 = vadd.f32 %v4549_v25, %v15694_v48  ;;  %v11586_v48 = vld [vmem:[%s17060_s1 + $0x56c] sm:$0xf]  ;;  %v9003_v25 = vld [vmem:[%s17060_s1 + $0x778] sm:$0xf0]  ;;  %4952 = vmatpush.bf16.msra.mxu2 %v9022_v17  ;;  %4975 = vmatpush.bf16.msra.mxu3 %v9150_v19 }
 0x2a1   :  { %v15858_v39 = vadd.f32 %v4615_v31, %v4593_v20  ;;  %4819 = vmatmul.bf16.vlgmr.msrb.gmra.mxu0 %v17158_v2  ;;  %4929 = vmatpush.bf16.msra.mxu1 %v8894_v35  ;;  %v8750_v53 = vor.u32 %v11586_v48, %v8747_v60  ;;  %v8875_v20 = vld [vmem:[%s17060_s1 + $0x678] sm:$0xf0]  ;;  %v11650_v31 = vld [vmem:[%s17060_s1 + $0x76c] sm:$0xf] }
 0x2a2   :  { %v4573_v7 = vadd.f32 %v4572_v42, %v4550_v3  ;;  %4842 = vmatmul.bf16.vlgmr.msrb.gmra.mxu1 %v17145_v26  ;;  %v8878_v43 = vor.u32 %v11618_v23, %v8875_v20  ;;  %v9006_v26 = vor.u32 %v11650_v31, %v9003_v25  ;;  %v8731_v3 = vld [vmem:[%s17060_s1 + $0x558] sm:$0xf0]  ;;  %v11614_v42 = vld [vmem:[%s17060_s1 + $0x64c] sm:$0xf] }
 0x2a3   :  { %4865 = vmatmul.bf16.vlgmr.msrb.gmra.mxu2 %v12643_v57  ;;  %4888 = vmatmul.bf16.vlgmr.msrb.gmra.mxu3 %v12964_v29  ;;  %v11682_v57 = vld [vmem:[%s17060_s1 + $0x86c] sm:$0xf]  ;;  %v8859_v19 = vld [vmem:[%s17060_s1 + $0x658] sm:$0xf0] }
 0x2a4   :  { %4907 = vmatpush.bf16.msra.mxu0 %v8750_v53  ;;  %v9134_v14 = vor.u32 %v11682_v57, %v9131_v13  ;;  %v11582_v29 = vld [vmem:[%s17060_s1 + $0x54c] sm:$0xf]  ;;  %v8987_v48 = vld [vmem:[%s17060_s1 + $0x758] sm:$0xf0]  ;;  %4953 = vmatpush.bf16.msra.mxu2 %v9006_v26 }
 0x2a5   :  { %4930 = vmatpush.bf16.msra.mxu1 %v8878_v43  ;;  %v8734_v44 = vor.u32 %v11582_v29, %v8731_v3  ;;  %v11646_v2 = vld [vmem:[%s17060_s1 + $0x74c] sm:$0xf]  ;;  %v9115_v31 = vld [vmem:[%s17060_s1 + $0x858] sm:$0xf0] }
 0x2a6   :  { %v4595_v34 = vpop.f32.mrf.mxu2  ;;  %v4618_v17 = vpop.f32.mrf.mxu3  ;;  %v8990_v53 = vor.u32 %v11646_v2, %v8987_v48  ;;  %v11678_v20 = vld [vmem:[%s17060_s1 + $0x84c] sm:$0xf]  ;;  %4976 = vmatpush.bf16.msra.mxu3 %v9134_v14  ;;  %v8715_v26 = vld [vmem:[%s17060_s1 + $0x538] sm:$0xf0] }
 0x2a7   :  { %v4596_v35 = vadd.f32 %v4595_v34, %v4573_v7  ;;  %v4551_v15 = vpop.f32.mrf.mxu0  ;;  %v4574_v23 = vpop.f32.mrf.mxu1  ;;  %v8862_v7 = vor.u32 %v11614_v42, %v8859_v19  ;;  %v9118_v43 = vor.u32 %v11678_v20, %v9115_v31  ;;  %v11610_v13 = vld [vmem:[%s17060_s1 + $0x62c] sm:$0xf]  ;;  %v8843_v14 = vld [vmem:[%s17060_s1 + $0x638] sm:$0xf0] }
 0x2a8   :  { %v4552_v60 = vadd.f32 %v4551_v15, %v15745_v27  ;;  %4908 = vmatpush.bf16.msra.mxu0 %v8734_v44  ;;  %v11578_v27 = vld [vmem:[%s17060_s1 + $0x52c] sm:$0xf]  ;;  %v8971_v3 = vld [vmem:[%s17060_s1 + $0x738] sm:$0xf0]  ;;  %4954 = vmatpush.bf16.msra.mxu2 %v8990_v53  ;;  %v8846_v42 = vor.u32 %v11610_v13, %v8843_v14 }
 0x2a9   :  { %v15913_v25 = vadd.f32 %v4618_v17, %v4596_v35  ;;  %4931 = vmatpush.bf16.msra.mxu1 %v8862_v7  ;;  %v8718_v34 = vor.u32 %v11578_v27, %v8715_v26  ;;  %v11642_v29 = vld [vmem:[%s17060_s1 + $0x72c] sm:$0xf]  ;;  %v9099_v15 = vld [vmem:[%s17060_s1 + $0x838] sm:$0xf0] }
 0x2aa   :  { %v4575_v57 = vadd.f32 %v4574_v23, %v4552_v60  ;;  %v8974_v35 = vor.u32 %v11642_v29, %v8971_v3  ;;  %v11674_v17 = vld [vmem:[%s17060_s1 + $0x82c] sm:$0xf]  ;;  %4977 = vmatpush.bf16.msra.mxu3 %v9118_v43  ;;  %v8699_v48 = vld [vmem:[%s17060_s1 + $0x518] sm:$0xf0] }
 0x2ab   :  { %v9102_v44 = vor.u32 %v11674_v17, %v9099_v15  ;;  %v11574_v2 = vld [vmem:[%s17060_s1 + $0x50c] sm:$0xf]  ;;  %v8827_v31 = vld [vmem:[%s17060_s1 + $0x618] sm:$0xf0] }
 0x2ac   :  { %4909 = vmatpush.bf16.msra.mxu0 %v8718_v34  ;;  %v11606_v60 = vld [vmem:[%s17060_s1 + $0x60c] sm:$0xf]  ;;  %v8702_v20 = vor.u32 %v11574_v2, %v8699_v48  ;;  %v8955_v27 = vld [vmem:[%s17060_s1 + $0x718] sm:$0xf0]  ;;  %4955 = vmatpush.bf16.msra.mxu2 %v8974_v35 }
 0x2ad   :  { %4932 = vmatpush.bf16.msra.mxu1 %v8846_v42  ;;  %v11638_v43 = vld [vmem:[%s17060_s1 + $0x70c] sm:$0xf]  ;;  %v9083_v29 = vld [vmem:[%s17060_s1 + $0x818] sm:$0xf0] }
 0x2ae   :  { %v4597_v19 = vpop.f32.mrf.mxu2  ;;  %v4620_v7 = vpop.f32.mrf.mxu3  ;;  %v8958_v34 = vor.u32 %v11638_v43, %v8955_v27  ;;  %v11670_v14 = vld [vmem:[%s17060_s1 + $0x80c] sm:$0xf]  ;;  %4978 = vmatpush.bf16.msra.mxu3 %v9102_v44  ;;  %v9579_v27 = vld [vmem:[%s17060_s1 + $0xbf8] sm:$0xf0] }
 0x2af   :  { %v4598_v23 = vadd.f32 %v4597_v19, %v4575_v57  ;;  %v4554_v53 = vpop.f32.mrf.mxu0  ;;  %v4577_v13 = vpop.f32.mrf.mxu1  ;;  %v8830_v57 = vor.u32 %v11606_v60, %v8827_v31  ;;  %v9086_v42 = vor.u32 %v11670_v14, %v9083_v29  ;;  %v9451_v31 = vld [vmem:[%s17060_s1 + $0xaf8] sm:$0xf0]  ;;  %v11794_v43 = vld [vmem:[%s17060_s1 + $0xbec] sm:$0xf] }
 0x2b0   :  { %v4555_v26 = vadd.f32 %v4554_v53, %v15751_v46  ;;  %4910 = vmatpush.bf16.msra.mxu0 %v8702_v20  ;;  %4956 = vmatpush.bf16.msra.mxu2 %v8958_v34  ;;  %v17159_v53 = vld [vmem:[#allocation11_spill] sm:$0xff]  ;;  %v11762_v20 = vld [vmem:[%s17060_s1 + $0xaec] sm:$0xf] }
 0x2b1   :  { %v15964_v3 = vadd.f32 %v4620_v7, %v4598_v23  ;;  %4824 = vmatmul.bf16.gmra.mxu0 %v12765_v50  ;;  %4933 = vmatpush.bf16.msra.mxu1 %v8830_v57  ;;  %v11726_v14 = vld [vmem:[%s17060_s1 + $0x9cc] sm:$0xf] }
 0x2b2   :  { %v4578_v17 = vadd.f32 %v4577_v13, %v4555_v26  ;;  %4847 = vmatmul.bf16.gmra.mxu1 %v12767_v51  ;;  %4979 = vmatpush.bf16.msra.mxu3 %v9086_v42  ;;  %v9454_v26 = vor.u32 %v11762_v20, %v9451_v31  ;;  %v9582_v13 = vor.u32 %v11794_v43, %v9579_v27  ;;  %v11758_v29 = vld [vmem:[%s17060_s1 + $0xacc] sm:$0xf]  ;;  %v9419_v43 = vld [vmem:[%s17060_s1 + $0xab8] sm:$0xf0] }
 0x2b3   :  { %4870 = vmatmul.bf16.gmra.mxu2 %v12775_v56  ;;  %4893 = vmatmul.bf16.gmra.mxu3 %v13096_v45  ;;  %v11730_v56 = vld [vmem:[%s17060_s1 + $0x9ec] sm:$0xf]  ;;  %v9323_v45 = vld [vmem:[%s17060_s1 + $0x9f8] sm:$0xf0] }
 0x2b4   :  { %5041 = vmatpush.bf16.msrb.mxu2 %v9582_v13  ;;  %v11754_v20 = vld [vmem:[%s17060_s1 + $0xaac] sm:$0xf] }
 0x2b5   :  { %5018 = vmatpush.bf16.msrb.mxu1 %v9454_v26  ;;  %v11786_v27 = vld [vmem:[%s17060_s1 + $0xbac] sm:$0xf]  ;;  %v9547_v26 = vld [vmem:[%s17060_s1 + $0xbb8] sm:$0xf0]  ;;  %v9422_v13 = vor.u32 %v11754_v20, %v9419_v43 }
 0x2b6   :  { %v4600_v46 = vpop.f32.mrf.mxu2  ;;  %v4623_v15 = vpop.f32.mrf.mxu3  ;;  %v11746_v43 = vld [vmem:[%s17060_s1 + $0xa6c] sm:$0xf] }
 0x2b7   :  { %v4601_v35 = vadd.f32 %v4600_v46, %v4578_v17  ;;  %v4556_v19 = vpop.f32.mrf.mxu0  ;;  %v4579_v2 = vpop.f32.mrf.mxu1 }
 0x2b8   :  { %v11790_v19 = vld [vmem:[%s17060_s1 + $0xbcc] sm:$0xf]  ;;  %v9563_v2 = vld [vmem:[%s17060_s1 + $0xbd8] sm:$0xf0] }
 0x2b9   :  { %v15970_v44 = vadd.f32 %v4623_v15, %v4601_v35  ;;  %v9435_v15 = vld [vmem:[%s17060_s1 + $0xad8] sm:$0xf0] }
 0x2be   :  { %v4602_v48 = vpop.f32.mrf.mxu2  ;;  %v4625_v60 = vpop.f32.mrf.mxu3 }
 0x2bf   :  { %v4636_v23 = vpop.f32.mrf.mxu0  ;;  %v4659_v7 = vpop.f32.mrf.mxu1 }
 0x2c0   :  { %v4637_v50 = vadd.f32 %v4636_v23, %v15807_v33  ;;  %v9326_v33 = vor.u32 %v11730_v56, %v9323_v45  ;;  %v9438_v23 = vor.u32 %v11758_v29, %v9435_v15  ;;  %v11722_v45 = vld [vmem:[%s17060_s1 + $0x9ac] sm:$0xf]  ;;  %v9275_v29 = vld [vmem:[%s17060_s1 + $0x998] sm:$0xf0] }
 0x2c1   :  { %4829 = vmatmul.bf16.gmra.mxu0 %v17159_v53 }
 0x2c2   :  { %v4660_v51 = vadd.f32 %v4659_v7, %v4637_v50  ;;  %4852 = vmatmul.bf16.gmra.mxu1 %v12851_v36  ;;  %v11826_v36 = vld [vmem:[%s17060_s1 + $0xcec] sm:$0xf]  ;;  %4995 = vmatpush.bf16.msrb.mxu0 %v9326_v33  ;;  %v9566_v50 = vor.u32 %v11790_v19, %v9563_v2  ;;  %v9403_v19 = vld [vmem:[%s17060_s1 + $0xa98] sm:$0xf0] }
 0x2c3   :  { %4875 = vmatmul.bf16.gmra.mxu2 %v12853_v37  ;;  %4898 = vmatmul.bf16.gmra.mxu3 %v13129_v8  ;;  %v9707_v37 = vld [vmem:[%s17060_s1 + $0xcf8] sm:$0xf0]  ;;  %v11822_v7 = vld [vmem:[%s17060_s1 + $0xccc] sm:$0xf] }
 0x2c4   :  { %v9710_v57 = vor.u32 %v11826_v36, %v9707_v37  ;;  %v9307_v8 = vld [vmem:[%s17060_s1 + $0x9d8] sm:$0xf0]  ;;  %5019 = vmatpush.bf16.msrb.mxu1 %v9438_v23  ;;  %5042 = vmatpush.bf16.msrb.mxu2 %v9566_v50  ;;  %v9550_v36 = vor.u32 %v11786_v27, %v9547_v26  ;;  %v11818_v37 = vld [vmem:[%s17060_s1 + $0xcac] sm:$0xf] }
 0x2c5   :  { %v9310_v35 = vor.u32 %v11726_v14, %v9307_v8  ;;  %v11718_v8 = vld [vmem:[%s17060_s1 + $0x98c] sm:$0xf]  ;;  %v9387_v26 = vld [vmem:[%s17060_s1 + $0xa78] sm:$0xf0] }
 0x2c6   :  { %v4682_v34 = vpop.f32.mrf.mxu2  ;;  %v4705_v17 = vpop.f32.mrf.mxu3  ;;  %5064 = vmatpush.bf16.msrb.mxu3 %v9710_v57  ;;  %v9675_v57 = vld [vmem:[%s17060_s1 + $0xcb8] sm:$0xf0]  ;;  %v9278_v15 = vor.u32 %v11718_v8, %v9275_v29  ;;  %v11782_v2 = vld [vmem:[%s17060_s1 + $0xb8c] sm:$0xf] }
 0x2c7   :  { %v4683_v42 = vadd.f32 %v4682_v34, %v4660_v51  ;;  %v4638_v46 = vpop.f32.mrf.mxu0  ;;  %v4661_v60 = vpop.f32.mrf.mxu1  ;;  %v9691_v51 = vld [vmem:[%s17060_s1 + $0xcd8] sm:$0xf0]  ;;  %4996 = vmatpush.bf16.msrb.mxu0 %v9310_v35  ;;  %v9678_v34 = vor.u32 %v11818_v37, %v9675_v57  ;;  %v9390_v37 = vor.u32 %v11746_v43, %v9387_v26  ;;  %v11742_v29 = vld [vmem:[%s17060_s1 + $0xa4c] sm:$0xf] }
 0x2c8   :  { %v4639_v48 = vadd.f32 %v4638_v46, %v15858_v39  ;;  %v9694_v56 = vor.u32 %v11822_v7, %v9691_v51  ;;  %v9291_v39 = vld [vmem:[%s17060_s1 + $0x9b8] sm:$0xf0]  ;;  %5020 = vmatpush.bf16.msrb.mxu1 %v9422_v13  ;;  %5043 = vmatpush.bf16.msrb.mxu2 %v9550_v36  ;;  %v11814_v51 = vld [vmem:[%s17060_s1 + $0xc8c] sm:$0xf] }
 0x2c9   :  { %v16026_v53 = vadd.f32 %v4705_v17, %v4683_v42  ;;  %v9294_v31 = vor.u32 %v11722_v45, %v9291_v39  ;;  %v11750_v42 = vld [vmem:[%s17060_s1 + $0xa8c] sm:$0xf]  ;;  %v9515_v36 = vld [vmem:[%s17060_s1 + $0xb78] sm:$0xf0] }
 0x2ca   :  { %v4662_v33 = vadd.f32 %v4661_v60, %v4639_v48  ;;  %5065 = vmatpush.bf16.msrb.mxu3 %v9694_v56  ;;  %v9531_v48 = vld [vmem:[%s17060_s1 + $0xb98] sm:$0xf0]  ;;  %v9406_v50 = vor.u32 %v11750_v42, %v9403_v19  ;;  %v11778_v13 = vld [vmem:[%s17060_s1 + $0xb6c] sm:$0xf] }
 0x2cb   :  { %4997 = vmatpush.bf16.msrb.mxu0 %v9294_v31  ;;  %v9534_v7 = vor.u32 %v11782_v2, %v9531_v48  ;;  %v9659_v56 = vld [vmem:[%s17060_s1 + $0xc98] sm:$0xf0]  ;;  %v11774_v19 = vld [vmem:[%s17060_s1 + $0xb4c] sm:$0xf] }
 0x2cc   :  { %v9662_v39 = vor.u32 %v11814_v51, %v9659_v56  ;;  %5021 = vmatpush.bf16.msrb.mxu1 %v9406_v50  ;;  %v9259_v31 = vld [vmem:[%s17060_s1 + $0x978] sm:$0xf0]  ;;  %v11806_v50 = vld [vmem:[%s17060_s1 + $0xc4c] sm:$0xf] }
 0x2cd   :  { %5044 = vmatpush.bf16.msrb.mxu2 %v9534_v7  ;;  %v9643_v57 = vld [vmem:[%s17060_s1 + $0xc78] sm:$0xf0] }
 0x2ce   :  { %v4684_v14 = vpop.f32.mrf.mxu2  ;;  %v4707_v46 = vpop.f32.mrf.mxu3  ;;  %5066 = vmatpush.bf16.msrb.mxu3 %v9678_v34  ;;  %v9243_v8 = vld [vmem:[%s17060_s1 + $0x958] sm:$0xf0] }
 0x2cf   :  { %v4685_v17 = vadd.f32 %v4684_v14, %v4662_v33  ;;  %v4641_v35 = vpop.f32.mrf.mxu0  ;;  %v4664_v23 = vpop.f32.mrf.mxu1  ;;  %4998 = vmatpush.bf16.msrb.mxu0 %v9278_v15  ;;  %v17160_v33 = vld [vmem:[#allocation12_spill] sm:$0xff] }
 0x2d0   :  { %v4642_v60 = vadd.f32 %v4641_v35, %v15913_v25  ;;  %v11714_v25 = vld [vmem:[%s17060_s1 + $0x96c] sm:$0xf]  ;;  %5022 = vmatpush.bf16.msrb.mxu1 %v9390_v37  ;;  %v9371_v15 = vld [vmem:[%s17060_s1 + $0xa58] sm:$0xf0] }
 0x2d1   :  { %v16077_v45 = vadd.f32 %v4707_v46, %v4685_v17  ;;  %4911 = vmatmul.bf16.vlgmr.msra.gmra.mxu0 %v17160_v33  ;;  %v9262_v27 = vor.u32 %v11714_v25, %v9259_v31  ;;  %v9627_v7 = vld [vmem:[%s17060_s1 + $0xc58] sm:$0xf0]  ;;  %v11738_v25 = vld [vmem:[%s17060_s1 + $0xa2c] sm:$0xf] }
 0x2d2   :  { %v4665_v20 = vadd.f32 %v4664_v23, %v4642_v60  ;;  %4934 = vmatmul.bf16.vlgmr.msra.gmra.mxu1 %v17146_v18  ;;  %v9518_v18 = vor.u32 %v11778_v13, %v9515_v36  ;;  %5067 = vmatpush.bf16.msrb.mxu3 %v9662_v39  ;;  %v9374_v60 = vor.u32 %v11742_v29, %v9371_v15  ;;  %v9499_v23 = vld [vmem:[%s17060_s1 + $0xb58] sm:$0xf0]  ;;  %v11802_v37 = vld [vmem:[%s17060_s1 + $0xc2c] sm:$0xf] }
 0x2d3   :  { %4957 = vmatmul.bf16.vlgmr.msra.gmra.mxu2 %v12985_v41  ;;  %4980 = vmatmul.bf16.vlgmr.msra.gmra.mxu3 %v13237_v16  ;;  %v11810_v41 = vld [vmem:[%s17060_s1 + $0xc6c] sm:$0xf]  ;;  %v9630_v56 = vor.u32 %v11806_v50, %v9627_v7  ;;  %v9227_v33 = vld [vmem:[%s17060_s1 + $0x938] sm:$0xf0] }
 0x2d4   :  { %4999 = vmatpush.bf16.msrb.mxu0 %v9262_v27  ;;  %v9646_v34 = vor.u32 %v11810_v41, %v9643_v57  ;;  %v11710_v16 = vld [vmem:[%s17060_s1 + $0x94c] sm:$0xf]  ;;  %5045 = vmatpush.bf16.msrb.mxu2 %v9518_v18  ;;  %v9355_v43 = vld [vmem:[%s17060_s1 + $0xa38] sm:$0xf0] }
 0x2d5   :  { %v9246_v35 = vor.u32 %v11710_v16, %v9243_v8  ;;  %5023 = vmatpush.bf16.msrb.mxu1 %v9374_v60  ;;  %v11770_v27 = vld [vmem:[%s17060_s1 + $0xb2c] sm:$0xf]  ;;  %v9483_v26 = vld [vmem:[%s17060_s1 + $0xb38] sm:$0xf0]  ;;  %v9358_v13 = vor.u32 %v11738_v25, %v9355_v43 }
 0x2d6   :  { %v4687_v14 = vpop.f32.mrf.mxu2  ;;  %v4710_v17 = vpop.f32.mrf.mxu3  ;;  %5068 = vmatpush.bf16.msrb.mxu3 %v9646_v34  ;;  %v9486_v36 = vor.u32 %v11770_v27, %v9483_v26  ;;  %v9611_v18 = vld [vmem:[%s17060_s1 + $0xc38] sm:$0xf0]  ;;  %v11702_v34 = vld [vmem:[%s17060_s1 + $0x90c] sm:$0xf] }
 0x2d7   :  { %v4688_v42 = vadd.f32 %v4687_v14, %v4665_v20  ;;  %v4643_v46 = vpop.f32.mrf.mxu0  ;;  %v4666_v48 = vpop.f32.mrf.mxu1  ;;  %v11706_v20 = vld [vmem:[%s17060_s1 + $0x92c] sm:$0xf]  ;;  %v9614_v41 = vor.u32 %v11802_v37, %v9611_v18  ;;  %v9211_v14 = vld [vmem:[%s17060_s1 + $0x918] sm:$0xf0] }
 0x2d8   :  { %v4644_v2 = vadd.f32 %v4643_v46, %v15964_v3  ;;  %5000 = vmatpush.bf16.msrb.mxu0 %v9246_v35  ;;  %v9502_v3 = vor.u32 %v11774_v19, %v9499_v23  ;;  %v9230_v31 = vor.u32 %v11706_v20, %v9227_v33  ;;  %v11734_v16 = vld [vmem:[%s17060_s1 + $0xa0c] sm:$0xf]  ;;  %v9339_v46 = vld [vmem:[%s17060_s1 + $0xa18] sm:$0xf0] }
 0x2d9   :  { %v16132_v51 = vadd.f32 %v4710_v17, %v4688_v42  ;;  %5024 = vmatpush.bf16.msrb.mxu1 %v9358_v13  ;;  %v9214_v17 = vor.u32 %v11702_v34, %v9211_v14  ;;  %v11766_v35 = vld [vmem:[%s17060_s1 + $0xb0c] sm:$0xf]  ;;  %v9467_v15 = vld [vmem:[%s17060_s1 + $0xb18] sm:$0xf0] }
 0x2da   :  { %v4667_v39 = vadd.f32 %v4666_v48, %v4644_v2  ;;  %5046 = vmatpush.bf16.msrb.mxu2 %v9502_v3  ;;  %5069 = vmatpush.bf16.msrb.mxu3 %v9630_v56  ;;  %v9342_v48 = vor.u32 %v11734_v16, %v9339_v46  ;;  %v9470_v60 = vor.u32 %v11766_v35, %v9467_v15  ;;  %v11798_v23 = vld [vmem:[%s17060_s1 + $0xc0c] sm:$0xf]  ;;  %v9595_v50 = vld [vmem:[%s17060_s1 + $0xc18] sm:$0xf0] }
 0x2db   :  { %v9598_v3 = vor.u32 %v11798_v23, %v9595_v50  ;;  %v11922_v37 = vld [vmem:[%s17060_s1 + $0xfec] sm:$0xf]  ;;  %v10091_v18 = vld [vmem:[%s17060_s1 + $0xff8] sm:$0xf0] }
 0x2dc   :  { %5001 = vmatpush.bf16.msrb.mxu0 %v9230_v31  ;;  %v11854_v16 = vld [vmem:[%s17060_s1 + $0xdcc] sm:$0xf]  ;;  %v9947_v35 = vld [vmem:[%s17060_s1 + $0xed8] sm:$0xf0] }
 0x2dd   :  { %5025 = vmatpush.bf16.msrb.mxu1 %v9342_v48  ;;  %v11918_v15 = vld [vmem:[%s17060_s1 + $0xfcc] sm:$0xf] }
 0x2de   :  { %v4689_v57 = vpop.f32.mrf.mxu2  ;;  %v4712_v29 = vpop.f32.mrf.mxu3  ;;  %5047 = vmatpush.bf16.msrb.mxu2 %v9486_v36  ;;  %5070 = vmatpush.bf16.msrb.mxu3 %v9614_v41  ;;  %v11890_v36 = vld [vmem:[%s17060_s1 + $0xeec] sm:$0xf] }
 0x2df   :  { %v4690_v8 = vadd.f32 %v4689_v57, %v4667_v39  ;;  %v4646_v42 = vpop.f32.mrf.mxu0  ;;  %v4669_v2 = vpop.f32.mrf.mxu1  ;;  %v10094_v57 = vor.u32 %v11922_v37, %v10091_v18  ;;  %v11950_v50 = vld [vmem:[%s17060_s1 + $0x10cc] sm:$0xf] }
 0x2e0   :  { %v4647_v19 = vadd.f32 %v4646_v42, %v15970_v44  ;;  %5002 = vmatpush.bf16.msrb.mxu0 %v9214_v17 }
 0x2e1   :  { %v16183_v7 = vadd.f32 %v4712_v29, %v4690_v8  ;;  %4916 = vmatmul.bf16.gmra.mxu0 %v13107_v55  ;;  %v11886_v8 = vld [vmem:[%s17060_s1 + $0xecc] sm:$0xf] }
 0x2e2   :  { %v4670_v56 = vadd.f32 %v4669_v2, %v4647_v19  ;;  %4939 = vmatmul.bf16.gmra.mxu1 %v13109_v58  ;;  %5048 = vmatpush.bf16.msrb.mxu2 %v9470_v60  ;;  %v10075_v19 = vld [vmem:[%s17060_s1 + $0xfd8] sm:$0xf0]  ;;  %v9950_v60 = vor.u32 %v11886_v8, %v9947_v35 }
 0x2e3   :  { %4962 = vmatmul.bf16.gmra.mxu2 %v13117_v61  ;;  %4985 = vmatmul.bf16.gmra.mxu3 %v13369_v52  ;;  %v11858_v61 = vld [vmem:[%s17060_s1 + $0xdec] sm:$0xf]  ;;  %v9835_v52 = vld [vmem:[%s17060_s1 + $0xdf8] sm:$0xf0]  ;;  %v10078_v23 = vor.u32 %v11918_v15, %v10075_v19 }
 0x2e4   :  { %5071 = vmatpush.bf16.msrb.mxu3 %v9598_v3  ;;  %v10203_v3 = vld [vmem:[%s17060_s1 + $0x10d8] sm:$0xf0]  ;;  %v17161_v19 = vld [vmem:[#allocation14_spill] sm:$0xff] }
 0x2e6   :  { %v4692_v44 = vpop.f32.mrf.mxu2  ;;  %v4715_v20 = vpop.f32.mrf.mxu3  ;;  %5133 = vmatpush.bf16.msra.mxu2 %v10094_v57 }
 0x2e7   :  { %v4693_v39 = vadd.f32 %v4692_v44, %v4670_v56  ;;  %v4648_v33 = vpop.f32.mrf.mxu0  ;;  %v4671_v25 = vpop.f32.mrf.mxu1  ;;  %v10206_v56 = vor.u32 %v11950_v50, %v10203_v3  ;;  %v11906_v50 = vld [vmem:[%s17060_s1 + $0xf6c] sm:$0xf]  ;;  %v10027_v3 = vld [vmem:[%s17060_s1 + $0xf78] sm:$0xf0] }
 0x2e8   :  { %v9931_v25 = vld [vmem:[%s17060_s1 + $0xeb8] sm:$0xf0] }
 0x2e9   :  { %v16189_v31 = vadd.f32 %v4715_v20, %v4693_v39  ;;  %v9803_v39 = vld [vmem:[%s17060_s1 + $0xdb8] sm:$0xf0]  ;;  %v11882_v20 = vld [vmem:[%s17060_s1 + $0xeac] sm:$0xf] }
 0x2ea   :  { %5134 = vmatpush.bf16.msra.mxu2 %v10078_v23  ;;  %v9899_v23 = vld [vmem:[%s17060_s1 + $0xe78] sm:$0xf0] }
 0x2ee   :  { %v4694_v43 = vpop.f32.mrf.mxu2  ;;  %v4717_v27 = vpop.f32.mrf.mxu3 }
 0x2ef   :  { %v4728_v26 = vpop.f32.mrf.mxu0  ;;  %v4751_v13 = vpop.f32.mrf.mxu1  ;;  %v11914_v43 = vld [vmem:[%s17060_s1 + $0xfac] sm:$0xf]  ;;  %v10059_v27 = vld [vmem:[%s17060_s1 + $0xfb8] sm:$0xf0] }
 0x2f0   :  { %v4729_v55 = vadd.f32 %v4728_v26, %v16026_v53  ;;  %v9838_v53 = vor.u32 %v11858_v61, %v9835_v52  ;;  %v9934_v26 = vor.u32 %v11882_v20, %v9931_v25  ;;  %v9755_v20 = vld [vmem:[%s17060_s1 + $0xd58] sm:$0xf0] }
 0x2f1   :  { %4921 = vmatmul.bf16.gmra.mxu0 %v13131_v9  ;;  %v9963_v9 = vld [vmem:[%s17060_s1 + $0xef8] sm:$0xf0] }
 0x2f2   :  { %v4752_v58 = vadd.f32 %v4751_v13, %v4729_v55  ;;  %4944 = vmatmul.bf16.gmra.mxu1 %v13133_v10  ;;  %v9966_v41 = vor.u32 %v11890_v36, %v9963_v9  ;;  %v11954_v10 = vld [vmem:[%s17060_s1 + $0x10ec] sm:$0xf]  ;;  %5087 = vmatpush.bf16.msra.mxu0 %v9838_v53  ;;  %v10062_v55 = vor.u32 %v11914_v43, %v10059_v27  ;;  %v9787_v53 = vld [vmem:[%s17060_s1 + $0xd98] sm:$0xf0] }
 0x2f3   :  { %4967 = vmatmul.bf16.gmra.mxu2 %v13135_v11  ;;  %4990 = vmatmul.bf16.gmra.mxu3 %v13416_v28  ;;  %v10219_v11 = vld [vmem:[%s17060_s1 + $0x10f8] sm:$0xf0]  ;;  %v11946_v13 = vld [vmem:[%s17060_s1 + $0x10ac] sm:$0xf] }
 0x2f4   :  { %v10222_v34 = vor.u32 %v11954_v10, %v10219_v11  ;;  %5110 = vmatpush.bf16.msra.mxu1 %v9966_v41  ;;  %v9819_v28 = vld [vmem:[%s17060_s1 + $0xdd8] sm:$0xf0]  ;;  %5135 = vmatpush.bf16.msra.mxu2 %v10062_v55  ;;  %v11846_v36 = vld [vmem:[%s17060_s1 + $0xd8c] sm:$0xf] }
 0x2f5   :  { %v9822_v46 = vor.u32 %v11854_v16, %v9819_v28  ;;  %v11878_v9 = vld [vmem:[%s17060_s1 + $0xe8c] sm:$0xf]  ;;  %v9790_v57 = vor.u32 %v11846_v36, %v9787_v53  ;;  %v9915_v10 = vld [vmem:[%s17060_s1 + $0xe98] sm:$0xf0] }
 0x2f6   :  { %v4774_v14 = vpop.f32.mrf.mxu2  ;;  %v16231_v42 = vpop.f32.mrf.mxu3  ;;  %5156 = vmatpush.bf16.msra.mxu3 %v10222_v34  ;;  %v11910_v11 = vld [vmem:[%s17060_s1 + $0xf8c] sm:$0xf]  ;;  %v10043_v34 = vld [vmem:[%s17060_s1 + $0xf98] sm:$0xf0]  ;;  %v9918_v28 = vor.u32 %v11878_v9, %v9915_v10 }
 0x2f7   :  { %v16229_v29 = vadd.f32 %v4774_v14, %v4752_v58  ;;  %v4730_v17 = vpop.f32.mrf.mxu0  ;;  %v4753_v48 = vpop.f32.mrf.mxu1  ;;  %5088 = vmatpush.bf16.msra.mxu0 %v9822_v46  ;;  %v10187_v58 = vld [vmem:[%s17060_s1 + $0x10b8] sm:$0xf0]  ;;  %v10046_v8 = vor.u32 %v11910_v11, %v10043_v34  ;;  %v11934_v9 = vld [vmem:[%s17060_s1 + $0x104c] sm:$0xf] }
 0x2f8   :  { %v4731_v2 = vadd.f32 %v4730_v17, %v16077_v45  ;;  %5111 = vmatpush.bf16.msra.mxu1 %v9950_v60  ;;  %v11850_v45 = vld [vmem:[%s17060_s1 + $0xdac] sm:$0xf]  ;;  %v10190_v61 = vor.u32 %v11946_v13, %v10187_v58  ;;  %v10171_v46 = vld [vmem:[%s17060_s1 + $0x1098] sm:$0xf0] }
 0x2f9   :  { %v9806_v33 = vor.u32 %v11850_v45, %v9803_v39  ;;  %v11942_v17 = vld [vmem:[%s17060_s1 + $0x108c] sm:$0xf]  ;;  %5136 = vmatpush.bf16.msra.mxu2 %v10046_v8  ;;  %v9883_v55 = vld [vmem:[%s17060_s1 + $0xe58] sm:$0xf0] }
 0x2fa   :  { %v4754_v44 = vadd.f32 %v4753_v48, %v4731_v2  ;;  %5157 = vmatpush.bf16.msra.mxu3 %v10206_v56  ;;  %v10174_v35 = vor.u32 %v11942_v17, %v10171_v46  ;;  %v9771_v2 = vld [vmem:[%s17060_s1 + $0xd78] sm:$0xf0]  ;;  %v11874_v48 = vld [vmem:[%s17060_s1 + $0xe6c] sm:$0xf] }
 0x2fb   :  { %5089 = vmatpush.bf16.msra.mxu0 %v9806_v33  ;;  %v9902_v56 = vor.u32 %v11874_v48, %v9899_v23  ;;  %v11870_v33 = vld [vmem:[%s17060_s1 + $0xe4c] sm:$0xf]  ;;  %v10011_v58 = vld [vmem:[%s17060_s1 + $0xf58] sm:$0xf0] }
 0x2fc   :  { %5112 = vmatpush.bf16.msra.mxu1 %v9934_v26  ;;  %v11902_v13 = vld [vmem:[%s17060_s1 + $0xf4c] sm:$0xf]  ;;  %v9886_v36 = vor.u32 %v11870_v33, %v9883_v55  ;;  %v9739_v11 = vld [vmem:[%s17060_s1 + $0xd38] sm:$0xf0] }
 0x2fd   :  { %v10014_v53 = vor.u32 %v11902_v13, %v10011_v58  ;;  %v11866_v34 = vld [vmem:[%s17060_s1 + $0xe2c] sm:$0xf]  ;;  %v9995_v8 = vld [vmem:[%s17060_s1 + $0xf38] sm:$0xf0]  ;;  %v11972_v58 = vld [vmem:[%s17062_s3 + $0x74] sm:$0xf0] }
 0x2fe   :  { %v4776_v52 = vpop.f32.mrf.mxu2  ;;  %v16284_v18 = vpop.f32.mrf.mxu3  ;;  %5158 = vmatpush.bf16.msra.mxu3 %v10190_v61  ;;  %v9723_v48 = vld [vmem:[%s17060_s1 + $0xd18] sm:$0xf0]  ;;  %v11926_v33 = vld [vmem:[%s17060_s1 + $0x100c] sm:$0xf] }
 0x2ff   :  { %v16282_v37 = vadd.f32 %v4776_v52, %v4754_v44  ;;  %v4733_v41 = vpop.f32.mrf.mxu0  ;;  %v4756_v16 = vpop.f32.mrf.mxu1  ;;  %5090 = vmatpush.bf16.msra.mxu0 %v9790_v57  ;;  %v10155_v44 = vld [vmem:[%s17060_s1 + $0x1078] sm:$0xf0] }
 0x300   :  { %v4734_v14 = vadd.f32 %v4733_v41, %v16132_v51  ;;  %5113 = vmatpush.bf16.msra.mxu1 %v9918_v28  ;;  %v11842_v51 = vld [vmem:[%s17060_s1 + $0xd6c] sm:$0xf]  ;;  %v10139_v41 = vld [vmem:[%s17060_s1 + $0x1058] sm:$0xf0] }
 0x301   :  { %5003 = vmatmul.bf16.vlgmr.msrb.gmra.mxu0 %v17161_v19  ;;  %v9774_v60 = vor.u32 %v11842_v51, %v9771_v2  ;;  %v10142_v57 = vor.u32 %v11934_v9, %v10139_v41  ;;  %v11898_v28 = vld [vmem:[%s17060_s1 + $0xf2c] sm:$0xf]  ;;  %v17162_v13 = vld [vmem:[#allocation16_spill] sm:$0xff] }
 0x302   :  { %v4757_v15 = vadd.f32 %v4756_v16, %v4734_v14  ;;  %5026 = vmatmul.bf16.vlgmr.msrb.gmra.mxu1 %v13250_v21  ;;  %v10030_v21 = vor.u32 %v11906_v50, %v10027_v3  ;;  %5159 = vmatpush.bf16.msra.mxu3 %v10174_v35  ;;  %v9867_v16 = vld [vmem:[%s17060_s1 + $0xe38] sm:$0xf0]  ;;  %v9998_v46 = vor.u32 %v11898_v28, %v9995_v8  ;;  %v11930_v35 = vld [vmem:[%s17060_s1 + $0x102c] sm:$0xf]  ;;  %v10337_v28 = vld [vmem:[%s17062_s3 + $0xe0] sm:$0xf] }
 0x303   :  { %5049 = vmatmul.bf16.vlgmr.msrb.gmra.mxu2 %v17135_v59  ;;  %5072 = vmatmul.bf16.vlgmr.msrb.gmra.mxu3 %v17150_v1  ;;  %v11938_v59 = vld [vmem:[%s17060_s1 + $0x106c] sm:$0xf]  ;;  %v9870_v17 = vor.u32 %v11866_v34, %v9867_v16  ;;  %v11970_v16 = vld [vmem:[%s17062_s3 + $0x64] sm:$0xf0] }
 0x304   :  { %5091 = vmatpush.bf16.msra.mxu0 %v9774_v60  ;;  %v10158_v45 = vor.u32 %v11938_v59, %v10155_v44  ;;  %5114 = vmatpush.bf16.msra.mxu1 %v9902_v56  ;;  %v11838_v1 = vld [vmem:[%s17060_s1 + $0xd4c] sm:$0xf]  ;;  %v9979_v44 = vld [vmem:[%s17060_s1 + $0xf18] sm:$0xf0] }
 0x305   :  { %v9758_v26 = vor.u32 %v11838_v1, %v9755_v20  ;;  %5137 = vmatpush.bf16.msra.mxu2 %v10030_v21  ;;  %v11830_v2 = vld [vmem:[%s17060_s1 + $0xd0c] sm:$0xf]  ;;  %v9851_v21 = vld [vmem:[%s17060_s1 + $0xe18] sm:$0xf0] }
 0x306   :  { %v4779_v39 = vpop.f32.mrf.mxu2  ;;  %v16341_v43 = vpop.f32.mrf.mxu3  ;;  %5160 = vmatpush.bf16.msra.mxu3 %v10158_v45  ;;  %v11862_v60 = vld [vmem:[%s17060_s1 + $0xe0c] sm:$0xf]  ;;  %v9726_v56 = vor.u32 %v11830_v2, %v9723_v48  ;;  %v11968_v2 = vld [vmem:[%s17062_s3 + $0x54] sm:$0xf0]  ;;  %v10329_v48 = vld [vmem:[%s17062_s3 + $0xd0] sm:$0xf] }
 0x307   :  { %v16339_v25 = vadd.f32 %v4779_v39, %v4757_v15  ;;  %v4735_v27 = vpop.f32.mrf.mxu0  ;;  %v4758_v52 = vpop.f32.mrf.mxu1  ;;  %v10123_v15 = vld [vmem:[%s17060_s1 + $0x1038] sm:$0xf0]  ;;  %v11894_v59 = vld [vmem:[%s17060_s1 + $0xf0c] sm:$0xf]  ;;  %v9854_v1 = vor.u32 %v11862_v60, %v9851_v21  ;;  %v11984_v21 = vld [vmem:[%s17062_s3 + $0xd4] sm:$0xf0] }
 0x308   :  { %v4736_v61 = vadd.f32 %v4735_v27, %v16183_v7  ;;  %5092 = vmatpush.bf16.msra.mxu0 %v9758_v26  ;;  %5115 = vmatpush.bf16.msra.mxu1 %v9886_v36  ;;  %v11834_v7 = vld [vmem:[%s17060_s1 + $0xd2c] sm:$0xf]  ;;  %v10126_v19 = vor.u32 %v11930_v35, %v10123_v15  ;;  %v9982_v20 = vor.u32 %v11894_v59, %v9979_v44  ;;  %v10107_v27 = vld [vmem:[%s17060_s1 + $0x1018] sm:$0xf0]  ;;  %v12004_v36 = vld [vmem:[%s17062_s3 + $0x174] sm:$0xf0] }
 0x309   :  { %v9742_v14 = vor.u32 %v11834_v7, %v9739_v11  ;;  %5138 = vmatpush.bf16.msra.mxu2 %v10014_v53  ;;  %v10110_v26 = vor.u32 %v11926_v33, %v10107_v27  ;;  %v12270_v7 = vld [vmem:[%s17061_s2] sm:$0xf]  ;;  %v12002_v35 = vld [vmem:[%s17062_s3 + $0x164] sm:$0xf0]  ;;  %v10393_v59 = vld [vmem:[%s17062_s3 + $0x150] sm:$0xf] }
 0x30a   :  { %v4759_v10 = vadd.f32 %v4758_v52, %v4736_v61  ;;  %5161 = vmatpush.bf16.msra.mxu3 %v10142_v57  ;;  %v10345_v61 = vld [vmem:[%s17062_s3 + $0xf0] sm:$0xf]  ;;  %v16441_v11 = vperm.slane %v12270_v7, 3  ;;  %v12000_v44 = vld [vmem:[%s17062_s3 + $0x154] sm:$0xf0] }
 0x30b   :  { %v10257_v27 = vld [vmem:[%s17062_s3 + $0x40] sm:$0xf]  ;;  %v10377_v7 = vld [vmem:[%s17062_s3 + $0x130] sm:$0xf] }
 0x30c   :  { %5093 = vmatpush.bf16.msra.mxu0 %v9742_v14  ;;  %5116 = vmatpush.bf16.msra.mxu1 %v9870_v17  ;;  %v10273_v14 = vld [vmem:[%s17062_s3 + $0x60] sm:$0xf]  ;;  %v11986_v17 = vld [vmem:[%s17062_s3 + $0xe4] sm:$0xf0]  ;;  %v4798_v60 = vadd.f32 %v16231_v42, %v16441_v11 }
 0x30d   :  { %5139 = vmatpush.bf16.msra.mxu2 %v9998_v46  ;;  %v10274_v8 = vor.u32 %v11970_v16, %v10273_v14  ;;  %v10401_v46 = vld [vmem:[%s17062_s3 + $0x160] sm:$0xf]  ;;  %v10338_v15 = vor.u32 %v11986_v17, %v10337_v28 }
 0x30e   :  { %v4781_v51 = vpop.f32.mrf.mxu2  ;;  %v16394_v50 = vpop.f32.mrf.mxu3  ;;  %5162 = vmatpush.bf16.msra.mxu3 %v10126_v19  ;;  %v10402_v19 = vor.u32 %v12002_v35, %v10401_v46 }
 0x30f   :  { %v16392_v23 = vadd.f32 %v4781_v51, %v4759_v10  ;;  %v4738_v3 = vpop.f32.mrf.mxu0  ;;  %v4761_v39 = vpop.f32.mrf.mxu1  ;;  %v10265_v51 = vld [vmem:[%s17062_s3 + $0x50] sm:$0xf] }
 0x310   :  { %v4739_v45 = vadd.f32 %v4738_v3, %v16189_v31  ;;  %5094 = vmatpush.bf16.msra.mxu0 %v9726_v56  ;;  %5117 = vmatpush.bf16.msra.mxu1 %v9854_v1  ;;  %v10281_v31 = vld [vmem:[%s17062_s3 + $0x70] sm:$0xf]  ;;  %v10266_v56 = vor.u32 %v11968_v2, %v10265_v51  ;;  %v10330_v1 = vor.u32 %v11984_v21, %v10329_v48  ;;  %v10305_v51 = vld [vmem:[%s17062_s3 + $0xa0] sm:$0xf] }
 0x311   :  { %5008 = vmatmul.bf16.gmra.mxu0 %v17162_v13  ;;  %5140 = vmatpush.bf16.msra.mxu2 %v9982_v20  ;;  %v10394_v20 = vor.u32 %v12000_v44, %v10393_v59  ;;  %v10233_v44 = vld [vmem:[%s17062_s3 + $0x10] sm:$0xf] }
 0x312   :  { %v4762_v55 = vadd.f32 %v4761_v39, %v4739_v45  ;;  %5031 = vmatmul.bf16.gmra.mxu1 %v17154_v32  ;;  %5163 = vmatpush.bf16.msra.mxu3 %v10110_v26  ;;  %v10282_v32 = vor.u32 %v11972_v58, %v10281_v31  ;;  %v11966_v26 = vld [vmem:[%s17062_s3 + $0x44] sm:$0xf0]  ;;  %v17163_v31 = vld [vmem:[#allocation19_spill] sm:$0xff] }
 0x313   :  { %5054 = vmatmul.bf16.gmra.mxu2 %v17141_v38  ;;  %5077 = vmatmul.bf16.gmra.mxu3 %v13666_v5  ;;  %v11988_v5 = vld [vmem:[%s17062_s3 + $0xf4] sm:$0xf0]  ;;  %v10409_v38 = vld [vmem:[%s17062_s3 + $0x170] sm:$0xf]  ;;  %v10258_v58 = vor.u32 %v11966_v26, %v10257_v27 }
 0x314   :  { %v10346_v57 = vor.u32 %v11988_v5, %v10345_v61  ;;  %v10410_v10 = vor.u32 %v12004_v36, %v10409_v38  ;;  %5633 = vmatpush.bf16.msrb.mxu0 %v10282_v32  ;;  %v11982_v61 = vld [vmem:[%s17062_s3 + $0xc4] sm:$0xf0]  ;;  %v10249_v36 = vld [vmem:[%s17062_s3 + $0x30] sm:$0xf]  ;;  %v11992_v26 = vld [vmem:[%s17062_s3 + $0x114] sm:$0xf0] }
 0x315   :  { %v11998_v32 = vld [vmem:[%s17062_s3 + $0x144] sm:$0xf0]  ;;  %v10361_v27 = vld [vmem:[%s17062_s3 + $0x110] sm:$0xf] }
 0x316   :  { %v4784_v52 = vpop.f32.mrf.mxu2  ;;  %v16436_v9 = vpop.f32.mrf.mxu3  ;;  %5646 = vmatpush.bf16.msrb.mxu1 %v10346_v57  ;;  %5659 = vmatpush.bf16.msrb.mxu2 %v10410_v10  ;;  %v11980_v10 = vld [vmem:[%s17062_s3 + $0xb4] sm:$0xf0] }
 0x317   :  { %v16434_v53 = vadd.f32 %v4784_v52, %v4762_v55  ;;  %v4740_v41 = vpop.f32.mrf.mxu0  ;;  %v4763_v34 = vpop.f32.mrf.mxu1  ;;  %v10321_v55 = vld [vmem:[%s17062_s3 + $0xc0] sm:$0xf] }
 0x318   :  { %5634 = vmatpush.bf16.msrb.mxu0 %v10274_v8  ;;  %v10385_v52 = vld [vmem:[%s17062_s3 + $0x140] sm:$0xf]  ;;  %v10322_v5 = vor.u32 %v11982_v61, %v10321_v55  ;;  %v11964_v41 = vld [vmem:[%s17062_s3 + $0x34] sm:$0xf0] }
 0x319   :  { %v10386_v38 = vor.u32 %v11998_v32, %v10385_v52  ;;  %v11996_v34 = vld [vmem:[%s17062_s3 + $0x134] sm:$0xf0]  ;;  %v10225_v32 = vld [vmem:[%s17062_s3] sm:$0xf] }
 0x31a   :  { %5647 = vmatpush.bf16.msrb.mxu1 %v10338_v15  ;;  %5660 = vmatpush.bf16.msrb.mxu2 %v10402_v19  ;;  %v10378_v17 = vor.u32 %v11996_v34, %v10377_v7  ;;  %v10241_v15 = vld [vmem:[%s17062_s3 + $0x20] sm:$0xf]  ;;  %v11962_v19 = vld [vmem:[%s17062_s3 + $0x24] sm:$0xf0]  ;;  %v11971_v34 = vld [vmem:[%s17062_s3 + $0x74] sm:$0xf] }
 0x31b   :  { %v10242_v48 = vor.u32 %v11962_v19, %v10241_v15  ;;  %v11969_v15 = vld [vmem:[%s17062_s3 + $0x64] sm:$0xf]  ;;  %v10275_v19 = vld [vmem:[%s17062_s3 + $0x68] sm:$0xf0] }
 0x31c   :  { %5635 = vmatpush.bf16.msrb.mxu0 %v10266_v56  ;;  %v11994_v56 = vld [vmem:[%s17062_s3 + $0x124] sm:$0xf0] }
 0x31e   :  { %v4786_v3 = vpop.f32.mrf.mxu2  ;;  %v4809_v45 = vpop.f32.mrf.mxu3  ;;  %5648 = vmatpush.bf16.msrb.mxu1 %v10330_v1  ;;  %5661 = vmatpush.bf16.msrb.mxu2 %v10394_v20  ;;  %v4803_v1 = vadd.f32 %v16341_v43, %v16441_v11 }
 0x31f   :  { %v4820_v39 = vpop.f32.mrf.mxu0  ;;  %v4843_v42 = vpop.f32.mrf.mxu1  ;;  %v10369_v3 = vld [vmem:[%s17062_s3 + $0x120] sm:$0xf]  ;;  %v11960_v45 = vld [vmem:[%s17062_s3 + $0x14] sm:$0xf0] }
 0x320   :  { %v4821_v33 = vadd.f32 %v4820_v39, %v4798_v60  ;;  %5636 = vmatpush.bf16.msrb.mxu0 %v10258_v58  ;;  %v11978_v60 = vld [vmem:[%s17062_s3 + $0xa4] sm:$0xf0]  ;;  %v10370_v59 = vor.u32 %v11994_v56, %v10369_v3  ;;  %v10297_v39 = vld [vmem:[%s17062_s3 + $0x90] sm:$0xf]  ;;  %v10362_v58 = vor.u32 %v11992_v26, %v10361_v27  ;;  %v10339_v3 = vld [vmem:[%s17062_s3 + $0xe8] sm:$0xf0] }
 0x321   :  { %5013 = vmatmul.bf16.gmra.mxu0 %v17163_v31  ;;  %v10306_v21 = vor.u32 %v11978_v60, %v10305_v51  ;;  %v11985_v51 = vld [vmem:[%s17062_s3 + $0xe4] sm:$0xf]  ;;  %v11983_v27 = vld [vmem:[%s17062_s3 + $0xd4] sm:$0xf] }
 0x322   :  { %v4844_v13 = vadd.f32 %v4843_v42, %v4821_v33  ;;  %5036 = vmatmul.bf16.gmra.mxu1 %v17155_v54  ;;  %5662 = vmatpush.bf16.msrb.mxu2 %v10386_v38  ;;  %v10313_v54 = vld [vmem:[%s17062_s3 + $0xb0] sm:$0xf]  ;;  %v10234_v33 = vor.u32 %v11960_v45, %v10233_v44  ;;  %v11976_v42 = vld [vmem:[%s17062_s3 + $0x94] sm:$0xf0]  ;;  %v10289_v38 = vld [vmem:[%s17062_s3 + $0x80] sm:$0xf]  ;;  %v10342_v45 = vor.u32 %v11985_v51, %v10339_v3 }
 0x323   :  { %5059 = vmatmul.bf16.gmra.mxu2 %v17142_v62  ;;  %5082 = vmatmul.bf16.gmra.mxu3 %v13713_v4  ;;  %v4800_v62 = vadd.f32 %v16284_v18, %v16441_v11  ;;  %v10250_v4 = vor.u32 %v11964_v41, %v10249_v36  ;;  %v10314_v8 = vor.u32 %v11980_v10, %v10313_v54  ;;  %v17164_v41 = vld [vmem:[#allocation23_spill] sm:$0xff]  ;;  %v12001_v56 = vld [vmem:[%s17062_s3 + $0x164] sm:$0xf]  ;;  %v10371_v3 = vld [vmem:[%s17062_s3 + $0x128] sm:$0xf0] }
 0x324   :  { %5649 = vmatpush.bf16.msrb.mxu1 %v10322_v5  ;;  %v10298_v43 = vor.u32 %v11976_v42, %v10297_v39  ;;  %v11958_v5 = vld [vmem:[%s17062_s3 + $0x4] sm:$0xf0]  ;;  %v10267_v42 = vld [vmem:[%s17062_s3 + $0x58] sm:$0xf0]  ;;  %v11977_v51 = vld [vmem:[%s17062_s3 + $0xa4] sm:$0xf] }
 0x325   :  { %5637 = vmatpush.bf16.msrb.mxu0 %v10250_v4  ;;  %v10226_v54 = vor.u32 %v11958_v5, %v10225_v32  ;;  %v11990_v4 = vld [vmem:[%s17062_s3 + $0x104] sm:$0xf0]  ;;  %v4808_v32 = vadd.f32 %v16436_v9, %v16441_v11  ;;  %v10323_v9 = vld [vmem:[%s17062_s3 + $0xc8] sm:$0xf0] }
 0x326   :  { %v4866_v57 = vpop.f32.mrf.mxu2  ;;  %v4889_v16 = vpop.f32.mrf.mxu3  ;;  %5663 = vmatpush.bf16.msrb.mxu2 %v10378_v17 }
 0x327   :  { %v4867_v14 = vadd.f32 %v4866_v57, %v4844_v13  ;;  %v4822_v28 = vpop.f32.mrf.mxu0  ;;  %v4845_v46 = vpop.f32.mrf.mxu1  ;;  %v10353_v57 = vld [vmem:[%s17062_s3 + $0x100] sm:$0xf] }
 0x328   :  { %v4823_v18 = vadd.f32 %v4822_v28, %v4800_v62  ;;  %5650 = vmatpush.bf16.msrb.mxu1 %v10314_v8  ;;  %v11974_v62 = vld [vmem:[%s17062_s3 + $0x84] sm:$0xf0]  ;;  %v10354_v7 = vor.u32 %v11990_v4, %v10353_v57  ;;  %v12003_v28 = vld [vmem:[%s17062_s3 + $0x174] sm:$0xf]  ;;  %v10411_v8 = vld [vmem:[%s17062_s3 + $0x178] sm:$0xf0] }
 0x329   :  { %v16523_v35 = vadd.f32 %v4889_v16, %v4867_v14  ;;  %5638 = vmatpush.bf16.msrb.mxu0 %v10242_v48  ;;  %v10290_v10 = vor.u32 %v11974_v62, %v10289_v38  ;;  %v10283_v14 = vld [vmem:[%s17062_s3 + $0x78] sm:$0xf0]  ;;  %v11987_v16 = vld [vmem:[%s17062_s3 + $0xf4] sm:$0xf]  ;;  %v11965_v38 = vld [vmem:[%s17062_s3 + $0x44] sm:$0xf] }
 0x32a   :  { %v4846_v2 = vadd.f32 %v4845_v46, %v4823_v18  ;;  %5664 = vmatpush.bf16.msrb.mxu2 %v10370_v59  ;;  %v10414_v18 = vor.u32 %v12003_v28, %v10411_v8  ;;  %v10387_v4 = vld [vmem:[%s17062_s3 + $0x148] sm:$0xf0]  ;;  %v10251_v28 = vld [vmem:[%s17062_s3 + $0x38] sm:$0xf0]  ;;  %v11979_v8 = vld [vmem:[%s17062_s3 + $0xb4] sm:$0xf] }
 0x32c   :  { %5651 = vmatpush.bf16.msrb.mxu1 %v10306_v21  ;;  %v10403_v21 = vld [vmem:[%s17062_s3 + $0x168] sm:$0xf0] }
 0x32d   :  { %5639 = vmatpush.bf16.msrb.mxu0 %v10234_v33  ;;  %v10406_v39 = vor.u32 %v12001_v56, %v10403_v21  ;;  %v11967_v33 = vld [vmem:[%s17062_s3 + $0x54] sm:$0xf] }
 0x32e   :  { %v4868_v20 = vpop.f32.mrf.mxu2  ;;  %v16565_v13 = vpop.f32.mrf.mxu3  ;;  %5665 = vmatpush.bf16.msrb.mxu2 %v10362_v58  ;;  %v10270_v26 = vor.u32 %v11967_v33, %v10267_v42  ;;  %v10395_v58 = vld [vmem:[%s17062_s3 + $0x158] sm:$0xf0]  ;;  %v11975_v33 = vld [vmem:[%s17062_s3 + $0x94] sm:$0xf] }
 0x32f   :  { %v16563_v55 = vadd.f32 %v4868_v20, %v4846_v2  ;;  %v4825_v31 = vpop.f32.mrf.mxu0  ;;  %v4848_v52 = vpop.f32.mrf.mxu1  ;;  %v10299_v42 = vld [vmem:[%s17062_s3 + $0x98] sm:$0xf0] }
 0x330   :  { %v4826_v61 = vadd.f32 %v4825_v31, %v4803_v1  ;;  %5652 = vmatpush.bf16.msrb.mxu1 %v10298_v43  ;;  %v10331_v31 = vld [vmem:[%s17062_s3 + $0xd8] sm:$0xf0]  ;;  %v11999_v43 = vld [vmem:[%s17062_s3 + $0x154] sm:$0xf] }
 0x331   :  { %5095 = vmatmul.bf16.vlgmr.msra.gmra.mxu0 %v17164_v41  ;;  %v11981_v41 = vld [vmem:[%s17062_s3 + $0xc4] sm:$0xf] }
 0x332   :  { %v4849_v36 = vadd.f32 %v4848_v52, %v4826_v61  ;;  %5118 = vmatmul.bf16.vlgmr.msra.gmra.mxu1 %v17156_v0  ;;  %5640 = vmatpush.bf16.msrb.mxu0 %v10226_v54  ;;  %v10286_v0 = vor.u32 %v11971_v34, %v10283_v14  ;;  %v10334_v61 = vor.u32 %v11983_v27, %v10331_v31  ;;  %v11991_v27 = vld [vmem:[%s17062_s3 + $0x114] sm:$0xf] }
 0x333   :  { %5141 = vmatmul.bf16.vlgmr.msra.gmra.mxu2 %v17143_v24  ;;  %5164 = vmatmul.bf16.vlgmr.msra.gmra.mxu3 %v13807_v49  ;;  %v10347_v24 = vld [vmem:[%s17062_s3 + $0xf8] sm:$0xf0]  ;;  %v4805_v49 = vadd.f32 %v16394_v50, %v16441_v11  ;;  %v10278_v50 = vor.u32 %v11969_v15, %v10275_v19  ;;  %v10398_v52 = vor.u32 %v11999_v43, %v10395_v58  ;;  %v11997_v11 = vld [vmem:[%s17062_s3 + $0x144] sm:$0xf]  ;;  %v10243_v19 = vld [vmem:[%s17062_s3 + $0x28] sm:$0xf0] }
 0x334   :  { %5653 = vmatpush.bf16.msrb.mxu1 %v10290_v10  ;;  %5666 = vmatpush.bf16.msrb.mxu2 %v10354_v7  ;;  %v10350_v17 = vor.u32 %v11987_v16, %v10347_v24  ;;  %v10326_v14 = vor.u32 %v11981_v41, %v10323_v9  ;;  %v10390_v16 = vor.u32 %v11997_v11, %v10387_v4  ;;  %v11963_v24 = vld [vmem:[%s17062_s3 + $0x34] sm:$0xf]  ;;  %v11961_v15 = vld [vmem:[%s17062_s3 + $0x24] sm:$0xf]  ;;  %v10291_v41 = vld [vmem:[%s17062_s3 + $0x88] sm:$0xf0] }
 0x335   :  { %v10246_v21 = vor.u32 %v11961_v15, %v10243_v19  ;;  %v10302_v43 = vor.u32 %v11975_v33, %v10299_v42  ;;  %v10355_v9 = vld [vmem:[%s17062_s3 + $0x108] sm:$0xf0]  ;;  %v17172_v15 = vld [vmem:[#allocation15_spill] sm:$0xff] }
 0x336   :  { %v4871_v46 = vpop.f32.mrf.mxu2  ;;  %5685 = vmatpush.bf16.msra.mxu0 %v10286_v0  ;;  %v4894_v48 = vpop.f32.mrf.mxu3 }
 0x337   :  { %v4872_v2 = vadd.f32 %v4871_v46, %v4849_v36  ;;  %v4827_v60 = vpop.f32.mrf.mxu0  ;;  %v4850_v44 = vpop.f32.mrf.mxu1  ;;  %v10259_v36 = vld [vmem:[%s17062_s3 + $0x48] sm:$0xf0] }
 0x338   :  { %5698 = vmatpush.bf16.msra.mxu1 %v10350_v17  ;;  %5711 = vmatpush.bf16.msra.mxu2 %v10414_v18  ;;  %v4828_v59 = vadd.f32 %v4827_v60, %v4805_v49  ;;  %v10262_v34 = vor.u32 %v11965_v38, %v10259_v36  ;;  %v11995_v17 = vld [vmem:[%s17062_s3 + $0x134] sm:$0xf]  ;;  %v10379_v18 = vld [vmem:[%s17062_s3 + $0x138] sm:$0xf0]  ;;  %v10254_v49 = vor.u32 %v11963_v24, %v10251_v28  ;;  %v10307_v60 = vld [vmem:[%s17062_s3 + $0xa8] sm:$0xf0] }
 0x339   :  { %v16627_v1 = vadd.f32 %v4894_v48, %v4872_v2  ;;  %v17167_v28 = vld [vmem:[#allocation26_spill] sm:$0xff] }
 0x33a   :  { %v4851_v20 = vadd.f32 %v4850_v44, %v4828_v59  ;;  %5686 = vmatpush.bf16.msra.mxu0 %v10278_v50  ;;  %v11993_v50 = vld [vmem:[%s17062_s3 + $0x124] sm:$0xf]  ;;  %v10310_v44 = vor.u32 %v11977_v51, %v10307_v60 }
 0x33c   :  { %5699 = vmatpush.bf16.msra.mxu1 %v10342_v45  ;;  %5712 = vmatpush.bf16.msra.mxu2 %v10406_v39  ;;  %v10374_v45 = vor.u32 %v11993_v50, %v10371_v3  ;;  %v11959_v39 = vld [vmem:[%s17062_s3 + $0x14] sm:$0xf]  ;;  %v17174_v50 = vld [vmem:[#allocation32_spill] sm:$0xff] }
 0x33e   :  { %v4873_v5 = vpop.f32.mrf.mxu2  ;;  %5687 = vmatpush.bf16.msra.mxu0 %v10270_v26  ;;  %v16660_v62 = vpop.f32.mrf.mxu3  ;;  %v10363_v26 = vld [vmem:[%s17062_s3 + $0x118] sm:$0xf0] }
 0x33f   :  { %v16658_v54 = vadd.f32 %v4873_v5, %v4851_v20  ;;  %v4830_v57 = vpop.f32.mrf.mxu0  ;;  %v4853_v7 = vpop.f32.mrf.mxu1  ;;  %v10235_v20 = vld [vmem:[%s17062_s3 + $0x18] sm:$0xf0]  ;;  %v10366_v58 = vor.u32 %v11991_v27, %v10363_v26  ;;  %v11973_v5 = vld [vmem:[%s17062_s3 + $0x84] sm:$0xf] }
 0x340   :  { %5700 = vmatpush.bf16.msra.mxu1 %v10334_v61  ;;  %5713 = vmatpush.bf16.msra.mxu2 %v10398_v52  ;;  %v4831_v10 = vadd.f32 %v4830_v57, %v4808_v32  ;;  %v10238_v31 = vor.u32 %v11959_v39, %v10235_v20  ;;  %v11957_v52 = vld [vmem:[%s17062_s3 + $0x4] sm:$0xf]  ;;  %v10227_v32 = vld [vmem:[%s17062_s3 + $0x8] sm:$0xf0] }
 0x341   :  { %5100 = vmatmul.bf16.gmra.mxu0 %v13677_v12  ;;  %v10315_v12 = vld [vmem:[%s17062_s3 + $0xb8] sm:$0xf0]  ;;  %v11989_v57 = vld [vmem:[%s17062_s3 + $0x104] sm:$0xf] }
 0x342   :  { %v4854_v0 = vadd.f32 %v4853_v7, %v4831_v10  ;;  %5123 = vmatmul.bf16.gmra.mxu1 %v13679_v6  ;;  %5688 = vmatpush.bf16.msra.mxu0 %v10262_v34  ;;  %v10318_v6 = vor.u32 %v11979_v8, %v10315_v12  ;;  %v10230_v10 = vor.u32 %v11957_v52, %v10227_v32  ;;  %v17168_v8 = vld [vmem:[#allocation18_spill] sm:$0xff]  ;;  %v17169_v12 = vld [vmem:[#allocation21_spill] sm:$0xff] }
 0x343   :  { %5146 = vmatmul.bf16.gmra.mxu2 %v13691_v40  ;;  %5169 = vmatmul.bf16.gmra.mxu3 %v13921_v22  ;;  %v10382_v40 = vor.u32 %v11995_v17, %v10379_v18  ;;  %v10294_v7 = vor.u32 %v11973_v5, %v10291_v41  ;;  %v10358_v34 = vor.u32 %v11989_v57, %v10355_v9 }
 0x344   :  { %5701 = vmatpush.bf16.msra.mxu1 %v10326_v14  ;;  %5714 = vmatpush.bf16.msra.mxu2 %v10390_v16  ;;  %v17165_v14 = vld [vmem:[#allocation29_spill] sm:$0xff]  ;;  %v17166_v16 = vld [vmem:[#allocation30_spill] sm:$0xff]  ;;  %v5208_v17 = vadd.f32 %v17169_v12, %v17168_v8  ;;  %v5209_v18 = vadd.f32 %v16282_v37, %v16229_v29 }
 0x346   :  { %v4876_v46 = vpop.f32.mrf.mxu2  ;;  %v4899_v2 = vpop.f32.mrf.mxu3  ;;  %5689 = vmatpush.bf16.msra.mxu0 %v10254_v49 }
 0x347   :  { %v4877_v22 = vadd.f32 %v4876_v46, %v4854_v0  ;;  %v4832_v48 = vpop.f32.mrf.mxu0  ;;  %v4855_v56 = vpop.f32.mrf.mxu1  ;;  %v5207_v0 = vadd.f32 %v17166_v16, %v17165_v14  ;;  %v5217_v46 = vadd.f32 %v5209_v18, %v16339_v25 }
 0x348   :  { %5702 = vmatpush.bf16.msra.mxu1 %v10318_v6  ;;  %5715 = vmatpush.bf16.msra.mxu2 %v10382_v40  ;;  %v17171_v6 = vld [vmem:[#allocation25_spill] sm:$0xff]  ;;  %v17175_v56 = vld [vmem:[#allocation10_spill] sm:$0xff] }
 0x349   :  { %v16711_v59 = vadd.f32 %v4899_v2, %v4877_v22  ;;  %v5216_v40 = vadd.f32 %v5208_v17, %v17171_v6  ;;  %v17173_v22 = vld [vmem:[#allocation28_spill] sm:$0xff] }
 0x34a   :  { %5690 = vmatpush.bf16.msra.mxu0 %v10246_v21 }
 0x34b   :  { %v5224_v2 = vadd.f32 %v5216_v40, %v17173_v22 }
 0x34c   :  { %5703 = vmatpush.bf16.msra.mxu1 %v10310_v44  ;;  %5716 = vmatpush.bf16.msra.mxu2 %v10374_v45 }
 0x34d   :  { %v5232_v21 = vadd.f32 %v5224_v2, %v17175_v56 }
 0x34e   :  { %v4878_v61 = vpop.f32.mrf.mxu2  ;;  %v4901_v38 = vpop.f32.mrf.mxu3  ;;  %5691 = vmatpush.bf16.msra.mxu0 %v10238_v31 }
 0x34f   :  { %v4912_v36 = vpop.f32.mrf.mxu0  ;;  %v4935_v4 = vpop.f32.mrf.mxu1  ;;  %v5236_v20 = vmul.f32 0.2, %v5232_v21 }
 0x350   :  { %v4913_v11 = vadd.f32 %v4912_v36, %v16523_v35  ;;  %5704 = vmatpush.bf16.msra.mxu1 %v10302_v43  ;;  %5717 = vmatpush.bf16.msra.mxu2 %v10366_v58  ;;  %v17170_v35 = vld [vmem:[#allocation31_spill] sm:$0xff] }
 0x351   :  { %5105 = vmatmul.bf16.gmra.mxu0 %v17167_v28  ;;  %v5215_v49 = vadd.f32 %v5207_v0, %v17170_v35  ;;  %v5240_v61 = vpack.c.bf16 %v5236_v20, %v5236_v20 }
 0x352   :  { %v4936_v24 = vadd.f32 %v4935_v4, %v4913_v11  ;;  %5128 = vmatmul.bf16.gmra.mxu1 %v17157_v63  ;;  %5692 = vmatpush.bf16.msra.mxu0 %v10230_v10  ;;  %v5225_v63 = vadd.f32 %v5217_v46, %v16392_v23 }
 0x353   :  { %5151 = vmatmul.bf16.gmra.mxu2 %v17144_v47  ;;  %5174 = vmatmul.bf16.gmra.mxu3 %v13959_v30  ;;  %v5223_v19 = vadd.f32 %v5215_v49, %v17172_v15 }
 0x354   :  { %5705 = vmatpush.bf16.msra.mxu1 %v10294_v7  ;;  %5718 = vmatpush.bf16.msra.mxu2 %v10358_v34  ;;  %v5233_v44 = vadd.f32 %v5225_v63, %v16434_v53 }
 0x355   :  { %v5231_v30 = vadd.f32 %v5223_v19, %v17174_v50 }
 0x356   :  { %v4958_v51 = vpop.f32.mrf.mxu2  ;;  %v4981_v47 = vpop.f32.mrf.mxu3  ;;  %v5237_v33 = vmul.f32 0.2, %v5233_v44 }
 0x357   :  { %v4959_v48 = vadd.f32 %v4958_v51, %v4936_v24  ;;  %v16766_v60 = vpop.f32.mrf.mxu0  ;;  %v16769_v3 = vpop.f32.mrf.mxu1  ;;  %v5235_v39 = vmul.f32 0.2, %v5231_v30 }
 0x358   :  { %v5241_v52 = vpack.c.bf16 %v5237_v33, %v5237_v33 }
 0x359   :  { %v4982_v45 = vadd.f32 %v4981_v47, %v4959_v48  ;;  %v5239_v31 = vpack.c.bf16 %v5235_v39, %v5235_v39 }
 0x35e   :  { %v16773_v42 = vpop.f32.mrf.mxu2  ;;  %v16775_v27 = vpop.f32.mrf.mxu3 }
 0x35f   :  { %v4917_v26 = vpop.f32.mrf.mxu0  ;;  %v4940_v58 = vpop.f32.mrf.mxu1 }
 0x360   :  { %v4918_v43 = vadd.f32 %v4917_v26, %v16627_v1 }
 0x361   :  { %5641 = vmatmul.bf16.vlgmr.msrb.gmra.mxu0 %v5239_v31 }
 0x362   :  { %v4941_v32 = vadd.f32 %v4940_v58, %v4918_v43  ;;  %5654 = vmatmul.bf16.vlgmr.msrb.gmra.mxu1 %v5240_v61 }
 0x363   :  { %5667 = vmatmul.bf16.vlgmr.msrb.gmra.mxu2 %v5241_v52 }
 0x366   :  { %v4963_v5 = vpop.f32.mrf.mxu2  ;;  %v4986_v36 = vpop.f32.mrf.mxu3 }
 0x367   :  { %v4964_v38 = vadd.f32 %v4963_v5, %v4941_v32  ;;  %v16778_v41 = vpop.f32.mrf.mxu0  ;;  %v16780_v57 = vpop.f32.mrf.mxu1  ;;  %v10465_v32 = vld [vmem:[%s17062_s3 + $0x1e0] sm:$0xf]  ;;  %v12018_v5 = vld [vmem:[%s17062_s3 + $0x1e4] sm:$0xf0] }
 0x369   :  { %v16782_v9 = vadd.f32 %v4986_v36, %v4964_v38  ;;  %v10466_v36 = vor.u32 %v12018_v5, %v10465_v32  ;;  %v12008_v32 = vld [vmem:[%s17062_s3 + $0x194] sm:$0xf0] }
 0x36e   :  { %v16784_v11 = vpop.f32.mrf.mxu2  ;;  %v16786_v4 = vpop.f32.mrf.mxu3 }
 0x36f   :  { %v4922_v1 = vpop.f32.mrf.mxu0  ;;  %v4945_v7 = vpop.f32.mrf.mxu1 }
 0x370   :  { %v4923_v10 = vadd.f32 %v4922_v1, %v16711_v59  ;;  %v10457_v1 = vld [vmem:[%s17062_s3 + $0x1d0] sm:$0xf] }
 0x371   :  { %5693 = vmatmul.bf16.vlgmr.msra.gmra.mxu0 %v5239_v31  ;;  %v12020_v31 = vld [vmem:[%s17062_s3 + $0x1f4] sm:$0xf0] }
 0x372   :  { %v4946_v34 = vadd.f32 %v4945_v7, %v4923_v10  ;;  %5706 = vmatmul.bf16.vlgmr.msra.gmra.mxu1 %v5240_v61  ;;  %v12016_v10 = vld [vmem:[%s17062_s3 + $0x1d4] sm:$0xf0] }
 0x373   :  { %5719 = vmatmul.bf16.vlgmr.msra.gmra.mxu2 %v5241_v52  ;;  %v10458_v7 = vor.u32 %v12016_v10, %v10457_v1 }
 0x376   :  { %v4968_v0 = vpop.f32.mrf.mxu2  ;;  %v4991_v28 = vpop.f32.mrf.mxu3 }
 0x377   :  { %v4969_v24 = vadd.f32 %v4968_v0, %v4946_v34  ;;  %v4924_v17 = vpop.f32.mrf.mxu0  ;;  %v4947_v18 = vpop.f32.mrf.mxu1 }
 0x378   :  { %v12014_v17 = vld [vmem:[%s17062_s3 + $0x1c4] sm:$0xf0] }
 0x379   :  { %v16789_v49 = vadd.f32 %v4991_v28, %v4969_v24  ;;  %v10449_v28 = vld [vmem:[%s17062_s3 + $0x1c0] sm:$0xf] }
 0x37e   :  { %v4970_v40 = vpop.f32.mrf.mxu2  ;;  %v4993_v46 = vpop.f32.mrf.mxu3 }
 0x37f   :  { %v5004_v19 = vpop.f32.mrf.mxu0  ;;  %v5027_v2 = vpop.f32.mrf.mxu1  ;;  %v10450_v40 = vor.u32 %v12014_v17, %v10449_v28  ;;  %v10441_v46 = vld [vmem:[%s17062_s3 + $0x1b0] sm:$0xf]  ;;  %v10417_v17 = vld [vmem:[%s17062_s3 + $0x180] sm:$0xf] }
 0x380   :  { %v5005_v51 = vadd.f32 %v5004_v19, %v4982_v45  ;;  %v10473_v45 = vld [vmem:[%s17062_s3 + $0x1f0] sm:$0xf]  ;;  %v12012_v19 = vld [vmem:[%s17062_s3 + $0x1b4] sm:$0xf0] }
 0x381   :  { %v10474_v43 = vor.u32 %v12020_v31, %v10473_v45 }
 0x382   :  { %v5028_v63 = vadd.f32 %v5027_v2, %v5005_v51  ;;  %v10442_v51 = vor.u32 %v12012_v19, %v10441_v46  ;;  %v4897_v46 = vadd.f32 %v16660_v62, %v16658_v54  ;;  %v12017_v54 = vld [vmem:[%s17062_s3 + $0x1e4] sm:$0xf]  ;;  %v10467_v62 = vld [vmem:[%s17062_s3 + $0x1e8] sm:$0xf0] }
 0x383   :  { %5672 = vmatpush.bf16.msrb.mxu3 %v10474_v43  ;;  %v10425_v43 = vld [vmem:[%s17062_s3 + $0x190] sm:$0xf] }
 0x384   :  { %v10426_v5 = vor.u32 %v12008_v32, %v10425_v43 }
 0x386   :  { %v5050_v48 = vpop.f32.mrf.mxu2  ;;  %v5073_v47 = vpop.f32.mrf.mxu3 }
 0x387   :  { %v5051_v59 = vadd.f32 %v5050_v48, %v5028_v63  ;;  %v16791_v30 = vpop.f32.mrf.mxu0  ;;  %v16793_v21 = vpop.f32.mrf.mxu1  ;;  %5673 = vmatpush.bf16.msrb.mxu3 %v10466_v36  ;;  %v4892_v36 = vadd.f32 %v16565_v13, %v16563_v55  ;;  %v12019_v13 = vld [vmem:[%s17062_s3 + $0x1f4] sm:$0xf] }
 0x389   :  { %v16795_v44 = vadd.f32 %v5073_v47, %v5051_v59  ;;  %v10433_v59 = vld [vmem:[%s17062_s3 + $0x1a0] sm:$0xf]  ;;  %v12010_v47 = vld [vmem:[%s17062_s3 + $0x1a4] sm:$0xf0]  ;;  %v4915_v10 = vadd.f32 %v16766_v60, %v4892_v36  ;;  %v10475_v60 = vld [vmem:[%s17062_s3 + $0x1f8] sm:$0xf0] }
 0x38a   :  { %v10434_v31 = vor.u32 %v12010_v47, %v10433_v59  ;;  %v12015_v36 = vld [vmem:[%s17062_s3 + $0x1d4] sm:$0xf] }
 0x38b   :  { %5674 = vmatpush.bf16.msrb.mxu3 %v10458_v7  ;;  %v4938_v59 = vadd.f32 %v16769_v3, %v4915_v10 }
 0x38d   :  { %v4961_v47 = vadd.f32 %v16773_v42, %v4938_v59  ;;  %v10459_v42 = vld [vmem:[%s17062_s3 + $0x1d8] sm:$0xf0] }
 0x38e   :  { %v16797_v39 = vpop.f32.mrf.mxu2  ;;  %v16799_v20 = vpop.f32.mrf.mxu3 }
 0x38f   :  { %v16801_v33 = vpop.f32.mrf.mxu0  ;;  %v16803_v26 = vpop.f32.mrf.mxu1  ;;  %5675 = vmatpush.bf16.msrb.mxu3 %v10450_v40  ;;  %v12006_v40 = vld [vmem:[%s17062_s3 + $0x184] sm:$0xf0] }
 0x390   :  { %v10418_v55 = vor.u32 %v12006_v40, %v10417_v17  ;;  %v10451_v17 = vld [vmem:[%s17062_s3 + $0x1c8] sm:$0xf0]  ;;  %v5010_v40 = vadd.f32 %v16801_v33, %v16782_v9 }
 0x392   :  { %v5033_v33 = vadd.f32 %v16803_v26, %v5010_v40 }
 0x393   :  { %5676 = vmatpush.bf16.msrb.mxu3 %v10442_v51  ;;  %v10478_v51 = vor.u32 %v12019_v13, %v10475_v60 }
 0x396   :  { %v16811_v58 = vpop.f32.mrf.mxu2  ;;  %v16813_v61 = vpop.f32.mrf.mxu3 }
 0x397   :  { %v16815_v52 = vpop.f32.mrf.mxu0  ;;  %v16823_v38 = vpop.f32.mrf.mxu1  ;;  %5677 = vmatpush.bf16.msrb.mxu3 %v10434_v31 }
 0x39b   :  { %5678 = vmatpush.bf16.msrb.mxu3 %v10426_v5 }
 0x39e   :  { %v16831_v34 = vpop.f32.mrf.mxu2  ;;  %v16833_v0 = vpop.f32.mrf.mxu3 }
 0x39f   :  { %v16835_v24 = vpop.f32.mrf.mxu0  ;;  %v16843_v18 = vpop.f32.mrf.mxu1  ;;  %5679 = vmatpush.bf16.msrb.mxu3 %v10418_v55 }
 0x3a0   :  { %v5015_v26 = vadd.f32 %v16835_v24, %v16789_v49 }
 0x3a2   :  { %v5038_v49 = vadd.f32 %v16843_v18, %v5015_v26 }
 0x3a3   :  { %5724 = vmatpush.bf16.msra.mxu3 %v10478_v51  ;;  %v12011_v51 = vld [vmem:[%s17062_s3 + $0x1b4] sm:$0xf] }
 0x3a6   :  { %v16851_v2 = vpop.f32.mrf.mxu2  ;;  %v16853_v63 = vpop.f32.mrf.mxu3 }
 0x3a7   :  { %v5016_v48 = vpop.f32.mrf.mxu0  ;;  %v5039_v45 = vpop.f32.mrf.mxu1 }
 0x3a8   :  { %v4920_v48 = vadd.f32 %v16778_v41, %v4897_v46  ;;  %v10470_v45 = vor.u32 %v12017_v54, %v10467_v62  ;;  %v12009_v62 = vld [vmem:[%s17062_s3 + $0x1a4] sm:$0xf] }
 0x3aa   :  { %v4943_v31 = vadd.f32 %v16780_v57, %v4920_v48  ;;  %5725 = vmatpush.bf16.msra.mxu3 %v10470_v45  ;;  %v10462_v57 = vor.u32 %v12015_v36, %v10459_v42  ;;  %v10443_v48 = vld [vmem:[%s17062_s3 + $0x1b8] sm:$0xf0] }
 0x3ac   :  { %v4966_v3 = vadd.f32 %v16784_v11, %v4943_v31  ;;  %v12013_v11 = vld [vmem:[%s17062_s3 + $0x1c4] sm:$0xf] }
 0x3ad   :  { %v10454_v46 = vor.u32 %v12013_v11, %v10451_v17  ;;  %v10419_v11 = vld [vmem:[%s17062_s3 + $0x188] sm:$0xf0] }
 0x3ae   :  { %v5062_v1 = vpop.f32.mrf.mxu2  ;;  %v5085_v7 = vpop.f32.mrf.mxu3  ;;  %5726 = vmatpush.bf16.msra.mxu3 %v10462_v57  ;;  %v5061_v57 = vadd.f32 %v16851_v2, %v5038_v49  ;;  %v10595_v49 = vld [vmem:[#allocation3 + $0xf0] sm:$0xf0] }
 0x3af   :  { %v16870_v28 = vpop.f32.mrf.mxu0  ;;  %v16880_v19 = vpop.f32.mrf.mxu1  ;;  %v4984_v1 = vadd.f32 %v16775_v27, %v4961_v47  ;;  %v4989_v7 = vadd.f32 %v16786_v4, %v4966_v3  ;;  %v10435_v47 = vld [vmem:[%s17062_s3 + $0x1a8] sm:$0xf0] }
 0x3b0   :  { %v10438_v45 = vor.u32 %v12009_v62, %v10435_v47 }
 0x3b1   :  { %v5007_v10 = vadd.f32 %v16791_v30, %v4984_v1  ;;  %v5012_v27 = vadd.f32 %v16815_v52, %v4989_v7  ;;  %v10446_v52 = vor.u32 %v12011_v51, %v10443_v48  ;;  %v12007_v1 = vld [vmem:[%s17062_s3 + $0x194] sm:$0xf]  ;;  %v12005_v7 = vld [vmem:[%s17062_s3 + $0x184] sm:$0xf] }
 0x3b2   :  { %5727 = vmatpush.bf16.msra.mxu3 %v10454_v46  ;;  %v5084_v46 = vadd.f32 %v16853_v63, %v5061_v57 }
 0x3b3   :  { %v5030_v30 = vadd.f32 %v16793_v21, %v5007_v10  ;;  %v5035_v59 = vadd.f32 %v16823_v38, %v5012_v27  ;;  %v5056_v21 = vadd.f32 %v16811_v58, %v5033_v33 }
 0x3b5   :  { %v5053_v9 = vadd.f32 %v16797_v39, %v5030_v30  ;;  %v5058_v54 = vadd.f32 %v16831_v34, %v5035_v59  ;;  %v5079_v58 = vadd.f32 %v16813_v61, %v5056_v21  ;;  %v5097_v61 = vadd.f32 %v16870_v28, %v16795_v44 }
 0x3b6   :  { %v16898_v43 = vpop.f32.mrf.mxu2  ;;  %v16900_v41 = vpop.f32.mrf.mxu3  ;;  %5728 = vmatpush.bf16.msra.mxu3 %v10446_v52  ;;  %v10422_v44 = vor.u32 %v12005_v7, %v10419_v11  ;;  %v10579_v7 = vld [vmem:[#allocation3 + $0xd0] sm:$0xf0] }
 0x3b7   :  { %v5098_v32 = vpop.f32.mrf.mxu0  ;;  %v5121_v5 = vpop.f32.mrf.mxu1  ;;  %v5076_v39 = vadd.f32 %v16799_v20, %v5053_v9  ;;  %v5081_v36 = vadd.f32 %v16833_v0, %v5058_v54  ;;  %v10427_v20 = vld [vmem:[%s17062_s3 + $0x198] sm:$0xf0]  ;;  %v5120_v18 = vadd.f32 %v16880_v19, %v5097_v61  ;;  %v10577_v61 = vld [vmem:[#allocation3 + $0xc0] sm:$0xf] }
 0x3b9   :  { %v5099_v31 = vadd.f32 %v5098_v32, %v5076_v39  ;;  %v10430_v32 = vor.u32 %v12007_v1, %v10427_v20  ;;  %v5143_v2 = vadd.f32 %v16898_v43, %v5120_v18 }
 0x3ba   :  { %5729 = vmatpush.bf16.msra.mxu3 %v10438_v45 }
 0x3bb   :  { %v5122_v10 = vadd.f32 %v5121_v5, %v5099_v31  ;;  %v16966_v19 = vadd.f32 %v16900_v41, %v5143_v2  ;;  %v16981_v41 = vld [vmem:[%s17063_s4] sm:$0x3] }
 0x3bc   :  { %v5309_v45 = vperm.slane %v16981_v41, 0  ;;  %v10593_v31 = vld [vmem:[#allocation3 + $0xe0] sm:$0xf] }
 0x3bd   :  { %v10721_v2 = vld [vmem:[#allocation3 + $0x1e0] sm:$0xf] }
 0x3be   :  { %v5144_v55 = vpop.f32.mrf.mxu2  ;;  %v5167_v13 = vpop.f32.mrf.mxu3  ;;  %5730 = vmatpush.bf16.msra.mxu3 %v10430_v32 }
 0x3bf   :  { %v5101_v60 = vpop.f32.mrf.mxu0  ;;  %v5124_v4 = vpop.f32.mrf.mxu1  ;;  %v5145_v17 = vadd.f32 %v5144_v55, %v5122_v10 }
 0x3c0   :  { %v5102_v24 = vadd.f32 %v5101_v60, %v5079_v58 }
 0x3c1   :  { %v16963_v48 = vadd.f32 %v5167_v13, %v5145_v17 }
 0x3c2   :  { %v5125_v40 = vadd.f32 %v5124_v4, %v5102_v24  ;;  %5731 = vmatpush.bf16.msra.mxu3 %v10422_v44  ;;  %v12047_v24 = vld [vmem:[#allocation3 + $0xcc] sm:$0xf0] }
 0x3c3   :  { %v5210_v63 = vadd.f32 %v16963_v48, %v16966_v19  ;;  %v10578_v11 = vor.u32 %v12047_v24, %v10577_v61  ;;  %v12043_v44 = vld [vmem:[#allocation3 + $0xac] sm:$0xf0]  ;;  %v12073_v61 = vld [vmem:[#allocation3 + $0x1a4] sm:$0xf] }
 0x3c4   :  { %v12033_v24 = vld [vmem:[#allocation3 + $0x64] sm:$0xf] }
 0x3c6   :  { %v5147_v38 = vpop.f32.mrf.mxu2  ;;  %v5170_v3 = vpop.f32.mrf.mxu3 }
 0x3c7   :  { %v5103_v34 = vpop.f32.mrf.mxu0  ;;  %v5126_v42 = vpop.f32.mrf.mxu1  ;;  %v5148_v5 = vadd.f32 %v5147_v38, %v5125_v40  ;;  %v10561_v40 = vld [vmem:[#allocation3 + $0xa0] sm:$0xf] }
 0x3c8   :  { %v5104_v0 = vadd.f32 %v5103_v34, %v5081_v36  ;;  %v12049_v34 = vld [vmem:[#allocation3 + $0xe4] sm:$0xf] }
 0x3c9   :  { %v16968_v55 = vadd.f32 %v5170_v3, %v5148_v5  ;;  %v12051_v3 = vld [vmem:[#allocation3 + $0xec] sm:$0xf0]  ;;  %v10598_v10 = vor.u32 %v12049_v34, %v10595_v49  ;;  %v10689_v34 = vld [vmem:[#allocation3 + $0x1a0] sm:$0xf] }
 0x3ca   :  { %v5127_v27 = vadd.f32 %v5126_v42, %v5104_v0  ;;  %v10594_v20 = vor.u32 %v12051_v3, %v10593_v31  ;;  %v12045_v0 = vld [vmem:[#allocation3 + $0xc4] sm:$0xf]  ;;  %v12083_v5 = vld [vmem:[#allocation3 + $0x1ec] sm:$0xf0] }
 0x3cb   :  { %v5218_v59 = vadd.f32 %v5210_v63, %v16968_v55  ;;  %6161 = vmatpush.bf16.msrb.mxu2 %v10598_v10  ;;  %v10582_v17 = vor.u32 %v12045_v0, %v10579_v7  ;;  %v10545_v63 = vld [vmem:[#allocation3 + $0x80] sm:$0xf]  ;;  %v12035_v49 = vld [vmem:[#allocation3 + $0x6c] sm:$0xf0]  ;;  %v10691_v10 = vld [vmem:[#allocation3 + $0x1b0] sm:$0xf0] }
 0x3cc   :  { %6135 = vmatpush.bf16.msrb.mxu0 %v10594_v20  ;;  %v10529_v20 = vld [vmem:[#allocation3 + $0x60] sm:$0xf]  ;;  %v5310_v0 = vperm.slane %v16981_v41, 1  ;;  %v10694_v7 = vor.u32 %v12073_v61, %v10691_v10 }
 0x3cd   :  { %v10481_v61 = vld [vmem:[#allocation3] sm:$0xf] }
 0x3ce   :  { %v5149_v28 = vpop.f32.mrf.mxu2  ;;  %v5172_v30 = vpop.f32.mrf.mxu3 }
 0x3cf   :  { %v5106_v60 = vpop.f32.mrf.mxu0  ;;  %v5129_v51 = vpop.f32.mrf.mxu1  ;;  %v5150_v9 = vadd.f32 %v5149_v28, %v5127_v27  ;;  %v12041_v28 = vld [vmem:[#allocation3 + $0xa4] sm:$0xf]  ;;  %v10562_v27 = vor.u32 %v12043_v44, %v10561_v40  ;;  %6162 = vmatpush.bf16.msrb.mxu2 %v10582_v17  ;;  %v10530_v17 = vor.u32 %v12035_v49, %v10529_v20  ;;  %v10675_v44 = vld [vmem:[#allocation3 + $0x190] sm:$0xf0] }
 0x3d0   :  { %v5107_v33 = vadd.f32 %v5106_v60, %v5084_v46  ;;  %v10563_v46 = vld [vmem:[#allocation3 + $0xb0] sm:$0xf0]  ;;  %6136 = vmatpush.bf16.msrb.mxu0 %v10578_v11  ;;  %v12081_v60 = vld [vmem:[#allocation3 + $0x1e4] sm:$0xf]  ;;  %v10673_v11 = vld [vmem:[#allocation3 + $0x180] sm:$0xf] }
 0x3d1   :  { %v16972_v4 = vadd.f32 %v5172_v30, %v5150_v9  ;;  %v10722_v30 = vor.u32 %v12083_v5, %v10721_v2  ;;  %v12069_v40 = vld [vmem:[#allocation3 + $0x184] sm:$0xf]  ;;  %v10513_v2 = vld [vmem:[#allocation3 + $0x40] sm:$0xf]  ;;  %v12031_v5 = vld [vmem:[#allocation3 + $0x4c] sm:$0xf0] }
 0x3d2   :  { %v5130_v43 = vadd.f32 %v5129_v51, %v5107_v33  ;;  %v10723_v51 = vld [vmem:[#allocation3 + $0x1f0] sm:$0xf0]  ;;  %v10566_v33 = vor.u32 %v12041_v28, %v10563_v46 }
 0x3d3   :  { %v5226_v47 = vadd.f32 %v5218_v59, %v16972_v4  ;;  %v10705_v59 = vld [vmem:[#allocation3 + $0x1c0] sm:$0xf]  ;;  %6148 = vmatpush.bf16.msrb.mxu1 %v10722_v30  ;;  %v12029_v30 = vld [vmem:[#allocation3 + $0x44] sm:$0xf] }
 0x3d4   :  { %6137 = vmatpush.bf16.msrb.mxu0 %v10562_v27  ;;  %6163 = vmatpush.bf16.msrb.mxu2 %v10566_v33  ;;  %v10678_v33 = vor.u32 %v12069_v40, %v10675_v44  ;;  %v12050_v40 = vld [vmem:[#allocation3 + $0xec] sm:$0xf]  ;;  %v10603_v44 = vld [vmem:[#allocation3 + $0xf8] sm:$0xf0] }
 0x3d6   :  { %v5152_v52 = vpop.f32.mrf.mxu2  ;;  %v5175_v54 = vpop.f32.mrf.mxu3 }
 0x3d7   :  { %v5153_v21 = vadd.f32 %v5152_v52, %v5130_v43  ;;  %v5108_v13 = vpop.f32.mrf.mxu0  ;;  %v5131_v62 = vpop.f32.mrf.mxu1  ;;  %v12039_v43 = vld [vmem:[#allocation3 + $0x8c] sm:$0xf0]  ;;  %v10726_v52 = vor.u32 %v12081_v60, %v10723_v51  ;;  %v10515_v60 = vld [vmem:[#allocation3 + $0x50] sm:$0xf0] }
 0x3d8   :  { %v12037_v13 = vld [vmem:[#allocation3 + $0x84] sm:$0xf]  ;;  %v10547_v62 = vld [vmem:[#allocation3 + $0x90] sm:$0xf0]  ;;  %v10546_v31 = vor.u32 %v12039_v43, %v10545_v63  ;;  %v10657_v63 = vld [vmem:[#allocation3 + $0x160] sm:$0xf] }
 0x3d9   :  { %v16976_v39 = vadd.f32 %v5175_v54, %v5153_v21  ;;  %v12067_v43 = vld [vmem:[#allocation3 + $0x16c] sm:$0xf0] }
 0x3da   :  { %6138 = vmatpush.bf16.msrb.mxu0 %v10546_v31 }
 0x3db   :  { %v5234_v26 = vadd.f32 %v5226_v47, %v16976_v39  ;;  %v12079_v47 = vld [vmem:[#allocation3 + $0x1cc] sm:$0xf0] }
 0x3dd   :  { %v5238_v38 = vmul.f32 0.2, %v5234_v26 }
 0x3de   :  { %v5154_v58 = vpop.f32.mrf.mxu2  ;;  %v5177_v42 = vpop.f32.mrf.mxu3  ;;  %6139 = vmatpush.bf16.msrb.mxu0 %v10530_v17 }
 0x3df   :  { %v16985_v36 = vpack.c.bf16 %v5238_v38, %v5238_v38  ;;  %v5642_v1 = vpop.f32.mrf.mxu0  ;;  %v5655_v57 = vpop.f32.mrf.mxu1  ;;  %v12077_v38 = vld [vmem:[#allocation3 + $0x1c4] sm:$0xf]  ;;  %v10707_v58 = vld [vmem:[#allocation3 + $0x1d0] sm:$0xf0]  ;;  %v12075_v42 = vld [vmem:[#allocation3 + $0x1ac] sm:$0xf0] }
 0x3e0   :  { %v5643_v32 = vadd.f32 %v5642_v1, %v5309_v45  ;;  %v10706_v45 = vor.u32 %v12079_v47, %v10705_v59  ;;  %v10710_v3 = vor.u32 %v12077_v38, %v10707_v58  ;;  %v10550_v1 = vor.u32 %v12037_v13, %v10547_v62  ;;  %v12065_v59 = vld [vmem:[#allocation3 + $0x164] sm:$0xf]  ;;  %v10497_v47 = vld [vmem:[#allocation3 + $0x20] sm:$0xf]  ;;  %v10499_v38 = vld [vmem:[#allocation3 + $0x30] sm:$0xf0] }
 0x3e1   :  { %5680 = vmatmul.bf16.vlgmr.msrb.gmra.mxu3 %v16985_v36  ;;  %v10518_v62 = vor.u32 %v12029_v30, %v10515_v60  ;;  %v10658_v58 = vor.u32 %v12067_v43, %v10657_v63  ;;  %v10585_v30 = vld [vmem:[#allocation3 + $0xc8] sm:$0xf]  ;;  %v12048_v60 = vld [vmem:[#allocation3 + $0xd4] sm:$0xf0] }
 0x3e2   :  { %v5656_v18 = vadd.f32 %v5655_v57, %v5643_v32  ;;  %6174 = vmatpush.bf16.msrb.mxu3 %v10726_v52  ;;  %v10531_v32 = vld [vmem:[#allocation3 + $0x70] sm:$0xf0]  ;;  %6149 = vmatpush.bf16.msrb.mxu1 %v10706_v45  ;;  %v10690_v57 = vor.u32 %v12075_v42, %v10689_v34  ;;  %v10514_v52 = vor.u32 %v12031_v5, %v10513_v2  ;;  %v12025_v45 = vld [vmem:[#allocation3 + $0x24] sm:$0xf]  ;;  %v12063_v34 = vld [vmem:[#allocation3 + $0x14c] sm:$0xf0] }
 0x3e3   :  { %6164 = vmatpush.bf16.msrb.mxu2 %v10550_v1  ;;  %v10534_v46 = vor.u32 %v12033_v24, %v10531_v32  ;;  %v10643_v1 = vld [vmem:[#allocation3 + $0x150] sm:$0xf0]  ;;  %v10502_v49 = vor.u32 %v12025_v45, %v10499_v38  ;;  %v12023_v24 = vld [vmem:[#allocation3 + $0xc] sm:$0xf0]  ;;  %v12021_v32 = vld [vmem:[#allocation3 + $0x4] sm:$0xf] }
 0x3e4   :  { %6140 = vmatpush.bf16.msrb.mxu0 %v10514_v52  ;;  %v10569_v43 = vld [vmem:[#allocation3 + $0xa8] sm:$0xf]  ;;  %v12044_v52 = vld [vmem:[#allocation3 + $0xb4] sm:$0xf0]  ;;  %v12057_v45 = vld [vmem:[#allocation3 + $0x124] sm:$0xf] }
 0x3e6   :  { %v5668_v9 = vpop.f32.mrf.mxu2  ;;  %6175 = vmatpush.bf16.msrb.mxu3 %v10710_v3  ;;  %6150 = vmatpush.bf16.msrb.mxu1 %v10690_v57  ;;  %v10641_v3 = vld [vmem:[#allocation3 + $0x140] sm:$0xf] }
 0x3e7   :  { %v16988_v21 = vadd.f32 %v5668_v9, %v5656_v18  ;;  %v5644_v54 = vpop.f32.mrf.mxu0  ;;  %v5657_v26 = vpop.f32.mrf.mxu1  ;;  %v12071_v18 = vld [vmem:[#allocation3 + $0x18c] sm:$0xf0]  ;;  %6165 = vmatpush.bf16.msrb.mxu2 %v10534_v46  ;;  %v10482_v46 = vor.u32 %v12023_v24, %v10481_v61  ;;  %v12053_v24 = vld [vmem:[#allocation3 + $0x104] sm:$0xf] }
 0x3e8   :  { %v10674_v51 = vor.u32 %v12071_v18, %v10673_v11  ;;  %v10659_v54 = vld [vmem:[#allocation3 + $0x170] sm:$0xf0]  ;;  %v12027_v26 = vld [vmem:[#allocation3 + $0x2c] sm:$0xf0]  ;;  %v12052_v11 = vld [vmem:[#allocation3 + $0xf4] sm:$0xf0]  ;;  %v10642_v18 = vor.u32 %v12063_v34, %v10641_v3 }
 0x3e9   :  { %v10662_v31 = vor.u32 %v12065_v59, %v10659_v54  ;;  %v10498_v42 = vor.u32 %v12027_v26, %v10497_v47  ;;  %v12042_v59 = vld [vmem:[#allocation3 + $0xac] sm:$0xf]  ;;  %v10570_v54 = vor.u32 %v12044_v52, %v10569_v43  ;;  %v10625_v47 = vld [vmem:[#allocation3 + $0x120] sm:$0xf]  ;;  %v12059_v26 = vld [vmem:[#allocation3 + $0x12c] sm:$0xf0] }
 0x3ea   :  { %6176 = vmatpush.bf16.msrb.mxu3 %v10694_v7  ;;  %6151 = vmatpush.bf16.msrb.mxu1 %v10674_v51  ;;  %v10601_v7 = vld [vmem:[#allocation3 + $0xe8] sm:$0xf]  ;;  %v12046_v51 = vld [vmem:[#allocation3 + $0xcc] sm:$0xf]  ;;  %v10626_v38 = vor.u32 %v12059_v26, %v10625_v47  ;;  %v12040_v3 = vld [vmem:[#allocation3 + $0x94] sm:$0xf0] }
 0x3eb   :  { %6166 = vmatpush.bf16.msrb.mxu2 %v10518_v62  ;;  %6141 = vmatpush.bf16.msrb.mxu0 %v10498_v42  ;;  %v10602_v5 = vor.u32 %v12052_v11, %v10601_v7  ;;  %v12055_v61 = vld [vmem:[#allocation3 + $0x10c] sm:$0xf0]  ;;  %v12036_v7 = vld [vmem:[#allocation3 + $0x74] sm:$0xf0]  ;;  %v10523_v43 = vld [vmem:[#allocation3 + $0x58] sm:$0xf0] }
 0x3ec   :  { %v10505_v47 = vld [vmem:[#allocation3 + $0x28] sm:$0xf]  ;;  %v12028_v26 = vld [vmem:[#allocation3 + $0x34] sm:$0xf0] }
 0x3ee   :  { %v5670_v28 = vpop.f32.mrf.mxu2  ;;  %6177 = vmatpush.bf16.msrb.mxu3 %v10678_v33  ;;  %6152 = vmatpush.bf16.msrb.mxu1 %v10658_v58  ;;  %v10586_v33 = vor.u32 %v12048_v60, %v10585_v30  ;;  %v10627_v58 = vld [vmem:[#allocation3 + $0x130] sm:$0xf0]  ;;  %v10521_v60 = vld [vmem:[#allocation3 + $0x48] sm:$0xf] }
 0x3ef   :  { %v5694_v27 = vpop.f32.mrf.mxu0  ;;  %v5707_v41 = vpop.f32.mrf.mxu1  ;;  %6167 = vmatpush.bf16.msrb.mxu2 %v10502_v49  ;;  %6142 = vmatpush.bf16.msrb.mxu0 %v10482_v46  ;;  %v10630_v34 = vor.u32 %v12057_v45, %v10627_v58  ;;  %v10609_v49 = vld [vmem:[#allocation3 + $0x100] sm:$0xf]  ;;  %v10539_v46 = vld [vmem:[#allocation3 + $0x78] sm:$0xf0]  ;;  %v10697_v45 = vld [vmem:[#allocation3 + $0x1a8] sm:$0xf] }
 0x3f0   :  { %v5695_v9 = vadd.f32 %v5694_v27, %v5310_v0  ;;  %v10483_v0 = vld [vmem:[#allocation3 + $0x10] sm:$0xf0]  ;;  %v10606_v27 = vor.u32 %v12050_v40, %v10603_v44  ;;  %v12084_v40 = vld [vmem:[#allocation3 + $0x1f4] sm:$0xf0]  ;;  %v12034_v44 = vld [vmem:[#allocation3 + $0x6c] sm:$0xf] }
 0x3f1   :  { %5732 = vmatmul.bf16.vlgmr.msra.gmra.mxu3 %v16985_v36  ;;  %v12061_v36 = vld [vmem:[#allocation3 + $0x144] sm:$0xf]  ;;  %v10486_v2 = vor.u32 %v12021_v32, %v10483_v0  ;;  %v10610_v32 = vor.u32 %v12055_v61, %v10609_v49  ;;  %v10537_v0 = vld [vmem:[#allocation3 + $0x68] sm:$0xf]  ;;  %v12076_v58 = vld [vmem:[#allocation3 + $0x1b4] sm:$0xf0] }
 0x3f2   :  { %v5708_v13 = vadd.f32 %v5707_v41, %v5695_v9  ;;  %6178 = vmatpush.bf16.msrb.mxu3 %v10662_v31  ;;  %v10646_v28 = vor.u32 %v12061_v36, %v10643_v1  ;;  %6153 = vmatpush.bf16.msrb.mxu1 %v10642_v18  ;;  %v10587_v9 = vld [vmem:[#allocation3 + $0xd8] sm:$0xf0]  ;;  %v10553_v31 = vld [vmem:[#allocation3 + $0x88] sm:$0xf]  ;;  %v12038_v36 = vld [vmem:[#allocation3 + $0x8c] sm:$0xf]  ;;  %v10538_v18 = vor.u32 %v12036_v7, %v10537_v0 }
 0x3f3   :  { %6168 = vmatpush.bf16.msrb.mxu2 %v10486_v2  ;;  %6187 = vmatpush.bf16.msra.mxu0 %v10602_v5  ;;  %v10590_v63 = vor.u32 %v12046_v51, %v10587_v9  ;;  %v10554_v42 = vor.u32 %v12040_v3, %v10553_v31  ;;  %v10555_v1 = vld [vmem:[#allocation3 + $0x98] sm:$0xf0]  ;;  %v12082_v2 = vld [vmem:[#allocation3 + $0x1ec] sm:$0xf]  ;;  %v12032_v51 = vld [vmem:[#allocation3 + $0x54] sm:$0xf0] }
 0x3f4   :  { %v10731_v5 = vld [vmem:[#allocation3 + $0x1f8] sm:$0xf0]  ;;  %v10713_v9 = vld [vmem:[#allocation3 + $0x1c8] sm:$0xf]  ;;  %v12026_v31 = vld [vmem:[#allocation3 + $0x2c] sm:$0xf] }
 0x3f5   :  { %v10734_v30 = vor.u32 %v12082_v2, %v10731_v5  ;;  %v10507_v3 = vld [vmem:[#allocation3 + $0x38] sm:$0xf0]  ;;  %v10489_v49 = vld [vmem:[#allocation3 + $0x8] sm:$0xf]  ;;  %v12024_v61 = vld [vmem:[#allocation3 + $0x14] sm:$0xf0] }
 0x3f6   :  { %v5720_v20 = vpop.f32.mrf.mxu2  ;;  %6179 = vmatpush.bf16.msrb.mxu3 %v10646_v28  ;;  %6154 = vmatpush.bf16.msrb.mxu1 %v10626_v38  ;;  %v10506_v38 = vor.u32 %v12028_v26, %v10505_v47  ;;  %v12022_v0 = vld [vmem:[#allocation3 + $0xc] sm:$0xf]  ;;  %v10491_v7 = vld [vmem:[#allocation3 + $0x18] sm:$0xf0]  ;;  %v10617_v47 = vld [vmem:[#allocation3 + $0x108] sm:$0xf] }
 0x3f7   :  { %v16992_v57 = vadd.f32 %v5720_v20, %v5708_v13  ;;  %v5696_v10 = vpop.f32.mrf.mxu0  ;;  %v5709_v17 = vpop.f32.mrf.mxu1  ;;  %6213 = vmatpush.bf16.msra.mxu2 %v10606_v27  ;;  %6188 = vmatpush.bf16.msra.mxu0 %v10586_v33  ;;  %v10571_v13 = vld [vmem:[#allocation3 + $0xb8] sm:$0xf0]  ;;  %v10558_v20 = vor.u32 %v12038_v36, %v10555_v1  ;;  %v10542_v27 = vor.u32 %v12034_v44, %v10539_v46  ;;  %v12080_v33 = vld [vmem:[#allocation3 + $0x1d4] sm:$0xf0]  ;;  %v12074_v36 = vld [vmem:[#allocation3 + $0x1ac] sm:$0xf] }
 0x3f8   :  { %v10574_v62 = vor.u32 %v12042_v59, %v10571_v13  ;;  %v10611_v10 = vld [vmem:[#allocation3 + $0x110] sm:$0xf0]  ;;  %v10729_v17 = vld [vmem:[#allocation3 + $0x1e8] sm:$0xf]  ;;  %v10714_v52 = vor.u32 %v12080_v33, %v10713_v9  ;;  %v10715_v13 = vld [vmem:[#allocation3 + $0x1d8] sm:$0xf0] }
 0x3f9   :  { %v10614_v11 = vor.u32 %v12053_v24, %v10611_v10  ;;  %v10730_v28 = vor.u32 %v12084_v40, %v10729_v17  ;;  %v10699_v1 = vld [vmem:[#allocation3 + $0x1b8] sm:$0xf0]  ;;  %v10681_v24 = vld [vmem:[#allocation3 + $0x188] sm:$0xf]  ;;  %v12072_v10 = vld [vmem:[#allocation3 + $0x194] sm:$0xf0] }
 0x3fa   :  { %6180 = vmatpush.bf16.msrb.mxu3 %v10630_v34  ;;  %6155 = vmatpush.bf16.msrb.mxu1 %v10610_v32  ;;  %v10698_v34 = vor.u32 %v12076_v58, %v10697_v45  ;;  %v10490_v32 = vor.u32 %v12024_v61, %v10489_v49  ;;  %v12070_v17 = vld [vmem:[#allocation3 + $0x18c] sm:$0xf]  ;;  %v10683_v40 = vld [vmem:[#allocation3 + $0x198] sm:$0xf0]  ;;  %v12068_v46 = vld [vmem:[#allocation3 + $0x174] sm:$0xf0] }
 0x3fb   :  { %6214 = vmatpush.bf16.msra.mxu2 %v10590_v63  ;;  %6189 = vmatpush.bf16.msra.mxu0 %v10570_v54  ;;  %v12030_v63 = vld [vmem:[#allocation3 + $0x4c] sm:$0xf]  ;;  %v10686_v44 = vor.u32 %v12070_v17, %v10683_v40  ;;  %v12056_v26 = vld [vmem:[#allocation3 + $0x114] sm:$0xf0]  ;;  %v12091_v49 = vld [vmem:[#allocation5 + $0x30] sm:$0xff] }
 0x3fc   :  { %v10526_v59 = vor.u32 %v12030_v63, %v10523_v43  ;;  %v12078_v54 = vld [vmem:[#allocation3 + $0x1cc] sm:$0xf]  ;;  %v10633_v43 = vld [vmem:[#allocation3 + $0x128] sm:$0xf]  ;;  %v12108_v40 = vld [vmem:[#allocation5 + $0xb8] sm:$0xff] }
 0x3fd   :  { %v12066_v2 = vld [vmem:[#allocation3 + $0x16c] sm:$0xf] }
 0x3fe   :  { %v5722_v41 = vpop.f32.mrf.mxu2  ;;  %6181 = vmatpush.bf16.msrb.mxu3 %v10614_v11  ;;  %6200 = vmatpush.bf16.msra.mxu1 %v10730_v28  ;;  %v10682_v11 = vor.u32 %v12072_v10, %v10681_v24  ;;  %v10665_v28 = vld [vmem:[#allocation3 + $0x168] sm:$0xf]  ;;  %v12062_v9 = vld [vmem:[#allocation3 + $0x14c] sm:$0xf]  ;;  %v12100_v10 = vld [vmem:[#allocation5 + $0x78] sm:$0xff] }
 0x3ff   :  { %6215 = vmatpush.bf16.msra.mxu2 %v10574_v62  ;;  %6190 = vmatpush.bf16.msra.mxu0 %v10554_v42  ;;  %v10522_v41 = vor.u32 %v12032_v51, %v10521_v60  ;;  %v10718_v62 = vor.u32 %v12078_v54, %v10715_v13  ;;  %v10510_v42 = vor.u32 %v12026_v31, %v10507_v3  ;;  %v10649_v60 = vld [vmem:[#allocation3 + $0x148] sm:$0xf]  ;;  %v12064_v51 = vld [vmem:[#allocation3 + $0x154] sm:$0xf0]  ;;  %v10635_v54 = vld [vmem:[#allocation3 + $0x138] sm:$0xf0] }
 0x400   :  { %v10666_v5 = vor.u32 %v12068_v46, %v10665_v28  ;;  %v10650_v33 = vor.u32 %v12064_v51, %v10649_v60  ;;  %v12054_v58 = vld [vmem:[#allocation3 + $0x10c] sm:$0xf]  ;;  %v10619_v31 = vld [vmem:[#allocation3 + $0x118] sm:$0xf0]  ;;  %v10618_v3 = vor.u32 %v12056_v26, %v10617_v47  ;;  %v12087_v28 = vld [vmem:[#allocation5 + $0x10] sm:$0xff] }
 0x401   :  { %v12098_v17 = vld [vmem:[#allocation5 + $0x68] sm:$0xff]  ;;  %v12107_v46 = vld [vmem:[#allocation5 + $0xb0] sm:$0xff] }
 0x402   :  { %6226 = vmatpush.bf16.msra.mxu3 %v10734_v30  ;;  %6201 = vmatpush.bf16.msra.mxu1 %v10714_v52  ;;  %v12060_v52 = vld [vmem:[#allocation3 + $0x134] sm:$0xf0]  ;;  %v12095_v60 = vld [vmem:[#allocation5 + $0x50] sm:$0xff]  ;;  %v12122_v26 = vld [vmem:[#allocation5 + $0x128] sm:$0xff] }
 0x403   :  { %6216 = vmatpush.bf16.msra.mxu2 %v10558_v20  ;;  %6191 = vmatpush.bf16.msra.mxu0 %v10538_v18  ;;  %v10702_v20 = vor.u32 %v12074_v36, %v10699_v1  ;;  %v10494_v18 = vor.u32 %v12022_v0, %v10491_v7  ;;  %v10634_v13 = vor.u32 %v12060_v52, %v10633_v43  ;;  %v12092_v1 = vld [vmem:[#allocation5 + $0x38] sm:$0xff]  ;;  %v12090_v7 = vld [vmem:[#allocation5 + $0x28] sm:$0xff]  ;;  %v12115_v51 = vld [vmem:[#allocation5 + $0xf0] sm:$0xff] }
 0x404   :  { %v12114_v43 = vld [vmem:[#allocation5 + $0xe8] sm:$0xff]  ;;  %v12104_v52 = vld [vmem:[#allocation5 + $0x98] sm:$0xff]  ;;  %v12103_v47 = vld [vmem:[#allocation5 + $0x90] sm:$0xff] }
 0x406   :  { %6227 = vmatpush.bf16.msra.mxu3 %v10718_v62  ;;  %6202 = vmatpush.bf16.msra.mxu1 %v10698_v34 }
 0x407   :  { %6217 = vmatpush.bf16.msra.mxu2 %v10542_v27  ;;  %6192 = vmatpush.bf16.msra.mxu0 %v10522_v41  ;;  %v10667_v27 = vld [vmem:[#allocation3 + $0x178] sm:$0xf0] }
 0x408   :  { %v10670_v30 = vor.u32 %v12066_v2, %v10667_v27  ;;  %v10651_v41 = vld [vmem:[#allocation3 + $0x158] sm:$0xf0]  ;;  %v12086_v27 = vld [vmem:[#allocation5 + $0x8] sm:$0xff] }
 0x409   :  { %v10654_v63 = vor.u32 %v12062_v9, %v10651_v41  ;;  %v12096_v2 = vld [vmem:[#allocation5 + $0x58] sm:$0xff]  ;;  %v12085_v9 = vld [vmem:[#allocation5] sm:$0xff] }
 0x40a   :  { %6228 = vmatpush.bf16.msra.mxu3 %v10702_v20  ;;  %6203 = vmatpush.bf16.msra.mxu1 %v10682_v11  ;;  %v12099_v11 = vld [vmem:[#allocation5 + $0x70] sm:$0xff]  ;;  %v12105_v41 = vld [vmem:[#allocation5 + $0xa0] sm:$0xff] }
 0x40b   :  { %6218 = vmatpush.bf16.msra.mxu2 %v10526_v59  ;;  %6193 = vmatpush.bf16.msra.mxu0 %v10506_v38  ;;  %v12058_v59 = vld [vmem:[#allocation3 + $0x12c] sm:$0xf] }
 0x40c   :  { %v10638_v62 = vor.u32 %v12058_v59, %v10635_v54  ;;  %v12123_v59 = vld [vmem:[#allocation5 + $0x130] sm:$0xff]  ;;  %v12093_v54 = vld [vmem:[#allocation5 + $0x40] sm:$0xff] }
 0x40e   :  { %6229 = vmatpush.bf16.msra.mxu3 %v10686_v44  ;;  %6204 = vmatpush.bf16.msra.mxu1 %v10666_v5  ;;  %v12097_v44 = vld [vmem:[#allocation5 + $0x60] sm:$0xff]  ;;  %v12116_v5 = vld [vmem:[#allocation5 + $0xf8] sm:$0xff] }
 0x40f   :  { %6219 = vmatpush.bf16.msra.mxu2 %v10510_v42  ;;  %6194 = vmatpush.bf16.msra.mxu0 %v10490_v32  ;;  %v10622_v42 = vor.u32 %v12054_v58, %v10619_v31  ;;  %v12102_v31 = vld [vmem:[#allocation5 + $0x88] sm:$0xff] }
 0x412   :  { %6230 = vmatpush.bf16.msra.mxu3 %v10670_v30  ;;  %6205 = vmatpush.bf16.msra.mxu1 %v10650_v33  ;;  %v12106_v30 = vld [vmem:[#allocation5 + $0xa8] sm:$0xff]  ;;  %v12124_v33 = vld [vmem:[#allocation5 + $0x138] sm:$0xff] }
 0x413   :  { %6220 = vmatpush.bf16.msra.mxu2 %v10494_v18  ;;  %v12089_v18 = vld [vmem:[#allocation5 + $0x20] sm:$0xff] }
 0x416   :  { %6231 = vmatpush.bf16.msra.mxu3 %v10654_v63  ;;  %6206 = vmatpush.bf16.msra.mxu1 %v10634_v13  ;;  %v12094_v63 = vld [vmem:[#allocation5 + $0x48] sm:$0xff]  ;;  %v12113_v13 = vld [vmem:[#allocation5 + $0xe0] sm:$0xff] }
 0x41a   :  { %6232 = vmatpush.bf16.msra.mxu3 %v10638_v62  ;;  %6207 = vmatpush.bf16.msra.mxu1 %v10618_v3  ;;  %v12132_v62 = vld [vmem:[#allocation5 + $0x178] sm:$0xff]  ;;  %v12121_v3 = vld [vmem:[#allocation5 + $0x120] sm:$0xff] }
 0x41e   :  { %6233 = vmatpush.bf16.msra.mxu3 %v10622_v42  ;;  %v12130_v42 = vld [vmem:[#allocation5 + $0x168] sm:$0xff] }
 0x464   :  { %v5681_v45 = vpop.f32.mrf.mxu3 }
 0x465   :  { %v5682_v38 = vadd.f32 %v5681_v45, %v16988_v21  ;;  %v12112_v45 = vld [vmem:[#allocation5 + $0xd8] sm:$0xff] }
 0x467   :  { %v5737_v34 = vmax.f32 %v5682_v38, 0.0  ;;  %v12131_v38 = vld [vmem:[#allocation5 + $0x170] sm:$0xff] }
 0x469   :  { %v5739_v36 = vpack.c.bf16 %v5737_v34, %v5737_v34  ;;  %v12111_v34 = vld [vmem:[#allocation5 + $0xd0] sm:$0xff] }
 0x46b   :  { %6143 = vmatmul.bf16.vlgmr.msrb.gmra.mxu0 %v5739_v36  ;;  %6169 = vmatmul.bf16.vlgmr.msrb.gmra.mxu2 %v5739_v36 }
 0x46c   :  { %v5683_v20 = vpop.f32.mrf.mxu3  ;;  %6580 = vmatpush.bf16.msrb.mxu0 %v12092_v1  ;;  %6606 = vmatpush.bf16.msrb.mxu2 %v12108_v40  ;;  %v12120_v1 = vld [vmem:[#allocation5 + $0x118] sm:$0xff]  ;;  %v12138_v40 = vld [vmem:[#allocation5 + $0x1a8] sm:$0xff] }
 0x46d   :  { %v12140_v20 = vld [vmem:[#allocation5 + $0x1b8] sm:$0xff] }
 0x470   :  { %6581 = vmatpush.bf16.msrb.mxu0 %v12091_v49  ;;  %6607 = vmatpush.bf16.msrb.mxu2 %v12107_v46  ;;  %v12127_v46 = vld [vmem:[#allocation5 + $0x150] sm:$0xff] }
 0x474   :  { %v5733_v61 = vpop.f32.mrf.mxu3  ;;  %6582 = vmatpush.bf16.msrb.mxu0 %v12090_v7  ;;  %6608 = vmatpush.bf16.msrb.mxu2 %v12106_v30  ;;  %v12109_v7 = vld [vmem:[#allocation5 + $0xc0] sm:$0xff] }
 0x475   :  { %v5734_v21 = vadd.f32 %v5733_v61, %v16992_v57  ;;  %v12088_v57 = vld [vmem:[#allocation5 + $0x18] sm:$0xff]  ;;  %v12110_v61 = vld [vmem:[#allocation5 + $0xc8] sm:$0xff] }
 0x477   :  { %v5738_v24 = vmax.f32 %v5734_v21, 0.0  ;;  %v12129_v21 = vld [vmem:[#allocation5 + $0x160] sm:$0xff] }
 0x478   :  { %6583 = vmatpush.bf16.msrb.mxu0 %v12089_v18  ;;  %6609 = vmatpush.bf16.msrb.mxu2 %v12105_v41  ;;  %v12128_v18 = vld [vmem:[#allocation5 + $0x158] sm:$0xff] }
 0x479   :  { %v5740_v32 = vpack.c.bf16 %v5738_v24, %v5738_v24  ;;  %v16999_v24 = vld [vmem:[%s17065_s6] sm:$0xf] }
 0x47b   :  { %6156 = vmatmul.bf16.vlgmr.msrb.gmra.mxu1 %v5740_v32  ;;  %6182 = vmatmul.bf16.vlgmr.msrb.gmra.mxu3 %v5740_v32 }
 0x47c   :  { %6195 = vmatmul.bf16.vlgmr.msra.gmra.mxu0 %v5739_v36  ;;  %6221 = vmatmul.bf16.vlgmr.msra.gmra.mxu2 %v5739_v36  ;;  %v5735_v0 = vpop.f32.mrf.mxu3  ;;  %v12101_v36 = vld [vmem:[#allocation5 + $0x80] sm:$0xff] }
 0x47d   :  { %6593 = vmatpush.bf16.msrb.mxu1 %v12100_v10  ;;  %6584 = vmatpush.bf16.msrb.mxu0 %v12088_v57  ;;  %v12119_v10 = vld [vmem:[#allocation5 + $0x110] sm:$0xff]  ;;  %v12118_v57 = vld [vmem:[#allocation5 + $0x108] sm:$0xff] }
 0x47e   :  { %6619 = vmatpush.bf16.msrb.mxu3 %v12116_v5  ;;  %6610 = vmatpush.bf16.msrb.mxu2 %v12104_v52  ;;  %v12139_v0 = vld [vmem:[#allocation5 + $0x1b0] sm:$0xff]  ;;  %v12136_v52 = vld [vmem:[#allocation5 + $0x198] sm:$0xff] }
 0x481   :  { %6594 = vmatpush.bf16.msrb.mxu1 %v12099_v11  ;;  %6585 = vmatpush.bf16.msrb.mxu0 %v12087_v28  ;;  %v5807_v11 = vperm.slane %v16999_v24, 0 }
 0x482   :  { %6620 = vmatpush.bf16.msrb.mxu3 %v12115_v51  ;;  %6611 = vmatpush.bf16.msrb.mxu2 %v12103_v47  ;;  %v12117_v51 = vld [vmem:[#allocation5 + $0x100] sm:$0xff] }
 0x483   :  { %v12145_v47 = vld [vmem:[#allocation5 + $0x1e0] sm:$0xff] }
 0x485   :  { %6595 = vmatpush.bf16.msrb.mxu1 %v12098_v17  ;;  %6586 = vmatpush.bf16.msrb.mxu0 %v12086_v27  ;;  %v12148_v17 = vld [vmem:[#allocation5 + $0x1f8] sm:$0xff]  ;;  %v5808_v27 = vperm.slane %v16999_v24, 1 }
 0x486   :  { %6621 = vmatpush.bf16.msrb.mxu3 %v12114_v43  ;;  %6612 = vmatpush.bf16.msrb.mxu2 %v12102_v31 }
 0x489   :  { %6596 = vmatpush.bf16.msrb.mxu1 %v12097_v44  ;;  %6587 = vmatpush.bf16.msrb.mxu0 %v12085_v9  ;;  %v12137_v9 = vld [vmem:[#allocation5 + $0x1a0] sm:$0xff] }
 0x48a   :  { %6622 = vmatpush.bf16.msrb.mxu3 %v12113_v13  ;;  %6613 = vmatpush.bf16.msrb.mxu2 %v12101_v36  ;;  %v12134_v36 = vld [vmem:[#allocation5 + $0x188] sm:$0xff] }
 0x48b   :  { %6208 = vmatmul.bf16.vlgmr.msra.gmra.mxu1 %v5740_v32  ;;  %6234 = vmatmul.bf16.vlgmr.msra.gmra.mxu3 %v5740_v32 }
 0x48d   :  { %6597 = vmatpush.bf16.msrb.mxu1 %v12096_v2  ;;  %6900 = vmatpush.bf16.msra.mxu0 %v12124_v33  ;;  %v12147_v2 = vld [vmem:[#allocation5 + $0x1f0] sm:$0xff]  ;;  %v12126_v33 = vld [vmem:[#allocation5 + $0x148] sm:$0xff] }
 0x48e   :  { %6623 = vmatpush.bf16.msrb.mxu3 %v12112_v45  ;;  %6926 = vmatpush.bf16.msra.mxu2 %v12140_v20 }
 0x491   :  { %6598 = vmatpush.bf16.msrb.mxu1 %v12095_v60  ;;  %6901 = vmatpush.bf16.msra.mxu0 %v12123_v59 }
 0x492   :  { %6624 = vmatpush.bf16.msrb.mxu3 %v12111_v34  ;;  %6927 = vmatpush.bf16.msra.mxu2 %v12139_v0  ;;  %v12144_v34 = vld [vmem:[#allocation5 + $0x1d8] sm:$0xff] }
 0x495   :  { %6599 = vmatpush.bf16.msrb.mxu1 %v12094_v63  ;;  %6902 = vmatpush.bf16.msra.mxu0 %v12122_v26  ;;  %v12146_v63 = vld [vmem:[#allocation5 + $0x1e8] sm:$0xff] }
 0x496   :  { %6625 = vmatpush.bf16.msrb.mxu3 %v12110_v61  ;;  %6928 = vmatpush.bf16.msra.mxu2 %v12138_v40  ;;  %v12143_v61 = vld [vmem:[#allocation5 + $0x1d0] sm:$0xff] }
 0x499   :  { %6600 = vmatpush.bf16.msrb.mxu1 %v12093_v54  ;;  %6903 = vmatpush.bf16.msra.mxu0 %v12121_v3  ;;  %v5809_v3 = vperm.slane %v16999_v24, 2 }
 0x49a   :  { %6626 = vmatpush.bf16.msrb.mxu3 %v12109_v7  ;;  %6929 = vmatpush.bf16.msra.mxu2 %v12137_v9  ;;  %v12133_v7 = vld [vmem:[#allocation5 + $0x180] sm:$0xff] }
 0x49d   :  { %6913 = vmatpush.bf16.msra.mxu1 %v12132_v62  ;;  %6904 = vmatpush.bf16.msra.mxu0 %v12120_v1  ;;  %v12125_v62 = vld [vmem:[#allocation5 + $0x140] sm:$0xff] }
 0x49e   :  { %6939 = vmatpush.bf16.msra.mxu3 %v12148_v17  ;;  %6930 = vmatpush.bf16.msra.mxu2 %v12136_v52  ;;  %v12142_v17 = vld [vmem:[#allocation5 + $0x1c8] sm:$0xff] }
 0x4a1   :  { %6914 = vmatpush.bf16.msra.mxu1 %v12131_v38  ;;  %6905 = vmatpush.bf16.msra.mxu0 %v12119_v10  ;;  %v5810_v10 = vperm.slane %v16999_v24, 3 }
 0x4a2   :  { %6940 = vmatpush.bf16.msra.mxu3 %v12147_v2 }
 0x4a5   :  { %6915 = vmatpush.bf16.msra.mxu1 %v12130_v42  ;;  %6906 = vmatpush.bf16.msra.mxu0 %v12118_v57 }
 0x4a6   :  { %6941 = vmatpush.bf16.msra.mxu3 %v12146_v63 }
 0x4a9   :  { %6916 = vmatpush.bf16.msra.mxu1 %v12129_v21  ;;  %6907 = vmatpush.bf16.msra.mxu0 %v12117_v51 }
 0x4aa   :  { %6942 = vmatpush.bf16.msra.mxu3 %v12145_v47 }
 0x4ad   :  { %6917 = vmatpush.bf16.msra.mxu1 %v12128_v18 }
 0x4ae   :  { %6943 = vmatpush.bf16.msra.mxu3 %v12144_v34 }
 0x4b1   :  { %6918 = vmatpush.bf16.msra.mxu1 %v12127_v46 }
 0x4b2   :  { %6944 = vmatpush.bf16.msra.mxu3 %v12143_v61  ;;  %v12155_v61 = vld [vmem:[#allocation5 + $0x230] sm:$0xff] }
 0x4b5   :  { %6919 = vmatpush.bf16.msra.mxu1 %v12126_v33 }
 0x4b6   :  { %6945 = vmatpush.bf16.msra.mxu3 %v12142_v17 }
 0x4b9   :  { %6920 = vmatpush.bf16.msra.mxu1 %v12125_v62 }
 0x4e8   :  { %v6144_v58 = vpop.f32.mrf.mxu0 }
 0x4e9   :  { %v6145_v28 = vadd.f32 %v6144_v58, %v5807_v11  ;;  %v12135_v58 = vld [vmem:[#allocation5 + $0x190] sm:$0xff] }
 0x4ea   :  { %6931 = vmatpush.bf16.msra.mxu2 %v12135_v58  ;;  %v12156_v58 = vld [vmem:[#allocation5 + $0x238] sm:$0xff] }
 0x4ee   :  { %v6170_v49 = vpop.f32.mrf.mxu2  ;;  %6932 = vmatpush.bf16.msra.mxu2 %v12134_v36 }
 0x4ef   :  { %v6171_v43 = vadd.f32 %v6170_v49, %v5808_v27 }
 0x4f0   :  { %v6146_v32 = vpop.f32.mrf.mxu0 }
 0x4f2   :  { %6933 = vmatpush.bf16.msra.mxu2 %v12133_v7 }
 0x4f6   :  { %v6172_v44 = vpop.f32.mrf.mxu2 }
 0x4f8   :  { %v6157_v5 = vpop.f32.mrf.mxu1 }
 0x4f9   :  { %v6158_v30 = vadd.f32 %v6157_v5, %v6145_v28  ;;  %v6196_v60 = vpop.f32.mrf.mxu0  ;;  %v12141_v5 = vld [vmem:[#allocation5 + $0x1c0] sm:$0xff] }
 0x4fa   :  { %v6197_v20 = vadd.f32 %v6196_v60, %v5809_v3  ;;  %6946 = vmatpush.bf16.msra.mxu3 %v12141_v5 }
 0x4fb   :  { %v10735_v41 = vmul.f32 -1.442695, %v6158_v30 }
 0x4fd   :  { %12252 = vpow2.f32 %v10735_v41 }
 0x4fe   :  { %v6183_v59 = vpop.f32.mrf.mxu3 }
 0x4ff   :  { %v6184_v54 = vadd.f32 %v6183_v59, %v6171_v43  ;;  %v6222_v13 = vpop.f32.mrf.mxu2 }
 0x500   :  { %v6159_v26 = vpop.f32.mrf.mxu1  ;;  %v6223_v44 = vadd.f32 %v6222_v13, %v5810_v10 }
 0x501   :  { %v10736_v45 = vmul.f32 -1.442695, %v6184_v54  ;;  %v6198_v38 = vpop.f32.mrf.mxu0 }
 0x503   :  { %v12253_v31 = vpop.eup %12252  ;;  %12254 = vpow2.f32 %v10736_v45 }
 0x504   :  { %v6251_v42 = vadd.f32 1.0, %v12253_v31 }
 0x506   :  { %12256 = vrcp.f32 %v6251_v42  ;;  %v6185_v1 = vpop.f32.mrf.mxu3  ;;  %v6266_v27 = vand.u32 2147483648, %v6251_v42  ;;  %v6264_v60 = vand.u32 2147483647, %v6251_v42  ;;  %vm6260_vm1 = vweird.f32 %v6251_v42 }
 0x507   :  { %v6224_v49 = vpop.f32.mrf.mxu2 }
 0x508   :  { %v6209_v21 = vpop.f32.mrf.mxu1  ;;  %v6267_v43 = vor.u32 1.1754944e-38, %v6266_v27  ;;  %vm6265_vm3 = vcmp.eq.f32.partialorder %v6264_v60, 8.507059e+37  ;;  %v12162_v60 = vld [vmem:[#allocation5 + $0x268] sm:$0xff] }
 0x509   :  { %v12255_v32 = vpop.eup %12254  ;;  %v6210_v0 = vadd.f32 %v6209_v21, %v6197_v20 }
 0x50a   :  { %v6252_v11 = vadd.f32 1.0, %v12255_v32  ;;  %v12164_v32 = vld [vmem:[#allocation5 + $0x278] sm:$0xff] }
 0x50b   :  { %v10737_v18 = vmul.f32 -1.442695, %v6210_v0 }
 0x50c   :  { %v12257_v57 = vpop.eup %12256  ;;  %12258 = vrcp.f32 %v6252_v11  ;;  %v6281_v62 = vand.u32 2147483648, %v6252_v11  ;;  %v6279_v45 = vand.u32 2147483647, %v6252_v11  ;;  %vm6275_vm5 = vweird.f32 %v6252_v11 }
 0x50d   :  { %v6256_v40 = vmul.f32 %v12257_v57, %v6251_v42  ;;  %12260 = vpow2.f32 %v10737_v18  ;;  %vm6261_vm0 = vweird.f32 %v12257_v57 }
 0x50e   :  { %v6235_v28 = vpop.f32.mrf.mxu3  ;;  %vm6262_vm2 = vmor %vm6260_vm1, %vm6261_vm0  ;;  %v6282_v42 = vor.u32 1.1754944e-38, %v6281_v62  ;;  %vm6280_vm7 = vcmp.eq.f32.partialorder %v6279_v45, 8.507059e+37  ;;  %v12171_v45 = vld [vmem:[#allocation5 + $0x2b0] sm:$0xff] }
 0x50f   :  { %v6257_v46 = vsub.f32 1.0, %v6256_v40  ;;  %v6236_v2 = vadd.f32 %v6235_v28, %v6223_v44  ;;  %v12163_v40 = vld [vmem:[#allocation5 + $0x270] sm:$0xff] }
 0x510   :  { %v6211_v30 = vpop.f32.mrf.mxu1 }
 0x511   :  { %v6258_v24 = vmul.f32 %v12257_v57, %v6257_v46  ;;  %v10738_v51 = vmul.f32 -1.442695, %v6236_v2 }
 0x512   :  { %v12259_v9 = vpop.eup %12258 }
 0x513   :  { %v12261_v41 = vpop.eup %12260  ;;  %v6259_v33 = vadd.f32 %v12257_v57, %v6258_v24  ;;  %v6271_v63 = vmul.f32 %v12259_v9, %v6252_v11  ;;  %12262 = vpow2.f32 %v10738_v51  ;;  %vm6276_vm4 = vweird.f32 %v12259_v9  ;;  %v12154_v11 = vld [vmem:[#allocation5 + $0x228] sm:$0xff] }
 0x514   :  { %v6253_v52 = vadd.f32 1.0, %v12261_v41  ;;  %vm6277_vm6 = vmor %vm6275_vm5, %vm6276_vm4 }
 0x515   :  { %v6263_v59 = vsel %vm6262_vm2, %v12257_v57, %v6259_v33  ;;  %v6272_v54 = vsub.f32 1.0, %v6271_v63  ;;  %v12152_v33 = vld [vmem:[#allocation5 + $0x218] sm:$0xff] }
 0x516   :  { %v17005_v13 = vsel %vm6265_vm3, %v6267_v43, %v6263_v59  ;;  %12264 = vrcp.f32 %v6253_v52  ;;  %v6237_v47 = vpop.f32.mrf.mxu3  ;;  %v6296_v7 = vand.u32 2147483648, %v6253_v52  ;;  %v6294_v17 = vand.u32 2147483647, %v6253_v52  ;;  %v12172_v63 = vld [vmem:[#allocation5 + $0x2b8] sm:$0xff] }
 0x517   :  { %v6273_v26 = vmul.f32 %v12259_v9, %v6272_v54  ;;  %v6316_v38 = vmul.f32 %v17005_v13, %v17165_v14  ;;  %vm6290_vm9 = vweird.f32 %v6253_v52  ;;  %v6636_v27 = vmul.f32 %v17005_v13, %v17166_v16  ;;  %v12161_v54 = vld [vmem:[#allocation5 + $0x260] sm:$0xff] }
 0x518   :  { %v6297_v46 = vor.u32 1.1754944e-38, %v6296_v7  ;;  %vm6295_vm11 = vcmp.eq.f32.partialorder %v6294_v17, 8.507059e+37  ;;  %v12157_v17 = vld [vmem:[#allocation5 + $0x240] sm:$0xff] }
 0x519   :  { %v12263_v31 = vpop.eup %12262  ;;  %v6274_v3 = vadd.f32 %v12259_v9, %v6273_v26  ;;  %v6320_v34 = vpack.c.bf16 %v6316_v38, %v6316_v38  ;;  %v6640_v59 = vpack.c.bf16 %v6636_v27, %v6636_v27  ;;  %v12166_v27 = vld [vmem:[#allocation5 + $0x288] sm:$0xff] }
 0x51a   :  { %v6254_v36 = vadd.f32 1.0, %v12263_v31  ;;  %v12180_v31 = vld [vmem:[#allocation5 + $0x2f8] sm:$0xff] }
 0x51b   :  { %v6278_v1 = vsel %vm6277_vm6, %v12259_v9, %v6274_v3  ;;  %6588 = vmatmul.bf16.vlgmr.msrb.gmra.mxu0 %v6320_v34 }
 0x51c   :  { %v12265_v20 = vpop.eup %12264  ;;  %v17009_v49 = vsel %vm6280_vm7, %v6282_v42, %v6278_v1  ;;  %12266 = vrcp.f32 %v6254_v36  ;;  %7217 = vmatpush.bf16.msrb.mxu0 %v12156_v58  ;;  %v6311_v24 = vand.u32 2147483648, %v6254_v36  ;;  %v6309_v9 = vand.u32 2147483647, %v6254_v36  ;;  %v12160_v58 = vld [vmem:[#allocation5 + $0x258] sm:$0xff]  ;;  %v12150_v42 = vld [vmem:[#allocation5 + $0x208] sm:$0xff]  ;;  %v12179_v1 = vld [vmem:[#allocation5 + $0x2f0] sm:$0xff] }
 0x51d   :  { %v6286_v21 = vmul.f32 %v12265_v20, %v6253_v52  ;;  %v6317_v14 = vmul.f32 %v17009_v49, %v17168_v8  ;;  %vm6291_vm8 = vweird.f32 %v12265_v20  ;;  %v12153_v8 = vld [vmem:[#allocation5 + $0x220] sm:$0xff]  ;;  %vm6305_vm13 = vweird.f32 %v6254_v36 }
 0x51e   :  { %vm6292_vm10 = vmor %vm6290_vm9, %vm6291_vm8  ;;  %v6312_v16 = vor.u32 1.1754944e-38, %v6311_v24  ;;  %vm6310_vm15 = vcmp.eq.f32.partialorder %v6309_v9, 8.507059e+37  ;;  %v6637_v47 = vmul.f32 %v17009_v49, %v17169_v12  ;;  %v12159_v12 = vld [vmem:[#allocation5 + $0x250] sm:$0xff]  ;;  %v12185_v24 = vld [vmem:[#allocation5 + $0x320] sm:$0xff] }
 0x51f   :  { %v6287_v10 = vsub.f32 1.0, %v6286_v21  ;;  %v6321_v0 = vpack.c.bf16 %v6317_v14, %v6317_v14  ;;  %v6953_v14 = vmul.f32 %v17005_v13, %v17170_v35  ;;  %v12204_v9 = vld [vmem:[#allocation5 + $0x3b8] sm:$0xff] }
 0x520   :  { %7218 = vmatpush.bf16.msrb.mxu0 %v12155_v61  ;;  %v6641_v34 = vpack.c.bf16 %v6637_v47, %v6637_v47  ;;  %v12169_v61 = vld [vmem:[#allocation5 + $0x2a0] sm:$0xff] }
 0x521   :  { %v6288_v18 = vmul.f32 %v12265_v20, %v6287_v10  ;;  %6601 = vmatmul.bf16.vlgmr.msrb.gmra.mxu1 %v6321_v0  ;;  %v12178_v10 = vld [vmem:[#allocation5 + $0x2e8] sm:$0xff]  ;;  %v12168_v0 = vld [vmem:[#allocation5 + $0x298] sm:$0xff] }
 0x522   :  { %v12267_v57 = vpop.eup %12266  ;;  %7230 = vmatpush.bf16.msrb.mxu1 %v12164_v32  ;;  %v12158_v32 = vld [vmem:[#allocation5 + $0x248] sm:$0xff] }
 0x523   :  { %v6289_v44 = vadd.f32 %v12265_v20, %v6288_v18  ;;  %v6301_v28 = vmul.f32 %v12267_v57, %v6254_v36  ;;  %vm6306_vm12 = vweird.f32 %v12267_v57  ;;  %v12170_v36 = vld [vmem:[#allocation5 + $0x2a8] sm:$0xff]  ;;  %v12187_v18 = vld [vmem:[#allocation5 + $0x330] sm:$0xff] }
 0x524   :  { %7219 = vmatpush.bf16.msrb.mxu0 %v12154_v11  ;;  %vm6307_vm14 = vmor %vm6305_vm13, %vm6306_vm12  ;;  %v6957_v11 = vpack.c.bf16 %v6953_v14, %v6953_v14  ;;  %v7271_v14 = vmul.f32 %v17009_v49, %v17173_v22  ;;  %v12197_v22 = vld [vmem:[#allocation5 + $0x380] sm:$0xff] }
 0x525   :  { %v6293_v2 = vsel %vm6292_vm10, %v12265_v20, %v6289_v44  ;;  %v6302_v5 = vsub.f32 1.0, %v6301_v28  ;;  %v12149_v20 = vld [vmem:[#allocation5 + $0x200] sm:$0xff]  ;;  %v6954_v44 = vmul.f32 %v17009_v49, %v17171_v6  ;;  %v12186_v28 = vld [vmem:[#allocation5 + $0x328] sm:$0xff] }
 0x526   :  { %v17015_v30 = vsel %vm6295_vm11, %v6297_v46, %v6293_v2  ;;  %7231 = vmatpush.bf16.msrb.mxu1 %v12163_v40  ;;  %v12167_v40 = vld [vmem:[#allocation5 + $0x290] sm:$0xff]  ;;  %v12176_v46 = vld [vmem:[#allocation5 + $0x2d8] sm:$0xff]  ;;  %v12165_v6 = vld [vmem:[#allocation5 + $0x280] sm:$0xff] }
 0x527   :  { %v6303_v51 = vmul.f32 %v12267_v57, %v6302_v5  ;;  %v6318_v41 = vmul.f32 %v17015_v30, %v16229_v29  ;;  %v12151_v29 = vld [vmem:[#allocation5 + $0x210] sm:$0xff]  ;;  %v6638_v21 = vmul.f32 %v17015_v30, %v16282_v37  ;;  %v12196_v37 = vld [vmem:[#allocation5 + $0x378] sm:$0xff]  ;;  %v6958_v5 = vpack.c.bf16 %v6954_v44, %v6954_v44  ;;  %v12206_v44 = vld [vmem:[#allocation5 + $0x3c8] sm:$0xff] }
 0x528   :  { %7220 = vmatpush.bf16.msrb.mxu0 %v12153_v8  ;;  %v12195_v2 = vld [vmem:[#allocation5 + $0x370] sm:$0xff] }
 0x529   :  { %v6304_v43 = vadd.f32 %v12267_v57, %v6303_v51  ;;  %v6322_v52 = vpack.c.bf16 %v6318_v41, %v6318_v41  ;;  %v6642_v7 = vpack.c.bf16 %v6638_v21, %v6638_v21  ;;  %v12184_v51 = vld [vmem:[#allocation5 + $0x318] sm:$0xff]  ;;  %v6955_v41 = vmul.f32 %v17015_v30, %v16339_v25  ;;  %v12182_v25 = vld [vmem:[#allocation5 + $0x308] sm:$0xff] }
 0x52a   :  { %7232 = vmatpush.bf16.msrb.mxu1 %v12162_v60  ;;  %v12194_v60 = vld [vmem:[#allocation5 + $0x368] sm:$0xff]  ;;  %v12228_v21 = vld [vmem:[#allocation5 + $0x478] sm:$0xff] }
 0x52b   :  { %v6308_v62 = vsel %vm6307_vm14, %v12267_v57, %v6304_v43  ;;  %6614 = vmatmul.bf16.vlgmr.msrb.gmra.mxu2 %v6322_v52  ;;  %6908 = vmatmul.bf16.vlgmr.msra.gmra.mxu0 %v6640_v59  ;;  %v12177_v57 = vld [vmem:[#allocation5 + $0x2e0] sm:$0xff]  ;;  %v6959_v43 = vpack.c.bf16 %v6955_v41, %v6955_v41  ;;  %v12183_v52 = vld [vmem:[#allocation5 + $0x310] sm:$0xff] }
 0x52c   :  { %v17021_v26 = vsel %vm6310_vm15, %v6312_v16, %v6308_v62  ;;  %7221 = vmatpush.bf16.msrb.mxu0 %v12152_v33  ;;  %7243 = vmatpush.bf16.msrb.mxu2 %v12172_v63  ;;  %v12174_v33 = vld [vmem:[#allocation5 + $0x2c8] sm:$0xff]  ;;  %v12193_v63 = vld [vmem:[#allocation5 + $0x360] sm:$0xff]  ;;  %v12203_v59 = vld [vmem:[#allocation5 + $0x3b0] sm:$0xff] }
 0x52d   :  { %v6319_v38 = vmul.f32 %v17021_v26, %v16966_v19  ;;  %v12188_v19 = vld [vmem:[#allocation5 + $0x338] sm:$0xff]  ;;  %v6639_v35 = vmul.f32 %v17021_v26, %v16963_v48  ;;  %v12175_v48 = vld [vmem:[#allocation5 + $0x2d0] sm:$0xff]  ;;  %v12173_v16 = vld [vmem:[#allocation5 + $0x2c0] sm:$0xff]  ;;  %v6956_v47 = vmul.f32 %v17021_v26, %v16968_v55 }
 0x52e   :  { %7233 = vmatpush.bf16.msrb.mxu1 %v12161_v54  ;;  %v12192_v54 = vld [vmem:[#allocation5 + $0x358] sm:$0xff]  ;;  %v12190_v55 = vld [vmem:[#allocation5 + $0x348] sm:$0xff]  ;;  %v12213_v41 = vld [vmem:[#allocation5 + $0x400] sm:$0xff] }
 0x52f   :  { %v6323_v3 = vpack.c.bf16 %v6319_v38, %v6319_v38  ;;  %v6643_v8 = vpack.c.bf16 %v6639_v35, %v6639_v35  ;;  %v12212_v62 = vld [vmem:[#allocation5 + $0x3f8] sm:$0xff]  ;;  %v12211_v38 = vld [vmem:[#allocation5 + $0x3f0] sm:$0xff] }
 0x530   :  { %7222 = vmatpush.bf16.msrb.mxu0 %v12151_v29  ;;  %7244 = vmatpush.bf16.msrb.mxu2 %v12171_v45  ;;  %v12202_v29 = vld [vmem:[#allocation5 + $0x3a8] sm:$0xff]  ;;  %v12191_v45 = vld [vmem:[#allocation5 + $0x350] sm:$0xff]  ;;  %v12236_v35 = vld [vmem:[#allocation5 + $0x4b8] sm:$0xff] }
 0x531   :  { %6627 = vmatmul.bf16.vlgmr.msrb.gmra.mxu3 %v6323_v3  ;;  %6921 = vmatmul.bf16.vlgmr.msra.gmra.mxu1 %v6641_v34  ;;  %v12201_v3 = vld [vmem:[#allocation5 + $0x3a0] sm:$0xff]  ;;  %v12220_v34 = vld [vmem:[#allocation5 + $0x438] sm:$0xff] }
 0x532   :  { %7234 = vmatpush.bf16.msrb.mxu1 %v12160_v58  ;;  %7256 = vmatpush.bf16.msrb.mxu3 %v12180_v31  ;;  %v6960_v58 = vpack.c.bf16 %v6956_v47, %v6956_v47  ;;  %v12181_v31 = vld [vmem:[#allocation5 + $0x300] sm:$0xff]  ;;  %v12231_v47 = vld [vmem:[#allocation5 + $0x490] sm:$0xff] }
 0x534   :  { %7223 = vmatpush.bf16.msrb.mxu0 %v12150_v42  ;;  %7245 = vmatpush.bf16.msrb.mxu2 %v12170_v36  ;;  %v7270_v42 = vmul.f32 %v17005_v13, %v17172_v15  ;;  %v12210_v36 = vld [vmem:[#allocation5 + $0x3e8] sm:$0xff]  ;;  %v12199_v15 = vld [vmem:[#allocation5 + $0x390] sm:$0xff] }
 0x536   :  { %7235 = vmatpush.bf16.msrb.mxu1 %v12159_v12  ;;  %7257 = vmatpush.bf16.msrb.mxu3 %v12179_v1  ;;  %v12200_v12 = vld [vmem:[#allocation5 + $0x398] sm:$0xff]  ;;  %v7274_v1 = vpack.c.bf16 %v7270_v42, %v7270_v42 }
 0x538   :  { %7224 = vmatpush.bf16.msrb.mxu0 %v12149_v20  ;;  %7246 = vmatpush.bf16.msrb.mxu2 %v12169_v61  ;;  %v12219_v20 = vld [vmem:[#allocation5 + $0x430] sm:$0xff]  ;;  %v12189_v61 = vld [vmem:[#allocation5 + $0x340] sm:$0xff] }
 0x53a   :  { %7236 = vmatpush.bf16.msrb.mxu1 %v12158_v32  ;;  %7258 = vmatpush.bf16.msrb.mxu3 %v12178_v10  ;;  %v12218_v32 = vld [vmem:[#allocation5 + $0x428] sm:$0xff]  ;;  %v12208_v10 = vld [vmem:[#allocation5 + $0x3d8] sm:$0xff] }
 0x53b   :  { %6934 = vmatmul.bf16.vlgmr.msra.gmra.mxu2 %v6642_v7  ;;  %7225 = vmatmul.bf16.vlgmr.msrb.gmra.mxu0 %v6957_v11  ;;  %v12227_v7 = vld [vmem:[#allocation5 + $0x470] sm:$0xff]  ;;  %v12198_v11 = vld [vmem:[#allocation5 + $0x388] sm:$0xff] }
 0x53c   :  { %7534 = vmatpush.bf16.msra.mxu0 %v12188_v19  ;;  %7247 = vmatpush.bf16.msrb.mxu2 %v12168_v0  ;;  %v12209_v19 = vld [vmem:[#allocation5 + $0x3e0] sm:$0xff]  ;;  %v7275_v0 = vpack.c.bf16 %v7271_v14, %v7271_v14 }
 0x53e   :  { %7237 = vmatpush.bf16.msrb.mxu1 %v12157_v17  ;;  %7259 = vmatpush.bf16.msrb.mxu3 %v12177_v57  ;;  %v12207_v17 = vld [vmem:[#allocation5 + $0x3d0] sm:$0xff]  ;;  %v12226_v57 = vld [vmem:[#allocation5 + $0x468] sm:$0xff] }
 0x540   :  { %7535 = vmatpush.bf16.msra.mxu0 %v12187_v18  ;;  %7248 = vmatpush.bf16.msrb.mxu2 %v12167_v40  ;;  %v12217_v18 = vld [vmem:[#allocation5 + $0x420] sm:$0xff]  ;;  %v7272_v40 = vmul.f32 %v17015_v30, %v16392_v23  ;;  %v12214_v23 = vld [vmem:[#allocation5 + $0x408] sm:$0xff] }
 0x541   :  { %6947 = vmatmul.bf16.vlgmr.msra.gmra.mxu3 %v6643_v8  ;;  %7238 = vmatmul.bf16.vlgmr.msrb.gmra.mxu1 %v6958_v5  ;;  %v12215_v8 = vld [vmem:[#allocation5 + $0x410] sm:$0xff]  ;;  %v12205_v5 = vld [vmem:[#allocation5 + $0x3c0] sm:$0xff] }
 0x542   :  { %7547 = vmatpush.bf16.msra.mxu1 %v12196_v37  ;;  %7260 = vmatpush.bf16.msrb.mxu3 %v12176_v46  ;;  %v12216_v37 = vld [vmem:[#allocation5 + $0x418] sm:$0xff]  ;;  %v7276_v46 = vpack.c.bf16 %v7272_v40, %v7272_v40 }
 0x544   :  { %7536 = vmatpush.bf16.msra.mxu0 %v12186_v28  ;;  %7249 = vmatpush.bf16.msrb.mxu2 %v12166_v27  ;;  %v12225_v28 = vld [vmem:[#allocation5 + $0x460] sm:$0xff]  ;;  %v12224_v27 = vld [vmem:[#allocation5 + $0x458] sm:$0xff] }
 0x546   :  { %7548 = vmatpush.bf16.msra.mxu1 %v12195_v2  ;;  %7261 = vmatpush.bf16.msrb.mxu3 %v12175_v48  ;;  %v12235_v2 = vld [vmem:[#allocation5 + $0x4b0] sm:$0xff]  ;;  %v7273_v48 = vmul.f32 %v17021_v26, %v16972_v4  ;;  %v12222_v4 = vld [vmem:[#allocation5 + $0x448] sm:$0xff] }
 0x548   :  { %7537 = vmatpush.bf16.msra.mxu0 %v12185_v24  ;;  %7250 = vmatpush.bf16.msrb.mxu2 %v12165_v6  ;;  %v12244_v24 = vld [vmem:[#allocation5 + $0x4f8] sm:$0xff]  ;;  %v7277_v6 = vpack.c.bf16 %v7273_v48, %v7273_v48 }
 0x54a   :  { %7549 = vmatpush.bf16.msra.mxu1 %v12194_v60  ;;  %7262 = vmatpush.bf16.msrb.mxu3 %v12174_v33  ;;  %v12234_v60 = vld [vmem:[#allocation5 + $0x4a8] sm:$0xff]  ;;  %v12233_v33 = vld [vmem:[#allocation5 + $0x4a0] sm:$0xff] }
 0x54b   :  { %7251 = vmatmul.bf16.vlgmr.msrb.gmra.mxu2 %v6959_v43  ;;  %v12242_v43 = vld [vmem:[#allocation5 + $0x4e8] sm:$0xff] }
 0x54c   :  { %7538 = vmatpush.bf16.msra.mxu0 %v12184_v51  ;;  %7560 = vmatpush.bf16.msra.mxu2 %v12204_v9  ;;  %v12223_v51 = vld [vmem:[#allocation5 + $0x450] sm:$0xff] }
 0x54d   :  { %v12243_v9 = vld [vmem:[#allocation5 + $0x4f0] sm:$0xff] }
 0x54e   :  { %7550 = vmatpush.bf16.msra.mxu1 %v12193_v63  ;;  %7263 = vmatpush.bf16.msrb.mxu3 %v12173_v16  ;;  %v7587_v63 = vmul.f32 %v17005_v13, %v17174_v50  ;;  %v12221_v16 = vld [vmem:[#allocation5 + $0x440] sm:$0xff]  ;;  %v12240_v50 = vld [vmem:[#allocation5 + $0x4d8] sm:$0xff] }
 0x550   :  { %7539 = vmatpush.bf16.msra.mxu0 %v12183_v52  ;;  %7561 = vmatpush.bf16.msra.mxu2 %v12203_v59  ;;  %v7591_v52 = vpack.c.bf16 %v7587_v63, %v7587_v63  ;;  %v12232_v59 = vld [vmem:[#allocation5 + $0x498] sm:$0xff] }
 0x551   :  { %7264 = vmatmul.bf16.vlgmr.msrb.gmra.mxu3 %v6960_v58  ;;  %v7589_v58 = vmul.f32 %v17015_v30, %v16434_v53 }
 0x552   :  { %7551 = vmatpush.bf16.msra.mxu1 %v12192_v54  ;;  %7573 = vmatpush.bf16.msra.mxu3 %v12212_v62  ;;  %v12241_v54 = vld [vmem:[#allocation5 + $0x4e0] sm:$0xff]  ;;  %v7588_v62 = vmul.f32 %v17009_v49, %v17175_v56 }
 0x553   :  { %v7593_v56 = vpack.c.bf16 %v7589_v58, %v7589_v58  ;;  %v12237_v49 = vld [vmem:[#allocation5 + $0x4c0] sm:$0xff] }
 0x554   :  { %7540 = vmatpush.bf16.msra.mxu0 %v12182_v25  ;;  %7562 = vmatpush.bf16.msra.mxu2 %v12202_v29  ;;  %v7592_v13 = vpack.c.bf16 %v7588_v62, %v7588_v62  ;;  %v12230_v25 = vld [vmem:[#allocation5 + $0x488] sm:$0xff]  ;;  %v12239_v29 = vld [vmem:[#allocation5 + $0x4d0] sm:$0xff] }
 0x556   :  { %7552 = vmatpush.bf16.msra.mxu1 %v12191_v45  ;;  %7574 = vmatpush.bf16.msra.mxu3 %v12211_v38  ;;  %v12229_v45 = vld [vmem:[#allocation5 + $0x480] sm:$0xff]  ;;  %v12238_v38 = vld [vmem:[#allocation5 + $0x4c8] sm:$0xff] }
 0x558   :  { %7541 = vmatpush.bf16.msra.mxu0 %v12181_v31  ;;  %7563 = vmatpush.bf16.msra.mxu2 %v12201_v3  ;;  %v7590_v31 = vmul.f32 %v17021_v26, %v16976_v39 }
 0x55a   :  { %7553 = vmatpush.bf16.msra.mxu1 %v12190_v55  ;;  %7575 = vmatpush.bf16.msra.mxu3 %v12210_v36  ;;  %v7594_v3 = vpack.c.bf16 %v7590_v31, %v7590_v31 }
 0x55b   :  { %7542 = vmatmul.bf16.vlgmr.msra.gmra.mxu0 %v7274_v1 }
 0x55c   :  { %7851 = vmatpush.bf16.msrb.mxu0 %v12220_v34  ;;  %7564 = vmatpush.bf16.msra.mxu2 %v12200_v12 }
 0x55e   :  { %7554 = vmatpush.bf16.msra.mxu1 %v12189_v61  ;;  %7576 = vmatpush.bf16.msra.mxu3 %v12209_v19 }
 0x560   :  { %7852 = vmatpush.bf16.msrb.mxu0 %v12219_v20  ;;  %7565 = vmatpush.bf16.msra.mxu2 %v12199_v15 }
 0x561   :  { %7555 = vmatmul.bf16.vlgmr.msra.gmra.mxu1 %v7275_v0 }
 0x562   :  { %7864 = vmatpush.bf16.msrb.mxu1 %v12228_v21  ;;  %7577 = vmatpush.bf16.msra.mxu3 %v12208_v10 }
 0x564   :  { %7853 = vmatpush.bf16.msrb.mxu0 %v12218_v32  ;;  %7566 = vmatpush.bf16.msra.mxu2 %v12198_v11 }
 0x566   :  { %7865 = vmatpush.bf16.msrb.mxu1 %v12227_v7  ;;  %7578 = vmatpush.bf16.msra.mxu3 %v12207_v17  ;;  %v12251_v17 = vld [vmem:[%s17067_s8] ss:$0 sm:$0xff] }
 0x568   :  { %7854 = vmatpush.bf16.msrb.mxu0 %v12217_v18  ;;  %7567 = vmatpush.bf16.msra.mxu2 %v12197_v22 }
 0x56a   :  { %7866 = vmatpush.bf16.msrb.mxu1 %v12226_v57  ;;  %7579 = vmatpush.bf16.msra.mxu3 %v12206_v44 }
 0x56b   :  { %7568 = vmatmul.bf16.vlgmr.msra.gmra.mxu2 %v7276_v46 }
 0x56c   :  { %7855 = vmatpush.bf16.msrb.mxu0 %v12216_v37  ;;  %7877 = vmatpush.bf16.msrb.mxu2 %v12236_v35 }
 0x56e   :  { %7867 = vmatpush.bf16.msrb.mxu1 %v12225_v28  ;;  %7580 = vmatpush.bf16.msra.mxu3 %v12205_v5 }
 0x570   :  { %7856 = vmatpush.bf16.msrb.mxu0 %v12215_v8  ;;  %7878 = vmatpush.bf16.msrb.mxu2 %v12235_v2 }
 0x571   :  { %7581 = vmatmul.bf16.vlgmr.msra.gmra.mxu3 %v7277_v6 }
 0x572   :  { %7868 = vmatpush.bf16.msrb.mxu1 %v12224_v27  ;;  %7890 = vmatpush.bf16.msrb.mxu3 %v12244_v24 }
 0x574   :  { %7857 = vmatpush.bf16.msrb.mxu0 %v12214_v23  ;;  %7879 = vmatpush.bf16.msrb.mxu2 %v12234_v60 }
 0x576   :  { %7869 = vmatpush.bf16.msrb.mxu1 %v12223_v51  ;;  %7891 = vmatpush.bf16.msrb.mxu3 %v12243_v9 }
 0x578   :  { %7858 = vmatpush.bf16.msrb.mxu0 %v12213_v41  ;;  %7880 = vmatpush.bf16.msrb.mxu2 %v12233_v33 }
 0x57a   :  { %7870 = vmatpush.bf16.msrb.mxu1 %v12222_v4  ;;  %7892 = vmatpush.bf16.msrb.mxu3 %v12242_v43 }
 0x57b   :  { %7859 = vmatmul.bf16.vlgmr.msrb.gmra.mxu0 %v7591_v52 }
 0x57c   :  { %7881 = vmatpush.bf16.msrb.mxu2 %v12232_v59 }
 0x57e   :  { %7871 = vmatpush.bf16.msrb.mxu1 %v12221_v16  ;;  %7893 = vmatpush.bf16.msrb.mxu3 %v12241_v54 }
 0x580   :  { %7882 = vmatpush.bf16.msrb.mxu2 %v12231_v47 }
 0x581   :  { %7872 = vmatmul.bf16.vlgmr.msrb.gmra.mxu1 %v7592_v13 }
 0x582   :  { %7894 = vmatpush.bf16.msrb.mxu3 %v12240_v50 }
 0x584   :  { %7883 = vmatpush.bf16.msrb.mxu2 %v12230_v25 }
 0x586   :  { %7895 = vmatpush.bf16.msrb.mxu3 %v12239_v29 }
 0x588   :  { %7884 = vmatpush.bf16.msrb.mxu2 %v12229_v45 }
 0x58a   :  { %7896 = vmatpush.bf16.msrb.mxu3 %v12238_v38 }
 0x58b   :  { %7885 = vmatmul.bf16.vlgmr.msrb.gmra.mxu2 %v7593_v56 }
 0x58e   :  { %7897 = vmatpush.bf16.msrb.mxu3 %v12237_v49 }
 0x591   :  { %7898 = vmatmul.bf16.vlgmr.msrb.gmra.mxu3 %v7594_v3 }
 0x598   :  { %v6589_v34 = vpop.f32.mrf.mxu0 }
 0x59e   :  { %v6602_v42 = vpop.f32.mrf.mxu1 }
 0x59f   :  { %v6603_v55 = vadd.f32 %v6602_v42, %v6589_v34 }
 0x5a0   :  { %v6591_v36 = vpop.f32.mrf.mxu0 }
 0x5a6   :  { %v6604_v12 = vpop.f32.mrf.mxu1 }
 0x5a8   :  { %v6909_v1 = vpop.f32.mrf.mxu0 }
 0x5ae   :  { %v6615_v20 = vpop.f32.mrf.mxu2  ;;  %v6922_v61 = vpop.f32.mrf.mxu1 }
 0x5af   :  { %v6616_v53 = vadd.f32 %v6615_v20, %v6603_v55  ;;  %v6923_v30 = vadd.f32 %v6922_v61, %v6909_v1 }
 0x5b0   :  { %v6911_v19 = vpop.f32.mrf.mxu0 }
 0x5b4   :  { %v6628_v21 = vpop.f32.mrf.mxu3 }
 0x5b5   :  { %v6629_v14 = vadd.f32 %v6628_v21, %v6616_v53 }
 0x5b6   :  { %v6617_v15 = vpop.f32.mrf.mxu2  ;;  %v6924_v32 = vpop.f32.mrf.mxu1 }
 0x5b7   :  { %v6635_v22 = vadd.f32 %v12251_v17, %v6629_v14 }
 0x5b8   :  { %v7226_v39 = vpop.f32.mrf.mxu0 }
 0x5bc   :  { %v6630_v26 = vpop.f32.mrf.mxu3 }
 0x5be   :  { %v6935_v10 = vpop.f32.mrf.mxu2  ;;  %v7239_v7 = vpop.f32.mrf.mxu1 }
 0x5bf   :  { %v6936_v0 = vadd.f32 %v6935_v10, %v6923_v30  ;;  %v7240_v11 = vadd.f32 %v7239_v7, %v7226_v39 }
 0x5c0   :  { %v7228_v18 = vpop.f32.mrf.mxu0 }
 0x5c4   :  { %v6948_v57 = vpop.f32.mrf.mxu3 }
 0x5c5   :  { %v6949_v37 = vadd.f32 %v6948_v57, %v6936_v0 }
 0x5c6   :  { %v6937_v35 = vpop.f32.mrf.mxu2  ;;  %v7241_v44 = vpop.f32.mrf.mxu1 }
 0x5c7   :  { %v6952_v40 = vadd.f32 %v6949_v37, %v6635_v22 }
 0x5cc   :  { %v6950_v28 = vpop.f32.mrf.mxu3 }
 0x5ce   :  { %v7252_v46 = vpop.f32.mrf.mxu2 }
 0x5cf   :  { %v7253_v8 = vadd.f32 %v7252_v46, %v7240_v11 }
 0x5d4   :  { %v7265_v2 = vpop.f32.mrf.mxu3 }
 0x5d5   :  { %v7266_v27 = vadd.f32 %v7265_v2, %v7253_v8 }
 0x5d6   :  { %v7254_v24 = vpop.f32.mrf.mxu2 }
 0x5d7   :  { %v7269_v48 = vadd.f32 %v7266_v27, %v6952_v40 }
 0x5d8   :  { %v7543_v5 = vpop.f32.mrf.mxu0 }
 0x5dc   :  { %v7267_v60 = vpop.f32.mrf.mxu3 }
 0x5de   :  { %v7556_v23 = vpop.f32.mrf.mxu1 }
 0x5df   :  { %v7557_v16 = vadd.f32 %v7556_v23, %v7543_v5 }
 0x5e0   :  { %v7545_v6 = vpop.f32.mrf.mxu0 }
 0x5e6   :  { %v7558_v51 = vpop.f32.mrf.mxu1 }
 0x5ee   :  { %v7569_v9 = vpop.f32.mrf.mxu2 }
 0x5ef   :  { %v7570_v54 = vadd.f32 %v7569_v9, %v7557_v16 }
 0x5f4   :  { %v7582_v41 = vpop.f32.mrf.mxu3 }
 0x5f5   :  { %v7583_v47 = vadd.f32 %v7582_v41, %v7570_v54 }
 0x5f6   :  { %v7571_v63 = vpop.f32.mrf.mxu2 }
 0x5f7   :  { %v7586_v29 = vadd.f32 %v7583_v47, %v7269_v48 }
 0x5f8   :  { %v7860_v33 = vpop.f32.mrf.mxu0 }
 0x5fc   :  { %v7584_v43 = vpop.f32.mrf.mxu3 }
 0x5fe   :  { %v7873_v4 = vpop.f32.mrf.mxu1 }
 0x5ff   :  { %v7874_v50 = vadd.f32 %v7873_v4, %v7860_v33 }
 0x600   :  { %v7862_v52 = vpop.f32.mrf.mxu0 }
 0x606   :  { %v7875_v59 = vpop.f32.mrf.mxu1 }
 0x60e   :  { %v7886_v62 = vpop.f32.mrf.mxu2 }
 0x60f   :  { %v7887_v13 = vadd.f32 %v7886_v62, %v7874_v50 }
 0x614   :  { %v7899_v25 = vpop.f32.mrf.mxu3 }
 0x615   :  { %v7900_v45 = vadd.f32 %v7899_v25, %v7887_v13 }
 0x616   :  { %v7888_v58 = vpop.f32.mrf.mxu2 }
 0x617   :  { %v7903_v38 = vadd.f32 %v7900_v45, %v7586_v29 }
 0x619   :  { %7904 = vst [vmem:[%s17068_s9] sm:$0xff] %v7903_v38 }
 0x61c   :  { %v7901_v56 = vpop.f32.mrf.mxu3 }
 0x61d   :  { %7909 = vsyncpa [#allocation4], 1 }
 0x61e   :  { %7910 = vsyncpa [#allocation6], 1 }

</bundles_post_ra>
